<compile_context>
chip_gen: v6e
topology: v6e:2x2x1
jax: 0.10.0
libtpu: 0.0.40
codegen_flags: <defaults>
</compile_context>

<pallas_src>
import jax
import jax.numpy as jnp
from jax import lax
from jax.experimental import pallas as pl
from jax.experimental.pallas import tpu as pltpu


# --------------------------------------------------------------------------
# Pallas kernel: TB batch samples per grid step, all GEMMs / LRN / ReLU fused.
# --------------------------------------------------------------------------
def _lee_kernel(xin_ref, wA_ref, bA_ref, m1_ref, m2_ref,
                r0w1_ref, r0b1_ref, r0w2_ref, r0b2_ref,
                r1w1_ref, r1b1_ref, r1w2_ref, r1b2_ref,
                cw1_ref, cb1_ref, cw2_ref, cb2_ref, cw3_ref, cb3_ref,
                out_ref):
    f32 = jnp.float32
    bf16 = jnp.bfloat16
    TB, N, K = xin_ref.shape

    def mm(a, w_ref, b_ref):
        # bf16 operands on the MXU, f32 accumulation, f32 bias add.
        return (jnp.dot(a.astype(bf16), w_ref[...],
                        preferred_element_type=f32) + b_ref[...])

    def relu(v):
        return jnp.maximum(v, 0.0)

    def lrn(v, mask_t_ref, size):
        # PyTorch LocalResponseNorm: x / (k + alpha/size * sum_window(x^2))^beta
        # with k=1, alpha=1e-4, beta=0.75.  Window sum == band-mask GEMM.
        sq = (v * v).astype(bf16)                  # square in f32, cast result
        ssum = jnp.dot(sq, mask_t_ref[...], preferred_element_type=f32)
        base = 1.0 + (1e-4 / size) * ssum
        return v * jnp.exp(-0.75 * jnp.log(base))  # EUP exp/log for ^0.75

    # (TB, N, K) bf16 -> (TB*N, K) GEMM slab (lane dim untouched, N % 8 == 0).
    feats = xin_ref[...].reshape(TB * N, K)

    # inception: both Conv3d branches fused into one block-diagonal GEMM; the
    # 1x1 branch lives in the centre-tap rows of the right 128 output columns.
    x = mm(feats, wA_ref, bA_ref)                  # (TB*N, 256)
    x = relu(lrn(x, m1_ref, 256.0))                # relu(lrn1(x))

    # residual block 0 (no skip connection in the reference forward)
    x = mm(relu(mm(x, r0w1_ref, r0b1_ref)), r0w2_ref, r0b2_ref)   # (TB*N, 128)
    x = relu(lrn(x, m2_ref, 128.0))                # relu(lrn2(x))

    # residual block 1 with skip: relu(x + block(x))
    bx = mm(relu(mm(x, r1w1_ref, r1b1_ref)), r1w2_ref, r1b2_ref)
    x = relu(x + bx)

    # classifier (dropout == identity in eval mode; double relu == relu)
    x = relu(mm(x, cw1_ref, cb1_ref))
    x = relu(mm(x, cw2_ref, cb2_ref))

    # adaptive_avg_pool2d hoisted before the last 128 -> num_classes GEMM
    # (exact by linearity): per-sample spatial mean, then a tiny GEMM.
    m = jnp.mean(x.reshape(TB, N, x.shape[-1]), axis=1)    # (TB, 128)
    out_ref[...] = (jnp.dot(m.astype(bf16), cw3_ref[...],
                            preferred_element_type=f32) + cb3_ref[...])


# --------------------------------------------------------------------------
# Parameters (deterministic, synthetic; biases zero like the module init)
# --------------------------------------------------------------------------
def init_params(key, input_channels, num_classes):
    Cin = input_channels
    ks = jax.random.split(key, 9)

    def w(k, shape, fan_in):
        return (jax.random.normal(k, shape, jnp.float32) /
                jnp.sqrt(jnp.float32(fan_in)))

    p = {}
    # conv_3x3 weight stored directly in GEMM layout ((kh,kw,c) -> oc)
    p["w3g"] = w(ks[0], (9 * Cin, 128), 9 * Cin)
    p["b3"] = jnp.zeros((128,), jnp.float32)
    # conv_1x1 weight in GEMM layout (c -> oc)
    p["w1g"] = w(ks[1], (Cin, 128), Cin)
    p["b1"] = jnp.zeros((128,), jnp.float32)
    # residual block 0: 256->128->128
    p["r0w1"] = w(ks[2], (256, 128), 256); p["r0b1"] = jnp.zeros((128,), jnp.float32)
    p["r0w2"] = w(ks[3], (128, 128), 128); p["r0b2"] = jnp.zeros((128,), jnp.float32)
    # residual block 1: 128->128->128
    p["r1w1"] = w(ks[4], (128, 128), 128); p["r1b1"] = jnp.zeros((128,), jnp.float32)
    p["r1w2"] = w(ks[5], (128, 128), 128); p["r1b2"] = jnp.zeros((128,), jnp.float32)
    # classifier: 128->128->128->num_classes (all 1x1 convs)
    p["cw1"] = w(ks[6], (128, 128), 128); p["cb1"] = jnp.zeros((128,), jnp.float32)
    p["cw2"] = w(ks[7], (128, 128), 128); p["cb2"] = jnp.zeros((128,), jnp.float32)
    p["cw3"] = w(ks[8], (128, num_classes), 128)
    p["cb3"] = jnp.zeros((num_classes,), jnp.float32)
    return p


def _lrn_mask_t(C, size):
    # mask[c, j] = 1 iff channel j is in the LRN window of channel c
    # (PyTorch window: [c - size//2, c + (size-1)//2], zero padded).
    c = jnp.arange(C)
    m = ((c[None, :] >= c[:, None] - size // 2) &
         (c[None, :] <= c[:, None] + (size - 1) // 2)).astype(jnp.float32)
    return m.T  # (j, c) so the kernel can do  sq @ maskT


# --------------------------------------------------------------------------
# Wrapper: im2col / layout glue + pallas_call
# --------------------------------------------------------------------------
def lee_et_al3d_forward(x5d, p, tb=8):
    B, one, Cin, H, W = x5d.shape
    assert one == 1
    N = H * W
    K = 9 * Cin
    NC = p["cw3"].shape[1]

    TB = min(tb, B)                       # samples per grid step
    B_pad = -(-B // TB) * TB              # round batch up to a multiple of TB

    # Conv3d with kernel (Cin,3,3) / stride (Cin,1,1) == 2D conv over Cin chans.
    # im2col: per spatial position, columns are [tap(0,0) chans, ..., tap(2,2)].
    x2d = x5d[:, 0]                                          # (B, Cin, H, W)
    xp = jnp.pad(x2d, ((0, 0), (0, 0), (1, 1), (1, 1)))
    shifts = [xp[:, :, kh:kh + H, kw:kw + W]
              for kh in range(3) for kw in range(3)]         # 9 x (B, Cin, H, W)
    pat = jnp.stack(shifts, axis=1)                          # (B, 9, Cin, H, W)
    xin = jnp.transpose(pat, (0, 3, 4, 1, 2)).reshape(B, N, K)
    if B_pad != B:
        xin = jnp.pad(xin, ((0, B_pad - B), (0, 0), (0, 0)))
    xin = xin.astype(jnp.bfloat16)                           # bf16 MXU operand

    # Fuse both inception branches into one block-diagonal GEMM weight; the
    # 1x1 branch reads the centre tap (kh=kw=1) of the im2col features.
    w_comb = jnp.zeros((K, 256), jnp.float32)
    w_comb = w_comb.at[:, :128].set(p["w3g"])
    w_comb = w_comb.at[4 * Cin:5 * Cin, 128:].set(p["w1g"])
    b_comb = jnp.concatenate([p["b3"], p["b1"]])[None, :]    # (1, 256) f32

    bf = lambda a: a.astype(jnp.bfloat16)
    m1t = bf(_lrn_mask_t(256, 256))       # 0/1 masks are exact in bf16
    m2t = bf(_lrn_mask_t(128, 128))

    wargs = [bf(w_comb), b_comb, m1t, m2t,
             bf(p["r0w1"]), p["r0b1"][None], bf(p["r0w2"]), p["r0b2"][None],
             bf(p["r1w1"]), p["r1b1"][None], bf(p["r1w2"]), p["r1b2"][None],
             bf(p["cw1"]), p["cb1"][None], bf(p["cw2"]), p["cb2"][None],
             bf(p["cw3"]), p["cb3"][None]]

    def rep2d(a):
        return pl.BlockSpec(a.shape, lambda b: (0, 0))       # resident weights

    out = pl.pallas_call(
        _lee_kernel,
        out_shape=jax.ShapeDtypeStruct((B_pad, NC), jnp.float32),
        grid=(B_pad // TB,),
        in_specs=[pl.BlockSpec((TB, N, K), lambda b: (b, 0, 0))]
                 + [rep2d(a) for a in wargs],
        out_specs=pl.BlockSpec((TB, NC), lambda b: (b, 0)),
        compiler_params=pltpu.CompilerParams(
            dimension_semantics=("parallel",),
            vmem_limit_bytes=32 * 1024 * 1024),
    )(xin, *wargs)
    return out[:B]                                           # (B, num_classes)


# --------------------------------------------------------------------------
# Pure-JAX reference (NCHW, mirrors the PyTorch forward) for validation
# --------------------------------------------------------------------------
def reference_forward(x5d, p):
    B, _, Cin, H, W = x5d.shape
    hp = lax.Precision.HIGHEST
    x2d = x5d[:, 0]                                          # (B, Cin, H, W)

    w3 = jnp.transpose(p["w3g"].reshape(3, 3, Cin, 128), (3, 2, 0, 1))  # OIHW
    y3 = lax.conv_general_dilated(
        x2d, w3, window_strides=(1, 1), padding=((1, 1), (1, 1)),
        dimension_numbers=("NCHW", "OIHW", "NCHW"), precision=hp)
    y3 = y3 + p["b3"].reshape(1, 128, 1, 1)
    y1 = jnp.einsum("bdhw,do->bohw", x2d, p["w1g"], precision=hp)
    y1 = y1 + p["b1"].reshape(1, 128, 1, 1)
    x = jnp.concatenate([y3, y1], axis=1)                    # (B, 256, H, W)

    def lrn(v, size):
        C = v.shape[1]
        c = jnp.arange(C)
        mask = ((c[None, :] >= c[:, None] - size // 2) &
                (c[None, :] <= c[:, None] + (size - 1) // 2)).astype(v.dtype)
        ssum = jnp.einsum("cj,bjhw->bchw", mask, v * v, precision=hp)
        return v / jnp.power(1.0 + (1e-4 / size) * ssum, 0.75)

    def conv1x1(v, w, b):
        return jnp.einsum("bchw,co->bohw", v, w, precision=hp) + b.reshape(1, -1, 1, 1)

    relu = jax.nn.relu
    x = relu(lrn(x, 256))
    x = conv1x1(relu(conv1x1(x, p["r0w1"], p["r0b1"])), p["r0w2"], p["r0b2"])
    x = relu(lrn(x, 128))
    bx = conv1x1(relu(conv1x1(x, p["r1w1"], p["r1b1"])), p["r1w2"], p["r1b2"])
    x = relu(x + bx)
    x = relu(conv1x1(x, p["cw1"], p["cb1"]))
    x = relu(conv1x1(x, p["cw2"], p["cb2"]))
    x = conv1x1(x, p["cw3"], p["cb3"])
    return jnp.mean(x, axis=(2, 3))                          # (B, num_classes)


if __name__ == "__main__":
    import numpy as np

    B, Cin, H, W = 16, 8, 8, 8
    num_classes = 10

    key = jax.random.PRNGKey(0)
    kx, kp = jax.random.split(key)
    x = jax.random.normal(kx, (B, 1, Cin, H, W), jnp.float32)
    params = init_params(kp, Cin, num_classes)

    fwd = jax.jit(lee_et_al3d_forward)
    out = jax.block_until_ready(fwd(x, params))
    ref = jax.block_until_ready(reference_forward(x, params))

    assert out.shape == (B, num_classes)
    # bf16 MXU operands vs f32 reference -> relaxed (but meaningful) tolerance.
    np.testing.assert_allclose(np.asarray(out), np.asarray(ref),
                               rtol=2e-2, atol=2e-2)
    print("KERNEL_OK")
</pallas_src>

<mosaic_0001>
module attributes {stable_mosaic.version = 11 : i64} {
  func.func @_lee_kernel(%arg0: i32, %arg1: memref<8x64x72xbf16, #tpu.memory_space<vmem>>, %arg2: memref<72x256xbf16, #tpu.memory_space<vmem>>, %arg3: memref<1x256xf32, #tpu.memory_space<vmem>>, %arg4: memref<256x256xbf16, #tpu.memory_space<vmem>>, %arg5: memref<128x128xbf16, #tpu.memory_space<vmem>>, %arg6: memref<256x128xbf16, #tpu.memory_space<vmem>>, %arg7: memref<1x128xf32, #tpu.memory_space<vmem>>, %arg8: memref<128x128xbf16, #tpu.memory_space<vmem>>, %arg9: memref<1x128xf32, #tpu.memory_space<vmem>>, %arg10: memref<128x128xbf16, #tpu.memory_space<vmem>>, %arg11: memref<1x128xf32, #tpu.memory_space<vmem>>, %arg12: memref<128x128xbf16, #tpu.memory_space<vmem>>, %arg13: memref<1x128xf32, #tpu.memory_space<vmem>>, %arg14: memref<128x128xbf16, #tpu.memory_space<vmem>>, %arg15: memref<1x128xf32, #tpu.memory_space<vmem>>, %arg16: memref<128x128xbf16, #tpu.memory_space<vmem>>, %arg17: memref<1x128xf32, #tpu.memory_space<vmem>>, %arg18: memref<128x10xbf16, #tpu.memory_space<vmem>>, %arg19: memref<1x10xf32, #tpu.memory_space<vmem>>, %arg20: memref<8x10xf32, #tpu.memory_space<vmem>>) attributes {dimension_semantics = [#tpu.dimension_semantics<parallel>], iteration_bounds = array<i64: 2>, scalar_prefetch = 0 : i64, scratch_operands = 0 : i64, tpu.core_type = #tpu.core_type<tc>, window_params = [{transform_indices = @transform_0, window_bounds = array<i64: 8, 64, 72>}, {pipeline_mode = #tpu.pipeline_mode<synchronous>, transform_indices = @transform_1, window_bounds = array<i64: 72, 256>}, {pipeline_mode = #tpu.pipeline_mode<synchronous>, transform_indices = @transform_2, window_bounds = array<i64: 1, 256>}, {pipeline_mode = #tpu.pipeline_mode<synchronous>, transform_indices = @transform_3, window_bounds = array<i64: 256, 256>}, {pipeline_mode = #tpu.pipeline_mode<synchronous>, transform_indices = @transform_4, window_bounds = array<i64: 128, 128>}, {pipeline_mode = #tpu.pipeline_mode<synchronous>, transform_indices = @transform_5, window_bounds = array<i64: 256, 128>}, {pipeline_mode = #tpu.pipeline_mode<synchronous>, transform_indices = @transform_6, window_bounds = array<i64: 1, 128>}, {pipeline_mode = #tpu.pipeline_mode<synchronous>, transform_indices = @transform_7, window_bounds = array<i64: 128, 128>}, {pipeline_mode = #tpu.pipeline_mode<synchronous>, transform_indices = @transform_8, window_bounds = array<i64: 1, 128>}, {pipeline_mode = #tpu.pipeline_mode<synchronous>, transform_indices = @transform_9, window_bounds = array<i64: 128, 128>}, {pipeline_mode = #tpu.pipeline_mode<synchronous>, transform_indices = @transform_10, window_bounds = array<i64: 1, 128>}, {pipeline_mode = #tpu.pipeline_mode<synchronous>, transform_indices = @transform_11, window_bounds = array<i64: 128, 128>}, {pipeline_mode = #tpu.pipeline_mode<synchronous>, transform_indices = @transform_12, window_bounds = array<i64: 1, 128>}, {pipeline_mode = #tpu.pipeline_mode<synchronous>, transform_indices = @transform_13, window_bounds = array<i64: 128, 128>}, {pipeline_mode = #tpu.pipeline_mode<synchronous>, transform_indices = @transform_14, window_bounds = array<i64: 1, 128>}, {pipeline_mode = #tpu.pipeline_mode<synchronous>, transform_indices = @transform_15, window_bounds = array<i64: 128, 128>}, {pipeline_mode = #tpu.pipeline_mode<synchronous>, transform_indices = @transform_16, window_bounds = array<i64: 1, 128>}, {pipeline_mode = #tpu.pipeline_mode<synchronous>, transform_indices = @transform_17, window_bounds = array<i64: 128, 10>}, {pipeline_mode = #tpu.pipeline_mode<synchronous>, transform_indices = @transform_18, window_bounds = array<i64: 1, 10>}, {transform_indices = @transform_19, window_bounds = array<i64: 8, 10>}]} {
    %c0 = arith.constant 0 : index
    %c0_0 = arith.constant 0 : index
    %c0_1 = arith.constant 0 : index
    %0 = vector.load %arg1[%c0, %c0_0, %c0_1] : memref<8x64x72xbf16, #tpu.memory_space<vmem>>, vector<8x64x72xbf16>
    %1 = vector.shape_cast %0 : vector<8x64x72xbf16> to vector<512x72xbf16>
    %c0_2 = arith.constant 0 : index
    %c0_3 = arith.constant 0 : index
    %2 = vector.load %arg2[%c0_2, %c0_3] : memref<72x256xbf16, #tpu.memory_space<vmem>>, vector<72x256xbf16>
    %cst = arith.constant dense<0.000000e+00> : vector<512x256xf32>
    %3 = tpu.matmul %1, %2, %cst {dimension_numbers = #tpu.dot_dimension_numbers<[1], [0], [0], [1], [0, 0, 1, 1], [], []>} : vector<512x72xbf16>, vector<72x256xbf16>, vector<512x256xf32> -> vector<512x256xf32>
    %c0_4 = arith.constant 0 : index
    %c0_5 = arith.constant 0 : index
    %4 = vector.load %arg3[%c0_4, %c0_5] : memref<1x256xf32, #tpu.memory_space<vmem>>, vector<1x256xf32>
    %5 = vector.broadcast %4 : vector<1x256xf32> to vector<512x256xf32>
    %6 = arith.addf %3, %5 : vector<512x256xf32>
    %7 = arith.mulf %6, %6 : vector<512x256xf32>
    %8 = arith.truncf %7 : vector<512x256xf32> to vector<512x256xbf16>
    %c0_6 = arith.constant 0 : index
    %c0_7 = arith.constant 0 : index
    %9 = vector.load %arg4[%c0_6, %c0_7] : memref<256x256xbf16, #tpu.memory_space<vmem>>, vector<256x256xbf16>
    %cst_8 = arith.constant dense<0.000000e+00> : vector<512x256xf32>
    %10 = tpu.matmul %8, %9, %cst_8 {dimension_numbers = #tpu.dot_dimension_numbers<[1], [0], [0], [1], [0, 0, 1, 1], [], []>} : vector<512x256xbf16>, vector<256x256xbf16>, vector<512x256xf32> -> vector<512x256xf32>
    %cst_9 = arith.constant 3.906250e-07 : f32
    %11 = vector.broadcast %cst_9 : f32 to vector<512x256xf32>
    %12 = arith.mulf %11, %10 : vector<512x256xf32>
    %cst_10 = arith.constant 1.000000e+00 : f32
    %13 = vector.broadcast %cst_10 : f32 to vector<512x256xf32>
    %14 = arith.addf %13, %12 : vector<512x256xf32>
    %15 = math.log %14 : vector<512x256xf32>
    %cst_11 = arith.constant -7.500000e-01 : f32
    %16 = vector.broadcast %cst_11 : f32 to vector<512x256xf32>
    %17 = arith.mulf %16, %15 : vector<512x256xf32>
    %18 = math.exp %17 : vector<512x256xf32>
    %19 = arith.mulf %6, %18 : vector<512x256xf32>
    %cst_12 = arith.constant 0.000000e+00 : f32
    %20 = vector.broadcast %cst_12 : f32 to vector<512x256xf32>
    %21 = arith.maximumf %19, %20 : vector<512x256xf32>
    %22 = arith.truncf %21 : vector<512x256xf32> to vector<512x256xbf16>
    %c0_13 = arith.constant 0 : index
    %c0_14 = arith.constant 0 : index
    %23 = vector.load %arg6[%c0_13, %c0_14] : memref<256x128xbf16, #tpu.memory_space<vmem>>, vector<256x128xbf16>
    %cst_15 = arith.constant dense<0.000000e+00> : vector<512x128xf32>
    %24 = tpu.matmul %22, %23, %cst_15 {dimension_numbers = #tpu.dot_dimension_numbers<[1], [0], [0], [1], [0, 0, 1, 1], [], []>} : vector<512x256xbf16>, vector<256x128xbf16>, vector<512x128xf32> -> vector<512x128xf32>
    %c0_16 = arith.constant 0 : index
    %c0_17 = arith.constant 0 : index
    %25 = vector.load %arg7[%c0_16, %c0_17] : memref<1x128xf32, #tpu.memory_space<vmem>>, vector<1x128xf32>
    %26 = vector.broadcast %25 : vector<1x128xf32> to vector<512x128xf32>
    %27 = arith.addf %24, %26 : vector<512x128xf32>
    %cst_18 = arith.constant 0.000000e+00 : f32
    %28 = vector.broadcast %cst_18 : f32 to vector<512x128xf32>
    %29 = arith.maximumf %27, %28 : vector<512x128xf32>
    %30 = arith.truncf %29 : vector<512x128xf32> to vector<512x128xbf16>
    %c0_19 = arith.constant 0 : index
    %c0_20 = arith.constant 0 : index
    %31 = vector.load %arg8[%c0_19, %c0_20] : memref<128x128xbf16, #tpu.memory_space<vmem>>, vector<128x128xbf16>
    %cst_21 = arith.constant dense<0.000000e+00> : vector<512x128xf32>
    %32 = tpu.matmul %30, %31, %cst_21 {dimension_numbers = #tpu.dot_dimension_numbers<[1], [0], [0], [1], [0, 0, 1, 1], [], []>} : vector<512x128xbf16>, vector<128x128xbf16>, vector<512x128xf32> -> vector<512x128xf32>
    %c0_22 = arith.constant 0 : index
    %c0_23 = arith.constant 0 : index
    %33 = vector.load %arg9[%c0_22, %c0_23] : memref<1x128xf32, #tpu.memory_space<vmem>>, vector<1x128xf32>
    %34 = vector.broadcast %33 : vector<1x128xf32> to vector<512x128xf32>
    %35 = arith.addf %32, %34 : vector<512x128xf32>
    %36 = arith.mulf %35, %35 : vector<512x128xf32>
    %37 = arith.truncf %36 : vector<512x128xf32> to vector<512x128xbf16>
    %c0_24 = arith.constant 0 : index
    %c0_25 = arith.constant 0 : index
    %38 = vector.load %arg5[%c0_24, %c0_25] : memref<128x128xbf16, #tpu.memory_space<vmem>>, vector<128x128xbf16>
    %cst_26 = arith.constant dense<0.000000e+00> : vector<512x128xf32>
    %39 = tpu.matmul %37, %38, %cst_26 {dimension_numbers = #tpu.dot_dimension_numbers<[1], [0], [0], [1], [0, 0, 1, 1], [], []>} : vector<512x128xbf16>, vector<128x128xbf16>, vector<512x128xf32> -> vector<512x128xf32>
    %cst_27 = arith.constant 7.812500e-07 : f32
    %40 = vector.broadcast %cst_27 : f32 to vector<512x128xf32>
    %41 = arith.mulf %40, %39 : vector<512x128xf32>
    %cst_28 = arith.constant 1.000000e+00 : f32
    %42 = vector.broadcast %cst_28 : f32 to vector<512x128xf32>
    %43 = arith.addf %42, %41 : vector<512x128xf32>
    %44 = math.log %43 : vector<512x128xf32>
    %cst_29 = arith.constant -7.500000e-01 : f32
    %45 = vector.broadcast %cst_29 : f32 to vector<512x128xf32>
    %46 = arith.mulf %45, %44 : vector<512x128xf32>
    %47 = math.exp %46 : vector<512x128xf32>
    %48 = arith.mulf %35, %47 : vector<512x128xf32>
    %cst_30 = arith.constant 0.000000e+00 : f32
    %49 = vector.broadcast %cst_30 : f32 to vector<512x128xf32>
    %50 = arith.maximumf %48, %49 : vector<512x128xf32>
    %51 = arith.truncf %50 : vector<512x128xf32> to vector<512x128xbf16>
    %c0_31 = arith.constant 0 : index
    %c0_32 = arith.constant 0 : index
    %52 = vector.load %arg10[%c0_31, %c0_32] : memref<128x128xbf16, #tpu.memory_space<vmem>>, vector<128x128xbf16>
    %cst_33 = arith.constant dense<0.000000e+00> : vector<512x128xf32>
    %53 = tpu.matmul %51, %52, %cst_33 {dimension_numbers = #tpu.dot_dimension_numbers<[1], [0], [0], [1], [0, 0, 1, 1], [], []>} : vector<512x128xbf16>, vector<128x128xbf16>, vector<512x128xf32> -> vector<512x128xf32>
    %c0_34 = arith.constant 0 : index
    %c0_35 = arith.constant 0 : index
    %54 = vector.load %arg11[%c0_34, %c0_35] : memref<1x128xf32, #tpu.memory_space<vmem>>, vector<1x128xf32>
    %55 = vector.broadcast %54 : vector<1x128xf32> to vector<512x128xf32>
    %56 = arith.addf %53, %55 : vector<512x128xf32>
    %cst_36 = arith.constant 0.000000e+00 : f32
    %57 = vector.broadcast %cst_36 : f32 to vector<512x128xf32>
    %58 = arith.maximumf %56, %57 : vector<512x128xf32>
    %59 = arith.truncf %58 : vector<512x128xf32> to vector<512x128xbf16>
    %c0_37 = arith.constant 0 : index
    %c0_38 = arith.constant 0 : index
    %60 = vector.load %arg12[%c0_37, %c0_38] : memref<128x128xbf16, #tpu.memory_space<vmem>>, vector<128x128xbf16>
    %cst_39 = arith.constant dense<0.000000e+00> : vector<512x128xf32>
    %61 = tpu.matmul %59, %60, %cst_39 {dimension_numbers = #tpu.dot_dimension_numbers<[1], [0], [0], [1], [0, 0, 1, 1], [], []>} : vector<512x128xbf16>, vector<128x128xbf16>, vector<512x128xf32> -> vector<512x128xf32>
    %c0_40 = arith.constant 0 : index
    %c0_41 = arith.constant 0 : index
    %62 = vector.load %arg13[%c0_40, %c0_41] : memref<1x128xf32, #tpu.memory_space<vmem>>, vector<1x128xf32>
    %63 = vector.broadcast %62 : vector<1x128xf32> to vector<512x128xf32>
    %64 = arith.addf %61, %63 : vector<512x128xf32>
    %65 = arith.addf %50, %64 : vector<512x128xf32>
    %cst_42 = arith.constant 0.000000e+00 : f32
    %66 = vector.broadcast %cst_42 : f32 to vector<512x128xf32>
    %67 = arith.maximumf %65, %66 : vector<512x128xf32>
    %68 = arith.truncf %67 : vector<512x128xf32> to vector<512x128xbf16>
    %c0_43 = arith.constant 0 : index
    %c0_44 = arith.constant 0 : index
    %69 = vector.load %arg14[%c0_43, %c0_44] : memref<128x128xbf16, #tpu.memory_space<vmem>>, vector<128x128xbf16>
    %cst_45 = arith.constant dense<0.000000e+00> : vector<512x128xf32>
    %70 = tpu.matmul %68, %69, %cst_45 {dimension_numbers = #tpu.dot_dimension_numbers<[1], [0], [0], [1], [0, 0, 1, 1], [], []>} : vector<512x128xbf16>, vector<128x128xbf16>, vector<512x128xf32> -> vector<512x128xf32>
    %c0_46 = arith.constant 0 : index
    %c0_47 = arith.constant 0 : index
    %71 = vector.load %arg15[%c0_46, %c0_47] : memref<1x128xf32, #tpu.memory_space<vmem>>, vector<1x128xf32>
    %72 = vector.broadcast %71 : vector<1x128xf32> to vector<512x128xf32>
    %73 = arith.addf %70, %72 : vector<512x128xf32>
    %cst_48 = arith.constant 0.000000e+00 : f32
    %74 = vector.broadcast %cst_48 : f32 to vector<512x128xf32>
    %75 = arith.maximumf %73, %74 : vector<512x128xf32>
    %76 = arith.truncf %75 : vector<512x128xf32> to vector<512x128xbf16>
    %c0_49 = arith.constant 0 : index
    %c0_50 = arith.constant 0 : index
    %77 = vector.load %arg16[%c0_49, %c0_50] : memref<128x128xbf16, #tpu.memory_space<vmem>>, vector<128x128xbf16>
    %cst_51 = arith.constant dense<0.000000e+00> : vector<512x128xf32>
    %78 = tpu.matmul %76, %77, %cst_51 {dimension_numbers = #tpu.dot_dimension_numbers<[1], [0], [0], [1], [0, 0, 1, 1], [], []>} : vector<512x128xbf16>, vector<128x128xbf16>, vector<512x128xf32> -> vector<512x128xf32>
    %c0_52 = arith.constant 0 : index
    %c0_53 = arith.constant 0 : index
    %79 = vector.load %arg17[%c0_52, %c0_53] : memref<1x128xf32, #tpu.memory_space<vmem>>, vector<1x128xf32>
    %80 = vector.broadcast %79 : vector<1x128xf32> to vector<512x128xf32>
    %81 = arith.addf %78, %80 : vector<512x128xf32>
    %cst_54 = arith.constant 0.000000e+00 : f32
    %82 = vector.broadcast %cst_54 : f32 to vector<512x128xf32>
    %83 = arith.maximumf %81, %82 : vector<512x128xf32>
    %84 = vector.shape_cast %83 : vector<512x128xf32> to vector<8x64x128xf32>
    %cst_55 = arith.constant dense<0.000000e+00> : vector<8x128xf32>
    %85 = vector.multi_reduction <add>, %84, %cst_55 [1] : vector<8x64x128xf32> to vector<8x128xf32>
    %cst_56 = arith.constant 6.400000e+01 : f32
    %86 = vector.broadcast %cst_56 : f32 to vector<8x128xf32>
    %87 = arith.divf %85, %86 : vector<8x128xf32>
    %88 = arith.truncf %87 : vector<8x128xf32> to vector<8x128xbf16>
    %c0_57 = arith.constant 0 : index
    %c0_58 = arith.constant 0 : index
    %89 = vector.load %arg18[%c0_57, %c0_58] : memref<128x10xbf16, #tpu.memory_space<vmem>>, vector<128x10xbf16>
    %cst_59 = arith.constant dense<0.000000e+00> : vector<8x10xf32>
    %90 = tpu.matmul %88, %89, %cst_59 {dimension_numbers = #tpu.dot_dimension_numbers<[1], [0], [0], [1], [0, 0, 1, 1], [], []>} : vector<8x128xbf16>, vector<128x10xbf16>, vector<8x10xf32> -> vector<8x10xf32>
    %c0_60 = arith.constant 0 : index
    %c0_61 = arith.constant 0 : index
    %91 = vector.load %arg19[%c0_60, %c0_61] : memref<1x10xf32, #tpu.memory_space<vmem>>, vector<1x10xf32>
    %92 = vector.broadcast %91 : vector<1x10xf32> to vector<8x10xf32>
    %93 = arith.addf %90, %92 : vector<8x10xf32>
    %c0_62 = arith.constant 0 : index
    %c0_63 = arith.constant 0 : index
    %94 = vector.load %arg20[%c0_62, %c0_63] : memref<8x10xf32, #tpu.memory_space<vmem>>, vector<8x10xf32>
    tpu.vector_store %arg20[%c0_62, %c0_63], %93 {strides = array<i32>} : memref<8x10xf32, #tpu.memory_space<vmem>>, vector<8x10xf32>,
    return
  }
  func.func @transform_0(%arg0: i32) -> (i32, i32, i32) {
    %c0_i32 = arith.constant 0 : i32
    %c0_i32_0 = arith.constant 0 : i32
    %c0_i32_1 = arith.constant 0 : i32
    return %arg0, %c0_i32, %c0_i32_0 : i32, i32, i32
  }
  func.func @transform_1(%arg0: i32) -> (i32, i32) {
    %c0_i32 = arith.constant 0 : i32
    %c0_i32_0 = arith.constant 0 : i32
    %c0_i32_1 = arith.constant 0 : i32
    return %c0_i32, %c0_i32_0 : i32, i32
  }
  func.func @transform_2(%arg0: i32) -> (i32, i32) {
    %c0_i32 = arith.constant 0 : i32
    %c0_i32_0 = arith.constant 0 : i32
    %c0_i32_1 = arith.constant 0 : i32
    return %c0_i32, %c0_i32_0 : i32, i32
  }
  func.func @transform_3(%arg0: i32) -> (i32, i32) {
    %c0_i32 = arith.constant 0 : i32
    %c0_i32_0 = arith.constant 0 : i32
    %c0_i32_1 = arith.constant 0 : i32
    return %c0_i32, %c0_i32_0 : i32, i32
  }
  func.func @transform_4(%arg0: i32) -> (i32, i32) {
    %c0_i32 = arith.constant 0 : i32
    %c0_i32_0 = arith.constant 0 : i32
    %c0_i32_1 = arith.constant 0 : i32
    return %c0_i32, %c0_i32_0 : i32, i32
  }
  func.func @transform_5(%arg0: i32) -> (i32, i32) {
    %c0_i32 = arith.constant 0 : i32
    %c0_i32_0 = arith.constant 0 : i32
    %c0_i32_1 = arith.constant 0 : i32
    return %c0_i32, %c0_i32_0 : i32, i32
  }
  func.func @transform_6(%arg0: i32) -> (i32, i32) {
    %c0_i32 = arith.constant 0 : i32
    %c0_i32_0 = arith.constant 0 : i32
    %c0_i32_1 = arith.constant 0 : i32
    return %c0_i32, %c0_i32_0 : i32, i32
  }
  func.func @transform_7(%arg0: i32) -> (i32, i32) {
    %c0_i32 = arith.constant 0 : i32
    %c0_i32_0 = arith.constant 0 : i32
    %c0_i32_1 = arith.constant 0 : i32
    return %c0_i32, %c0_i32_0 : i32, i32
  }
  func.func @transform_8(%arg0: i32) -> (i32, i32) {
    %c0_i32 = arith.constant 0 : i32
    %c0_i32_0 = arith.constant 0 : i32
    %c0_i32_1 = arith.constant 0 : i32
    return %c0_i32, %c0_i32_0 : i32, i32
  }
  func.func @transform_9(%arg0: i32) -> (i32, i32) {
    %c0_i32 = arith.constant 0 : i32
    %c0_i32_0 = arith.constant 0 : i32
    %c0_i32_1 = arith.constant 0 : i32
    return %c0_i32, %c0_i32_0 : i32, i32
  }
  func.func @transform_10(%arg0: i32) -> (i32, i32) {
    %c0_i32 = arith.constant 0 : i32
    %c0_i32_0 = arith.constant 0 : i32
    %c0_i32_1 = arith.constant 0 : i32
    return %c0_i32, %c0_i32_0 : i32, i32
  }
  func.func @transform_11(%arg0: i32) -> (i32, i32) {
    %c0_i32 = arith.constant 0 : i32
    %c0_i32_0 = arith.constant 0 : i32
    %c0_i32_1 = arith.constant 0 : i32
    return %c0_i32, %c0_i32_0 : i32, i32
  }
  func.func @transform_12(%arg0: i32) -> (i32, i32) {
    %c0_i32 = arith.constant 0 : i32
    %c0_i32_0 = arith.constant 0 : i32
    %c0_i32_1 = arith.constant 0 : i32
    return %c0_i32, %c0_i32_0 : i32, i32
  }
  func.func @transform_13(%arg0: i32) -> (i32, i32) {
    %c0_i32 = arith.constant 0 : i32
    %c0_i32_0 = arith.constant 0 : i32
    %c0_i32_1 = arith.constant 0 : i32
    return %c0_i32, %c0_i32_0 : i32, i32
  }
  func.func @transform_14(%arg0: i32) -> (i32, i32) {
    %c0_i32 = arith.constant 0 : i32
    %c0_i32_0 = arith.constant 0 : i32
    %c0_i32_1 = arith.constant 0 : i32
    return %c0_i32, %c0_i32_0 : i32, i32
  }
  func.func @transform_15(%arg0: i32) -> (i32, i32) {
    %c0_i32 = arith.constant 0 : i32
    %c0_i32_0 = arith.constant 0 : i32
    %c0_i32_1 = arith.constant 0 : i32
    return %c0_i32, %c0_i32_0 : i32, i32
  }
  func.func @transform_16(%arg0: i32) -> (i32, i32) {
    %c0_i32 = arith.constant 0 : i32
    %c0_i32_0 = arith.constant 0 : i32
    %c0_i32_1 = arith.constant 0 : i32
    return %c0_i32, %c0_i32_0 : i32, i32
  }
  func.func @transform_17(%arg0: i32) -> (i32, i32) {
    %c0_i32 = arith.constant 0 : i32
    %c0_i32_0 = arith.constant 0 : i32
    %c0_i32_1 = arith.constant 0 : i32
    return %c0_i32, %c0_i32_0 : i32, i32
  }
  func.func @transform_18(%arg0: i32) -> (i32, i32) {
    %c0_i32 = arith.constant 0 : i32
    %c0_i32_0 = arith.constant 0 : i32
    %c0_i32_1 = arith.constant 0 : i32
    return %c0_i32, %c0_i32_0 : i32, i32
  }
  func.func @transform_19(%arg0: i32) -> (i32, i32) {
    %c0_i32 = arith.constant 0 : i32
    %c0_i32_0 = arith.constant 0 : i32
    return %arg0, %c0_i32 : i32, i32
  }
}

</mosaic_0001>

<bundles_post_ra>
// kernel: lee_et_al3d_forward.1
= control target key start
LH: loop header
LB: loop body
LE: loop exit
PB: predicated region body
PF: predicated region fallthrough
CT: control target
= control target key end

     0   :  { %s12783_s0 = inlined_call_operand.vmem [shape: bf16[16,64,72], index: 0, kind: input, shape index: {}]   ;;  %s12784_s1 = inlined_call_operand.vmem [shape: bf16[72,256], index: 1, kind: input, shape index: {}]   ;;  %s12785_s2 = inlined_call_operand.vmem [shape: f32[1,256], index: 2, kind: input, shape index: {}]   ;;  %s12786_s3 = inlined_call_operand.vmem [shape: bf16[256,256], index: 3, kind: input, shape index: {}]   ;;  %s12787_s4 = inlined_call_operand.vmem [shape: bf16[128,128], index: 4, kind: input, shape index: {}]   ;;  %s12788_s5 = inlined_call_operand.vmem [shape: bf16[256,128], index: 5, kind: input, shape index: {}]   ;;  %s12789_s6 = inlined_call_operand.vmem [shape: f32[1,128], index: 6, kind: input, shape index: {}]   ;;  %s12790_s7 = inlined_call_operand.vmem [shape: bf16[128,128], index: 7, kind: input, shape index: {}]   ;;  %s12791_s8 = inlined_call_operand.vmem [shape: f32[1,128], index: 8, kind: input, shape index: {}]   ;;  %s12792_s9 = inlined_call_operand.vmem [shape: bf16[128,128], index: 9, kind: input, shape index: {}]   ;;  %s12793_s10 = inlined_call_operand.vmem [shape: f32[1,128], index: 10, kind: input, shape index: {}]   ;;  %s12794_s11 = inlined_call_operand.vmem [shape: bf16[128,128], index: 11, kind: input, shape index: {}]   ;;  %s12795_s12 = inlined_call_operand.vmem [shape: f32[1,128], index: 12, kind: input, shape index: {}]   ;;  %s12796_s13 = inlined_call_operand.vmem [shape: bf16[128,128], index: 13, kind: input, shape index: {}]   ;;  %s12797_s14 = inlined_call_operand.vmem [shape: f32[1,128], index: 14, kind: input, shape index: {}]   ;;  %s12798_s15 = inlined_call_operand.vmem [shape: bf16[128,128], index: 15, kind: input, shape index: {}]   ;;  %s12799_s16 = inlined_call_operand.vmem [shape: f32[1,128], index: 16, kind: input, shape index: {}]   ;;  %s12800_s17 = inlined_call_operand.vmem [shape: bf16[128,10], index: 17, kind: input, shape index: {}]   ;;  %s12801_s18 = inlined_call_operand.vmem [shape: f32[1,10], index: 18, kind: input, shape index: {}]   ;;  %s12802_s19 = inlined_call_operand.hbm [shape: f32[16,10], index: 19, kind: output, shape index: {}]  }
   0x1   :  { %13026 = sst [smem:[#allocation112_spill]] %s12783_s0 }
   0x2   :  { %13027 = sst [smem:[#allocation113_spill]] %s12784_s1 }
   0x3   :  { %13028 = sst [smem:[#allocation114_spill]] %s12785_s2 }
   0x4   :  { %13029 = sst [smem:[#allocation115_spill]] %s12786_s3 }
   0x5   :  { %13030 = sst [smem:[#allocation116_spill]] %s12787_s4 }
   0x6   :  { %13031 = sst [smem:[#allocation117_spill]] %s12802_s19 }
   0x7   :  { %24 = vsyncpa [#allocation3], 0 }
   0x8   :  { %26 = vsyncpa [#allocation3 + $0x1], 0  ;;  %s9530_s0 = smov 0   ;;  %s9532_s30 = smov 0  }
   0x9   :  { %s9534_s20 = smov 0   ;;  %s9536_s21 = smov 0  }
   0xa LB: > { %13032 = sst [smem:[#allocation5_spill]] %s9412_s0  ;;  %s9551_s1 = sadd.s32 4294967295, %s9424_s21   ;;  %s9424_s21 = sphi %s9536_s21, %s13415_s21   ;;  %s9420_s20 = sphi %s9534_s20, %s13417_s20   ;;  %s9416_s30 = sphi %s9532_s30, %s13419_s30   ;;  %s9412_s0 = sphi %s9530_s0, %s13418_s0  }
   0xb   : > { %13033 = sst [smem:[#allocation6_spill]] %s9420_s20  ;;  %s7439_s22 = sadd.s32 4294967294, %s9424_s21  }
   0xc   : > { %13034 = sst [smem:[#allocation7_spill]] %s9424_s21  ;;  %s9555_s2 = sadd.s32 1, %s9424_s21  }
   0xd   : > { %13035 = sst [smem:[#allocation8_spill]] %s9555_s2  ;;  %s443_s23 = sadd.s32 1, %s9420_s20 }
   0xe   : > { %s440_s24 = ssub.s32 %s9424_s21, %s9555_s2  ;;  %p453_p0 = scmp.ne.s32.totalorder %s9420_s20, %s9416_s30 }
   0xf   : > { %p441_p1 = scmp.eq.s32.totalorder %s440_s24, 0  ;;  %p454_p2 = scmp.eq.s32.totalorder %s9551_s1, 1 }
  0x10   : > { %p459_p3 = scmp.ne.s32.totalorder %s9416_s30, %s9412_s0  ;;  %p460_p4 = scmp.eq.s32.totalorder %s7439_s22, 1 }
  0x11   : > { %s9566_s25 = scalar_select %p441_p1, %s9420_s20, %s443_s23  }
  0x12   : > { %p9568_p5 = por %p454_p2, %p453_p0  ;;  %p9572_p6 = por %p460_p4, %p459_p3 }
  0x13   : > { %13036 = sst [smem:[#allocation9_spill]] %s9566_s25  ;;  %p7442_p7 = scmp.ge.s32.totalorder %s9424_s21, 1 }
  0x14   : > { %s13038_s26 = scalar_select %p9572_p6, 1, 0 }
  0x15   : > { %p542_p8 = scmp.lt.s32.totalorder %s9424_s21, 3 }
  0x16   : > { %13039 = sst [smem:[#allocation10_spill]] %s13038_s26 }
  0x17   : > { %p543_p9 = pnand %p7442_p7, %p542_p8 }
  0x19   : > { %546 = sbr.rel (%p543_p9) target bundleno = 2526 (0x9de), region = 96 }
  0x1e   : > { %s13040_s29 = sld [smem:[#allocation113_spill]]  ;;  %vm994_vm0 = vcmask 1043456   ;;  %s7444_s22 = sshll.u32 %s9551_s1, 3  ;;  %v12812_v4 = vmov 0   ;;  %vm897_vm1 = vcmask 588800   ;;  %v8509_v51 = vld [vmem:[%s12788_s5 + $0x38] sm:$0xff]  }
  0x1f   : > { %1033 = vmatprep.mubr.bf16.mxu0 %v12812_v4  ;;  %p600_p10 = scmp.lt.s32.totalorder %s7444_s22, 15  ;;  %s13041_s26 = sld [smem:[#allocation112_spill]]  ;;  %v8519_v58 = vld [vmem:[%s12788_s5 + $0x30] sm:$0xff]   ;;  %v8522_v61 = vld [vmem:[%s12788_s5 + $0x28] sm:$0xff]   ;;  %vm7260_vm2 = vcmask 1041409   ;;  %vm7262_vm3 = vcmask 1042434  }
  0x20   : > { %s13042_s24 = sld [smem:[#allocation115_spill]]  ;;  %vm7264_vm4 = vcmask 1043459   ;;  %vm9428_vm5 = vmmov 0   ;;  %vm7266_vm6 = vcmask 1044484   ;;  %vm7268_vm7 = vcmask 1045509  }
  0x21   : > { %s13421_s22 = smov (!%p600_p10, %s7444_s22), 15  ;;  %s13043_s25 = sld [smem:[#allocation114_spill]]  ;;  %vm7270_vm8 = vcmask 1046534   ;;  %vm7272_vm9 = vcmask 1047559   ;;  %vm7364_vm10 = vcmask 80896  }
  0x22   : > { %s7637_s2 = sshll.u32 %s13421_s22, 5  ;;  %s13248_s4 = sld [smem:[#allocation116_spill]] }
  0x24   : > { %v679_v0 = vld [vmem:[%s13040_s29 + $0x40] sm:$0xff]  ;;  %v8431_v3 = vld [vmem:[%s13040_s29 + $0x34] ss:$8 sps:$4 sm:$0xff]   ;;  %v8433_v6 = vld [vmem:[%s13040_s29 + $0x30] ss:$8 sps:$4 sm:$0xff]  }
  0x25   : > { %v7488_v1 = vcombine.high %v679_v0, %v679_v0  ;;  %v7487_v2 = vcombine.low %v679_v0, %v679_v0  ;;  %v8434_v7 = vld [vmem:[%s13040_s29 + $0x24] ss:$8 sps:$4 sm:$0xff]   ;;  %s9595_s0 = scalar_lea.vmem %s13041_s26, %s7637_s2  ;;  %v8436_v8 = vld [vmem:[%s13040_s29 + $0x20] ss:$8 sps:$4 sm:$0xff]   ;;  %v8437_v9 = vld [vmem:[%s13040_s29 + $0x14] ss:$8 sps:$4 sm:$0xff]  }
  0x26   : > { %v8439_v10 = vld [vmem:[%s13040_s29 + $0x10] ss:$8 sps:$4 sm:$0xff]   ;;  %v8440_v11 = vld [vmem:[%s13040_s29 + $0x4] ss:$8 sps:$4 sm:$0xff]   ;;  %v8442_v12 = vld [vmem:[%s13040_s29] ss:$8 sps:$4 sm:$0xff]  }
  0x27   : > { %7489 = vmatprep.subr.msk.bf16.mxu0 %vm994_vm0, %v7488_v1  ;;  %v996_v5 = vsel %vm994_vm0, %v7487_v2, 0  ;;  %v8443_v13 = vld [vmem:[%s9595_s0] sm:$0xff]   ;;  %v8444_v14 = vld [vmem:[%s9595_s0 + $0x8] sm:$0xff]   ;;  %v8461_v15 = vld [vmem:[%s13042_s24 + $0x74] ss:$8 sps:$4 sm:$0xff]   ;;  %s7634_s2 = sshll.u32 %s9551_s1, 7 }
  0x28   : > { %1008 = vmatpush1.bf16.msra.mxu0 %v996_v5  ;;  %v8463_v16 = vld [vmem:[%s13042_s24 + $0x70] ss:$8 sps:$4 sm:$0xff]   ;;  %1738 = vmatprep.subr.bf16.mxu1 %v8461_v15  ;;  %v8465_v18 = vld [vmem:[%s13042_s24 + $0x64] ss:$8 sps:$4 sm:$0xff]   ;;  %v8467_v19 = vld [vmem:[%s13042_s24 + $0x60] ss:$8 sps:$4 sm:$0xff]  }
  0x29   : > { %1009 = vmatprep.subr.bf16.mxu0 %v8431_v3  ;;  %v8445_v17 = vld [vmem:[%s9595_s0 + $0x10] sm:$0xff]   ;;  %1739 = vmatpush1.bf16.msra.mxu1 %v8463_v16  ;;  %v8446_v22 = vld [vmem:[%s9595_s0 + $0x18] sm:$0xff]   ;;  %v8472_v23 = vld [vmem:[%s13042_s24 + $0x44] ss:$8 sps:$4 sm:$0xff]  }
  0x2a   : > { %v8468_v20 = vld [vmem:[%s13042_s24 + $0x54] ss:$8 sps:$4 sm:$0xff]   ;;  %v8470_v21 = vld [vmem:[%s13042_s24 + $0x50] ss:$8 sps:$4 sm:$0xff]   ;;  %1740 = vmatprep.subr.bf16.mxu1 %v8465_v18  ;;  %v8474_v24 = vld [vmem:[%s13042_s24 + $0x40] ss:$8 sps:$4 sm:$0xff]  }
  0x2b   : > { %v8475_v25 = vld [vmem:[%s13042_s24 + $0x34] ss:$8 sps:$4 sm:$0xff]   ;;  %v8477_v26 = vld [vmem:[%s13042_s24 + $0x30] ss:$8 sps:$4 sm:$0xff]   ;;  %v8447_v27 = vld [vmem:[%s9595_s0 + $0x20] sm:$0xff]  }
  0x2c   : > { %1010 = vmatpush1.bf16.msra.mxu0 %v8433_v6  ;;  %v8479_v28 = vld [vmem:[%s13042_s24 + $0x24] ss:$8 sps:$4 sm:$0xff]   ;;  %v8481_v29 = vld [vmem:[%s13042_s24 + $0x20] ss:$8 sps:$4 sm:$0xff]   ;;  %v8482_v30 = vld [vmem:[%s13042_s24 + $0x14] ss:$8 sps:$4 sm:$0xff]  }
  0x2d   : > { %1011 = vmatprep.subr.bf16.mxu0 %v8434_v7  ;;  %1741 = vmatpush1.bf16.msra.mxu1 %v8467_v19  ;;  %v8484_v31 = vld [vmem:[%s13042_s24 + $0x10] ss:$8 sps:$4 sm:$0xff]   ;;  %v8448_v32 = vld [vmem:[%s9595_s0 + $0x28] sm:$0xff]   ;;  %v8489_v35 = vld [vmem:[%s13042_s24 + $0xf4] ss:$8 sps:$4 sm:$0xff]  }
  0x2e   : > { %1742 = vmatprep.subr.bf16.mxu1 %v8468_v20  ;;  %v8486_v33 = vld [vmem:[%s13042_s24 + $0x4] ss:$8 sps:$4 sm:$0xff]   ;;  %v8488_v34 = vld [vmem:[%s13042_s24] ss:$8 sps:$4 sm:$0xff]   ;;  %v8491_v36 = vld [vmem:[%s13042_s24 + $0xf0] ss:$8 sps:$4 sm:$0xff]  }
  0x2f   : > { %v8449_v37 = vld [vmem:[%s9595_s0 + $0x30] sm:$0xff]   ;;  %v8493_v38 = vld [vmem:[%s13042_s24 + $0xe4] ss:$8 sps:$4 sm:$0xff]   ;;  %v8495_v39 = vld [vmem:[%s13042_s24 + $0xe0] ss:$8 sps:$4 sm:$0xff]  }
  0x30   : > { %1012 = vmatpush1.bf16.msra.mxu0 %v8436_v8  ;;  %v8496_v40 = vld [vmem:[%s13042_s24 + $0xd4] ss:$8 sps:$4 sm:$0xff]   ;;  %v8498_v41 = vld [vmem:[%s13042_s24 + $0xd0] ss:$8 sps:$4 sm:$0xff]   ;;  %v8500_v43 = vld [vmem:[%s13042_s24 + $0xc4] ss:$8 sps:$4 sm:$0xff]  }
  0x31   : > { %1013 = vmatprep.subr.bf16.mxu0 %v8437_v9  ;;  %1743 = vmatpush1.bf16.msra.mxu1 %v8470_v21  ;;  %v8450_v42 = vld [vmem:[%s9595_s0 + $0x38] sm:$0xff]   ;;  %v8502_v44 = vld [vmem:[%s13042_s24 + $0xc0] ss:$8 sps:$4 sm:$0xff]   ;;  %v8507_v48 = vld [vmem:[%s13042_s24 + $0xa4] ss:$8 sps:$4 sm:$0xff]  }
  0x32   : > { %1744 = vmatprep.subr.bf16.mxu1 %v8472_v23  ;;  %v8503_v45 = vld [vmem:[%s13042_s24 + $0xb4] ss:$8 sps:$4 sm:$0xff]   ;;  %v8451_v46 = vld [vmem:[%s9595_s0 + $0x40] sm:$0xff]   ;;  %v8505_v47 = vld [vmem:[%s13042_s24 + $0xb0] ss:$8 sps:$4 sm:$0xff]  }
  0x33   : > { %v8510_v49 = vld [vmem:[%s13042_s24 + $0xa0] ss:$8 sps:$4 sm:$0xff]   ;;  %v8511_v52 = vld [vmem:[%s13042_s24 + $0x94] ss:$8 sps:$4 sm:$0xff]   ;;  %v8513_v53 = vld [vmem:[%s13042_s24 + $0x90] ss:$8 sps:$4 sm:$0xff]  }
  0x34   : > { %1014 = vmatpush1.bf16.msra.mxu0 %v8439_v10  ;;  %v8452_v50 = vld [vmem:[%s9595_s0 + $0x48] sm:$0xff]   ;;  %v8453_v56 = vld [vmem:[%s9595_s0 + $0x50] sm:$0xff]   ;;  %v8454_v57 = vld [vmem:[%s9595_s0 + $0x58] sm:$0xff]  }
  0x35   : > { %1015 = vmatprep.subr.bf16.mxu0 %v8440_v11  ;;  %1745 = vmatpush1.bf16.msra.mxu1 %v8474_v24  ;;  %v8515_v54 = vld [vmem:[%s13042_s24 + $0x84] ss:$8 sps:$4 sm:$0xff]   ;;  %v8517_v55 = vld [vmem:[%s13042_s24 + $0x80] ss:$8 sps:$4 sm:$0xff]   ;;  %v8457_v62 = vld [vmem:[%s9595_s0 + $0x70] sm:$0xff]  }
  0x36   : > { %1746 = vmatprep.subr.bf16.mxu1 %v8475_v25  ;;  %v8455_v59 = vld [vmem:[%s9595_s0 + $0x60] sm:$0xff]   ;;  %v8456_v60 = vld [vmem:[%s9595_s0 + $0x68] sm:$0xff]   ;;  %v8458_v63 = vld [vmem:[%s9595_s0 + $0x78] sm:$0xff]  }
  0x37   : > { %v8525_v0 = vld [vmem:[%s12788_s5 + $0x20] sm:$0xff]   ;;  %v8460_v2 = vld [vmem:[%s9595_s0 + $0x88] sm:$0xff]   ;;  %v8527_v3 = vld [vmem:[%s12788_s5 + $0x18] sm:$0xff]  }
  0x38   : > { %1016 = vmatpush1.bf16.msra.mxu0 %v8442_v12  ;;  %v8459_v1 = vld [vmem:[%s9595_s0 + $0x80] sm:$0xff]   ;;  %v8464_v5 = vld [vmem:[%s9595_s0 + $0x90] sm:$0xff]   ;;  %v8471_v6 = vld [vmem:[%s9595_s0 + $0x98] sm:$0xff]  }
  0x39   : > { %3442 = vmatprep.subr.bf16.mxu0 %v12812_v4  ;;  %1747 = vmatpush1.bf16.msra.mxu1 %v8477_v26  ;;  %v8528_v7 = vld [vmem:[%s12788_s5 + $0x10] sm:$0xff]   ;;  %v8478_v8 = vld [vmem:[%s9595_s0 + $0xa0] sm:$0xff]   ;;  %v8485_v9 = vld [vmem:[%s9595_s0 + $0xa8] sm:$0xff]  }
  0x3a   : > { %1748 = vmatprep.subr.bf16.mxu1 %v8479_v28  ;;  %v8529_v10 = vld [vmem:[%s12788_s5 + $0x8] sm:$0xff]   ;;  %v8492_v11 = vld [vmem:[%s9595_s0 + $0xb0] sm:$0xff]   ;;  %v8499_v12 = vld [vmem:[%s9595_s0 + $0xb8] sm:$0xff]  }
  0x3b   : > { %7490 = vmatmul.mubr.msk.bf16.vlgmr.msra.gmra.mxu0 %vm897_vm1, %v8443_v13  ;;  %v8530_v13 = vld [vmem:[%s12788_s5] sm:$0xff]   ;;  %v8514_v25 = vld [vmem:[%s9595_s0 + $0xc8] sm:$0xff]   ;;  %v8531_v28 = vld [vmem:[%s12788_s5 + $0x78] sm:$0xff]  }
  0x3c   : > { %1043 = vmatprep.mubr.bf16.mxu0 %v12812_v4  ;;  %3443 = vmatpush1.bf16.msra.mxu0 %v8509_v51  ;;  %v8506_v16 = vld [vmem:[%s9595_s0 + $0xc0] sm:$0xff]  }
  0x3d   : > { %1749 = vmatpush1.bf16.msra.mxu1 %v8481_v29  ;;  %3444 = vmatprep.subr.bf16.mxu0 %v12812_v4  ;;  %v680_v19 = vld [vmem:[%s13043_s25] sm:$0x3]  ;;  %s596_s25 = sand.u32 1, %s9416_s30  }
  0x3e   : > { %1750 = vmatprep.subr.bf16.mxu1 %v8482_v30  ;;  %s7443_s27 = sshll.u32 %s596_s25, 3  ;;  %s7367_s20 = scalar_lea.sflag [#allocation3], %s596_s25 }
  0x3f   : > { %s598_s26 = scalar_lea.vmem [#allocation2], %s7443_s27  ;;  %s9429_s27 = smov [#allocation2]  }
  0x40   : > { %3445 = vmatpush1.bf16.msra.mxu0 %v8519_v58  ;;  %s7380_s19 = sshll.u32 %s598_s26, 4  ;;  %s9368_s22 = sshll.u32 %s9429_s27, 4  ;;  %s12744_s19 = int_to_ptr.vmem [resolvable:$true] %s7380_s19  ;;  %s9369_s22 = int_to_ptr.vmem [resolvable:$false] %s9368_s22 }
  0x41   : > { %1751 = vmatpush1.bf16.msra.mxu1 %v8484_v31  ;;  %3446 = vmatprep.subr.bf16.mxu0 %v12812_v4  ;;  %s9364_s1 = scalar_lea.vmem %s12744_s19, 128  ;;  %s9370_s21 = scalar_lea.vmem %s9369_s22, 256 }
  0x42   : > { %1752 = vmatprep.subr.bf16.mxu1 %v8486_v33  ;;  %p9365_p11 = scmp.ne.s32.totalorder %s12744_s19, %s9364_s1  ;;  %p9371_p0 = scmp.lt.s32.totalorder %s12744_s19, %s9369_s22 }
  0x43   : > { %7491 = vmatmul.mubr.msk.bf16.gmra.mxu0 %vm897_vm1, %v8444_v14  ;;  %v682_v14 = vlaneseq  ;;  %p9372_p1 = scmp.lt.s32.totalorder %s9370_s21, %s9364_s1 }
  0x44   : > { %1053 = vmatprep.mubr.bf16.mxu0 %v12812_v4  ;;  %3447 = vmatpush1.bf16.msra.mxu0 %v8522_v61  ;;  %p9366_p12 = pnand %p9365_p11, %p9568_p5 }
  0x45   : > { %1753 = vmatpush1.bf16.msra.mxu1 %v8488_v34  ;;  %3448 = vmatprep.subr.bf16.mxu0 %v12812_v4  ;;  %v683_v15 = vshrl.u32 %v682_v14, 7  ;;  %p9373_p2 = por %p9372_p1, %p9371_p0 }
  0x46   : > { %1754 = vmatprep.subr.bf16.mxu1 %v8489_v35  ;;  %p9367_p13 = pneg %p9366_p12 }
  0x47   : > { %v684_v18 = vsub.s32 0, %v683_v15 }
  0x48   : > { %3449 = vmatpush1.bf16.msra.mxu0 %v8525_v0  ;;  %p9374_p3 = pnand %p9373_p2, %p9367_p13 }
  0x49   : > { %1755 = vmatpush2.bf16.msra.mxu1 %v8491_v36  ;;  %3450 = vmatprep.subr.bf16.mxu0 %v12812_v4 }
  0x4a   : > { %1756 = vmatprep.subr.bf16.mxu1 %v8493_v38 }
  0x4b   : > { %7492 = vmatmul.mubr.msk.bf16.gmra.mxu0 %vm897_vm1, %v8445_v17  ;;  %v688_v17 = vsub.s32 1, %v683_v15 }
  0x4c   : > { %1063 = vmatprep.mubr.bf16.mxu0 %v12812_v4  ;;  %3451 = vmatpush1.bf16.msra.mxu0 %v8527_v3 }
  0x4d   : > { %1757 = vmatpush2.bf16.msra.mxu1 %v8495_v39  ;;  %3452 = vmatprep.subr.bf16.mxu0 %v12812_v4  ;;  %v9818_v21 = vrot.slane %v680_v19, %v688_v17 }
  0x4e   : > { %1758 = vmatprep.subr.bf16.mxu1 %v8496_v40 }
  0x50   : > { %3453 = vmatpush1.bf16.msra.mxu0 %v8528_v7 }
  0x51   : > { %1759 = vmatpush2.bf16.msra.mxu1 %v8498_v41  ;;  %3454 = vmatprep.subr.bf16.mxu0 %v12812_v4  ;;  %v8518_v41 = vld [vmem:[%s9595_s0 + $0xd0] sm:$0xff]  }
  0x52   : > { %1760 = vmatprep.subr.bf16.mxu1 %v8500_v43 }
  0x53   : > { %7493 = vmatmul.mubr.msk.bf16.gmra.mxu0 %vm897_vm1, %v8446_v22  ;;  %v9821_v22 = vrot.slane %v680_v19, %v684_v18 }
  0x54   : > { %1073 = vmatprep.mubr.bf16.mxu0 %v12812_v4  ;;  %3455 = vmatpush1.bf16.msra.mxu0 %v8529_v10 }
  0x55   : > { %1761 = vmatpush2.bf16.msra.mxu1 %v8502_v44  ;;  %3456 = vmatprep.subr.bf16.mxu0 %v12812_v4 }
  0x56   : > { %1762 = vmatprep.subr.bf16.mxu1 %v8503_v45 }
  0x58   : > { %3457 = vmatpush1.bf16.msra.mxu0 %v8530_v13 }
  0x59   : > { %1763 = vmatpush2.bf16.msra.mxu1 %v8505_v47  ;;  %3458 = vmatprep.subr.bf16.mxu0 %v12812_v4 }
  0x5a   : > { %1764 = vmatprep.subr.bf16.mxu1 %v8507_v48 }
  0x5b   : > { %7494 = vmatmul.mubr.msk.bf16.gmra.mxu0 %vm897_vm1, %v8447_v27 }
  0x5c   : > { %1083 = vmatprep.mubr.bf16.mxu0 %v12812_v4  ;;  %3459 = vmatpush2.bf16.msra.mxu0 %v8531_v28  ;;  %v8523_v28 = vld [vmem:[%s9595_s0 + $0xe8] sm:$0xff]  }
  0x5d   : > { %1765 = vmatpush2.bf16.msra.mxu1 %v8510_v49  ;;  %3460 = vmatprep.subr.bf16.mxu0 %v12812_v4 }
  0x5e   : > { %1766 = vmatprep.subr.bf16.mxu1 %v8511_v52 }
  0x61   : > { %1767 = vmatpush2.bf16.msra.mxu1 %v8513_v53 }
  0x62   : > { %1768 = vmatprep.subr.bf16.mxu1 %v8515_v54 }
  0x63   : > { %7495 = vmatmul.mubr.msk.bf16.gmra.mxu0 %vm897_vm1, %v8448_v32 }
  0x64   : > { %1093 = vmatprep.mubr.bf16.mxu0 %v12812_v4 }
  0x65   : > { %1769 = vmatpush2.bf16.msra.mxu1 %v8517_v55 }
  0x6b   : > { %7496 = vmatmul.mubr.msk.bf16.gmra.mxu0 %vm897_vm1, %v8449_v37 }
  0x6c   : > { %1103 = vmatprep.mubr.bf16.mxu0 %v12812_v4 }
  0x73   : > { %7497 = vmatmul.mubr.msk.bf16.gmra.mxu0 %vm897_vm1, %v8450_v42 }
  0x74   : > { %1113 = vmatprep.mubr.bf16.mxu0 %v12812_v4 }
  0x7b   : > { %7498 = vmatmul.mubr.msk.bf16.gmra.mxu0 %vm897_vm1, %v8451_v46 }
  0x7c   : > { %1123 = vmatprep.mubr.bf16.mxu0 %v12812_v4 }
  0x83   : > { %7499 = vmatmul.mubr.msk.bf16.gmra.mxu0 %vm897_vm1, %v8452_v50 }
  0x84   : > { %1133 = vmatprep.mubr.bf16.mxu0 %v12812_v4 }
  0x8b   : > { %7500 = vmatmul.mubr.msk.bf16.gmra.mxu0 %vm897_vm1, %v8453_v56  ;;  %v8520_v56 = vld [vmem:[%s9595_s0 + $0xd8] sm:$0xff]  }
  0x8c   : > { %1143 = vmatprep.mubr.bf16.mxu0 %v12812_v4 }
  0x93   : > { %7501 = vmatmul.mubr.msk.bf16.gmra.mxu0 %vm897_vm1, %v8454_v57 }
  0x94   : > { %1153 = vmatprep.mubr.bf16.mxu0 %v12812_v4 }
  0x9b   : > { %7502 = vmatmul.mubr.msk.bf16.gmra.mxu0 %vm897_vm1, %v8455_v59  ;;  %v8532_v59 = vld [vmem:[%s12788_s5 + $0x70] sm:$0xff]  }
  0x9c   : > { %1163 = vmatprep.mubr.bf16.mxu0 %v12812_v4  ;;  %3461 = vmatpush2.bf16.msra.mxu0 %v8532_v59 }
  0x9d   : > { %3462 = vmatprep.subr.bf16.mxu0 %v12812_v4 }
  0xa3   : > { %7503 = vmatmul.mubr.msk.bf16.gmra.mxu0 %vm897_vm1, %v8456_v60 }
  0xa4   : > { %1173 = vmatprep.mubr.bf16.mxu0 %v12812_v4 }
  0xab   : > { %7504 = vmatmul.mubr.msk.bf16.gmra.mxu0 %vm897_vm1, %v8457_v62 }
  0xac   : > { %1183 = vmatprep.mubr.bf16.mxu0 %v12812_v4 }
  0xb3   : > { %7505 = vmatmul.mubr.msk.bf16.gmra.mxu0 %vm897_vm1, %v8458_v63 }
  0xb4   : > { %1193 = vmatprep.mubr.bf16.mxu0 %v12812_v4 }
  0xbb   : > { %7506 = vmatmul.mubr.msk.bf16.gmra.mxu0 %vm897_vm1, %v8459_v1 }
  0xbc   : > { %1203 = vmatprep.mubr.bf16.mxu0 %v12812_v4 }
  0xc3   : > { %7507 = vmatmul.mubr.msk.bf16.gmra.mxu0 %vm897_vm1, %v8460_v2 }
  0xc4   : > { %1213 = vmatprep.mubr.bf16.mxu0 %v12812_v4 }
  0xcb   : > { %7508 = vmatmul.mubr.msk.bf16.gmra.mxu0 %vm897_vm1, %v8464_v5 }
  0xcc   : > { %1223 = vmatprep.mubr.bf16.mxu0 %v12812_v4 }
  0xd3   : > { %7509 = vmatmul.mubr.msk.bf16.gmra.mxu0 %vm897_vm1, %v8471_v6 }
  0xd4   : > { %1233 = vmatprep.mubr.bf16.mxu0 %v12812_v4 }
  0xdb   : > { %7510 = vmatmul.mubr.msk.bf16.gmra.mxu0 %vm897_vm1, %v8478_v8 }
  0xdc   : > { %1243 = vmatprep.mubr.bf16.mxu0 %v12812_v4 }
  0xe3   : > { %7511 = vmatmul.mubr.msk.bf16.gmra.mxu0 %vm897_vm1, %v8485_v9  ;;  %v8521_v9 = vld [vmem:[%s9595_s0 + $0xe0] sm:$0xff]  }
  0xe4   : > { %1253 = vmatprep.mubr.bf16.mxu0 %v12812_v4 }
  0xeb   : > { %7512 = vmatmul.mubr.msk.bf16.gmra.mxu0 %vm897_vm1, %v8492_v11 }
  0xec   : > { %1263 = vmatprep.mubr.bf16.mxu0 %v12812_v4 }
  0xf3   : > { %7513 = vmatmul.mubr.msk.bf16.gmra.mxu0 %vm897_vm1, %v8499_v12 }
  0xf4   : > { %1273 = vmatprep.mubr.bf16.mxu0 %v12812_v4 }
  0xfb   : > { %v1035_v20 = vpop.f32.mrf.mxu0  ;;  %7514 = vmatmul.mubr.msk.bf16.gmra.mxu0 %vm897_vm1, %v8506_v16 }
  0xfc   : > { %1283 = vmatprep.mubr.bf16.mxu0 %v12812_v4  ;;  %v9834_v29 = vadd.f32 %v1035_v20, %v9821_v22 }
  0xfd   : > { %v1037_v23 = vpop.f32.mrf.mxu0 }
  0xfe   : > { %v9825_v26 = vadd.f32 %v1037_v23, %v9818_v21  ;;  %v1354_v36 = vmul.f32 %v9834_v29, %v9834_v29 }
  0xff   : > { %v1039_v24 = vpop.f32.mrf.mxu0 }
 0x100   : > { %v9828_v27 = vadd.f32 %v1039_v24, %v9821_v22  ;;  %v1355_v34 = vmul.f32 %v9825_v26, %v9825_v26 }
 0x101   : > { %v1041_v30 = vpop.f32.mrf.mxu0 }
 0x102   : > { %v9837_v31 = vadd.f32 %v1041_v30, %v9818_v21  ;;  %v1356_v32 = vmul.f32 %v9828_v27, %v9828_v27 }
 0x103   : > { %v1045_v33 = vpop.f32.mrf.mxu0  ;;  %7515 = vmatmul.mubr.msk.bf16.gmra.mxu0 %vm897_vm1, %v8514_v25 }
 0x104   : > { %v1357_v35 = vmul.f32 %v9837_v31, %v9837_v31  ;;  %1293 = vmatprep.mubr.bf16.mxu0 %v12812_v4  ;;  %v1482_v40 = vpack.c.bf16 %v1356_v32, %v1354_v36  ;;  %v9858_v44 = vadd.f32 %v1045_v33, %v9821_v22  ;;  %v8533_v33 = vld [vmem:[%s12788_s5 + $0x68] sm:$0xff]  }
 0x105   : > { %v1047_v37 = vpop.f32.mrf.mxu0  ;;  %3463 = vmatpush2.bf16.msra.mxu0 %v8533_v33 }
 0x106   : > { %v1483_v38 = vpack.c.bf16 %v1357_v35, %v1355_v34  ;;  %v9852_v42 = vadd.f32 %v1047_v37, %v9818_v21  ;;  %v1358_v51 = vmul.f32 %v9858_v44, %v9858_v44  ;;  %3464 = vmatprep.subr.bf16.mxu0 %v12812_v4 }
 0x107   : > { %v1049_v39 = vpop.f32.mrf.mxu0 }
 0x108   : > { %v9855_v43 = vadd.f32 %v1049_v39, %v9821_v22  ;;  %1770 = vmatprep.mubr.bf16.mxu1 %v1483_v38  ;;  %v1359_v49 = vmul.f32 %v9852_v42, %v9852_v42 }
 0x109   : > { %v1051_v45 = vpop.f32.mrf.mxu0  ;;  %1771 = vmatmul.mubr.bf16.vlgmr.msra.gmra.mxu1 %v1482_v40 }
 0x10a   : > { %v9861_v46 = vadd.f32 %v1051_v45, %v9818_v21  ;;  %v1360_v47 = vmul.f32 %v9855_v43, %v9855_v43 }
 0x10b   : > { %v1055_v48 = vpop.f32.mrf.mxu0  ;;  %7516 = vmatmul.mubr.msk.bf16.gmra.mxu0 %vm897_vm1, %v8518_v41 }
 0x10c   : > { %v1361_v50 = vmul.f32 %v9861_v46, %v9861_v46  ;;  %1303 = vmatprep.mubr.bf16.mxu0 %v12812_v4  ;;  %v1484_v55 = vpack.c.bf16 %v1360_v47, %v1358_v51  ;;  %v9884_v60 = vadd.f32 %v1055_v48, %v9821_v22 }
 0x10d   : > { %v1057_v52 = vpop.f32.mrf.mxu0 }
 0x10e   : > { %v1485_v53 = vpack.c.bf16 %v1361_v50, %v1359_v49  ;;  %v9875_v57 = vadd.f32 %v1057_v52, %v9818_v21  ;;  %v1362_v3 = vmul.f32 %v9884_v60, %v9884_v60  ;;  %v8524_v50 = vld [vmem:[%s9595_s0 + $0xf0] sm:$0xff]  }
 0x10f   : > { %v1059_v54 = vpop.f32.mrf.mxu0 }
 0x110   : > { %v9878_v58 = vadd.f32 %v1059_v54, %v9821_v22  ;;  %1780 = vmatprep.mubr.bf16.mxu1 %v1485_v53  ;;  %v1363_v1 = vmul.f32 %v9875_v57, %v9875_v57 }
 0x111   : > { %v1061_v61 = vpop.f32.mrf.mxu0  ;;  %1781 = vmatmul.mubr.bf16.gmra.mxu1 %v1484_v55 }
 0x112   : > { %v9887_v62 = vadd.f32 %v1061_v61, %v9818_v21  ;;  %v1364_v63 = vmul.f32 %v9878_v58, %v9878_v58 }
 0x113   : > { %v1065_v0 = vpop.f32.mrf.mxu0  ;;  %7517 = vmatmul.mubr.msk.bf16.gmra.mxu0 %vm897_vm1, %v8520_v56 }
 0x114   : > { %v1365_v2 = vmul.f32 %v9887_v62, %v9887_v62  ;;  %1313 = vmatprep.mubr.bf16.mxu0 %v12812_v4  ;;  %v1486_v8 = vpack.c.bf16 %v1364_v63, %v1362_v3  ;;  %v9908_v12 = vadd.f32 %v1065_v0, %v9821_v22 }
 0x115   : > { %v1067_v5 = vpop.f32.mrf.mxu0 }
 0x116   : > { %v1487_v6 = vpack.c.bf16 %v1365_v2, %v1363_v1  ;;  %v9902_v10 = vadd.f32 %v1067_v5, %v9818_v21  ;;  %v1366_v19 = vmul.f32 %v9908_v12, %v9908_v12 }
 0x117   : > { %v1069_v7 = vpop.f32.mrf.mxu0 }
 0x118   : > { %v9905_v11 = vadd.f32 %v1069_v7, %v9821_v22  ;;  %1790 = vmatprep.mubr.bf16.mxu1 %v1487_v6  ;;  %v1367_v17 = vmul.f32 %v9902_v10, %v9902_v10  ;;  %v8526_v6 = vld [vmem:[%s9595_s0 + $0xf8] sm:$0xff]   ;;  %s13410_s0 = sld [smem:[#allocation117_spill]] }
 0x119   : > { %v1071_v13 = vpop.f32.mrf.mxu0  ;;  %1791 = vmatmul.mubr.bf16.gmra.mxu1 %v1486_v8 }
 0x11a   : > { %v9911_v14 = vadd.f32 %v1071_v13, %v9818_v21  ;;  %v1368_v15 = vmul.f32 %v9905_v11, %v9905_v11 }
 0x11b   : > { %v1075_v16 = vpop.f32.mrf.mxu0  ;;  %7518 = vmatmul.mubr.msk.bf16.gmra.mxu0 %vm897_vm1, %v8521_v9  ;;  %v8534_v9 = vld [vmem:[%s12788_s5 + $0x60] sm:$0xff]  }
 0x11c   : > { %v1369_v18 = vmul.f32 %v9911_v14, %v9911_v14  ;;  %1323 = vmatprep.mubr.bf16.mxu0 %v12812_v4  ;;  %v1488_v25 = vpack.c.bf16 %v1368_v15, %v1366_v19  ;;  %v9934_v34 = vadd.f32 %v1075_v16, %v9821_v22  ;;  %3465 = vmatpush2.bf16.msra.mxu0 %v8534_v9 }
 0x11d   : > { %v1077_v20 = vpop.f32.mrf.mxu0  ;;  %3466 = vmatprep.subr.bf16.mxu0 %v12812_v4 }
 0x11e   : > { %v1489_v23 = vpack.c.bf16 %v1369_v18, %v1367_v17  ;;  %v9925_v30 = vadd.f32 %v1077_v20, %v9818_v21  ;;  %v1370_v41 = vmul.f32 %v9934_v34, %v9934_v34  ;;  %s13411_s23 = smov %s13410_s0 }
 0x11f   : > { %v1079_v24 = vpop.f32.mrf.mxu0 }
 0x120   : > { %v9928_v32 = vadd.f32 %v1079_v24, %v9821_v22  ;;  %1800 = vmatprep.mubr.bf16.mxu1 %v1489_v23  ;;  %v1371_v39 = vmul.f32 %v9925_v30, %v9925_v30 }
 0x121   : > { %v1081_v35 = vpop.f32.mrf.mxu0  ;;  %1801 = vmatmul.mubr.bf16.gmra.mxu1 %v1488_v25 }
 0x122   : > { %v9937_v36 = vadd.f32 %v1081_v35, %v9818_v21  ;;  %v1372_v37 = vmul.f32 %v9928_v32, %v9928_v32 }
 0x123   : > { %v1085_v38 = vpop.f32.mrf.mxu0  ;;  %7519 = vmatmul.mubr.msk.bf16.gmra.mxu0 %vm897_vm1, %v8523_v28 }
 0x124   : > { %v1373_v40 = vmul.f32 %v9937_v36, %v9937_v36  ;;  %1333 = vmatprep.mubr.bf16.mxu0 %v12812_v4  ;;  %v1490_v49 = vpack.c.bf16 %v1372_v37, %v1370_v41  ;;  %v9958_v53 = vadd.f32 %v1085_v38, %v9821_v22 }
 0x125   : > { %v1087_v45 = vpop.f32.mrf.mxu0 }
 0x126   : > { %v1491_v47 = vpack.c.bf16 %v1373_v40, %v1371_v39  ;;  %v9952_v51 = vadd.f32 %v1087_v45, %v9818_v21  ;;  %v1374_v0 = vmul.f32 %v9958_v53, %v9958_v53 }
 0x127   : > { %v1089_v48 = vpop.f32.mrf.mxu0 }
 0x128   : > { %v9955_v52 = vadd.f32 %v1089_v48, %v9821_v22  ;;  %1810 = vmatprep.mubr.bf16.mxu1 %v1491_v47  ;;  %v1375_v61 = vmul.f32 %v9952_v51, %v9952_v51 }
 0x129   : > { %v1091_v54 = vpop.f32.mrf.mxu0  ;;  %1811 = vmatmul.mubr.bf16.gmra.mxu1 %v1490_v49 }
 0x12a   : > { %v9961_v55 = vadd.f32 %v1091_v54, %v9818_v21  ;;  %v1376_v56 = vmul.f32 %v9955_v52, %v9955_v52 }
 0x12b   : > { %v1095_v59 = vpop.f32.mrf.mxu0  ;;  %7520 = vmatmul.mubr.msk.bf16.gmra.mxu0 %vm897_vm1, %v8524_v50 }
 0x12c   : > { %v1377_v63 = vmul.f32 %v9961_v55, %v9961_v55  ;;  %1343 = vmatprep.mubr.bf16.mxu0 %v12812_v4  ;;  %v1492_v5 = vpack.c.bf16 %v1376_v56, %v1374_v0  ;;  %v9984_v13 = vadd.f32 %v1095_v59, %v9821_v22  ;;  %v8535_v0 = vld [vmem:[%s12788_s5 + $0x58] sm:$0xff]  }
 0x12d   : > { %v1097_v1 = vpop.f32.mrf.mxu0  ;;  %3467 = vmatpush2.bf16.msra.mxu0 %v8535_v0 }
 0x12e   : > { %v1493_v2 = vpack.c.bf16 %v1377_v63, %v1375_v61  ;;  %v9975_v7 = vadd.f32 %v1097_v1, %v9818_v21  ;;  %v1378_v23 = vmul.f32 %v9984_v13, %v9984_v13  ;;  %3468 = vmatprep.subr.bf16.mxu0 %v12812_v4 }
 0x12f   : > { %v1099_v3 = vpop.f32.mrf.mxu0 }
 0x130   : > { %v9978_v8 = vadd.f32 %v1099_v3, %v9821_v22  ;;  %1820 = vmatprep.mubr.bf16.mxu1 %v1493_v2  ;;  %v1379_v19 = vmul.f32 %v9975_v7, %v9975_v7 }
 0x131   : > { %v1101_v15 = vpop.f32.mrf.mxu0  ;;  %1821 = vmatmul.mubr.bf16.gmra.mxu1 %v1492_v5 }
 0x132   : > { %13044 = vst [vmem:[#allocation11_spill] sm:$0xff] %v9978_v8  ;;  %v9987_v16 = vadd.f32 %v1101_v15, %v9818_v21  ;;  %v1380_v17 = vmul.f32 %v9978_v8, %v9978_v8 }
 0x133   : > { %v1105_v18 = vpop.f32.mrf.mxu0  ;;  %7521 = vmatmul.mubr.msk.bf16.gmra.mxu0 %vm897_vm1, %v8526_v6 }
 0x134   : > { %v1381_v20 = vmul.f32 %v9987_v16, %v9987_v16  ;;  %v1494_v33 = vpack.c.bf16 %v1380_v17, %v1378_v23  ;;  %v10006_v38 = vadd.f32 %v1105_v18, %v9821_v22 }
 0x135   : > { %v1107_v24 = vpop.f32.mrf.mxu0 }
 0x136   : > { %v1495_v25 = vpack.c.bf16 %v1381_v20, %v1379_v19  ;;  %v10000_v35 = vadd.f32 %v1107_v24, %v9818_v21  ;;  %13047 = vst [vmem:[#allocation14_spill] sm:$0xff] %v10006_v38  ;;  %v1382_v49 = vmul.f32 %v10006_v38, %v10006_v38 }
 0x137   : > { %v1109_v28 = vpop.f32.mrf.mxu0 }
 0x138   : > { %13045 = vst [vmem:[#allocation12_spill] sm:$0xff] %v10000_v35  ;;  %v10003_v37 = vadd.f32 %v1109_v28, %v9821_v22  ;;  %1830 = vmatprep.mubr.bf16.mxu1 %v1495_v25  ;;  %v1383_v47 = vmul.f32 %v10000_v35, %v10000_v35 }
 0x139   : > { %v1111_v39 = vpop.f32.mrf.mxu0  ;;  %1831 = vmatmul.mubr.bf16.gmra.mxu1 %v1494_v33 }
 0x13a   : > { %13046 = vst [vmem:[#allocation13_spill] sm:$0xff] %v10003_v37  ;;  %v10009_v40 = vadd.f32 %v1111_v39, %v9818_v21  ;;  %v1384_v41 = vmul.f32 %v10003_v37, %v10003_v37 }
 0x13b   : > { %v1115_v45 = vpop.f32.mrf.mxu0 }
 0x13c   : > { %13048 = vst [vmem:[#allocation15_spill] sm:$0xff] %v10009_v40  ;;  %v1385_v48 = vmul.f32 %v10009_v40, %v10009_v40  ;;  %v1496_v59 = vpack.c.bf16 %v1384_v41, %v1382_v49  ;;  %v10029_v1 = vadd.f32 %v1115_v45, %v9821_v22 }
 0x13d   : > { %v1117_v50 = vpop.f32.mrf.mxu0 }
 0x13e   : > { %v1497_v54 = vpack.c.bf16 %v1385_v48, %v1383_v47  ;;  %v10020_v61 = vadd.f32 %v1117_v50, %v9818_v21  ;;  %13051 = vst [vmem:[#allocation18_spill] sm:$0xff] %v10029_v1  ;;  %v1386_v17 = vmul.f32 %v10029_v1, %v10029_v1 }
 0x13f   : > { %v1119_v56 = vpop.f32.mrf.mxu0 }
 0x140   : > { %13049 = vst [vmem:[#allocation16_spill] sm:$0xff] %v10020_v61  ;;  %v10023_v63 = vadd.f32 %v1119_v56, %v9821_v22  ;;  %1840 = vmatprep.mubr.bf16.mxu1 %v1497_v54  ;;  %v1387_v9 = vmul.f32 %v10020_v61, %v10020_v61 }
 0x141   : > { %v1121_v2 = vpop.f32.mrf.mxu0  ;;  %1841 = vmatmul.mubr.bf16.gmra.mxu1 %v1496_v59 }
 0x142   : > { %13050 = vst [vmem:[#allocation17_spill] sm:$0xff] %v10023_v63  ;;  %v10032_v3 = vadd.f32 %v1121_v2, %v9818_v21  ;;  %v1388_v5 = vmul.f32 %v10023_v63, %v10023_v63 }
 0x143   : > { %v1125_v6 = vpop.f32.mrf.mxu0 }
 0x144   : > { %13052 = vst [vmem:[#allocation19_spill] sm:$0xff] %v10032_v3  ;;  %v1389_v15 = vmul.f32 %v10032_v3, %v10032_v3  ;;  %v1498_v23 = vpack.c.bf16 %v1388_v5, %v1386_v17  ;;  %v10050_v28 = vadd.f32 %v1125_v6, %v9821_v22 }
 0x145   : > { %v1127_v18 = vpop.f32.mrf.mxu0 }
 0x146   : > { %v1499_v19 = vpack.c.bf16 %v1389_v15, %v1387_v9  ;;  %v10044_v24 = vadd.f32 %v1127_v18, %v9818_v21  ;;  %13055 = vst [vmem:[#allocation22_spill] sm:$0xff] %v10050_v28  ;;  %v1390_v49 = vmul.f32 %v10050_v28, %v10050_v28 }
 0x147   : > { %v1129_v20 = vpop.f32.mrf.mxu0 }
 0x148   : > { %13053 = vst [vmem:[#allocation20_spill] sm:$0xff] %v10044_v24  ;;  %v10047_v25 = vadd.f32 %v1129_v20, %v9821_v22  ;;  %1850 = vmatprep.mubr.bf16.mxu1 %v1499_v19  ;;  %v1391_v47 = vmul.f32 %v10044_v24, %v10044_v24 }
 0x149   : > { %v1131_v33 = vpop.f32.mrf.mxu0  ;;  %1851 = vmatmul.mubr.bf16.gmra.mxu1 %v1498_v23 }
 0x14a   : > { %13054 = vst [vmem:[#allocation21_spill] sm:$0xff] %v10047_v25  ;;  %v10053_v39 = vadd.f32 %v1131_v33, %v9818_v21  ;;  %v1392_v41 = vmul.f32 %v10047_v25, %v10047_v25 }
 0x14b   : > { %v1135_v45 = vpop.f32.mrf.mxu0 }
 0x14c   : > { %13056 = vst [vmem:[#allocation23_spill] sm:$0xff] %v10053_v39  ;;  %v1393_v48 = vmul.f32 %v10053_v39, %v10053_v39  ;;  %v1500_v59 = vpack.c.bf16 %v1392_v41, %v1390_v49  ;;  %v10070_v5 = vadd.f32 %v1135_v45, %v9821_v22 }
 0x14d   : > { %v1137_v50 = vpop.f32.mrf.mxu0 }
 0x14e   : > { %v1501_v54 = vpack.c.bf16 %v1393_v48, %v1391_v47  ;;  %v10064_v0 = vadd.f32 %v1137_v50, %v9818_v21  ;;  %13059 = vst [vmem:[#allocation26_spill] sm:$0xff] %v10070_v5  ;;  %v1394_v20 = vmul.f32 %v10070_v5, %v10070_v5 }
 0x14f   : > { %v1139_v56 = vpop.f32.mrf.mxu0 }
 0x150   : > { %13057 = vst [vmem:[#allocation24_spill] sm:$0xff] %v10064_v0  ;;  %v10067_v2 = vadd.f32 %v1139_v56, %v9821_v22  ;;  %1860 = vmatprep.mubr.bf16.mxu1 %v1501_v54  ;;  %v1395_v18 = vmul.f32 %v10064_v0, %v10064_v0 }
 0x151   : > { %v1141_v6 = vpop.f32.mrf.mxu0  ;;  %1861 = vmatmul.mubr.bf16.gmra.mxu1 %v1500_v59 }
 0x152   : > { %13058 = vst [vmem:[#allocation25_spill] sm:$0xff] %v10067_v2  ;;  %v10073_v9 = vadd.f32 %v1141_v6, %v9818_v21  ;;  %v1396_v15 = vmul.f32 %v10067_v2, %v10067_v2 }
 0x153   : > { %v1145_v17 = vpop.f32.mrf.mxu0 }
 0x154   : > { %13060 = vst [vmem:[#allocation27_spill] sm:$0xff] %v10073_v9  ;;  %v1397_v19 = vmul.f32 %v10073_v9, %v10073_v9  ;;  %v1502_v45 = vpack.c.bf16 %v1396_v15, %v1394_v20  ;;  %v10090_v49 = vadd.f32 %v1145_v17, %v9821_v22 }
 0x155   : > { %v1147_v23 = vpop.f32.mrf.mxu0 }
 0x156   : > { %v1503_v33 = vpack.c.bf16 %v1397_v19, %v1395_v18  ;;  %v10084_v47 = vadd.f32 %v1147_v23, %v9818_v21  ;;  %13063 = vst [vmem:[#allocation30_spill] sm:$0xff] %v10090_v49  ;;  %v1398_v18 = vmul.f32 %v10090_v49, %v10090_v49 }
 0x157   : > { %v1149_v41 = vpop.f32.mrf.mxu0 }
 0x158   : > { %13061 = vst [vmem:[#allocation28_spill] sm:$0xff] %v10084_v47  ;;  %v10087_v48 = vadd.f32 %v1149_v41, %v9821_v22  ;;  %1870 = vmatprep.mubr.bf16.mxu1 %v1503_v33  ;;  %v1399_v6 = vmul.f32 %v10084_v47, %v10084_v47 }
 0x159   : > { %v1151_v50 = vpop.f32.mrf.mxu0  ;;  %1871 = vmatmul.mubr.bf16.gmra.mxu1 %v1502_v45 }
 0x15a   : > { %13062 = vst [vmem:[#allocation29_spill] sm:$0xff] %v10087_v48  ;;  %v10093_v54 = vadd.f32 %v1151_v50, %v9818_v21  ;;  %v1400_v56 = vmul.f32 %v10087_v48, %v10087_v48 }
 0x15b   : > { %v1155_v59 = vpop.f32.mrf.mxu0 }
 0x15c   : > { %13064 = vst [vmem:[#allocation31_spill] sm:$0xff] %v10093_v54  ;;  %v1401_v15 = vmul.f32 %v10093_v54, %v10093_v54  ;;  %v1504_v23 = vpack.c.bf16 %v1400_v56, %v1398_v18  ;;  %v10110_v45 = vadd.f32 %v1155_v59, %v9821_v22 }
 0x15d   : > { %v1157_v17 = vpop.f32.mrf.mxu0 }
 0x15e   : > { %v1505_v19 = vpack.c.bf16 %v1401_v15, %v1399_v6  ;;  %v10104_v33 = vadd.f32 %v1157_v17, %v9818_v21  ;;  %13067 = vst [vmem:[#allocation34_spill] sm:$0xff] %v10110_v45  ;;  %v1402_v17 = vmul.f32 %v10110_v45, %v10110_v45 }
 0x15f   : > { %v1159_v20 = vpop.f32.mrf.mxu0 }
 0x160   : > { %13065 = vst [vmem:[#allocation32_spill] sm:$0xff] %v10104_v33  ;;  %v10107_v41 = vadd.f32 %v1159_v20, %v9821_v22  ;;  %1880 = vmatprep.mubr.bf16.mxu1 %v1505_v19  ;;  %v1403_v56 = vmul.f32 %v10104_v33, %v10104_v33 }
 0x161   : > { %v1161_v50 = vpop.f32.mrf.mxu0  ;;  %1881 = vmatmul.mubr.bf16.gmra.mxu1 %v1504_v23 }
 0x162   : > { %13066 = vst [vmem:[#allocation33_spill] sm:$0xff] %v10107_v41  ;;  %v10113_v4 = vadd.f32 %v1161_v50, %v9818_v21  ;;  %v1404_v6 = vmul.f32 %v10107_v41, %v10107_v41  ;;  %v8536_v50 = vld [vmem:[%s12788_s5 + $0x50] sm:$0xff]  }
 0x163   : > { %v1165_v15 = vpop.f32.mrf.mxu0  ;;  %3469 = vmatpush2.bf16.msra.mxu0 %v8536_v50 }
 0x164   : > { %13068 = vst [vmem:[#allocation35_spill] sm:$0xff] %v10113_v4  ;;  %v1405_v18 = vmul.f32 %v10113_v4, %v10113_v4  ;;  %v1506_v23 = vpack.c.bf16 %v1404_v6, %v1402_v17  ;;  %v10133_v4 = vadd.f32 %v1165_v15, %v9821_v22  ;;  %v13073_v6 = vmov 0  }
 0x165   : > { %v1167_v59 = vpop.f32.mrf.mxu0  ;;  %3470 = vmatprep.subr.bf16.mxu0 %v13073_v6 }
 0x166   : > { %v1507_v19 = vpack.c.bf16 %v1405_v18, %v1403_v56  ;;  %v10127_v41 = vadd.f32 %v1167_v59, %v9818_v21  ;;  %13071 = vst [vmem:[#allocation38_spill] sm:$0xff] %v10133_v4  ;;  %v1406_v15 = vmul.f32 %v10133_v4, %v10133_v4 }
 0x167   : > { %v1169_v20 = vpop.f32.mrf.mxu0 }
 0x168   : > { %13069 = vst [vmem:[#allocation36_spill] sm:$0xff] %v10127_v41  ;;  %v10130_v48 = vadd.f32 %v1169_v20, %v9821_v22  ;;  %1890 = vmatprep.mubr.bf16.mxu1 %v1507_v19  ;;  %v1407_v59 = vmul.f32 %v10127_v41, %v10127_v41 }
 0x169   : > { %v1171_v33 = vpop.f32.mrf.mxu0  ;;  %1891 = vmatmul.mubr.bf16.gmra.mxu1 %v1506_v23 }
 0x16a   : > { %13070 = vst [vmem:[#allocation37_spill] sm:$0xff] %v10130_v48  ;;  %v10136_v56 = vadd.f32 %v1171_v33, %v9818_v21  ;;  %v1408_v18 = vmul.f32 %v10130_v48, %v10130_v48 }
 0x16b   : > { %v1175_v17 = vpop.f32.mrf.mxu0 }
 0x16c   : > { %13072 = vst [vmem:[#allocation39_spill] sm:$0xff] %v10136_v56  ;;  %v1409_v19 = vmul.f32 %v10136_v56, %v10136_v56  ;;  %v1508_v33 = vpack.c.bf16 %v1408_v18, %v1406_v15  ;;  %v10154_v48 = vadd.f32 %v1175_v17, %v9821_v22 }
 0x16d   : > { %v1177_v20 = vpop.f32.mrf.mxu0 }
 0x16e   : > { %v1509_v23 = vpack.c.bf16 %v1409_v19, %v1407_v59  ;;  %v10148_v45 = vadd.f32 %v1177_v20, %v9818_v21  ;;  %13076 = vst [vmem:[#allocation42_spill] sm:$0xff] %v10154_v48  ;;  %v1410_v20 = vmul.f32 %v10154_v48, %v10154_v48 }
 0x16f   : > { %v1179_v50 = vpop.f32.mrf.mxu0 }
 0x170   : > { %13074 = vst [vmem:[#allocation40_spill] sm:$0xff] %v10148_v45  ;;  %v10151_v49 = vadd.f32 %v1179_v50, %v9821_v22  ;;  %1900 = vmatprep.mubr.bf16.mxu1 %v1509_v23  ;;  %v1411_v18 = vmul.f32 %v10148_v45, %v10148_v45  ;;  %v8537_v23 = vld [vmem:[%s12788_s5 + $0x48] sm:$0xff]  }
 0x171   : > { %v1181_v41 = vpop.f32.mrf.mxu0  ;;  %1901 = vmatmul.mubr.bf16.gmra.mxu1 %v1508_v33  ;;  %3471 = vmatpush2.bf16.msra.mxu0 %v8537_v23 }
 0x172   : > { %13075 = vst [vmem:[#allocation41_spill] sm:$0xff] %v10151_v49  ;;  %v10157_v56 = vadd.f32 %v1181_v41, %v9818_v21  ;;  %v1412_v59 = vmul.f32 %v10151_v49, %v10151_v49  ;;  %3472 = vmatprep.subr.bf16.mxu0 %v13073_v6 }
 0x173   : > { %v1185_v19 = vpop.f32.mrf.mxu0 }
 0x174   : > { %13077 = vst [vmem:[#allocation43_spill] sm:$0xff] %v10157_v56  ;;  %v1413_v15 = vmul.f32 %v10157_v56, %v10157_v56  ;;  %v1510_v33 = vpack.c.bf16 %v1412_v59, %v1410_v20  ;;  %v10178_v48 = vadd.f32 %v1185_v19, %v9821_v22 }
 0x175   : > { %v1187_v17 = vpop.f32.mrf.mxu0 }
 0x176   : > { %v1511_v41 = vpack.c.bf16 %v1413_v15, %v1411_v18  ;;  %v10171_v49 = vadd.f32 %v1187_v17, %v9818_v21  ;;  %13080 = vst [vmem:[#allocation46_spill] sm:$0xff] %v10178_v48  ;;  %v1414_v6 = vmul.f32 %v10178_v48, %v10178_v48 }
 0x177   : > { %v1189_v50 = vpop.f32.mrf.mxu0 }
 0x178   : > { %13078 = vst [vmem:[#allocation44_spill] sm:$0xff] %v10171_v49  ;;  %v10174_v45 = vadd.f32 %v1189_v50, %v9821_v22  ;;  %1910 = vmatprep.mubr.bf16.mxu1 %v1511_v41  ;;  %v1415_v15 = vmul.f32 %v10171_v49, %v10171_v49 }
 0x179   : > { %v1191_v56 = vpop.f32.mrf.mxu0  ;;  %1911 = vmatmul.mubr.bf16.gmra.mxu1 %v1510_v33 }
 0x17a   : > { %13079 = vst [vmem:[#allocation45_spill] sm:$0xff] %v10174_v45  ;;  %v10181_v4 = vadd.f32 %v1191_v56, %v9818_v21  ;;  %v1416_v59 = vmul.f32 %v10174_v45, %v10174_v45  ;;  %v8538_v56 = vld [vmem:[%s12788_s5 + $0x40] sm:$0xff]  }
 0x17b   : > { %v1195_v18 = vpop.f32.mrf.mxu0  ;;  %3473 = vmatpush2.bf16.msra.mxu0 %v8538_v56 }
 0x17c   : > { %13081 = vst [vmem:[#allocation47_spill] sm:$0xff] %v10181_v4  ;;  %v1417_v20 = vmul.f32 %v10181_v4, %v10181_v4  ;;  %v1512_v41 = vpack.c.bf16 %v1416_v59, %v1414_v6  ;;  %v10201_v45 = vadd.f32 %v1195_v18, %v9821_v22 }
 0x17d   : > { %v1197_v19 = vpop.f32.mrf.mxu0 }
 0x17e   : > { %v1513_v17 = vpack.c.bf16 %v1417_v20, %v1415_v15  ;;  %v10195_v50 = vadd.f32 %v1197_v19, %v9818_v21  ;;  %13084 = vst [vmem:[#allocation50_spill] sm:$0xff] %v10201_v45 }
 0x17f   : > { %v1199_v23 = vpop.f32.mrf.mxu0 }
 0x180   : > { %13082 = vst [vmem:[#allocation48_spill] sm:$0xff] %v10195_v50  ;;  %v10198_v33 = vadd.f32 %v1199_v23, %v9821_v22  ;;  %1920 = vmatprep.mubr.bf16.mxu1 %v1513_v17  ;;  %v1419_v6 = vmul.f32 %v10195_v50, %v10195_v50  ;;  %v1418_v17 = vmul.f32 %v10201_v45, %v10201_v45 }
 0x181   : > { %v1201_v48 = vpop.f32.mrf.mxu0  ;;  %1921 = vmatmul.mubr.bf16.gmra.mxu1 %v1512_v41 }
 0x182   : > { %13083 = vst [vmem:[#allocation49_spill] sm:$0xff] %v10198_v33  ;;  %v10204_v15 = vadd.f32 %v1201_v48, %v9818_v21  ;;  %v1420_v20 = vmul.f32 %v10198_v33, %v10198_v33 }
 0x183   : > { %v1205_v59 = vpop.f32.mrf.mxu0 }
 0x184   : > { %13085 = vst [vmem:[#allocation51_spill] sm:$0xff] %v10204_v15  ;;  %v1421_v19 = vmul.f32 %v10204_v15, %v10204_v15  ;;  %v1514_v41 = vpack.c.bf16 %v1420_v20, %v1418_v17  ;;  %v10221_v33 = vadd.f32 %v1205_v59, %v9821_v22 }
 0x185   : > { %v1207_v18 = vpop.f32.mrf.mxu0 }
 0x186   : > { %v1515_v56 = vpack.c.bf16 %v1421_v19, %v1419_v6  ;;  %v10215_v48 = vadd.f32 %v1207_v18, %v9818_v21  ;;  %13088 = vst [vmem:[#allocation54_spill] sm:$0xff] %v10221_v33  ;;  %v1422_v18 = vmul.f32 %v10221_v33, %v10221_v33 }
 0x187   : > { %v1209_v23 = vpop.f32.mrf.mxu0 }
 0x188   : > { %13086 = vst [vmem:[#allocation52_spill] sm:$0xff] %v10215_v48  ;;  %v10218_v4 = vadd.f32 %v1209_v23, %v9821_v22  ;;  %1930 = vmatprep.mubr.bf16.mxu1 %v1515_v56  ;;  %v1423_v20 = vmul.f32 %v10215_v48, %v10215_v48 }
 0x189   : > { %v1211_v50 = vpop.f32.mrf.mxu0  ;;  %1931 = vmatmul.mubr.bf16.gmra.mxu1 %v1514_v41 }
 0x18a   : > { %13087 = vst [vmem:[#allocation53_spill] sm:$0xff] %v10218_v4  ;;  %v10224_v15 = vadd.f32 %v1211_v50, %v9818_v21  ;;  %v1424_v6 = vmul.f32 %v10218_v4, %v10218_v4 }
 0x18b   : > { %v1215_v19 = vpop.f32.mrf.mxu0 }
 0x18c   : > { %13089 = vst [vmem:[#allocation55_spill] sm:$0xff] %v10224_v15  ;;  %v1425_v17 = vmul.f32 %v10224_v15, %v10224_v15  ;;  %v1516_v41 = vpack.c.bf16 %v1424_v6, %v1422_v18  ;;  %v10241_v4 = vadd.f32 %v1215_v19, %v9821_v22 }
 0x18d   : > { %v1217_v59 = vpop.f32.mrf.mxu0 }
 0x18e   : > { %v1517_v56 = vpack.c.bf16 %v1425_v17, %v1423_v20  ;;  %v10235_v50 = vadd.f32 %v1217_v59, %v9818_v21  ;;  %13092 = vst [vmem:[#allocation58_spill] sm:$0xff] %v10241_v4  ;;  %v1426_v59 = vmul.f32 %v10241_v4, %v10241_v4 }
 0x18f   : > { %v1219_v23 = vpop.f32.mrf.mxu0 }
 0x190   : > { %13090 = vst [vmem:[#allocation56_spill] sm:$0xff] %v10235_v50  ;;  %v10238_v45 = vadd.f32 %v1219_v23, %v9821_v22  ;;  %1940 = vmatprep.mubr.bf16.mxu1 %v1517_v56  ;;  %v1427_v6 = vmul.f32 %v10235_v50, %v10235_v50 }
 0x191   : > { %v1221_v48 = vpop.f32.mrf.mxu0  ;;  %1941 = vmatmul.mubr.bf16.gmra.mxu1 %v1516_v41 }
 0x192   : > { %13091 = vst [vmem:[#allocation57_spill] sm:$0xff] %v10238_v45  ;;  %v10244_v15 = vadd.f32 %v1221_v48, %v9818_v21  ;;  %v1428_v20 = vmul.f32 %v10238_v45, %v10238_v45 }
 0x193   : > { %v1225_v17 = vpop.f32.mrf.mxu0 }
 0x194   : > { %13093 = vst [vmem:[#allocation59_spill] sm:$0xff] %v10244_v15  ;;  %v1429_v18 = vmul.f32 %v10244_v15, %v10244_v15  ;;  %v1518_v41 = vpack.c.bf16 %v1428_v20, %v1426_v59  ;;  %v10261_v45 = vadd.f32 %v1225_v17, %v9821_v22 }
 0x195   : > { %v1227_v19 = vpop.f32.mrf.mxu0 }
 0x196   : > { %v1519_v56 = vpack.c.bf16 %v1429_v18, %v1427_v6  ;;  %v10255_v48 = vadd.f32 %v1227_v19, %v9818_v21  ;;  %13096 = vst [vmem:[#allocation62_spill] sm:$0xff] %v10261_v45  ;;  %v1430_v19 = vmul.f32 %v10261_v45, %v10261_v45 }
 0x197   : > { %v1229_v23 = vpop.f32.mrf.mxu0 }
 0x198   : > { %13094 = vst [vmem:[#allocation60_spill] sm:$0xff] %v10255_v48  ;;  %v10258_v33 = vadd.f32 %v1229_v23, %v9821_v22  ;;  %1950 = vmatprep.mubr.bf16.mxu1 %v1519_v56  ;;  %v1431_v20 = vmul.f32 %v10255_v48, %v10255_v48 }
 0x199   : > { %v1231_v50 = vpop.f32.mrf.mxu0  ;;  %1951 = vmatmul.mubr.bf16.gmra.mxu1 %v1518_v41 }
 0x19a   : > { %13095 = vst [vmem:[#allocation61_spill] sm:$0xff] %v10258_v33  ;;  %v10264_v15 = vadd.f32 %v1231_v50, %v9818_v21  ;;  %v1432_v6 = vmul.f32 %v10258_v33, %v10258_v33 }
 0x19b   : > { %v1235_v18 = vpop.f32.mrf.mxu0 }
 0x19c   : > { %13097 = vst [vmem:[#allocation63_spill] sm:$0xff] %v10264_v15  ;;  %v1433_v59 = vmul.f32 %v10264_v15, %v10264_v15  ;;  %v1520_v41 = vpack.c.bf16 %v1432_v6, %v1430_v19  ;;  %v10281_v33 = vadd.f32 %v1235_v18, %v9821_v22 }
 0x19d   : > { %v1237_v17 = vpop.f32.mrf.mxu0 }
 0x19e   : > { %v1521_v56 = vpack.c.bf16 %v1433_v59, %v1431_v20  ;;  %v10275_v50 = vadd.f32 %v1237_v17, %v9818_v21  ;;  %13100 = vst [vmem:[#allocation66_spill] sm:$0xff] %v10281_v33  ;;  %v1434_v17 = vmul.f32 %v10281_v33, %v10281_v33 }
 0x19f   : > { %v1239_v23 = vpop.f32.mrf.mxu0 }
 0x1a0   : > { %13098 = vst [vmem:[#allocation64_spill] sm:$0xff] %v10275_v50  ;;  %v10278_v4 = vadd.f32 %v1239_v23, %v9821_v22  ;;  %1960 = vmatprep.mubr.bf16.mxu1 %v1521_v56  ;;  %v1435_v6 = vmul.f32 %v10275_v50, %v10275_v50 }
 0x1a1   : > { %v1241_v48 = vpop.f32.mrf.mxu0  ;;  %1961 = vmatmul.mubr.bf16.gmra.mxu1 %v1520_v41 }
 0x1a2   : > { %13099 = vst [vmem:[#allocation65_spill] sm:$0xff] %v10278_v4  ;;  %v10284_v15 = vadd.f32 %v1241_v48, %v9818_v21  ;;  %v1436_v20 = vmul.f32 %v10278_v4, %v10278_v4 }
 0x1a3   : > { %v1245_v59 = vpop.f32.mrf.mxu0 }
 0x1a4   : > { %13101 = vst [vmem:[#allocation67_spill] sm:$0xff] %v10284_v15  ;;  %v1437_v19 = vmul.f32 %v10284_v15, %v10284_v15  ;;  %v1522_v41 = vpack.c.bf16 %v1436_v20, %v1434_v17  ;;  %v10301_v4 = vadd.f32 %v1245_v59, %v9821_v22 }
 0x1a5   : > { %v1247_v18 = vpop.f32.mrf.mxu0 }
 0x1a6   : > { %v1523_v56 = vpack.c.bf16 %v1437_v19, %v1435_v6  ;;  %v10295_v48 = vadd.f32 %v1247_v18, %v9818_v21  ;;  %13104 = vst [vmem:[#allocation70_spill] sm:$0xff] %v10301_v4  ;;  %v1438_v18 = vmul.f32 %v10301_v4, %v10301_v4 }
 0x1a7   : > { %v1249_v23 = vpop.f32.mrf.mxu0 }
 0x1a8   : > { %13102 = vst [vmem:[#allocation68_spill] sm:$0xff] %v10295_v48  ;;  %v10298_v45 = vadd.f32 %v1249_v23, %v9821_v22  ;;  %1970 = vmatprep.mubr.bf16.mxu1 %v1523_v56  ;;  %v1439_v20 = vmul.f32 %v10295_v48, %v10295_v48 }
 0x1a9   : > { %v1251_v50 = vpop.f32.mrf.mxu0  ;;  %1971 = vmatmul.mubr.bf16.gmra.mxu1 %v1522_v41 }
 0x1aa   : > { %13103 = vst [vmem:[#allocation69_spill] sm:$0xff] %v10298_v45  ;;  %v10304_v15 = vadd.f32 %v1251_v50, %v9818_v21  ;;  %v1440_v6 = vmul.f32 %v10298_v45, %v10298_v45 }
 0x1ab   : > { %v1255_v19 = vpop.f32.mrf.mxu0 }
 0x1ac   : > { %13105 = vst [vmem:[#allocation71_spill] sm:$0xff] %v10304_v15  ;;  %v1441_v17 = vmul.f32 %v10304_v15, %v10304_v15  ;;  %v1524_v41 = vpack.c.bf16 %v1440_v6, %v1438_v18  ;;  %v10321_v45 = vadd.f32 %v1255_v19, %v9821_v22 }
 0x1ad   : > { %v1257_v59 = vpop.f32.mrf.mxu0 }
 0x1ae   : > { %v1525_v56 = vpack.c.bf16 %v1441_v17, %v1439_v20  ;;  %v10315_v50 = vadd.f32 %v1257_v59, %v9818_v21  ;;  %13108 = vst [vmem:[#allocation74_spill] sm:$0xff] %v10321_v45  ;;  %v1442_v59 = vmul.f32 %v10321_v45, %v10321_v45 }
 0x1af   : > { %v1259_v23 = vpop.f32.mrf.mxu0 }
 0x1b0   : > { %13106 = vst [vmem:[#allocation72_spill] sm:$0xff] %v10315_v50  ;;  %v10318_v33 = vadd.f32 %v1259_v23, %v9821_v22  ;;  %1980 = vmatprep.mubr.bf16.mxu1 %v1525_v56  ;;  %v1443_v6 = vmul.f32 %v10315_v50, %v10315_v50 }
 0x1b1   : > { %v1261_v48 = vpop.f32.mrf.mxu0  ;;  %1981 = vmatmul.mubr.bf16.gmra.mxu1 %v1524_v41 }
 0x1b2   : > { %13107 = vst [vmem:[#allocation73_spill] sm:$0xff] %v10318_v33  ;;  %v10324_v15 = vadd.f32 %v1261_v48, %v9818_v21  ;;  %v1444_v20 = vmul.f32 %v10318_v33, %v10318_v33 }
 0x1b3   : > { %v1265_v17 = vpop.f32.mrf.mxu0 }
 0x1b4   : > { %13109 = vst [vmem:[#allocation75_spill] sm:$0xff] %v10324_v15  ;;  %v1445_v18 = vmul.f32 %v10324_v15, %v10324_v15  ;;  %v1526_v41 = vpack.c.bf16 %v1444_v20, %v1442_v59  ;;  %v10341_v33 = vadd.f32 %v1265_v17, %v9821_v22 }
 0x1b5   : > { %v1267_v19 = vpop.f32.mrf.mxu0 }
 0x1b6   : > { %v1527_v56 = vpack.c.bf16 %v1445_v18, %v1443_v6  ;;  %v10335_v48 = vadd.f32 %v1267_v19, %v9818_v21  ;;  %13112 = vst [vmem:[#allocation78_spill] sm:$0xff] %v10341_v33  ;;  %v1446_v19 = vmul.f32 %v10341_v33, %v10341_v33 }
 0x1b7   : > { %v1269_v23 = vpop.f32.mrf.mxu0 }
 0x1b8   : > { %13110 = vst [vmem:[#allocation76_spill] sm:$0xff] %v10335_v48  ;;  %v10338_v4 = vadd.f32 %v1269_v23, %v9821_v22  ;;  %1990 = vmatprep.mubr.bf16.mxu1 %v1527_v56  ;;  %v1447_v20 = vmul.f32 %v10335_v48, %v10335_v48 }
 0x1b9   : > { %v1271_v50 = vpop.f32.mrf.mxu0  ;;  %1991 = vmatmul.mubr.bf16.gmra.mxu1 %v1526_v41 }
 0x1ba   : > { %13111 = vst [vmem:[#allocation77_spill] sm:$0xff] %v10338_v4  ;;  %v10344_v15 = vadd.f32 %v1271_v50, %v9818_v21  ;;  %v1448_v6 = vmul.f32 %v10338_v4, %v10338_v4 }
 0x1bb   : > { %v1275_v18 = vpop.f32.mrf.mxu0 }
 0x1bc   : > { %13113 = vst [vmem:[#allocation79_spill] sm:$0xff] %v10344_v15  ;;  %v1449_v59 = vmul.f32 %v10344_v15, %v10344_v15  ;;  %v1528_v41 = vpack.c.bf16 %v1448_v6, %v1446_v19  ;;  %v10361_v4 = vadd.f32 %v1275_v18, %v9821_v22 }
 0x1bd   : > { %v1277_v17 = vpop.f32.mrf.mxu0 }
 0x1be   : > { %v1529_v56 = vpack.c.bf16 %v1449_v59, %v1447_v20  ;;  %v10355_v50 = vadd.f32 %v1277_v17, %v9818_v21  ;;  %13116 = vst [vmem:[#allocation82_spill] sm:$0xff] %v10361_v4  ;;  %v1450_v17 = vmul.f32 %v10361_v4, %v10361_v4 }
 0x1bf   : > { %v1279_v23 = vpop.f32.mrf.mxu0 }
 0x1c0   : > { %13114 = vst [vmem:[#allocation80_spill] sm:$0xff] %v10355_v50  ;;  %v10358_v45 = vadd.f32 %v1279_v23, %v9821_v22  ;;  %2000 = vmatprep.mubr.bf16.mxu1 %v1529_v56  ;;  %v1451_v6 = vmul.f32 %v10355_v50, %v10355_v50 }
 0x1c1   : > { %v1281_v48 = vpop.f32.mrf.mxu0  ;;  %2001 = vmatmul.mubr.bf16.gmra.mxu1 %v1528_v41 }
 0x1c2   : > { %13115 = vst [vmem:[#allocation81_spill] sm:$0xff] %v10358_v45  ;;  %v10364_v15 = vadd.f32 %v1281_v48, %v9818_v21  ;;  %v1452_v20 = vmul.f32 %v10358_v45, %v10358_v45 }
 0x1c3   : > { %v1285_v59 = vpop.f32.mrf.mxu0 }
 0x1c4   : > { %13117 = vst [vmem:[#allocation83_spill] sm:$0xff] %v10364_v15  ;;  %v1453_v19 = vmul.f32 %v10364_v15, %v10364_v15  ;;  %v1530_v41 = vpack.c.bf16 %v1452_v20, %v1450_v17  ;;  %v10381_v50 = vadd.f32 %v1285_v59, %v9821_v22 }
 0x1c5   : > { %v1287_v18 = vpop.f32.mrf.mxu0 }
 0x1c6   : > { %v1531_v56 = vpack.c.bf16 %v1453_v19, %v1451_v6  ;;  %v10378_v45 = vadd.f32 %v1287_v18, %v9818_v21  ;;  %13120 = vst [vmem:[#allocation86_spill] sm:$0xff] %v10381_v50 }
 0x1c7   : > { %v1289_v23 = vpop.f32.mrf.mxu0 }
 0x1c8   : > { %v10375_v48 = vadd.f32 %v1289_v23, %v9821_v22  ;;  %2010 = vmatprep.mubr.bf16.mxu1 %v1531_v56  ;;  %13119 = vst [vmem:[#allocation85_spill] sm:$0xff] %v10378_v45  ;;  %v1455_v23 = vmul.f32 %v10378_v45, %v10378_v45 }
 0x1c9   : > { %v1291_v33 = vpop.f32.mrf.mxu0  ;;  %v1772_v49 = vpop.f32.mrf.mxu1  ;;  %2011 = vmatmul.mubr.bf16.gmra.mxu1 %v1530_v41 }
 0x1ca   : > { %13118 = vst [vmem:[#allocation84_spill] sm:$0xff] %v10375_v48  ;;  %v10384_v15 = vadd.f32 %v1291_v33, %v9818_v21  ;;  %v2091_v4 = vmul.f32 3.90625e-07, %v1772_v49  ;;  %v1456_v20 = vmul.f32 %v10375_v48, %v10375_v48  ;;  %v1454_v33 = vmul.f32 %v10381_v50, %v10381_v50 }
 0x1cb   : > { %v1295_v6 = vpop.f32.mrf.mxu0  ;;  %v1774_v19 = vpop.f32.mrf.mxu1 }
 0x1cc   : > { %13121 = vst [vmem:[#allocation87_spill] sm:$0xff] %v10384_v15  ;;  %v1457_v17 = vmul.f32 %v10384_v15, %v10384_v15  ;;  %v2219_v18 = vadd.f32 1.0, %v2091_v4  ;;  %v2092_v56 = vmul.f32 3.90625e-07, %v1774_v19  ;;  %v1532_v19 = vpack.c.bf16 %v1456_v20, %v1454_v33 }
 0x1cd   : > { %v1297_v41 = vpop.f32.mrf.mxu0  ;;  %v1776_v59 = vpop.f32.mrf.mxu1 }
 0x1ce   : > { %8595 = vlog2.f32 %v2219_v18  ;;  %v2220_v49 = vadd.f32 1.0, %v2092_v56  ;;  %v2093_v54 = vmul.f32 3.90625e-07, %v1776_v59  ;;  %v1533_v5 = vpack.c.bf16 %v1457_v17, %v1455_v23 }
 0x1cf   : > { %v1299_v47 = vpop.f32.mrf.mxu0  ;;  %v1778_v2 = vpop.f32.mrf.mxu1  ;;  %v10398_v15 = vadd.f32 %v1297_v41, %v9818_v21  ;;  %v10401_v18 = vadd.f32 %v1295_v6, %v9821_v22 }
 0x1d0   : > { %8597 = vlog2.f32 %v2220_v49  ;;  %v10395_v48 = vadd.f32 %v1299_v47, %v9821_v22  ;;  %v2094_v4 = vmul.f32 3.90625e-07, %v1778_v2  ;;  %v2221_v45 = vadd.f32 1.0, %v2093_v54  ;;  %2020 = vmatprep.mubr.bf16.mxu1 %v1533_v5 }
 0x1d1   : > { %13123 = vst [vmem:[#allocation89_spill] sm:$0xff] %v10398_v15  ;;  %v1301_v9 = vpop.f32.mrf.mxu0  ;;  %v1782_v0 = vpop.f32.mrf.mxu1  ;;  %13124 = vst [vmem:[#allocation90_spill] sm:$0xff] %v10401_v18  ;;  %2021 = vmatmul.mubr.bf16.gmra.mxu1 %v1532_v19  ;;  %v1459_v6 = vmul.f32 %v10398_v15, %v10398_v15 }
 0x1d2   : > { %13122 = vst [vmem:[#allocation88_spill] sm:$0xff] %v10395_v48  ;;  %v2222_v56 = vadd.f32 1.0, %v2094_v4  ;;  %v10404_v59 = vadd.f32 %v1301_v9, %v9818_v21  ;;  %v2095_v17 = vmul.f32 3.90625e-07, %v1782_v0  ;;  %8599 = vlog2.f32 %v2221_v45 }
 0x1d3   : > { %v1305_v47 = vpop.f32.mrf.mxu0  ;;  %v1784_v2 = vpop.f32.mrf.mxu1  ;;  %v1460_v20 = vmul.f32 %v10395_v48, %v10395_v48  ;;  %v1458_v0 = vmul.f32 %v10401_v18, %v10401_v18 }
 0x1d4   : > { %13125 = vst [vmem:[#allocation91_spill] sm:$0xff] %v10404_v59  ;;  %8601 = vlog2.f32 %v2222_v56  ;;  %v1461_v5 = vmul.f32 %v10404_v59, %v10404_v59  ;;  %v2223_v54 = vadd.f32 1.0, %v2095_v17  ;;  %v2096_v23 = vmul.f32 3.90625e-07, %v1784_v2 }
 0x1d5   : > { %v1307_v41 = vpop.f32.mrf.mxu0  ;;  %v1786_v9 = vpop.f32.mrf.mxu1  ;;  %v10415_v33 = vadd.f32 %v1305_v47, %v9821_v22  ;;  %v1534_v2 = vpack.c.bf16 %v1460_v20, %v1458_v0 }
 0x1d6   : > { %8603 = vlog2.f32 %v2223_v54  ;;  %v2097_v45 = vmul.f32 3.90625e-07, %v1786_v9  ;;  %v2224_v49 = vadd.f32 1.0, %v2096_v23  ;;  %v1535_v56 = vpack.c.bf16 %v1461_v5, %v1459_v6 }
 0x1d7   : > { %13126 = vst [vmem:[#allocation92_spill] sm:$0xff] %v10415_v33  ;;  %v1309_v4 = vpop.f32.mrf.mxu0  ;;  %v1788_v19 = vpop.f32.mrf.mxu1  ;;  %v10421_v15 = vadd.f32 %v1307_v41, %v9818_v21  ;;  %v1462_v20 = vmul.f32 %v10415_v33, %v10415_v33 }
 0x1d8   : > { %v2225_v48 = vadd.f32 1.0, %v2097_v45  ;;  %v10418_v17 = vadd.f32 %v1309_v4, %v9821_v22  ;;  %v2098_v59 = vmul.f32 3.90625e-07, %v1788_v19  ;;  %8605 = vlog2.f32 %v2224_v49  ;;  %2030 = vmatprep.mubr.bf16.mxu1 %v1535_v56 }
 0x1d9   : > { %13128 = vst [vmem:[#allocation94_spill] sm:$0xff] %v10421_v15  ;;  %v1311_v54 = vpop.f32.mrf.mxu0  ;;  %v1792_v9 = vpop.f32.mrf.mxu1  ;;  %2031 = vmatmul.mubr.bf16.gmra.mxu1 %v1534_v2  ;;  %v1463_v19 = vmul.f32 %v10421_v15, %v10421_v15 }
 0x1da   : > { %13127 = vst [vmem:[#allocation93_spill] sm:$0xff] %v10418_v17  ;;  %8607 = vlog2.f32 %v2225_v48  ;;  %v1464_v47 = vmul.f32 %v10418_v17, %v10418_v17  ;;  %v2226_v23 = vadd.f32 1.0, %v2098_v59  ;;  %v10426_v5 = vadd.f32 %v1311_v54, %v9818_v21 }
 0x1db   : > { %v8596_v6 = vpop.eup %8595  ;;  %v2099_v0 = vmul.f32 3.90625e-07, %v1792_v9  ;;  %v1315_v45 = vpop.f32.mrf.mxu0 }
 0x1dc   : > { %13129 = vst [vmem:[#allocation95_spill] sm:$0xff] %v10426_v5  ;;  %v1794_v41 = vpop.f32.mrf.mxu1  ;;  %v2348_v49 = vmul.f32 0.6931472, %v8596_v6  ;;  %8609 = vlog2.f32 %v2226_v23  ;;  %v1465_v48 = vmul.f32 %v10426_v5, %v10426_v5  ;;  %v10433_v4 = vadd.f32 %v1315_v45, %v9821_v22 }
 0x1dd   : > { %v8598_v59 = vpop.eup %8597  ;;  %v2227_v56 = vadd.f32 1.0, %v2099_v0  ;;  %v2100_v2 = vmul.f32 3.90625e-07, %v1794_v41  ;;  %v1317_v54 = vpop.f32.mrf.mxu0  ;;  %v1536_v33 = vpack.c.bf16 %v1464_v47, %v1462_v20 }
 0x1de   : > { %13130 = vst [vmem:[#allocation96_spill] sm:$0xff] %v10433_v4  ;;  %v1796_v17 = vpop.f32.mrf.mxu1  ;;  %v2603_v9 = vmul.f32 -0.75, %v2348_v49  ;;  %v2350_v18 = vmul.f32 0.6931472, %v8598_v59  ;;  %v10439_v23 = vmul.f32 %v10433_v4, %v10433_v4  ;;  %v10442_v6 = vadd.f32 %v1317_v54, %v9818_v21 }
 0x1df   : > { %8611 = vlog2.f32 %v2227_v56  ;;  %v2228_v45 = vadd.f32 1.0, %v2100_v2  ;;  %v2101_v5 = vmul.f32 3.90625e-07, %v1796_v17  ;;  %v1319_v50 = vpop.f32.mrf.mxu0  ;;  %v1537_v15 = vpack.c.bf16 %v1465_v48, %v1463_v19  ;;  %v8600_v0 = vpop.eup %8599 }
 0x1e0   : > { %13131 = vst [vmem:[#allocation97_spill] sm:$0xff] %v10442_v6  ;;  %v1798_v25 = vpop.f32.mrf.mxu1  ;;  %v2731_v41 = vmul.f32 1.442695, %v2603_v9  ;;  %v2604_v28 = vmul.f32 -0.75, %v2350_v18  ;;  %v10446_v47 = vmul.f32 %v10442_v6, %v10442_v6  ;;  %v10449_v20 = vadd.f32 %v1319_v50, %v9821_v22 }
 0x1e1   : > { %v8602_v49 = vpop.eup %8601  ;;  %v2352_v59 = vmul.f32 0.6931472, %v8600_v0  ;;  %8613 = vlog2.f32 %v2228_v45  ;;  %v2229_v54 = vadd.f32 1.0, %v2101_v5  ;;  %v2102_v56 = vmul.f32 3.90625e-07, %v1798_v25  ;;  %2040 = vmatprep.mubr.bf16.mxu1 %v1537_v15  ;;  %v1321_v17 = vpop.f32.mrf.mxu0 }
 0x1e2   : > { %13132 = vst [vmem:[#allocation98_spill] sm:$0xff] %v10449_v20  ;;  %v1802_v2 = vpop.f32.mrf.mxu1  ;;  %8615 = vpow2.f32 %v2731_v41  ;;  %v2733_v48 = vmul.f32 1.442695, %v2604_v28  ;;  %v2354_v19 = vmul.f32 0.6931472, %v8602_v49  ;;  %v10453_v18 = vmul.f32 %v10449_v20, %v10449_v20  ;;  %2041 = vmatmul.mubr.bf16.gmra.mxu1 %v1536_v33 }
 0x1e3   : > { %v8604_v9 = vpop.eup %8603  ;;  %v2605_v4 = vmul.f32 -0.75, %v2352_v59  ;;  %8617 = vlog2.f32 %v2229_v54  ;;  %v2230_v50 = vadd.f32 1.0, %v2102_v56  ;;  %v10456_v0 = vadd.f32 %v1321_v17, %v9818_v21  ;;  %v1325_v5 = vpop.f32.mrf.mxu0 }
 0x1e4   : > { %v1804_v25 = vpop.f32.mrf.mxu1  ;;  %8619 = vpow2.f32 %v2733_v48  ;;  %v2606_v15 = vmul.f32 -0.75, %v2354_v19  ;;  %v2356_v45 = vmul.f32 0.6931472, %v8604_v9  ;;  %v1538_v28 = vpack.c.bf16 %v10453_v18, %v10439_v23 }
 0x1e5   : > { %13133 = vst [vmem:[#allocation99_spill] sm:$0xff] %v10456_v0  ;;  %v2735_v41 = vmul.f32 1.442695, %v2605_v4  ;;  %8621 = vlog2.f32 %v2230_v50  ;;  %v1469_v33 = vmul.f32 %v10456_v0, %v10456_v0  ;;  %v2103_v49 = vmul.f32 3.90625e-07, %v1802_v2  ;;  %v1327_v59 = vpop.f32.mrf.mxu0  ;;  %v8606_v56 = vpop.eup %8605 }
 0x1e6   : > { %v1806_v54 = vpop.f32.mrf.mxu1  ;;  %v2737_v20 = vmul.f32 1.442695, %v2606_v15  ;;  %v2607_v17 = vmul.f32 -0.75, %v2356_v45  ;;  %v10463_v6 = vadd.f32 %v1325_v5, %v9821_v22  ;;  %v2104_v48 = vmul.f32 3.90625e-07, %v1804_v25 }
 0x1e7   : > { %v8608_v19 = vpop.eup %8607  ;;  %8623 = vpow2.f32 %v2735_v41  ;;  %v2358_v9 = vmul.f32 0.6931472, %v8606_v56  ;;  %v2231_v39 = vadd.f32 1.0, %v2103_v49  ;;  %v10466_v4 = vadd.f32 %v1327_v59, %v9818_v21  ;;  %v1329_v23 = vpop.f32.mrf.mxu0 }
 0x1e8   : > { %13134 = vst [vmem:[#allocation100_spill] sm:$0xff] %v10463_v6  ;;  %v1808_v18 = vpop.f32.mrf.mxu1  ;;  %8625 = vpow2.f32 %v2737_v20  ;;  %v2739_v2 = vmul.f32 1.442695, %v2607_v17  ;;  %v2360_v50 = vmul.f32 0.6931472, %v8608_v19  ;;  %v10470_v15 = vmul.f32 %v10463_v6, %v10463_v6 }
 0x1e9   : > { %13135 = vst [vmem:[#allocation101_spill] sm:$0xff] %v10466_v4  ;;  %v8610_v45 = vpop.eup %8609  ;;  %v2608_v5 = vmul.f32 -0.75, %v2358_v9  ;;  %8627 = vlog2.f32 %v2231_v39  ;;  %v2232_v25 = vadd.f32 1.0, %v2104_v48  ;;  %v10474_v41 = vmul.f32 %v10466_v4, %v10466_v4  ;;  %v1331_v49 = vpop.f32.mrf.mxu0 }
 0x1ea   : > { %v1812_v59 = vpop.f32.mrf.mxu1  ;;  %8629 = vpow2.f32 %v2739_v2  ;;  %v2609_v56 = vmul.f32 -0.75, %v2360_v50  ;;  %v2362_v0 = vmul.f32 0.6931472, %v8610_v45  ;;  %v2105_v20 = vmul.f32 3.90625e-07, %v1806_v54 }
 0x1eb   : > { %v2741_v17 = vmul.f32 1.442695, %v2608_v5  ;;  %8631 = vlog2.f32 %v2232_v25  ;;  %v10477_v19 = vadd.f32 %v1329_v23, %v9821_v22  ;;  %v2106_v6 = vmul.f32 3.90625e-07, %v1808_v18  ;;  %v1335_v24 = vpop.f32.mrf.mxu0 }
 0x1ec   : > { %v1814_v9 = vpop.f32.mrf.mxu1  ;;  %v8612_v39 = vpop.eup %8611  ;;  %v2743_v48 = vmul.f32 1.442695, %v2609_v56  ;;  %v2610_v63 = vmul.f32 -0.75, %v2362_v0  ;;  %v2233_v1 = vadd.f32 1.0, %v2105_v20  ;;  %v1539_v4 = vpack.c.bf16 %v1469_v33, %v10446_v47 }
 0x1ed   : > { %13136 = vst [vmem:[#allocation102_spill] sm:$0xff] %v10477_v19  ;;  %8633 = vpow2.f32 %v2741_v17  ;;  %v2364_v3 = vmul.f32 0.6931472, %v8612_v39  ;;  %v10482_v2 = vmul.f32 %v10477_v19, %v10477_v19  ;;  %v2234_v54 = vadd.f32 1.0, %v2106_v6  ;;  %v1337_v50 = vpop.f32.mrf.mxu0 }
 0x1ee   : > { %v1816_v45 = vpop.f32.mrf.mxu1  ;;  %v8614_v23 = vpop.eup %8613  ;;  %8635 = vpow2.f32 %v2743_v48  ;;  %v2745_v18 = vmul.f32 1.442695, %v2610_v63  ;;  %2050 = vmatprep.mubr.bf16.mxu1 %v1539_v4  ;;  %v10485_v5 = vadd.f32 %v1331_v49, %v9818_v21  ;;  %v2107_v0 = vmul.f32 3.90625e-07, %v1812_v59 }
 0x1ef   : > { %v10487_v25 = vpop.eup %8615  ;;  %v2611_v47 = vmul.f32 -0.75, %v2364_v3  ;;  %v2366_v33 = vmul.f32 0.6931472, %v8614_v23  ;;  %8637 = vlog2.f32 %v2233_v1  ;;  %v1540_v56 = vpack.c.bf16 %v10482_v2, %v10470_v15  ;;  %2051 = vmatmul.mubr.bf16.gmra.mxu1 %v1538_v28  ;;  %v1339_v6 = vpop.f32.mrf.mxu0 }
 0x1f0   : > { %13137 = vst [vmem:[#allocation103_spill] sm:$0xff] %v10485_v5  ;;  %v1818_v20 = vpop.f32.mrf.mxu1  ;;  %v8618_v17 = vpop.eup %8617  ;;  %8639 = vpow2.f32 %v2745_v18  ;;  %v1473_v63 = vmul.f32 %v10485_v5, %v10485_v5  ;;  %v2235_v4 = vadd.f32 1.0, %v2107_v0  ;;  %v10494_v49 = vadd.f32 %v1335_v24, %v9821_v22 }
 0x1f1   : > { %v10496_v59 = vpop.eup %8619  ;;  %v2747_v3 = vmul.f32 1.442695, %v2611_v47  ;;  %v2612_v39 = vmul.f32 -0.75, %v2366_v33  ;;  %v2368_v1 = vmul.f32 0.6931472, %v8618_v17  ;;  %8641 = vlog2.f32 %v2234_v54  ;;  %v1341_v48 = vpop.f32.mrf.mxu0 }
 0x1f2   : > { %13138 = vst [vmem:[#allocation104_spill] sm:$0xff] %v10494_v49  ;;  %v1822_v15 = vpop.f32.mrf.mxu1  ;;  %v8622_v28 = vpop.eup %8621  ;;  %8643 = vlog2.f32 %v2235_v4  ;;  %v10500_v2 = vmul.f32 %v10494_v49, %v10494_v49  ;;  %v2108_v23 = vmul.f32 3.90625e-07, %v1814_v9  ;;  %v10503_v18 = vadd.f32 %v1337_v50, %v9818_v21 }
 0x1f3   : > { %8645 = vpow2.f32 %v2747_v3  ;;  %v2749_v24 = vmul.f32 1.442695, %v2612_v39  ;;  %v2613_v0 = vmul.f32 -0.75, %v2368_v1  ;;  %v2370_v19 = vmul.f32 0.6931472, %v8622_v28  ;;  %v1345_v47 = vpop.f32.mrf.mxu0 }
 0x1f4   : > { %13139 = vst [vmem:[#allocation105_spill] sm:$0xff] %v10503_v18  ;;  %v1824_v33 = vpop.f32.mrf.mxu1  ;;  %v10505_v17 = vpop.eup %8623  ;;  %v2236_v54 = vadd.f32 1.0, %v2108_v23  ;;  %v10509_v4 = vmul.f32 %v10503_v18, %v10503_v18  ;;  %v2109_v5 = vmul.f32 3.90625e-07, %v1816_v45  ;;  %v10512_v49 = vadd.f32 %v1339_v6, %v9821_v22 }
 0x1f5   : > { %v10514_v9 = vpop.eup %8625  ;;  %8647 = vpow2.f32 %v2749_v24  ;;  %v2751_v50 = vmul.f32 1.442695, %v2613_v0  ;;  %v2614_v3 = vmul.f32 -0.75, %v2370_v19  ;;  %v2110_v39 = vmul.f32 3.90625e-07, %v1818_v20  ;;  %v1347_v1 = vpop.f32.mrf.mxu0  ;;  %v8539_v19 = vld [vmem:[%s12790_s7 + $0x38] sm:$0xff]  }
 0x1f6   : > { %13140 = vst [vmem:[#allocation106_spill] sm:$0xff] %v10512_v49  ;;  %v1826_v28 = vpop.f32.mrf.mxu1  ;;  %v8628_v61 = vpop.eup %8627  ;;  %8649 = vlog2.f32 %v2236_v54  ;;  %v2237_v37 = vadd.f32 1.0, %v2109_v5  ;;  %v10518_v23 = vmul.f32 %v10512_v49, %v10512_v49  ;;  %v1541_v45 = vpack.c.bf16 %v1473_v63, %v10474_v41  ;;  %7887 = vmatprep.subr.bf16.mxu1 %v8539_v19 }
 0x1f7   : > { %v10521_v18 = vpop.eup %8629  ;;  %8651 = vpow2.f32 %v2751_v50  ;;  %v2753_v6 = vmul.f32 1.442695, %v2614_v3  ;;  %v2372_v38 = vmul.f32 0.6931472, %v8628_v61  ;;  %v2238_v24 = vadd.f32 1.0, %v2110_v39  ;;  %v1349_v3 = vpop.f32.mrf.mxu0  ;;  %7888 = vmatpush3.bf16.msra.mxu1 %v8539_v19 }
 0x1f8   : > { %v1828_v0 = vpop.f32.mrf.mxu1  ;;  %v8632_v20 = vpop.eup %8631  ;;  %8653 = vlog2.f32 %v2237_v37  ;;  %v1542_v5 = vpack.c.bf16 %v10518_v23, %v10500_v2  ;;  %2060 = vmatprep.mubr.bf16.mxu1 %v1541_v45  ;;  %v10529_v54 = vadd.f32 %v1341_v48, %v9818_v21  ;;  %v2111_v41 = vmul.f32 3.90625e-07, %v1822_v15 }
 0x1f9   : > { %8655 = vpow2.f32 %v2753_v6  ;;  %v2615_v63 = vmul.f32 -0.75, %v2372_v38  ;;  %v2374_v50 = vmul.f32 0.6931472, %v8632_v20  ;;  %2061 = vmatmul.mubr.bf16.gmra.mxu1 %v1540_v56  ;;  %v10532_v61 = vadd.f32 %v1345_v47, %v9821_v22 }
 0x1fa   : > { %13141 = vst [vmem:[#allocation107_spill] sm:$0xff] %v10529_v54  ;;  %v1832_v39 = vpop.f32.mrf.mxu1  ;;  %v10534_v49 = vpop.eup %8633  ;;  %8657 = vlog2.f32 %v2238_v24  ;;  %v1477_v37 = vmul.f32 %v10529_v54, %v10529_v54  ;;  %v2239_v2 = vadd.f32 1.0, %v2111_v41  ;;  %v2112_v48 = vmul.f32 3.90625e-07, %v1824_v33 }
 0x1fb   : > { %13142 = vst [vmem:[#allocation108_spill] sm:$0xff] %v10532_v61  ;;  %v10538_v15 = vpop.eup %8635  ;;  %v2755_v38 = vmul.f32 1.442695, %v2615_v63  ;;  %v2616_v23 = vmul.f32 -0.75, %v2374_v50  ;;  %v10542_v56 = vmul.f32 %v10532_v61, %v10532_v61  ;;  %v10545_v47 = vadd.f32 %v1347_v1, %v9818_v21 }
 0x1fc   : > { %v1834_v45 = vpop.f32.mrf.mxu1  ;;  %v8638_v6 = vpop.eup %8637  ;;  %8659 = vlog2.f32 %v2239_v2  ;;  %v2240_v24 = vadd.f32 1.0, %v2112_v48  ;;  %v2113_v20 = vmul.f32 3.90625e-07, %v1826_v28  ;;  %v10548_v41 = vadd.f32 %v1349_v3, %v9821_v22 }
 0x1fd   : > { %13143 = vst [vmem:[#allocation109_spill] sm:$0xff] %v10545_v47  ;;  %v10550_v33 = vpop.eup %8639  ;;  %8661 = vpow2.f32 %v2755_v38  ;;  %v2757_v19 = vmul.f32 1.442695, %v2616_v23  ;;  %v2376_v63 = vmul.f32 0.6931472, %v8638_v6  ;;  %v10554_v50 = vmul.f32 %v10545_v47, %v10545_v47  ;;  %v1351_v22 = vpop.f32.mrf.mxu0 }
 0x1fe   : > { %13144 = vst [vmem:[#allocation110_spill] sm:$0xff] %v10548_v41  ;;  %v1836_v61 = vpop.f32.mrf.mxu1  ;;  %v8642_v1 = vpop.eup %8641  ;;  %8663 = vlog2.f32 %v2240_v24  ;;  %v2241_v54 = vadd.f32 1.0, %v2113_v20  ;;  %v10558_v2 = vmul.f32 %v10548_v41, %v10548_v41  ;;  %v2114_v28 = vmul.f32 3.90625e-07, %v1828_v0 }
 0x1ff   : > { %v8644_v3 = vpop.eup %8643  ;;  %8665 = vpow2.f32 %v2757_v19  ;;  %v2617_v48 = vmul.f32 -0.75, %v2376_v63  ;;  %v2378_v38 = vmul.f32 0.6931472, %v8642_v1  ;;  %v1543_v23 = vpack.c.bf16 %v1477_v37, %v10509_v4 }
 0x200   : > { %v1838_v6 = vpop.f32.mrf.mxu1  ;;  %v10561_v40 = vpop.eup %8645  ;;  %v2380_v47 = vmul.f32 0.6931472, %v8644_v3  ;;  %8667 = vlog2.f32 %v2241_v54  ;;  %v2242_v20 = vadd.f32 1.0, %v2114_v28  ;;  %v10566_v0 = vadd.f32 %v1351_v22, %v9818_v21 }
 0x201   : > { %v2759_v35 = vmul.f32 1.442695, %v2617_v48  ;;  %v2618_v41 = vmul.f32 -0.75, %v2378_v38  ;;  %2070 = vmatprep.mubr.bf16.mxu1 %v1543_v23  ;;  %v2115_v19 = vmul.f32 3.90625e-07, %v1832_v39  ;;  %v2988_v54 = vmul.f32 %v10496_v59, %v9825_v26 }
 0x202   : > { %13145 = vst [vmem:[#allocation111_spill] sm:$0xff] %v10566_v0  ;;  %v1842_v63 = vpop.f32.mrf.mxu1  ;;  %v10568_v1 = vpop.eup %8647  ;;  %v2619_v4 = vmul.f32 -0.75, %v2380_v47  ;;  %8669 = vlog2.f32 %v2242_v20  ;;  %2071 = vmatmul.mubr.bf16.gmra.mxu1 %v1542_v5  ;;  %v2116_v37 = vmul.f32 3.90625e-07, %v1834_v45  ;;  %v1481_v48 = vmul.f32 %v10566_v0, %v10566_v0 }
 0x203   : > { %v8650_v3 = vpop.eup %8649  ;;  %8671 = vpow2.f32 %v2759_v35  ;;  %v2761_v28 = vmul.f32 1.442695, %v2618_v41  ;;  %v2243_v38 = vadd.f32 1.0, %v2115_v19  ;;  %v2990_v5 = vmul.f32 %v10514_v9, %v9837_v31 }
 0x204   : > { %v1844_v21 = vpop.f32.mrf.mxu1  ;;  %v10574_v22 = vpop.eup %8651  ;;  %v2763_v39 = vmul.f32 1.442695, %v2619_v4  ;;  %v2382_v23 = vmul.f32 0.6931472, %v8650_v3  ;;  %v2244_v24 = vadd.f32 1.0, %v2116_v37  ;;  %v3116_v45 = vmax.f32 %v2988_v54, 0.0 }
 0x205   : > { %v8654_v47 = vpop.eup %8653  ;;  %8673 = vpow2.f32 %v2761_v28  ;;  %v2117_v26 = vmul.f32 3.90625e-07, %v1836_v61  ;;  %v2987_v35 = vmul.f32 %v10487_v25, %v9834_v29  ;;  %v3118_v4 = vmax.f32 %v2990_v5, 0.0 }
 0x206   : > { %v10580_v59 = vpop.f32.mrf.mxu1  ;;  %v10582_v41 = vpop.eup %8655  ;;  %8675 = vpow2.f32 %v2763_v39  ;;  %v2620_v20 = vmul.f32 -0.75, %v2382_v23  ;;  %v2384_v19 = vmul.f32 0.6931472, %v8654_v47  ;;  %v2989_v31 = vmul.f32 %v10505_v17, %v9828_v27 }
 0x207   : > { %v8658_v3 = vpop.eup %8657  ;;  %8677 = vlog2.f32 %v2243_v38  ;;  %v2245_v37 = vadd.f32 1.0, %v2117_v26  ;;  %v3115_v9 = vmax.f32 %v2987_v35, 0.0  ;;  %v3244_v0 = vpack.c.bf16 %v3118_v4, %v3116_v45 }
 0x208   : > { %v10586_v54 = vpop.f32.mrf.mxu1  ;;  %v2765_v61 = vmul.f32 1.442695, %v2620_v20  ;;  %v2621_v28 = vmul.f32 -0.75, %v2384_v19  ;;  %v2386_v29 = vmul.f32 0.6931472, %v8658_v3  ;;  %8679 = vlog2.f32 %v2244_v24 }
 0x209   : > { %v8660_v25 = vpop.eup %8659  ;;  %8681 = vlog2.f32 %v2245_v37  ;;  %v3117_v39 = vmax.f32 %v2989_v31, 0.0  ;;  %v2118_v23 = vmul.f32 3.90625e-07, %v1838_v6  ;;  %3474 = vmatprep.mubr.bf16.mxu0 %v3244_v0  ;;  %v1545_v20 = vpack.c.bf16 %v1481_v48, %v10554_v50 }
 0x20a   : > { %v1852_v47 = vpop.f32.mrf.mxu1  ;;  %v10588_v5 = vpop.eup %8661  ;;  %8683 = vpow2.f32 %v2765_v61  ;;  %v2767_v38 = vmul.f32 1.442695, %v2621_v28  ;;  %v2622_v26 = vmul.f32 -0.75, %v2386_v29  ;;  %v2388_v8 = vmul.f32 0.6931472, %v8660_v25 }
 0x20b   : > { %v8664_v27 = vpop.eup %8663  ;;  %v3243_v17 = vpack.c.bf16 %v3117_v39, %v3115_v9  ;;  %v2246_v35 = vadd.f32 1.0, %v2118_v23  ;;  %v2119_v19 = vmul.f32 3.90625e-07, %v1842_v63  ;;  %2080 = vmatprep.mubr.bf16.mxu1 %v1545_v20  ;;  %v2120_v61 = vmul.f32 3.90625e-07, %v1844_v21 }
 0x20c   : > { %v1854_v24 = vpop.f32.mrf.mxu1  ;;  %v10591_v3 = vpop.eup %8665  ;;  %8685 = vpow2.f32 %v2767_v38  ;;  %v2769_v45 = vmul.f32 1.442695, %v2622_v26  ;;  %v2623_v6 = vmul.f32 -0.75, %v2388_v8  ;;  %v2390_v4 = vmul.f32 0.6931472, %v8664_v27 }
 0x20d   : > { %v8668_v37 = vpop.eup %8667  ;;  %3475 = vmatmul.mubr.bf16.vlgmr.msra.gmra.mxu0 %v3243_v17  ;;  %8687 = vlog2.f32 %v2246_v35  ;;  %v2247_v31 = vadd.f32 1.0, %v2119_v19  ;;  %v2992_v0 = vmul.f32 %v10534_v49, %v9852_v42  ;;  %v13146_v28 = vpack.c.bf16 %v10558_v2, %v10542_v56 }
 0x20e   : > { %v10595_v9 = vpop.f32.mrf.mxu1  ;;  %8689 = vpow2.f32 %v2769_v45  ;;  %v2771_v50 = vmul.f32 1.442695, %v2623_v6  ;;  %v2624_v63 = vmul.f32 -0.75, %v2390_v4  ;;  %v2392_v48 = vmul.f32 0.6931472, %v8668_v37 }
 0x20f   : > { %2081 = vmatmul.mubr.bf16.gmra.mxu1 %v13146_v28  ;;  %v8670_v8 = vpop.eup %8669  ;;  %8691 = vlog2.f32 %v2247_v31  ;;  %v2248_v29 = vadd.f32 1.0, %v2120_v61  ;;  %v2994_v25 = vmul.f32 %v10550_v33, %v9861_v46  ;;  %v3120_v21 = vmax.f32 %v2992_v0, 0.0 }
 0x210   : > { %v10602_v39 = vpop.f32.mrf.mxu1  ;;  %v10604_v42 = vpop.eup %8671  ;;  %8693 = vpow2.f32 %v2771_v50  ;;  %v2773_v49 = vmul.f32 1.442695, %v2624_v63  ;;  %v2625_v23 = vmul.f32 -0.75, %v2392_v48  ;;  %v2394_v38 = vmul.f32 0.6931472, %v8670_v8 }
 0x211   : > { %8695 = vlog2.f32 %v2248_v29  ;;  %v3122_v26 = vmax.f32 %v2994_v25, 0.0  ;;  %v2121_v56 = vmul.f32 3.90625e-07, %v10580_v59  ;;  %v2991_v2 = vmul.f32 %v10521_v18, %v9858_v44 }
 0x212   : > { %v10609_v27 = vpop.f32.mrf.mxu1  ;;  %v10611_v17 = vpop.eup %8673  ;;  %8697 = vpow2.f32 %v2773_v49  ;;  %v2775_v46 = vmul.f32 1.442695, %v2625_v23  ;;  %v2626_v33 = vmul.f32 -0.75, %v2394_v38  ;;  %v2993_v35 = vmul.f32 %v10538_v15, %v9855_v43 }
 0x213   : > { %v10615_v20 = vpop.eup %8675  ;;  %v3246_v19 = vpack.c.bf16 %v3122_v26, %v3120_v21  ;;  %v2249_v45 = vadd.f32 1.0, %v2121_v56  ;;  %v3119_v6 = vmax.f32 %v2991_v2, 0.0  ;;  %v2122_v59 = vmul.f32 3.90625e-07, %v10586_v54 }
 0x214   : > { %v1864_v4 = vpop.f32.mrf.mxu1  ;;  %v8678_v37 = vpop.eup %8677  ;;  %8699 = vpow2.f32 %v2775_v46  ;;  %v2777_v44 = vmul.f32 1.442695, %v2626_v33  ;;  %v3121_v18 = vmax.f32 %v2993_v35, 0.0  ;;  %v2123_v31 = vmul.f32 3.90625e-07, %v1852_v47 }
 0x215   : > { %v8680_v61 = vpop.eup %8679  ;;  %v2396_v0 = vmul.f32 0.6931472, %v8678_v37  ;;  %3482 = vmatprep.mubr.bf16.mxu0 %v3246_v19  ;;  %8701 = vlog2.f32 %v2249_v45  ;;  %v2250_v50 = vadd.f32 1.0, %v2122_v59  ;;  %v2124_v63 = vmul.f32 3.90625e-07, %v1854_v24 }
 0x216   : > { %v10618_v43 = vpop.f32.mrf.mxu1  ;;  %v8682_v15 = vpop.eup %8681  ;;  %8703 = vpow2.f32 %v2777_v44  ;;  %v2398_v48 = vmul.f32 0.6931472, %v8680_v61  ;;  %v3245_v28 = vpack.c.bf16 %v3121_v18, %v3119_v6  ;;  %v2251_v8 = vadd.f32 1.0, %v2123_v31  ;;  %v8540_v31 = vld [vmem:[%s12790_s7 + $0x30] sm:$0xff]  }
 0x217   : > { %v10620_v54 = vpop.eup %8683  ;;  %v2627_v29 = vmul.f32 -0.75, %v2396_v0  ;;  %v2400_v25 = vmul.f32 0.6931472, %v8682_v15  ;;  %8705 = vlog2.f32 %v2250_v50  ;;  %v2252_v21 = vadd.f32 1.0, %v2124_v63  ;;  %7889 = vmatprep.subr.bf16.mxu1 %v8540_v31 }
 0x218   : > { %v10622_v47 = vpop.f32.mrf.mxu1  ;;  %v2628_v49 = vmul.f32 -0.75, %v2398_v48  ;;  %3483 = vmatmul.mubr.bf16.gmra.mxu0 %v3245_v28  ;;  %8707 = vlog2.f32 %v2251_v8  ;;  %v2996_v24 = vmul.f32 %v10568_v1, %v9875_v57  ;;  %v2998_v23 = vmul.f32 %v10582_v41, %v9887_v62  ;;  %7890 = vmatpush3.bf16.msra.mxu1 %v8540_v31 }
 0x219   : > { %v10628_v38 = vpop.eup %8685  ;;  %v2779_v26 = vmul.f32 1.442695, %v2627_v29  ;;  %v2629_v56 = vmul.f32 -0.75, %v2400_v25  ;;  %8709 = vlog2.f32 %v2252_v21  ;;  %v2125_v2 = vmul.f32 3.90625e-07, %v10595_v9 }
 0x21a   : > { %v10631_v46 = vpop.f32.mrf.mxu1  ;;  %v8688_v33 = vpop.eup %8687  ;;  %v2781_v35 = vmul.f32 1.442695, %v2628_v49  ;;  %v3124_v19 = vmax.f32 %v2996_v24, 0.0  ;;  %v3126_v45 = vmax.f32 %v2998_v23, 0.0  ;;  %v2995_v6 = vmul.f32 %v10561_v40, %v9884_v60 }
 0x21b   : > { %v10635_v57 = vpop.eup %8689  ;;  %8711 = vpow2.f32 %v2779_v26  ;;  %v2783_v62 = vmul.f32 1.442695, %v2629_v56  ;;  %v2402_v1 = vmul.f32 0.6931472, %v8688_v33  ;;  %v2253_v41 = vadd.f32 1.0, %v2125_v2 }
 0x21c   : > { %v10637_v59 = vpop.f32.mrf.mxu1  ;;  %v8692_v37 = vpop.eup %8691  ;;  %8713 = vpow2.f32 %v2781_v35  ;;  %v3248_v9 = vpack.c.bf16 %v3126_v45, %v3124_v19  ;;  %v2997_v44 = vmul.f32 %v10574_v22, %v9878_v58  ;;  %v3123_v18 = vmax.f32 %v2995_v6, 0.0 }
 0x21d   : > { %v10644_v60 = vpop.eup %8693  ;;  %8715 = vpow2.f32 %v2783_v62  ;;  %v2630_v40 = vmul.f32 -0.75, %v2402_v1  ;;  %v2404_v61 = vmul.f32 0.6931472, %v8692_v37  ;;  %v2126_v0 = vmul.f32 3.90625e-07, %v10602_v39 }
 0x21e   : > { %v10647_v50 = vpop.f32.mrf.mxu1  ;;  %v8696_v63 = vpop.eup %8695  ;;  %3490 = vmatprep.mubr.bf16.mxu0 %v3248_v9  ;;  %8717 = vlog2.f32 %v2253_v41  ;;  %v3125_v15 = vmax.f32 %v2997_v44, 0.0  ;;  %v2127_v58 = vmul.f32 3.90625e-07, %v10609_v27  ;;  %v2128_v22 = vmul.f32 3.90625e-07, %v1864_v4 }
 0x21f   : > { %v10650_v48 = vpop.eup %8697  ;;  %v2785_v28 = vmul.f32 1.442695, %v2630_v40  ;;  %v2631_v8 = vmul.f32 -0.75, %v2404_v61  ;;  %v2406_v29 = vmul.f32 0.6931472, %v8696_v63  ;;  %v2254_v25 = vadd.f32 1.0, %v2126_v0 }
 0x220   : > { %v10652_v21 = vpop.f32.mrf.mxu1  ;;  %v3247_v39 = vpack.c.bf16 %v3125_v15, %v3123_v18  ;;  %v2255_v49 = vadd.f32 1.0, %v2127_v58  ;;  %v2256_v24 = vadd.f32 1.0, %v2128_v22  ;;  %v3000_v23 = vmul.f32 %v10591_v3, %v9902_v10 }
 0x221   : > { %v10656_v26 = vpop.eup %8699  ;;  %8719 = vpow2.f32 %v2785_v28  ;;  %v2787_v27 = vmul.f32 1.442695, %v2631_v8  ;;  %v2632_v4 = vmul.f32 -0.75, %v2406_v29  ;;  %v3002_v56 = vmul.f32 %v10611_v17, %v9911_v14 }
 0x222   : > { %v10660_v2 = vpop.f32.mrf.mxu1  ;;  %v8702_v33 = vpop.eup %8701  ;;  %3491 = vmatmul.mubr.bf16.gmra.mxu0 %v3247_v39  ;;  %8721 = vlog2.f32 %v2254_v25  ;;  %v3128_v35 = vmax.f32 %v3000_v23, 0.0  ;;  %v2129_v19 = vmul.f32 3.90625e-07, %v10618_v43  ;;  %v2999_v45 = vmul.f32 %v10588_v5, %v9908_v12 }
 0x223   : > { %v10665_v10 = vpop.eup %8703  ;;  %8723 = vpow2.f32 %v2787_v27  ;;  %v2789_v3 = vmul.f32 1.442695, %v2632_v4  ;;  %v2408_v6 = vmul.f32 0.6931472, %v8702_v33  ;;  %v3130_v62 = vmax.f32 %v3002_v56, 0.0 }
 0x224   : > { %v10667_v1 = vpop.f32.mrf.mxu1  ;;  %v8706_v14 = vpop.eup %8705  ;;  %8725 = vlog2.f32 %v2255_v49  ;;  %v2257_v17 = vadd.f32 1.0, %v2129_v19  ;;  %v3001_v41 = vmul.f32 %v10604_v42, %v9905_v11  ;;  %v3127_v37 = vmax.f32 %v2999_v45, 0.0 }
 0x225   : > { %v8708_v9 = vpop.eup %8707  ;;  %8727 = vpow2.f32 %v2789_v3  ;;  %v2633_v43 = vmul.f32 -0.75, %v2408_v6  ;;  %v2410_v44 = vmul.f32 0.6931472, %v8706_v14  ;;  %v3250_v12 = vpack.c.bf16 %v3130_v62, %v3128_v35 }
 0x226   : > { %v10671_v5 = vpop.f32.mrf.mxu1  ;;  %v8710_v18 = vpop.eup %8709  ;;  %v2412_v31 = vmul.f32 0.6931472, %v8708_v9  ;;  %8729 = vlog2.f32 %v2256_v24  ;;  %v3129_v40 = vmax.f32 %v3001_v41, 0.0  ;;  %v2130_v61 = vmul.f32 3.90625e-07, %v10622_v47 }
 0x227   : > { %v2791_v0 = vmul.f32 1.442695, %v2633_v43  ;;  %v2634_v63 = vmul.f32 -0.75, %v2410_v44  ;;  %v2414_v15 = vmul.f32 0.6931472, %v8710_v18  ;;  %3498 = vmatprep.mubr.bf16.mxu0 %v3250_v12  ;;  %8731 = vlog2.f32 %v2257_v17 }
 0x228   : > { %v10674_v11 = vpop.f32.mrf.mxu1  ;;  %v10676_v42 = vpop.eup %8711  ;;  %v2635_v58 = vmul.f32 -0.75, %v2412_v31  ;;  %v3249_v22 = vpack.c.bf16 %v3129_v40, %v3127_v37  ;;  %v2258_v28 = vadd.f32 1.0, %v2130_v61  ;;  %v2131_v8 = vmul.f32 3.90625e-07, %v10631_v46 }
 0x229   : > { %v10679_v29 = vpop.eup %8713  ;;  %8733 = vpow2.f32 %v2791_v0  ;;  %v2793_v25 = vmul.f32 1.442695, %v2634_v63  ;;  %v2636_v39 = vmul.f32 -0.75, %v2414_v15  ;;  %v2132_v47 = vmul.f32 3.90625e-07, %v10637_v59 }
 0x22a   : > { %v10682_v49 = vpop.f32.mrf.mxu1  ;;  %v10684_v24 = vpop.eup %8715  ;;  %v2795_v23 = vmul.f32 1.442695, %v2635_v58  ;;  %3499 = vmatmul.mubr.bf16.gmra.mxu0 %v3249_v22  ;;  %8735 = vlog2.f32 %v2258_v28  ;;  %v2259_v27 = vadd.f32 1.0, %v2131_v8  ;;  %v3004_v4 = vmul.f32 %v10620_v54, %v9925_v30 }
 0x22b   : > { %v8718_v56 = vpop.eup %8717  ;;  %8737 = vpow2.f32 %v2793_v25  ;;  %v2797_v46 = vmul.f32 1.442695, %v2636_v39  ;;  %v2260_v33 = vadd.f32 1.0, %v2132_v47  ;;  %v3006_v35 = vmul.f32 %v10635_v57, %v9937_v36 }
 0x22c   : > { %v10690_v19 = vpop.f32.mrf.mxu1  ;;  %8739 = vpow2.f32 %v2795_v23  ;;  %v2416_v59 = vmul.f32 0.6931472, %v8718_v56  ;;  %v3132_v45 = vmax.f32 %v3004_v4, 0.0  ;;  %v2133_v3 = vmul.f32 3.90625e-07, %v10647_v50 }
 0x22d   : > { %8741 = vpow2.f32 %v2797_v46  ;;  %v3134_v6 = vmax.f32 %v3006_v35, 0.0  ;;  %v3003_v62 = vmul.f32 %v10615_v20, %v9934_v34  ;;  %v3005_v30 = vmul.f32 %v10628_v38, %v9928_v32 }
 0x22e   : > { %v10697_v54 = vpop.f32.mrf.mxu1  ;;  %v10699_v14 = vpop.eup %8719  ;;  %v2637_v36 = vmul.f32 -0.75, %v2416_v59  ;;  %8743 = vlog2.f32 %v2259_v27  ;;  %v2261_v57 = vadd.f32 1.0, %v2133_v3  ;;  %v2134_v17 = vmul.f32 3.90625e-07, %v10652_v21 }
 0x22f   : > { %v8722_v41 = vpop.eup %8721  ;;  %8745 = vlog2.f32 %v2260_v33  ;;  %v3252_v50 = vpack.c.bf16 %v3134_v6, %v3132_v45  ;;  %v3131_v37 = vmax.f32 %v3003_v62, 0.0  ;;  %v3133_v9 = vmax.f32 %v3005_v30, 0.0 }
 0x230   : > { %v10702_v43 = vpop.f32.mrf.mxu1  ;;  %v10704_v34 = vpop.eup %8723  ;;  %v2799_v20 = vmul.f32 1.442695, %v2637_v36  ;;  %v2418_v32 = vmul.f32 0.6931472, %v8722_v41  ;;  %8747 = vlog2.f32 %v2261_v57  ;;  %v2262_v38 = vadd.f32 1.0, %v2134_v17 }
 0x231   : > { %v8726_v44 = vpop.eup %8725  ;;  %3506 = vmatprep.mubr.bf16.mxu0 %v3252_v50  ;;  %v3251_v12 = vpack.c.bf16 %v3133_v9, %v3131_v37  ;;  %v2135_v18 = vmul.f32 3.90625e-07, %v10660_v2  ;;  %v2136_v21 = vmul.f32 3.90625e-07, %v10667_v1  ;;  %v3008_v31 = vmul.f32 %v10650_v48, %v9952_v51 }
 0x232   : > { %v10710_v40 = vpop.f32.mrf.mxu1  ;;  %v10712_v61 = vpop.eup %8727  ;;  %8749 = vpow2.f32 %v2799_v20  ;;  %v2638_v0 = vmul.f32 -0.75, %v2418_v32  ;;  %v2420_v63 = vmul.f32 0.6931472, %v8726_v44  ;;  %v3010_v15 = vmul.f32 %v10665_v10, %v9961_v55 }
 0x233   : > { %v8730_v58 = vpop.eup %8729  ;;  %3507 = vmatmul.mubr.bf16.gmra.mxu0 %v3251_v12  ;;  %8751 = vlog2.f32 %v2262_v38  ;;  %v2263_v22 = vadd.f32 1.0, %v2135_v18  ;;  %v2264_v2 = vadd.f32 1.0, %v2136_v21  ;;  %v3136_v28 = vmax.f32 %v3008_v31, 0.0 }
 0x234   : > { %v10716_v1 = vpop.f32.mrf.mxu1  ;;  %v8732_v8 = vpop.eup %8731  ;;  %v2801_v51 = vmul.f32 1.442695, %v2638_v0  ;;  %v2639_v48 = vmul.f32 -0.75, %v2420_v63  ;;  %v2422_v25 = vmul.f32 0.6931472, %v8730_v58  ;;  %v3138_v39 = vmax.f32 %v3010_v15, 0.0 }
 0x235   : > { %v2424_v47 = vmul.f32 0.6931472, %v8732_v8  ;;  %8753 = vlog2.f32 %v2263_v22  ;;  %v2137_v23 = vmul.f32 3.90625e-07, %v10671_v5  ;;  %v3007_v55 = vmul.f32 %v10644_v60, %v9958_v53 }
 0x236   : > { %v10721_v10 = vpop.f32.mrf.mxu1  ;;  %v10723_v27 = vpop.eup %8733  ;;  %8755 = vpow2.f32 %v2801_v51  ;;  %v2803_v4 = vmul.f32 1.442695, %v2639_v48  ;;  %v2640_v56 = vmul.f32 -0.75, %v2422_v25  ;;  %v3254_v46 = vpack.c.bf16 %v3138_v39, %v3136_v28 }
 0x237   : > { %v8736_v33 = vpop.eup %8735  ;;  %v2641_v35 = vmul.f32 -0.75, %v2424_v47  ;;  %8757 = vlog2.f32 %v2264_v2  ;;  %v2265_v59 = vadd.f32 1.0, %v2137_v23  ;;  %v3009_v45 = vmul.f32 %v10656_v26, %v9955_v52  ;;  %v13147_v23 = vld [vmem:[#allocation11_spill] sm:$0xff] }
 0x238   : > { %v10727_v3 = vpop.f32.mrf.mxu1  ;;  %v10729_v5 = vpop.eup %8737  ;;  %8759 = vpow2.f32 %v2803_v4  ;;  %v2805_v53 = vmul.f32 1.442695, %v2640_v56  ;;  %v2426_v60 = vmul.f32 0.6931472, %v8736_v33  ;;  %3514 = vmatprep.mubr.bf16.mxu0 %v3254_v46  ;;  %v3135_v6 = vmax.f32 %v3007_v55, 0.0  ;;  %v8541_v4 = vld [vmem:[%s12790_s7 + $0x28] sm:$0xff]  }
 0x239   : > { %v10731_v62 = vpop.eup %8739  ;;  %v2807_v30 = vmul.f32 1.442695, %v2641_v35  ;;  %8761 = vlog2.f32 %v2265_v59  ;;  %v3137_v36 = vmax.f32 %v3009_v45, 0.0  ;;  %v2138_v57 = vmul.f32 3.90625e-07, %v10674_v11  ;;  %7891 = vmatprep.subr.bf16.mxu1 %v8541_v4 }
 0x23a   : > { %v10734_v17 = vpop.f32.mrf.mxu1  ;;  %v10736_v41 = vpop.eup %8741  ;;  %8763 = vpow2.f32 %v2805_v53  ;;  %v2642_v52 = vmul.f32 -0.75, %v2426_v60  ;;  %v2139_v26 = vmul.f32 3.90625e-07, %v10682_v49  ;;  %v2140_v50 = vmul.f32 3.90625e-07, %v10690_v19  ;;  %7892 = vmatpush3.bf16.msra.mxu1 %v8541_v4 }
 0x23b   : > { %v8744_v37 = vpop.eup %8743  ;;  %8765 = vpow2.f32 %v2807_v30  ;;  %v3253_v9 = vpack.c.bf16 %v3137_v36, %v3135_v6  ;;  %v2266_v20 = vadd.f32 1.0, %v2138_v57  ;;  %v3012_v32 = vmul.f32 %v10679_v29, %v9975_v7 }
 0x23c   : > { %v10742_v38 = vpop.f32.mrf.mxu1  ;;  %v8746_v11 = vpop.eup %8745  ;;  %v2809_v44 = vmul.f32 1.442695, %v2642_v52  ;;  %v2428_v12 = vmul.f32 0.6931472, %v8744_v37  ;;  %v2267_v18 = vadd.f32 1.0, %v2139_v26  ;;  %v2268_v21 = vadd.f32 1.0, %v2140_v50 }
 0x23d   : > { %v8748_v31 = vpop.eup %8747  ;;  %v2430_v0 = vmul.f32 0.6931472, %v8746_v11  ;;  %3515 = vmatmul.mubr.bf16.gmra.mxu0 %v3253_v9  ;;  %8767 = vlog2.f32 %v2266_v20  ;;  %v3014_v49 = vmul.f32 %v10699_v14, %v9987_v16  ;;  %v3140_v19 = vmax.f32 %v3012_v32, 0.0 }
 0x23e   : > { %v10746_v63 = vpop.f32.mrf.mxu1  ;;  %8769 = vpow2.f32 %v2809_v44  ;;  %v2643_v15 = vmul.f32 -0.75, %v2428_v12  ;;  %v2432_v7 = vmul.f32 0.6931472, %v8748_v31  ;;  %v2141_v29 = vmul.f32 3.90625e-07, %v10697_v54  ;;  %v13149_v31 = vld [vmem:[#allocation15_spill] sm:$0xff] }
 0x23f   : > { %v10749_v58 = vpop.eup %8749  ;;  %v2644_v22 = vmul.f32 -0.75, %v2430_v0  ;;  %8771 = vlog2.f32 %v2267_v18  ;;  %v3142_v2 = vmax.f32 %v3014_v49, 0.0  ;;  %v3011_v28 = vmul.f32 %v10676_v42, %v9984_v13  ;;  %v13148_v18 = vld [vmem:[#allocation12_spill] sm:$0xff] }
 0x240   : > { %v10753_v8 = vpop.f32.mrf.mxu1  ;;  %v8752_v51 = vpop.eup %8751  ;;  %v2811_v16 = vmul.f32 1.442695, %v2643_v15  ;;  %v2645_v14 = vmul.f32 -0.75, %v2432_v7  ;;  %8773 = vlog2.f32 %v2268_v21  ;;  %v2269_v48 = vadd.f32 1.0, %v2141_v29  ;;  %v13150_v7 = vld [vmem:[#allocation14_spill] sm:$0xff] }
 0x241   : > { %v2813_v25 = vmul.f32 1.442695, %v2644_v22  ;;  %v2434_v39 = vmul.f32 0.6931472, %v8752_v51  ;;  %v3256_v47 = vpack.c.bf16 %v3142_v2, %v3140_v19  ;;  %v3013_v54 = vmul.f32 %v10684_v24, %v13147_v23 }
 0x242   : > { %v10757_v55 = vpop.f32.mrf.mxu1  ;;  %v8754_v13 = vpop.eup %8753  ;;  %8775 = vpow2.f32 %v2811_v16  ;;  %v2815_v42 = vmul.f32 1.442695, %v2645_v14  ;;  %v3139_v56 = vmax.f32 %v3011_v28, 0.0  ;;  %v2142_v46 = vmul.f32 3.90625e-07, %v10702_v43 }
 0x243   : > { %v10763_v33 = vpop.eup %8755  ;;  %8777 = vpow2.f32 %v2813_v25  ;;  %v2646_v35 = vmul.f32 -0.75, %v2434_v39  ;;  %v2436_v59 = vmul.f32 0.6931472, %v8754_v13  ;;  %3522 = vmatprep.mubr.bf16.mxu0 %v3256_v47  ;;  %v3141_v45 = vmax.f32 %v3013_v54, 0.0 }
 0x244   : > { %v10765_v24 = vpop.f32.mrf.mxu1  ;;  %v8758_v53 = vpop.eup %8757  ;;  %8779 = vpow2.f32 %v2815_v42  ;;  %v2270_v60 = vadd.f32 1.0, %v2142_v46  ;;  %v2143_v6 = vmul.f32 3.90625e-07, %v10710_v40  ;;  %v2144_v30 = vmul.f32 3.90625e-07, %v10716_v1 }
 0x245   : > { %v10769_v36 = vpop.eup %8759  ;;  %v2817_v43 = vmul.f32 1.442695, %v2646_v35  ;;  %v2647_v57 = vmul.f32 -0.75, %v2436_v59  ;;  %v2438_v52 = vmul.f32 0.6931472, %v8758_v53  ;;  %8781 = vlog2.f32 %v2269_v48  ;;  %v13151_v48 = vld [vmem:[#allocation13_spill] sm:$0xff] }
 0x246   : > { %v10771_v26 = vpop.f32.mrf.mxu1  ;;  %v8762_v50 = vpop.eup %8761  ;;  %v3255_v37 = vpack.c.bf16 %v3141_v45, %v3139_v56  ;;  %8783 = vlog2.f32 %v2270_v60  ;;  %v2271_v9 = vadd.f32 1.0, %v2143_v6  ;;  %v2272_v20 = vadd.f32 1.0, %v2144_v30  ;;  %v13152_v59 = vld [vmem:[#allocation16_spill] sm:$0xff] }
 0x247   : > { %v10773_v32 = vpop.eup %8763  ;;  %8785 = vpow2.f32 %v2817_v43  ;;  %v2819_v40 = vmul.f32 1.442695, %v2647_v57  ;;  %v2648_v11 = vmul.f32 -0.75, %v2438_v52  ;;  %v2440_v1 = vmul.f32 0.6931472, %v8762_v50 }
 0x248   : > { %v10775_v44 = vpop.f32.mrf.mxu1  ;;  %v10777_v12 = vpop.eup %8765  ;;  %3523 = vmatmul.mubr.bf16.gmra.mxu0 %v3255_v37  ;;  %8787 = vlog2.f32 %v2271_v9  ;;  %v3016_v21 = vmul.f32 %v10712_v61, %v13148_v18  ;;  %v3018_v0 = vmul.f32 %v10729_v5, %v13149_v31  ;;  %v2145_v49 = vmul.f32 3.90625e-07, %v10721_v10  ;;  %v13153_v37 = vld [vmem:[#allocation19_spill] sm:$0xff] }
 0x249   : > { %8789 = vpow2.f32 %v2819_v40  ;;  %v2821_v19 = vmul.f32 1.442695, %v2648_v11  ;;  %v2649_v15 = vmul.f32 -0.75, %v2440_v1  ;;  %v3015_v29 = vmul.f32 %v10704_v34, %v13150_v7 }
 0x24a   : > { %v10786_v22 = vpop.f32.mrf.mxu1  ;;  %v8768_v2 = vpop.eup %8767  ;;  %8791 = vlog2.f32 %v2272_v20  ;;  %v3144_v28 = vmax.f32 %v3016_v21, 0.0  ;;  %v3146_v51 = vmax.f32 %v3018_v0, 0.0  ;;  %v2273_v16 = vadd.f32 1.0, %v2145_v49  ;;  %v13154_v49 = vld [vmem:[#allocation18_spill] sm:$0xff] }
 0x24b   : > { %v10788_v14 = vpop.eup %8769  ;;  %8793 = vpow2.f32 %v2821_v19  ;;  %v2823_v61 = vmul.f32 1.442695, %v2649_v15  ;;  %v2442_v5 = vmul.f32 0.6931472, %v8768_v2  ;;  %v3017_v10 = vmul.f32 %v10723_v27, %v13151_v48  ;;  %v13155_v19 = vld [vmem:[#allocation17_spill] sm:$0xff] }
 0x24c   : > { %v10792_v25 = vpop.f32.mrf.mxu1  ;;  %v8772_v39 = vpop.eup %8771  ;;  %v3258_v47 = vpack.c.bf16 %v3146_v51, %v3144_v28  ;;  %8795 = vlog2.f32 %v2273_v16  ;;  %v3143_v34 = vmax.f32 %v3015_v29, 0.0  ;;  %v2146_v23 = vmul.f32 3.90625e-07, %v10727_v3 }
 0x24d   : > { %v8774_v54 = vpop.eup %8773  ;;  %8797 = vpow2.f32 %v2823_v61  ;;  %v2650_v4 = vmul.f32 -0.75, %v2442_v5  ;;  %v2444_v13 = vmul.f32 0.6931472, %v8772_v39  ;;  %v3145_v42 = vmax.f32 %v3017_v10, 0.0 }
 0x24e   : > { %v10795_v56 = vpop.f32.mrf.mxu1  ;;  %v2446_v46 = vmul.f32 0.6931472, %v8774_v54  ;;  %3530 = vmatprep.mubr.bf16.mxu0 %v3258_v47  ;;  %v2274_v35 = vadd.f32 1.0, %v2146_v23  ;;  %v2147_v27 = vmul.f32 3.90625e-07, %v10734_v17  ;;  %v3020_v45 = vmul.f32 %v10736_v41, %v13152_v59 }
 0x24f   : > { %v10800_v53 = vpop.eup %8775  ;;  %v2825_v60 = vmul.f32 1.442695, %v2650_v4  ;;  %v2651_v6 = vmul.f32 -0.75, %v2444_v13  ;;  %v3257_v3 = vpack.c.bf16 %v3145_v42, %v3143_v34  ;;  %v2148_v30 = vmul.f32 3.90625e-07, %v10742_v38 }
 0x250   : > { %v10803_v43 = vpop.f32.mrf.mxu1  ;;  %v10805_v57 = vpop.eup %8777  ;;  %v2652_v52 = vmul.f32 -0.75, %v2446_v46  ;;  %8799 = vlog2.f32 %v2274_v35  ;;  %v2275_v50 = vadd.f32 1.0, %v2147_v27  ;;  %v3022_v17 = vmul.f32 %v10763_v33, %v13153_v37  ;;  %v13157_v37 = vld [vmem:[#allocation23_spill] sm:$0xff] }
 0x251   : > { %v10809_v9 = vpop.eup %8779  ;;  %8801 = vpow2.f32 %v2825_v60  ;;  %v2827_v41 = vmul.f32 1.442695, %v2651_v6  ;;  %3531 = vmatmul.mubr.bf16.gmra.mxu0 %v3257_v3  ;;  %v2276_v20 = vadd.f32 1.0, %v2148_v30  ;;  %v3148_v40 = vmax.f32 %v3020_v45, 0.0  ;;  %v13156_v6 = vld [vmem:[#allocation20_spill] sm:$0xff] }
 0x252   : > { %v10811_v11 = vpop.f32.mrf.mxu1  ;;  %v8782_v38 = vpop.eup %8781  ;;  %v2829_v1 = vmul.f32 1.442695, %v2652_v52  ;;  %8803 = vlog2.f32 %v2275_v50  ;;  %v3150_v18 = vmax.f32 %v3022_v17, 0.0  ;;  %v2149_v21 = vmul.f32 3.90625e-07, %v10746_v63 }
 0x253   : > { %v8784_v31 = vpop.eup %8783  ;;  %8805 = vpow2.f32 %v2827_v41  ;;  %v2448_v0 = vmul.f32 0.6931472, %v8782_v38  ;;  %v3019_v33 = vmul.f32 %v10731_v62, %v13154_v49  ;;  %v3021_v15 = vmul.f32 %v10749_v58, %v13155_v19  ;;  %v13159_v49 = vld [vmem:[#allocation21_spill] sm:$0xff] }
 0x254   : > { %v10818_v7 = vpop.f32.mrf.mxu1  ;;  %v10820_v29 = vpop.eup %8785  ;;  %8807 = vpow2.f32 %v2829_v1  ;;  %v2450_v2 = vmul.f32 0.6931472, %v8784_v31  ;;  %v3260_v28 = vpack.c.bf16 %v3150_v18, %v3148_v40  ;;  %v2277_v51 = vadd.f32 1.0, %v2149_v21  ;;  %v13158_v1 = vld [vmem:[#allocation22_spill] sm:$0xff] }
 0x255   : > { %v8788_v16 = vpop.eup %8787  ;;  %v2653_v61 = vmul.f32 -0.75, %v2448_v0  ;;  %8809 = vlog2.f32 %v2276_v20  ;;  %v3147_v63 = vmax.f32 %v3019_v33, 0.0  ;;  %v3149_v5 = vmax.f32 %v3021_v15, 0.0 }
 0x256   : > { %v10822_v48 = vpop.f32.mrf.mxu1  ;;  %v10824_v10 = vpop.eup %8789  ;;  %v2654_v62 = vmul.f32 -0.75, %v2450_v2  ;;  %v2452_v39 = vmul.f32 0.6931472, %v8788_v16  ;;  %3538 = vmatprep.mubr.bf16.mxu0 %v3260_v28  ;;  %8811 = vlog2.f32 %v2277_v51  ;;  %v2150_v58 = vmul.f32 3.90625e-07, %v10753_v8 }
 0x257   : > { %v8792_v47 = vpop.eup %8791  ;;  %v2831_v34 = vmul.f32 1.442695, %v2653_v61  ;;  %v3259_v23 = vpack.c.bf16 %v3149_v5, %v3147_v63  ;;  %v2151_v54 = vmul.f32 3.90625e-07, %v10757_v55  ;;  %v2152_v4 = vmul.f32 3.90625e-07, %v10765_v24 }
 0x258   : > { %v10829_v13 = vpop.f32.mrf.mxu1  ;;  %v10831_v42 = vpop.eup %8793  ;;  %v2833_v46 = vmul.f32 1.442695, %v2654_v62  ;;  %v2655_v35 = vmul.f32 -0.75, %v2452_v39  ;;  %v2454_v27 = vmul.f32 0.6931472, %v8792_v47  ;;  %v2278_v59 = vadd.f32 1.0, %v2150_v58 }
 0x259   : > { %v8796_v45 = vpop.eup %8795  ;;  %8813 = vpow2.f32 %v2831_v34  ;;  %3539 = vmatmul.mubr.bf16.gmra.mxu0 %v3259_v23  ;;  %v2279_v60 = vadd.f32 1.0, %v2151_v54  ;;  %v2280_v8 = vadd.f32 1.0, %v2152_v4  ;;  %v3024_v3 = vmul.f32 %v10773_v32, %v13156_v6 }
 0x25a   : > { %v10835_v30 = vpop.f32.mrf.mxu1  ;;  %v10837_v55 = vpop.eup %8797  ;;  %8815 = vpow2.f32 %v2833_v46  ;;  %v2835_v24 = vmul.f32 1.442695, %v2655_v35  ;;  %v2656_v52 = vmul.f32 -0.75, %v2454_v27  ;;  %v2456_v50 = vmul.f32 0.6931472, %v8796_v45  ;;  %v13160_v35 = vld [vmem:[#allocation24_spill] sm:$0xff] }
 0x25b   : > { %8817 = vlog2.f32 %v2278_v59  ;;  %v3026_v17 = vmul.f32 %v10788_v14, %v13157_v37  ;;  %v3152_v41 = vmax.f32 %v3024_v3, 0.0  ;;  %v2153_v20 = vmul.f32 3.90625e-07, %v10771_v26 }
 0x25c   : > { %v10842_v40 = vpop.f32.mrf.mxu1  ;;  %8819 = vpow2.f32 %v2835_v24  ;;  %v2837_v38 = vmul.f32 1.442695, %v2656_v52  ;;  %v2657_v32 = vmul.f32 -0.75, %v2456_v50  ;;  %v3023_v18 = vmul.f32 %v10769_v36, %v13158_v1 }
 0x25d   : > { %v8800_v21 = vpop.eup %8799  ;;  %8821 = vlog2.f32 %v2279_v60  ;;  %v3154_v31 = vmax.f32 %v3026_v17, 0.0  ;;  %v2281_v0 = vadd.f32 1.0, %v2153_v20  ;;  %v3025_v33 = vmul.f32 %v10777_v12, %v13159_v49  ;;  %v13161_v60 = vld [vmem:[#allocation27_spill] sm:$0xff]  ;;  %v13162_v20 = vld [vmem:[#allocation26_spill] sm:$0xff] }
 0x25e   : > { %v10848_v19 = vpop.f32.mrf.mxu1  ;;  %v10850_v14 = vpop.eup %8801  ;;  %8823 = vpow2.f32 %v2837_v38  ;;  %v2839_v26 = vmul.f32 1.442695, %v2657_v32  ;;  %v2458_v15 = vmul.f32 0.6931472, %v8800_v21  ;;  %v3151_v2 = vmax.f32 %v3023_v18, 0.0  ;;  %v13163_v38 = vld [vmem:[#allocation25_spill] sm:$0xff] }
 0x25f   : > { %v8804_v28 = vpop.eup %8803  ;;  %8825 = vlog2.f32 %v2280_v8  ;;  %v3262_v51 = vpack.c.bf16 %v3154_v31, %v3152_v41  ;;  %v3153_v16 = vmax.f32 %v3025_v33, 0.0  ;;  %v2154_v36 = vmul.f32 3.90625e-07, %v10775_v44 }
 0x260   : > { %v10853_v61 = vpop.f32.mrf.mxu1  ;;  %v10855_v63 = vpop.eup %8805  ;;  %8827 = vpow2.f32 %v2839_v26  ;;  %v2658_v12 = vmul.f32 -0.75, %v2458_v15  ;;  %v2460_v5 = vmul.f32 0.6931472, %v8804_v28  ;;  %v2155_v62 = vmul.f32 3.90625e-07, %v10786_v22 }
 0x261   : > { %v10858_v39 = vpop.eup %8807  ;;  %3546 = vmatprep.mubr.bf16.mxu0 %v3262_v51  ;;  %8829 = vlog2.f32 %v2281_v0  ;;  %v3261_v58 = vpack.c.bf16 %v3153_v16, %v3151_v2  ;;  %v2282_v47 = vadd.f32 1.0, %v2154_v36  ;;  %v2156_v34 = vmul.f32 3.90625e-07, %v10792_v25 }
 0x262   : > { %v10861_v23 = vpop.f32.mrf.mxu1  ;;  %v8810_v44 = vpop.eup %8809  ;;  %v2841_v54 = vmul.f32 1.442695, %v2658_v12  ;;  %v2659_v4 = vmul.f32 -0.75, %v2460_v5  ;;  %v2283_v46 = vadd.f32 1.0, %v2155_v62  ;;  %v3028_v27 = vmul.f32 %v10805_v57, %v13160_v35  ;;  %v13164_v62 = vld [vmem:[#allocation28_spill] sm:$0xff] }
 0x263   : > { %v8812_v59 = vpop.eup %8811  ;;  %v2462_v45 = vmul.f32 0.6931472, %v8810_v44  ;;  %3547 = vmatmul.mubr.bf16.gmra.mxu0 %v3261_v58  ;;  %8831 = vlog2.f32 %v2282_v47  ;;  %v2284_v22 = vadd.f32 1.0, %v2156_v34  ;;  %v3030_v8 = vmul.f32 %v10820_v29, %v13161_v60 }
 0x264   : > { %v10867_v6 = vpop.f32.mrf.mxu1  ;;  %8833 = vpow2.f32 %v2841_v54  ;;  %v2843_v25 = vmul.f32 1.442695, %v2659_v4  ;;  %v2464_v3 = vmul.f32 0.6931472, %v8812_v59  ;;  %v3156_v24 = vmax.f32 %v3028_v27, 0.0  ;;  %v13165_v4 = vld [vmem:[#allocation31_spill] sm:$0xff] }
 0x265   : > { %v2660_v52 = vmul.f32 -0.75, %v2462_v45  ;;  %8835 = vlog2.f32 %v2283_v46  ;;  %v3158_v50 = vmax.f32 %v3030_v8, 0.0  ;;  %v2157_v37 = vmul.f32 3.90625e-07, %v10795_v56  ;;  %v8542_v56 = vld [vmem:[%s12790_s7 + $0x20] sm:$0xff]  }
 0x266   : > { %v10870_v57 = vpop.f32.mrf.mxu1  ;;  %v10872_v17 = vpop.eup %8813  ;;  %8837 = vpow2.f32 %v2843_v25  ;;  %v2661_v41 = vmul.f32 -0.75, %v2464_v3  ;;  %v3027_v29 = vmul.f32 %v10800_v53, %v13162_v20  ;;  %v3029_v32 = vmul.f32 %v10809_v9, %v13163_v38  ;;  %7893 = vmatprep.subr.bf16.mxu1 %v8542_v56  ;;  %v13166_v3 = vld [vmem:[#allocation30_spill] sm:$0xff]  ;;  %v13167_v38 = vld [vmem:[#allocation29_spill] sm:$0xff] }
 0x267   : > { %v10878_v1 = vpop.eup %8815  ;;  %v2845_v18 = vmul.f32 1.442695, %v2660_v52  ;;  %8839 = vlog2.f32 %v2284_v22  ;;  %v3264_v21 = vpack.c.bf16 %v3158_v50, %v3156_v24  ;;  %v2285_v31 = vadd.f32 1.0, %v2157_v37  ;;  %7894 = vmatpush3.bf16.msra.mxu1 %v8542_v56 }
 0x268   : > { %v10880_v0 = vpop.f32.mrf.mxu1  ;;  %v8818_v49 = vpop.eup %8817  ;;  %v2847_v33 = vmul.f32 1.442695, %v2661_v41  ;;  %v3155_v26 = vmax.f32 %v3027_v29, 0.0  ;;  %v3157_v15 = vmax.f32 %v3029_v32, 0.0  ;;  %v2158_v53 = vmul.f32 3.90625e-07, %v10803_v43 }
 0x269   : > { %v10886_v2 = vpop.eup %8819  ;;  %8841 = vpow2.f32 %v2845_v18  ;;  %v2466_v9 = vmul.f32 0.6931472, %v8818_v49  ;;  %3554 = vmatprep.mubr.bf16.mxu0 %v3264_v21  ;;  %v2159_v28 = vmul.f32 3.90625e-07, %v10811_v11  ;;  %v2160_v51 = vmul.f32 3.90625e-07, %v10818_v7 }
 0x26a   : > { %v10890_v16 = vpop.f32.mrf.mxu1  ;;  %v8822_v36 = vpop.eup %8821  ;;  %8843 = vpow2.f32 %v2847_v33  ;;  %v3263_v12 = vpack.c.bf16 %v3157_v15, %v3155_v26  ;;  %v2286_v5 = vadd.f32 1.0, %v2158_v53  ;;  %v3032_v58 = vmul.f32 %v10831_v42, %v13164_v62 }
 0x26b   : > { %v10894_v43 = vpop.eup %8823  ;;  %v2662_v47 = vmul.f32 -0.75, %v2466_v9  ;;  %v2468_v34 = vmul.f32 0.6931472, %v8822_v36  ;;  %8845 = vlog2.f32 %v2285_v31  ;;  %v2287_v44 = vadd.f32 1.0, %v2159_v28 }
 0x26c   : > { %v10896_v11 = vpop.f32.mrf.mxu1  ;;  %v8826_v7 = vpop.eup %8825  ;;  %3555 = vmatmul.mubr.bf16.gmra.mxu0 %v3263_v12  ;;  %8847 = vlog2.f32 %v2286_v5  ;;  %v2288_v54 = vadd.f32 1.0, %v2160_v51  ;;  %v3034_v46 = vmul.f32 %v10850_v14, %v13165_v4  ;;  %v3160_v35 = vmax.f32 %v3032_v58, 0.0 }
 0x26d   : > { %v10900_v27 = vpop.eup %8827  ;;  %v2849_v42 = vmul.f32 1.442695, %v2662_v47  ;;  %v2663_v59 = vmul.f32 -0.75, %v2468_v34  ;;  %v2470_v45 = vmul.f32 0.6931472, %v8826_v7  ;;  %8849 = vlog2.f32 %v2287_v44 }
 0x26e   : > { %v10902_v22 = vpop.f32.mrf.mxu1  ;;  %v8830_v60 = vpop.eup %8829  ;;  %8851 = vlog2.f32 %v2288_v54  ;;  %v3162_v8 = vmax.f32 %v3034_v46, 0.0  ;;  %v2161_v25 = vmul.f32 3.90625e-07, %v10822_v48  ;;  %v3031_v24 = vmul.f32 %v10824_v10, %v13166_v3  ;;  %v13168_v54 = vld [vmem:[#allocation32_spill] sm:$0xff]  ;;  %v13169_v46 = vld [vmem:[#allocation35_spill] sm:$0xff] }
 0x26f   : > { %8853 = vpow2.f32 %v2849_v42  ;;  %v2851_v52 = vmul.f32 1.442695, %v2663_v59  ;;  %v2664_v14 = vmul.f32 -0.75, %v2470_v45  ;;  %v2472_v50 = vmul.f32 0.6931472, %v8830_v60 }
 0x270   : > { %v10907_v37 = vpop.f32.mrf.mxu1  ;;  %v8832_v41 = vpop.eup %8831  ;;  %v3266_v20 = vpack.c.bf16 %v3162_v8, %v3160_v35  ;;  %v2289_v29 = vadd.f32 1.0, %v2161_v25  ;;  %v3033_v32 = vmul.f32 %v10837_v55, %v13167_v38  ;;  %v3159_v18 = vmax.f32 %v3031_v24, 0.0  ;;  %v13170_v24 = vld [vmem:[#allocation34_spill] sm:$0xff]  ;;  %v13171_v38 = vld [vmem:[#allocation33_spill] sm:$0xff] }
 0x271   : > { %v10911_v21 = vpop.eup %8833  ;;  %8855 = vpow2.f32 %v2851_v52  ;;  %v2853_v48 = vmul.f32 1.442695, %v2664_v14  ;;  %v2665_v31 = vmul.f32 -0.75, %v2472_v50  ;;  %v2474_v56 = vmul.f32 0.6931472, %v8832_v41 }
 0x272   : > { %v10913_v10 = vpop.f32.mrf.mxu1  ;;  %v8836_v49 = vpop.eup %8835  ;;  %3562 = vmatprep.mubr.bf16.mxu0 %v3266_v20  ;;  %8857 = vlog2.f32 %v2289_v29  ;;  %v3161_v33 = vmax.f32 %v3033_v32, 0.0  ;;  %v2162_v26 = vmul.f32 3.90625e-07, %v10829_v13  ;;  %v2163_v15 = vmul.f32 3.90625e-07, %v10835_v30 }
 0x273   : > { %v10917_v53 = vpop.eup %8837  ;;  %8859 = vpow2.f32 %v2853_v48  ;;  %v2855_v55 = vmul.f32 1.442695, %v2665_v31  ;;  %v2666_v9 = vmul.f32 -0.75, %v2474_v56  ;;  %v2476_v28 = vmul.f32 0.6931472, %v8836_v49  ;;  %v8543_v49 = vld [vmem:[%s12790_s7 + $0x18] sm:$0xff]  }
 0x274   : > { %v10919_v51 = vpop.f32.mrf.mxu1  ;;  %v8840_v36 = vpop.eup %8839  ;;  %v3265_v12 = vpack.c.bf16 %v3161_v33, %v3159_v18  ;;  %v2290_v5 = vadd.f32 1.0, %v2162_v26  ;;  %v2291_v62 = vadd.f32 1.0, %v2163_v15  ;;  %v2164_v58 = vmul.f32 3.90625e-07, %v10842_v40  ;;  %7895 = vmatprep.subr.bf16.mxu1 %v8543_v49 }
 0x275   : > { %8861 = vpow2.f32 %v2855_v55  ;;  %v2857_v47 = vmul.f32 1.442695, %v2666_v9  ;;  %v2667_v34 = vmul.f32 -0.75, %v2476_v28  ;;  %v2478_v13 = vmul.f32 0.6931472, %v8840_v36  ;;  %v13172_v36 = vld [vmem:[#allocation36_spill] sm:$0xff]  ;;  %7896 = vmatpush3.bf16.msra.mxu1 %v8543_v49 }
 0x276   : > { %v10922_v44 = vpop.f32.mrf.mxu1  ;;  %v10924_v30 = vpop.eup %8841  ;;  %3563 = vmatmul.mubr.bf16.gmra.mxu0 %v3265_v12  ;;  %8863 = vlog2.f32 %v2290_v5  ;;  %v2292_v7 = vadd.f32 1.0, %v2164_v58  ;;  %v3036_v4 = vmul.f32 %v10858_v39, %v13168_v54  ;;  %v3038_v35 = vmul.f32 %v10878_v1, %v13169_v46 }
 0x277   : > { %v10930_v42 = vpop.eup %8843  ;;  %8865 = vpow2.f32 %v2857_v47  ;;  %v2859_v40 = vmul.f32 1.442695, %v2667_v34  ;;  %v2668_v59 = vmul.f32 -0.75, %v2478_v13  ;;  %v2165_v45 = vmul.f32 3.90625e-07, %v10848_v19 }
 0x278   : > { %v10933_v60 = vpop.f32.mrf.mxu1  ;;  %v8846_v8 = vpop.eup %8845  ;;  %8867 = vlog2.f32 %v2291_v62  ;;  %v3164_v25 = vmax.f32 %v3036_v4, 0.0  ;;  %v3166_v3 = vmax.f32 %v3038_v35, 0.0  ;;  %v3035_v52 = vmul.f32 %v10855_v63, %v13170_v24 }
 0x279   : > { %v8848_v39 = vpop.eup %8847  ;;  %8869 = vpow2.f32 %v2859_v40  ;;  %v2861_v14 = vmul.f32 1.442695, %v2668_v59  ;;  %v2480_v1 = vmul.f32 0.6931472, %v8846_v8  ;;  %v2293_v50 = vadd.f32 1.0, %v2165_v45  ;;  %v13173_v8 = vld [vmem:[#allocation39_spill] sm:$0xff] }
 0x27a   : > { %v10937_v41 = vpop.f32.mrf.mxu1  ;;  %v8850_v20 = vpop.eup %8849  ;;  %v2482_v29 = vmul.f32 0.6931472, %v8848_v39  ;;  %8871 = vlog2.f32 %v2292_v7  ;;  %v3268_v19 = vpack.c.bf16 %v3166_v3, %v3164_v25  ;;  %v3037_v32 = vmul.f32 %v10872_v17, %v13171_v38 }
 0x27b   : > { %v8852_v18 = vpop.eup %8851  ;;  %8873 = vpow2.f32 %v2861_v14  ;;  %v2669_v48 = vmul.f32 -0.75, %v2480_v1  ;;  %v2484_v31 = vmul.f32 0.6931472, %v8850_v20  ;;  %v3163_v56 = vmax.f32 %v3035_v52, 0.0  ;;  %v13174_v14 = vld [vmem:[#allocation38_spill] sm:$0xff] }
 0x27c   : > { %v10941_v63 = vpop.f32.mrf.mxu1  ;;  %v10946_v33 = vpop.eup %8853  ;;  %v2670_v26 = vmul.f32 -0.75, %v2482_v29  ;;  %v2486_v15 = vmul.f32 0.6931472, %v8852_v18  ;;  %3570 = vmatprep.mubr.bf16.mxu0 %v3268_v19  ;;  %8875 = vlog2.f32 %v2293_v50  ;;  %v3165_v55 = vmax.f32 %v3037_v32, 0.0  ;;  %v13175_v29 = vld [vmem:[#allocation37_spill] sm:$0xff] }
 0x27d   : > { %v2863_v9 = vmul.f32 1.442695, %v2669_v48  ;;  %v2671_v17 = vmul.f32 -0.75, %v2484_v31  ;;  %v2166_v28 = vmul.f32 3.90625e-07, %v10853_v61  ;;  %v3040_v12 = vmul.f32 %v10894_v43, %v13172_v36  ;;  %v8544_v43 = vld [vmem:[%s12790_s7 + $0x10] sm:$0xff]  }
 0x27e   : > { %v10951_v5 = vpop.f32.mrf.mxu1  ;;  %v10953_v62 = vpop.eup %8855  ;;  %v2865_v58 = vmul.f32 1.442695, %v2670_v26  ;;  %v2672_v47 = vmul.f32 -0.75, %v2486_v15  ;;  %v3267_v34 = vpack.c.bf16 %v3165_v55, %v3163_v56  ;;  %v2167_v13 = vmul.f32 3.90625e-07, %v10861_v23  ;;  %7897 = vmatprep.subr.bf16.mxu1 %v8544_v43 }
 0x27f   : > { %v8858_v7 = vpop.eup %8857  ;;  %8877 = vpow2.f32 %v2863_v9  ;;  %v2867_v54 = vmul.f32 1.442695, %v2671_v17  ;;  %v2294_v4 = vadd.f32 1.0, %v2166_v28  ;;  %v2168_v61 = vmul.f32 3.90625e-07, %v10867_v6  ;;  %7898 = vmatpush3.bf16.msra.mxu1 %v8544_v43  ;;  %v13176_v43 = vld [vmem:[#allocation40_spill] sm:$0xff] }
 0x280   : > { %v10957_v46 = vpop.f32.mrf.mxu1  ;;  %v10962_v35 = vpop.eup %8859  ;;  %8879 = vpow2.f32 %v2865_v58  ;;  %v2869_v40 = vmul.f32 1.442695, %v2672_v47  ;;  %v2488_v59 = vmul.f32 0.6931472, %v8858_v7  ;;  %3571 = vmatmul.mubr.bf16.gmra.mxu0 %v3267_v34  ;;  %v2295_v23 = vadd.f32 1.0, %v2167_v13 }
 0x281   : > { %8881 = vpow2.f32 %v2867_v54  ;;  %v2296_v45 = vadd.f32 1.0, %v2168_v61  ;;  %v3042_v25 = vmul.f32 %v10911_v21, %v13173_v8  ;;  %v3168_v3 = vmax.f32 %v3040_v12, 0.0 }
 0x282   : > { %v10966_v6 = vpop.f32.mrf.mxu1  ;;  %v10968_v24 = vpop.eup %8861  ;;  %8883 = vpow2.f32 %v2869_v40  ;;  %v2673_v52 = vmul.f32 -0.75, %v2488_v59  ;;  %v2169_v39 = vmul.f32 3.90625e-07, %v10870_v57  ;;  %v3039_v1 = vmul.f32 %v10886_v2, %v13174_v14 }
 0x283   : > { %v8864_v50 = vpop.eup %8863  ;;  %8885 = vlog2.f32 %v2294_v4  ;;  %v3170_v20 = vmax.f32 %v3042_v25, 0.0  ;;  %v3041_v21 = vmul.f32 %v10900_v27, %v13175_v29  ;;  %v2170_v19 = vmul.f32 3.90625e-07, %v10880_v0  ;;  %v8545_v27 = vld [vmem:[%s12790_s7 + $0x8] sm:$0xff]  }
 0x284   : > { %v10976_v38 = vpop.f32.mrf.mxu1  ;;  %v10978_v32 = vpop.eup %8865  ;;  %v2871_v18 = vmul.f32 1.442695, %v2673_v52  ;;  %v2490_v48 = vmul.f32 0.6931472, %v8864_v50  ;;  %8887 = vlog2.f32 %v2295_v23  ;;  %v2297_v57 = vadd.f32 1.0, %v2169_v39  ;;  %7899 = vmatprep.subr.bf16.mxu1 %v8545_v27  ;;  %v8546_v23 = vld [vmem:[%s12790_s7] sm:$0xff]  }
 0x285   : > { %v8868_v31 = vpop.eup %8867  ;;  %8889 = vlog2.f32 %v2296_v45  ;;  %v3270_v2 = vpack.c.bf16 %v3170_v20, %v3168_v3  ;;  %v3167_v56 = vmax.f32 %v3039_v1, 0.0  ;;  %v3169_v49 = vmax.f32 %v3041_v21, 0.0  ;;  %7900 = vmatpush3.bf16.msra.mxu1 %v8545_v27  ;;  %v13178_v50 = vld [vmem:[#allocation42_spill] sm:$0xff] }
 0x286   : > { %v10980_v26 = vpop.f32.mrf.mxu1  ;;  %v10985_v0 = vpop.eup %8869  ;;  %8891 = vpow2.f32 %v2871_v18  ;;  %v2674_v15 = vmul.f32 -0.75, %v2490_v48  ;;  %v2492_v55 = vmul.f32 0.6931472, %v8868_v31  ;;  %v2298_v9 = vadd.f32 1.0, %v2170_v19  ;;  %7901 = vmatprep.subr.bf16.mxu1 %v8546_v23  ;;  %v13179_v18 = vld [vmem:[#allocation41_spill] sm:$0xff] }
 0x287   : > { %v8872_v17 = vpop.eup %8871  ;;  %3578 = vmatprep.mubr.bf16.mxu0 %v3270_v2  ;;  %8893 = vlog2.f32 %v2297_v57  ;;  %v3269_v28 = vpack.c.bf16 %v3169_v49, %v3167_v56  ;;  %v2171_v36 = vmul.f32 3.90625e-07, %v10890_v16  ;;  %v2172_v12 = vmul.f32 3.90625e-07, %v10896_v11  ;;  %v13177_v16 = vld [vmem:[#allocation43_spill] sm:$0xff] }
 0x288   : > { %v10989_v58 = vpop.f32.mrf.mxu1  ;;  %v10991_v47 = vpop.eup %8873  ;;  %v2873_v34 = vmul.f32 1.442695, %v2674_v15  ;;  %v2675_v13 = vmul.f32 -0.75, %v2492_v55  ;;  %v2494_v7 = vmul.f32 0.6931472, %v8872_v17  ;;  %8895 = vlog2.f32 %v2298_v9  ;;  %v13180_v17 = vld [vmem:[#allocation44_spill] sm:$0xff] }
 0x289   : > { %v8876_v54 = vpop.eup %8875  ;;  %3579 = vmatmul.mubr.bf16.gmra.mxu0 %v3269_v28  ;;  %v2299_v4 = vadd.f32 1.0, %v2171_v36  ;;  %v2300_v61 = vadd.f32 1.0, %v2172_v12  ;;  %v3044_v40 = vmul.f32 %v10924_v30, %v13176_v43  ;;  %v3046_v11 = vmul.f32 %v10946_v33, %v13177_v16  ;;  %7902 = vmatpush3.bf16.msra.mxu1 %v8546_v23  ;;  %v13181_v36 = vld [vmem:[#allocation47_spill] sm:$0xff] }
 0x28a   : > { %v10997_v59 = vpop.f32.mrf.mxu1  ;;  %8897 = vpow2.f32 %v2873_v34  ;;  %v2875_v45 = vmul.f32 1.442695, %v2675_v13  ;;  %v2676_v8 = vmul.f32 -0.75, %v2494_v7  ;;  %v2496_v25 = vmul.f32 0.6931472, %v8876_v54 }
 0x28b   : > { %8899 = vlog2.f32 %v2299_v4  ;;  %v3172_v3 = vmax.f32 %v3044_v40, 0.0  ;;  %v3174_v52 = vmax.f32 %v3046_v11, 0.0  ;;  %v2173_v39 = vmul.f32 3.90625e-07, %v10902_v22 }
 0x28c   : > { %v11003_v14 = vpop.f32.mrf.mxu1  ;;  %v11005_v30 = vpop.eup %8877  ;;  %8901 = vpow2.f32 %v2875_v45  ;;  %v2877_v33 = vmul.f32 1.442695, %v2676_v8  ;;  %v2677_v1 = vmul.f32 -0.75, %v2496_v25  ;;  %v3043_v20 = vmul.f32 %v10917_v53, %v13178_v50  ;;  %v13182_v8 = vld [vmem:[#allocation46_spill] sm:$0xff] }
 0x28d   : > { %v11009_v29 = vpop.eup %8879  ;;  %8903 = vlog2.f32 %v2300_v61  ;;  %v3272_v21 = vpack.c.bf16 %v3174_v52, %v3172_v3  ;;  %v2301_v19 = vadd.f32 1.0, %v2173_v39  ;;  %v3045_v22 = vmul.f32 %v10930_v42, %v13179_v18 }
 0x28e   : > { %v11013_v48 = vpop.f32.mrf.mxu1  ;;  %v11015_v57 = vpop.eup %8881  ;;  %8905 = vpow2.f32 %v2877_v33  ;;  %v2879_v31 = vmul.f32 1.442695, %v2677_v1  ;;  %v3171_v2 = vmax.f32 %v3043_v20, 0.0  ;;  %v2174_v56 = vmul.f32 3.90625e-07, %v10907_v37 }
 0x28f   : > { %v11018_v49 = vpop.eup %8883  ;;  %3586 = vmatprep.mubr.bf16.mxu0 %v3272_v21  ;;  %8907 = vlog2.f32 %v2301_v19  ;;  %v3173_v53 = vmax.f32 %v3045_v22, 0.0  ;;  %v2175_v27 = vmul.f32 3.90625e-07, %v10913_v10  ;;  %v2176_v15 = vmul.f32 3.90625e-07, %v10919_v51  ;;  %v13183_v19 = vld [vmem:[#allocation45_spill] sm:$0xff] }
 0x290   : > { %v11022_v55 = vpop.f32.mrf.mxu1  ;;  %v8886_v42 = vpop.eup %8885  ;;  %8909 = vpow2.f32 %v2879_v31  ;;  %v2302_v9 = vadd.f32 1.0, %v2174_v56  ;;  %v3048_v28 = vmul.f32 %v10962_v35, %v13180_v17  ;;  %v3050_v37 = vmul.f32 %v10978_v32, %v13181_v36 }
 0x291   : > { %v8888_v12 = vpop.eup %8887  ;;  %v2498_v34 = vmul.f32 0.6931472, %v8886_v42  ;;  %v3271_v13 = vpack.c.bf16 %v3173_v53, %v3171_v2  ;;  %v2303_v7 = vadd.f32 1.0, %v2175_v27  ;;  %v2304_v54 = vadd.f32 1.0, %v2176_v15 }
 0x292   : > { %v8890_v4 = vpop.eup %8889  ;;  %v2500_v10 = vmul.f32 0.6931472, %v8888_v12  ;;  %8911 = vlog2.f32 %v2302_v9  ;;  %v3176_v51 = vmax.f32 %v3048_v28, 0.0  ;;  %v3178_v61 = vmax.f32 %v3050_v37, 0.0  ;;  %v11028_v43 = vpop.f32.mrf.mxu1 }
 0x293   : > { %v11030_v40 = vpop.eup %8891  ;;  %v2678_v16 = vmul.f32 -0.75, %v2498_v34  ;;  %v2502_v11 = vmul.f32 0.6931472, %v8890_v4  ;;  %3587 = vmatmul.mubr.bf16.gmra.mxu0 %v3271_v13  ;;  %8913 = vlog2.f32 %v2303_v7  ;;  %v2177_v35 = vmul.f32 3.90625e-07, %v10922_v44 }
 0x294   : > { %v8894_v32 = vpop.eup %8893  ;;  %v2679_v23 = vmul.f32 -0.75, %v2500_v10  ;;  %8915 = vlog2.f32 %v2304_v54  ;;  %v3274_v45 = vpack.c.bf16 %v3178_v61, %v3176_v51  ;;  %v3047_v25 = vmul.f32 %v10953_v62, %v13182_v8  ;;  %v11035_v3 = vpop.f32.mrf.mxu1  ;;  %v13184_v51 = vld [vmem:[#allocation48_spill] sm:$0xff] }
 0x295   : > { %v8896_v52 = vpop.eup %8895  ;;  %v2881_v39 = vmul.f32 1.442695, %v2678_v16  ;;  %v2680_v33 = vmul.f32 -0.75, %v2502_v11  ;;  %v2504_v1 = vmul.f32 0.6931472, %v8894_v32  ;;  %v2305_v50 = vadd.f32 1.0, %v2177_v35 }
 0x296   : > { %v2883_v20 = vmul.f32 1.442695, %v2679_v23  ;;  %v2506_v21 = vmul.f32 0.6931472, %v8896_v52  ;;  %3594 = vmatprep.mubr.bf16.mxu0 %v3274_v45  ;;  %v3049_v44 = vmul.f32 %v10968_v24, %v13183_v19  ;;  %v3175_v18 = vmax.f32 %v3047_v25, 0.0  ;;  %v11039_v22 = vpop.f32.mrf.mxu1  ;;  %v13185_v16 = vld [vmem:[#allocation51_spill] sm:$0xff] }
 0x297   : > { %v11041_v31 = vpop.eup %8897  ;;  %8917 = vpow2.f32 %v2881_v39  ;;  %v2885_v62 = vmul.f32 1.442695, %v2680_v33  ;;  %v2681_v2 = vmul.f32 -0.75, %v2504_v1  ;;  %v2178_v56 = vmul.f32 3.90625e-07, %v10933_v60 }
 0x298   : > { %v8900_v53 = vpop.eup %8899  ;;  %8919 = vpow2.f32 %v2883_v20  ;;  %v2682_v27 = vmul.f32 -0.75, %v2506_v21  ;;  %v3177_v15 = vmax.f32 %v3049_v44, 0.0  ;;  %v2179_v42 = vmul.f32 3.90625e-07, %v10937_v41  ;;  %v11045_v9 = vpop.f32.mrf.mxu1  ;;  %v13186_v21 = vld [vmem:[#allocation50_spill] sm:$0xff] }
 0x299   : > { %v11047_v17 = vpop.eup %8901  ;;  %8921 = vpow2.f32 %v2885_v62  ;;  %v2887_v24 = vmul.f32 1.442695, %v2681_v2  ;;  %v2508_v28 = vmul.f32 0.6931472, %v8900_v53  ;;  %v2306_v36 = vadd.f32 1.0, %v2178_v56  ;;  %v13187_v2 = vld [vmem:[#allocation49_spill] sm:$0xff] }
 0x29a   : > { %v8904_v37 = vpop.eup %8903  ;;  %v2889_v12 = vmul.f32 1.442695, %v2682_v27  ;;  %8923 = vlog2.f32 %v2305_v50  ;;  %v3273_v34 = vpack.c.bf16 %v3177_v15, %v3175_v18  ;;  %v2307_v13 = vadd.f32 1.0, %v2179_v42  ;;  %v11052_v4 = vpop.f32.mrf.mxu1 }
 0x29b   : > { %v11049_v60 = vpop.eup %8905  ;;  %8925 = vpow2.f32 %v2887_v24  ;;  %v2683_v7 = vmul.f32 -0.75, %v2508_v28  ;;  %v2510_v54 = vmul.f32 0.6931472, %v8904_v37  ;;  %v2180_v41 = vmul.f32 3.90625e-07, %v10941_v63 }
 0x29c   : > { %v8908_v10 = vpop.eup %8907  ;;  %8927 = vpow2.f32 %v2889_v12  ;;  %3595 = vmatmul.mubr.bf16.gmra.mxu0 %v3273_v34  ;;  %v3052_v61 = vmul.f32 %v10991_v47, %v13184_v51  ;;  %v3054_v11 = vmul.f32 %v11009_v29, %v13185_v16  ;;  %v2181_v35 = vmul.f32 3.90625e-07, %v10951_v5  ;;  %v11061_v50 = vpop.f32.mrf.mxu1 }
 0x29d   : > { %v11059_v32 = vpop.eup %8909  ;;  %v2891_v23 = vmul.f32 1.442695, %v2683_v7  ;;  %v2684_v45 = vmul.f32 -0.75, %v2510_v54  ;;  %v2512_v8 = vmul.f32 0.6931472, %v8908_v10  ;;  %8929 = vlog2.f32 %v2306_v36 }
 0x29e   : > { %8931 = vlog2.f32 %v2307_v13  ;;  %v2308_v63 = vadd.f32 1.0, %v2180_v41  ;;  %v3180_v25 = vmax.f32 %v3052_v61, 0.0  ;;  %v3182_v52 = vmax.f32 %v3054_v11, 0.0  ;;  %v11068_v36 = vpop.f32.mrf.mxu1  ;;  %v13188_v13 = vld [vmem:[#allocation52_spill] sm:$0xff]  ;;  %v13189_v11 = vld [vmem:[#allocation55_spill] sm:$0xff] }
 0x29f   : > { %v8912_v39 = vpop.eup %8911  ;;  %8933 = vpow2.f32 %v2891_v23  ;;  %v2893_v33 = vmul.f32 1.442695, %v2684_v45  ;;  %v2685_v1 = vmul.f32 -0.75, %v2512_v8  ;;  %v2309_v47 = vadd.f32 1.0, %v2181_v35 }
 0x2a0   : > { %v8914_v29 = vpop.eup %8913  ;;  %v2514_v20 = vmul.f32 0.6931472, %v8912_v39  ;;  %8935 = vlog2.f32 %v2308_v63  ;;  %v3276_v5 = vpack.c.bf16 %v3182_v52, %v3180_v25  ;;  %v3051_v19 = vmul.f32 %v10985_v0, %v13186_v21  ;;  %v11083_v8 = vpop.f32.mrf.mxu1  ;;  %v13190_v52 = vld [vmem:[#allocation54_spill] sm:$0xff] }
 0x2a1   : > { %v8916_v44 = vpop.eup %8915  ;;  %8937 = vpow2.f32 %v2893_v33  ;;  %v2895_v18 = vmul.f32 1.442695, %v2685_v1  ;;  %v2516_v62 = vmul.f32 0.6931472, %v8914_v29  ;;  %v3053_v56 = vmul.f32 %v11005_v30, %v13187_v2  ;;  %v13191_v1 = vld [vmem:[#allocation53_spill] sm:$0xff] }
 0x2a2   : > { %v2686_v53 = vmul.f32 -0.75, %v2514_v20  ;;  %v2518_v27 = vmul.f32 0.6931472, %v8916_v44  ;;  %3602 = vmatprep.mubr.bf16.mxu0 %v3276_v5  ;;  %8939 = vlog2.f32 %v2309_v47  ;;  %v3179_v15 = vmax.f32 %v3051_v19, 0.0 }
 0x2a3   : > { %8941 = vpow2.f32 %v2895_v18  ;;  %v2687_v42 = vmul.f32 -0.75, %v2516_v62  ;;  %v3181_v24 = vmax.f32 %v3053_v56, 0.0  ;;  %v2182_v28 = vmul.f32 3.90625e-07, %v10957_v46 }
 0x2a4   : > { %v11070_v0 = vpop.eup %8917  ;;  %v2897_v37 = vmul.f32 1.442695, %v2686_v53  ;;  %v2688_v12 = vmul.f32 -0.75, %v2518_v27  ;;  %v2183_v34 = vmul.f32 3.90625e-07, %v10966_v6  ;;  %v3056_v30 = vmul.f32 %v11018_v49, %v13188_v13 }
 0x2a5   : > { %v11075_v7 = vpop.eup %8919  ;;  %v2899_v54 = vmul.f32 1.442695, %v2687_v42  ;;  %v3275_v41 = vpack.c.bf16 %v3181_v24, %v3179_v15  ;;  %v2310_v10 = vadd.f32 1.0, %v2182_v28  ;;  %v2184_v51 = vmul.f32 3.90625e-07, %v10976_v38 }
 0x2a6   : > { %v11078_v61 = vpop.eup %8921  ;;  %8943 = vpow2.f32 %v2897_v37  ;;  %v2901_v46 = vmul.f32 1.442695, %v2688_v12  ;;  %v2311_v16 = vadd.f32 1.0, %v2183_v34  ;;  %v3058_v35 = vmul.f32 %v11041_v31, %v13189_v11 }
 0x2a7   : > { %v8924_v23 = vpop.eup %8923  ;;  %8945 = vpow2.f32 %v2899_v54  ;;  %3603 = vmatmul.mubr.bf16.gmra.mxu0 %v3275_v41  ;;  %v2312_v6 = vadd.f32 1.0, %v2184_v51  ;;  %v3184_v49 = vmax.f32 %v3056_v30, 0.0  ;;  %v2185_v45 = vmul.f32 3.90625e-07, %v10980_v26  ;;  %v13192_v54 = vld [vmem:[#allocation56_spill] sm:$0xff] }
 0x2a8   : > { %v11085_v63 = vpop.eup %8925  ;;  %8947 = vpow2.f32 %v2901_v46  ;;  %v2520_v38 = vmul.f32 0.6931472, %v8924_v23  ;;  %v3186_v25 = vmax.f32 %v3058_v35, 0.0  ;;  %v3055_v39 = vmul.f32 %v11015_v57, %v13190_v52  ;;  %v11094_v57 = vpop.f32.mrf.mxu1 }
 0x2a9   : > { %v11089_v33 = vpop.eup %8927  ;;  %8949 = vlog2.f32 %v2310_v10  ;;  %v2313_v31 = vadd.f32 1.0, %v2185_v45  ;;  %v3057_v47 = vmul.f32 %v11030_v40, %v13191_v1  ;;  %v2186_v29 = vmul.f32 3.90625e-07, %v10989_v58 }
 0x2aa   : > { %v8930_v26 = vpop.eup %8929  ;;  %v2689_v20 = vmul.f32 -0.75, %v2520_v38  ;;  %8951 = vlog2.f32 %v2311_v16  ;;  %v3278_v5 = vpack.c.bf16 %v3186_v25, %v3184_v49  ;;  %v3183_v21 = vmax.f32 %v3055_v39, 0.0  ;;  %v11106_v51 = vpop.f32.mrf.mxu1  ;;  %v13195_v39 = vld [vmem:[#allocation57_spill] sm:$0xff] }
 0x2ab   : > { %v8932_v19 = vpop.eup %8931  ;;  %v2522_v44 = vmul.f32 0.6931472, %v8930_v26  ;;  %8953 = vlog2.f32 %v2312_v6  ;;  %v3185_v18 = vmax.f32 %v3057_v47, 0.0  ;;  %v2314_v62 = vadd.f32 1.0, %v2186_v29 }
 0x2ac   : > { %v11096_v2 = vpop.eup %8933  ;;  %v2903_v56 = vmul.f32 1.442695, %v2689_v20  ;;  %v2524_v53 = vmul.f32 0.6931472, %v8932_v19  ;;  %3610 = vmatprep.mubr.bf16.mxu0 %v3278_v5  ;;  %8955 = vlog2.f32 %v2313_v31  ;;  %v2187_v58 = vmul.f32 3.90625e-07, %v10997_v59  ;;  %v11117_v1 = vpop.f32.mrf.mxu1 }
 0x2ad   : > { %v8936_v40 = vpop.eup %8935  ;;  %v2690_v27 = vmul.f32 -0.75, %v2522_v44  ;;  %v3277_v15 = vpack.c.bf16 %v3185_v18, %v3183_v21  ;;  %8957 = vlog2.f32 %v2314_v62  ;;  %v2188_v42 = vmul.f32 3.90625e-07, %v11003_v14  ;;  %v13193_v59 = vld [vmem:[#allocation59_spill] sm:$0xff]  ;;  %v13196_v44 = vld [vmem:[#allocation60_spill] sm:$0xff] }
 0x2ae   : > { %v11100_v24 = vpop.eup %8937  ;;  %8959 = vpow2.f32 %v2903_v56  ;;  %v2691_v28 = vmul.f32 -0.75, %v2524_v53  ;;  %v2526_v37 = vmul.f32 0.6931472, %v8936_v40  ;;  %v2315_v12 = vadd.f32 1.0, %v2187_v58  ;;  %v13197_v62 = vld [vmem:[#allocation63_spill] sm:$0xff] }
 0x2af   : > { %v8940_v34 = vpop.eup %8939  ;;  %v2905_v13 = vmul.f32 1.442695, %v2690_v27  ;;  %3611 = vmatmul.mubr.bf16.gmra.mxu0 %v3277_v15  ;;  %v2316_v30 = vadd.f32 1.0, %v2188_v42  ;;  %v3060_v41 = vmul.f32 %v11049_v60, %v13192_v54  ;;  %v3062_v10 = vmul.f32 %v11070_v0, %v13193_v59  ;;  %v13194_v60 = vld [vmem:[#allocation58_spill] sm:$0xff]  ;;  %v11130_v15 = vpop.f32.mrf.mxu1 }
 0x2b0   : > { %v11108_v46 = vpop.eup %8941  ;;  %v2907_v14 = vmul.f32 1.442695, %v2691_v28  ;;  %v2692_v16 = vmul.f32 -0.75, %v2526_v37  ;;  %v2528_v11 = vmul.f32 0.6931472, %v8940_v34  ;;  %8961 = vlog2.f32 %v2315_v12 }
 0x2b1   : > { %8963 = vpow2.f32 %v2905_v13  ;;  %v3188_v35 = vmax.f32 %v3060_v41, 0.0  ;;  %v3190_v23 = vmax.f32 %v3062_v10, 0.0  ;;  %v2189_v6 = vmul.f32 3.90625e-07, %v11013_v48 }
 0x2b2   : > { %8965 = vpow2.f32 %v2907_v14  ;;  %v2909_v49 = vmul.f32 1.442695, %v2692_v16  ;;  %v2693_v45 = vmul.f32 -0.75, %v2528_v11  ;;  %v3059_v38 = vmul.f32 %v11047_v17, %v13194_v60  ;;  %v11135_v11 = vpop.f32.mrf.mxu1 }
 0x2b3   : > { %v11113_v0 = vpop.eup %8943  ;;  %8967 = vlog2.f32 %v2316_v30  ;;  %v3280_v25 = vpack.c.bf16 %v3190_v23, %v3188_v35  ;;  %v2317_v52 = vadd.f32 1.0, %v2189_v6  ;;  %v3061_v31 = vmul.f32 %v11059_v32, %v13195_v39  ;;  %v13198_v6 = vld [vmem:[#allocation62_spill] sm:$0xff] }
 0x2b4   : > { %v11119_v47 = vpop.eup %8945  ;;  %8969 = vpow2.f32 %v2909_v49  ;;  %v2911_v48 = vmul.f32 1.442695, %v2693_v45  ;;  %v3187_v29 = vmax.f32 %v3059_v38, 0.0  ;;  %v2190_v26 = vmul.f32 3.90625e-07, %v11022_v55 }
 0x2b5   : > { %v11122_v20 = vpop.eup %8947  ;;  %3618 = vmatprep.mubr.bf16.mxu0 %v3280_v25  ;;  %8971 = vlog2.f32 %v2317_v52  ;;  %v3189_v17 = vmax.f32 %v3061_v31, 0.0  ;;  %v2191_v5 = vmul.f32 3.90625e-07, %v11028_v43  ;;  %v2192_v21 = vmul.f32 3.90625e-07, %v11035_v3 }
 0x2b6   : > { %v8950_v19 = vpop.eup %8949  ;;  %8973 = vpow2.f32 %v2911_v48  ;;  %v2318_v32 = vadd.f32 1.0, %v2190_v26  ;;  %v3064_v18 = vmul.f32 %v11078_v61, %v13196_v44  ;;  %v3066_v56 = vmul.f32 %v11089_v33, %v13197_v62 }
 0x2b7   : > { %v8952_v53 = vpop.eup %8951  ;;  %v2530_v55 = vmul.f32 0.6931472, %v8950_v19  ;;  %v3279_v58 = vpack.c.bf16 %v3189_v17, %v3187_v29  ;;  %v2319_v40 = vadd.f32 1.0, %v2191_v5  ;;  %v2320_v27 = vadd.f32 1.0, %v2192_v21  ;;  %v11146_v21 = vpop.f32.mrf.mxu1 }
 0x2b8   : > { %v8954_v42 = vpop.eup %8953  ;;  %v2532_v43 = vmul.f32 0.6931472, %v8952_v53  ;;  %8975 = vlog2.f32 %v2318_v32  ;;  %v3192_v3 = vmax.f32 %v3064_v18, 0.0  ;;  %v3194_v28 = vmax.f32 %v3066_v56, 0.0  ;;  %v13200_v56 = vld [vmem:[#allocation64_spill] sm:$0xff] }
 0x2b9   : > { %v8956_v37 = vpop.eup %8955  ;;  %v2694_v12 = vmul.f32 -0.75, %v2530_v55  ;;  %v2534_v34 = vmul.f32 0.6931472, %v8954_v42  ;;  %3619 = vmatmul.mubr.bf16.gmra.mxu0 %v3279_v58  ;;  %8977 = vlog2.f32 %v2319_v40  ;;  %v2193_v61 = vmul.f32 3.90625e-07, %v11039_v22  ;;  %v13199_v22 = vld [vmem:[#allocation61_spill] sm:$0xff] }
 0x2ba   : > { %v8958_v33 = vpop.eup %8957  ;;  %v2695_v13 = vmul.f32 -0.75, %v2532_v43  ;;  %v2536_v30 = vmul.f32 0.6931472, %v8956_v37  ;;  %8979 = vlog2.f32 %v2320_v27  ;;  %v3282_v54 = vpack.c.bf16 %v3194_v28, %v3192_v3  ;;  %v11158_v28 = vpop.f32.mrf.mxu1 }
 0x2bb   : > { %v11133_v41 = vpop.eup %8959  ;;  %v2913_v59 = vmul.f32 1.442695, %v2694_v12  ;;  %v2696_v10 = vmul.f32 -0.75, %v2534_v34  ;;  %v2538_v14 = vmul.f32 0.6931472, %v8958_v33  ;;  %v2321_v16 = vadd.f32 1.0, %v2193_v61 }
 0x2bc   : > { %v2915_v35 = vmul.f32 1.442695, %v2695_v13  ;;  %v2697_v23 = vmul.f32 -0.75, %v2536_v30  ;;  %3626 = vmatprep.mubr.bf16.mxu0 %v3282_v54  ;;  %v3063_v49 = vmul.f32 %v11075_v7, %v13198_v6  ;;  %v3065_v45 = vmul.f32 %v11085_v63, %v13199_v22  ;;  %v13202_v12 = vld [vmem:[#allocation66_spill] sm:$0xff]  ;;  %v11165_v6 = vpop.f32.mrf.mxu1 }
 0x2bd   : > { %v8962_v60 = vpop.eup %8961  ;;  %8981 = vpow2.f32 %v2913_v59  ;;  %v2917_v38 = vmul.f32 1.442695, %v2696_v10  ;;  %v2698_v25 = vmul.f32 -0.75, %v2538_v14  ;;  %v2194_v52 = vmul.f32 3.90625e-07, %v11045_v9  ;;  %v13203_v14 = vld [vmem:[#allocation65_spill] sm:$0xff] }
 0x2be   : > { %v11142_v39 = vpop.eup %8963  ;;  %8983 = vpow2.f32 %v2915_v35  ;;  %v2919_v31 = vmul.f32 1.442695, %v2697_v23  ;;  %v2540_v48 = vmul.f32 0.6931472, %v8962_v60  ;;  %v3191_v29 = vmax.f32 %v3063_v49, 0.0 }
 0x2bf   : > { %v11144_v26 = vpop.eup %8965  ;;  %8985 = vpow2.f32 %v2917_v38  ;;  %v2921_v17 = vmul.f32 1.442695, %v2698_v25  ;;  %v3193_v7 = vmax.f32 %v3065_v45, 0.0  ;;  %v2322_v5 = vadd.f32 1.0, %v2194_v52 }
 0x2c0   : > { %v8968_v63 = vpop.eup %8967  ;;  %8987 = vpow2.f32 %v2919_v31  ;;  %v2699_v19 = vmul.f32 -0.75, %v2540_v48  ;;  %v2195_v32 = vmul.f32 3.90625e-07, %v11052_v4  ;;  %v2196_v9 = vmul.f32 3.90625e-07, %v11061_v50  ;;  %v13201_v4 = vld [vmem:[#allocation67_spill] sm:$0xff] }
 0x2c1   : > { %v11150_v44 = vpop.eup %8969  ;;  %8989 = vpow2.f32 %v2921_v17  ;;  %v2542_v18 = vmul.f32 0.6931472, %v8968_v63  ;;  %v3281_v62 = vpack.c.bf16 %v3193_v7, %v3191_v29  ;;  %v3068_v53 = vmul.f32 %v11100_v24, %v13200_v56  ;;  %v13204_v48 = vld [vmem:[#allocation68_spill] sm:$0xff] }
 0x2c2   : > { %v8972_v55 = vpop.eup %8971  ;;  %v2923_v58 = vmul.f32 1.442695, %v2699_v19  ;;  %8991 = vlog2.f32 %v2321_v16  ;;  %v2323_v40 = vadd.f32 1.0, %v2195_v32  ;;  %v2324_v27 = vadd.f32 1.0, %v2196_v9  ;;  %v11176_v32 = vpop.f32.mrf.mxu1 }
 0x2c3   : > { %v11154_v42 = vpop.eup %8973  ;;  %v2700_v43 = vmul.f32 -0.75, %v2542_v18  ;;  %v2544_v3 = vmul.f32 0.6931472, %v8972_v55  ;;  %3627 = vmatmul.mubr.bf16.gmra.mxu0 %v3281_v62  ;;  %8993 = vlog2.f32 %v2322_v5  ;;  %v3070_v50 = vmul.f32 %v11113_v0, %v13201_v4  ;;  %v13205_v62 = vld [vmem:[#allocation71_spill] sm:$0xff] }
 0x2c4   : > { %8995 = vpow2.f32 %v2923_v58  ;;  %v3196_v37 = vmax.f32 %v3068_v53, 0.0  ;;  %v2197_v24 = vmul.f32 3.90625e-07, %v11068_v36  ;;  %v3067_v34 = vmul.f32 %v11096_v2, %v13202_v12 }
 0x2c5   : > { %v8976_v61 = vpop.eup %8975  ;;  %v2925_v33 = vmul.f32 1.442695, %v2700_v43  ;;  %v2701_v13 = vmul.f32 -0.75, %v2544_v3  ;;  %8997 = vlog2.f32 %v2323_v40  ;;  %v3198_v30 = vmax.f32 %v3070_v50, 0.0  ;;  %v13207_v3 = vld [vmem:[#allocation69_spill] sm:$0xff] }
 0x2c6   : > { %v8978_v54 = vpop.eup %8977  ;;  %v2546_v59 = vmul.f32 0.6931472, %v8976_v61  ;;  %8999 = vlog2.f32 %v2324_v27  ;;  %v2325_v10 = vadd.f32 1.0, %v2197_v24  ;;  %v3069_v0 = vmul.f32 %v11108_v46, %v13203_v14  ;;  %v13206_v27 = vld [vmem:[#allocation70_spill] sm:$0xff] }
 0x2c7   : > { %v8980_v16 = vpop.eup %8979  ;;  %9001 = vpow2.f32 %v2925_v33  ;;  %v2927_v35 = vmul.f32 1.442695, %v2701_v13  ;;  %v2548_v23 = vmul.f32 0.6931472, %v8978_v54  ;;  %v3284_v36 = vpack.c.bf16 %v3198_v30, %v3196_v37 }
 0x2c8   : > { %v2702_v2 = vmul.f32 -0.75, %v2546_v59  ;;  %v2550_v49 = vmul.f32 0.6931472, %v8980_v16  ;;  %9003 = vlog2.f32 %v2325_v10  ;;  %v3195_v22 = vmax.f32 %v3067_v34, 0.0 }
 0x2c9   : > { %9005 = vpow2.f32 %v2927_v35  ;;  %v2703_v45 = vmul.f32 -0.75, %v2548_v23  ;;  %3634 = vmatprep.mubr.bf16.mxu0 %v3284_v36  ;;  %v3197_v60 = vmax.f32 %v3069_v0, 0.0  ;;  %v2198_v38 = vmul.f32 3.90625e-07, %v11083_v8 }
 0x2ca   : > { %v11168_v25 = vpop.eup %8981  ;;  %v2929_v46 = vmul.f32 1.442695, %v2702_v2  ;;  %v2704_v52 = vmul.f32 -0.75, %v2550_v49  ;;  %v2199_v31 = vmul.f32 3.90625e-07, %v11094_v57  ;;  %v3072_v29 = vmul.f32 %v11122_v20, %v13204_v48  ;;  %v13209_v48 = vld [vmem:[#allocation75_spill] sm:$0xff] }
 0x2cb   : > { %v11173_v17 = vpop.eup %8983  ;;  %v2931_v7 = vmul.f32 1.442695, %v2703_v45  ;;  %v3283_v5 = vpack.c.bf16 %v3197_v60, %v3195_v22  ;;  %v2326_v63 = vadd.f32 1.0, %v2198_v38  ;;  %v2200_v19 = vmul.f32 3.90625e-07, %v11106_v51 }
 0x2cc   : > { %v11178_v9 = vpop.eup %8985  ;;  %9007 = vpow2.f32 %v2929_v46  ;;  %v2933_v8 = vmul.f32 1.442695, %v2704_v52  ;;  %v2327_v18 = vadd.f32 1.0, %v2199_v31  ;;  %v3074_v57 = vmul.f32 %v11142_v39, %v13205_v62  ;;  %v13208_v31 = vld [vmem:[#allocation72_spill] sm:$0xff] }
 0x2cd   : > { %v11182_v56 = vpop.eup %8987  ;;  %9009 = vpow2.f32 %v2931_v7  ;;  %3635 = vmatmul.mubr.bf16.gmra.mxu0 %v3283_v5  ;;  %v2328_v20 = vadd.f32 1.0, %v2200_v19  ;;  %v3200_v53 = vmax.f32 %v3072_v29, 0.0  ;;  %v2201_v55 = vmul.f32 3.90625e-07, %v11117_v1  ;;  %v11185_v58 = vpop.f32.mrf.mxu0 }
 0x2ce   : > { %v11187_v51 = vpop.eup %8989  ;;  %9011 = vpow2.f32 %v2933_v8  ;;  %v3202_v40 = vmax.f32 %v3074_v57, 0.0  ;;  %v3071_v43 = vmul.f32 %v11119_v47, %v13206_v27  ;;  %v3073_v39 = vmul.f32 %v11133_v41, %v13207_v3  ;;  %v11195_v1 = vpop.f32.mrf.mxu1  ;;  %v13210_v27 = vld [vmem:[#allocation74_spill] sm:$0xff] }
 0x2cf   : > { %v8992_v4 = vpop.eup %8991  ;;  %9013 = vlog2.f32 %v2326_v63  ;;  %v2329_v50 = vadd.f32 1.0, %v2201_v55  ;;  %v2202_v37 = vmul.f32 3.90625e-07, %v11130_v15  ;;  %v2203_v24 = vmul.f32 3.90625e-07, %v11135_v11  ;;  %v3478_v12 = vpop.f32.mrf.mxu0 }
 0x2d0   : > { %v8994_v34 = vpop.eup %8993  ;;  %v2552_v61 = vmul.f32 0.6931472, %v8992_v4  ;;  %9015 = vlog2.f32 %v2327_v18  ;;  %v3286_v33 = vpack.c.bf16 %v3202_v40, %v3200_v53  ;;  %v3199_v13 = vmax.f32 %v3071_v43, 0.0  ;;  %v2066_v36 = vpop.f32.mrf.mxu1 }
 0x2d1   : > { %v11197_v30 = vpop.eup %8995  ;;  %v2554_v47 = vmul.f32 0.6931472, %v8994_v34  ;;  %9017 = vlog2.f32 %v2328_v20  ;;  %v3201_v41 = vmax.f32 %v3073_v39, 0.0  ;;  %v2330_v54 = vadd.f32 1.0, %v2202_v37  ;;  %v11199_v59 = vpop.f32.mrf.mxu0 }
 0x2d2   : > { %v8998_v10 = vpop.eup %8997  ;;  %v2705_v15 = vmul.f32 -0.75, %v2552_v61  ;;  %3642 = vmatprep.mubr.bf16.mxu0 %v3286_v33  ;;  %9019 = vlog2.f32 %v2329_v50  ;;  %v2331_v11 = vadd.f32 1.0, %v2203_v24  ;;  %v2204_v14 = vmul.f32 3.90625e-07, %v11146_v21  ;;  %v11211_v57 = vpop.f32.mrf.mxu1 }
 0x2d3   : > { %v9000_v0 = vpop.eup %8999  ;;  %v2706_v16 = vmul.f32 -0.75, %v2554_v47  ;;  %v2556_v35 = vmul.f32 0.6931472, %v8998_v10  ;;  %v3285_v23 = vpack.c.bf16 %v3201_v41, %v3199_v13  ;;  %9021 = vlog2.f32 %v2330_v54  ;;  %v3481_v2 = vpop.f32.mrf.mxu0  ;;  %v13212_v41 = vld [vmem:[#allocation76_spill] sm:$0xff] }
 0x2d4   : > { %v11202_v49 = vpop.eup %9001  ;;  %v2935_v22 = vmul.f32 1.442695, %v2705_v15  ;;  %v2558_v45 = vmul.f32 0.6931472, %v9000_v0  ;;  %9023 = vlog2.f32 %v2331_v11  ;;  %v2332_v60 = vadd.f32 1.0, %v2204_v14  ;;  %v11228_v33 = vpop.f32.mrf.mxu1  ;;  %v13213_v14 = vld [vmem:[#allocation79_spill] sm:$0xff] }
 0x2d5   : > { %v9004_v38 = vpop.eup %9003  ;;  %v2937_v46 = vmul.f32 1.442695, %v2706_v16  ;;  %v2707_v52 = vmul.f32 -0.75, %v2556_v35  ;;  %3643 = vmatmul.mubr.bf16.gmra.mxu0 %v3285_v23  ;;  %v3076_v21 = vmul.f32 %v11150_v44, %v13208_v31  ;;  %v3078_v29 = vmul.f32 %v11168_v25, %v13209_v48 }
 0x2d6   : > { %v11208_v7 = vpop.eup %9005  ;;  %9025 = vpow2.f32 %v2935_v22  ;;  %v2708_v5 = vmul.f32 -0.75, %v2558_v45  ;;  %v2560_v63 = vmul.f32 0.6931472, %v9004_v38  ;;  %v2205_v19 = vmul.f32 3.90625e-07, %v11158_v28  ;;  %v13211_v28 = vld [vmem:[#allocation73_spill] sm:$0xff]  ;;  %v2074_v38 = vpop.f32.mrf.mxu1 }
 0x2d7   : > { %9027 = vpow2.f32 %v2937_v46  ;;  %v2939_v8 = vmul.f32 1.442695, %v2707_v52  ;;  %v3204_v18 = vmax.f32 %v3076_v21, 0.0  ;;  %v3206_v62 = vmax.f32 %v3078_v29, 0.0 }
 0x2d8   : > { %v2941_v20 = vmul.f32 1.442695, %v2708_v5  ;;  %v2709_v53 = vmul.f32 -0.75, %v2560_v63  ;;  %9029 = vlog2.f32 %v2332_v60  ;;  %v2333_v44 = vadd.f32 1.0, %v2205_v19  ;;  %v11213_v55 = vpop.f32.mrf.mxu0 }
 0x2d9   : > { %v11215_v25 = vpop.eup %9007  ;;  %9031 = vpow2.f32 %v2939_v8  ;;  %v3288_v40 = vpack.c.bf16 %v3206_v62, %v3204_v18  ;;  %v3075_v43 = vmul.f32 %v11144_v26, %v13210_v27  ;;  %v3077_v3 = vmul.f32 %v11154_v42, %v13211_v28  ;;  %v2076_v27 = vpop.f32.mrf.mxu1 }
 0x2da   : > { %v11221_v39 = vpop.eup %9009  ;;  %9033 = vpow2.f32 %v2941_v20  ;;  %v2943_v4 = vmul.f32 1.442695, %v2709_v53  ;;  %v2206_v50 = vmul.f32 3.90625e-07, %v11165_v6  ;;  %v2207_v37 = vmul.f32 3.90625e-07, %v11176_v32  ;;  %v3486_v24 = vpop.f32.mrf.mxu0 }
 0x2db   : > { %v11225_v12 = vpop.eup %9011  ;;  %3650 = vmatprep.mubr.bf16.mxu0 %v3288_v40  ;;  %9035 = vlog2.f32 %v2333_v44  ;;  %v3203_v34 = vmax.f32 %v3075_v43, 0.0  ;;  %v3205_v61 = vmax.f32 %v3077_v3, 0.0  ;;  %v2208_v26 = vmul.f32 3.90625e-07, %v11195_v1  ;;  %v13214_v44 = vld [vmem:[#allocation78_spill] sm:$0xff] }
 0x2dc   : > { %v9014_v42 = vpop.eup %9013  ;;  %9037 = vpow2.f32 %v2943_v4  ;;  %v2334_v13 = vadd.f32 1.0, %v2206_v50  ;;  %v2335_v47 = vadd.f32 1.0, %v2207_v37  ;;  %v3080_v6 = vmul.f32 %v11178_v9, %v13212_v41  ;;  %v11232_v54 = vpop.f32.mrf.mxu0  ;;  %v13215_v4 = vld [vmem:[#allocation77_spill] sm:$0xff] }
 0x2dd   : > { %v9016_v32 = vpop.eup %9015  ;;  %v2562_v10 = vmul.f32 0.6931472, %v9014_v42  ;;  %v3287_v15 = vpack.c.bf16 %v3205_v61, %v3203_v34  ;;  %v2336_v11 = vadd.f32 1.0, %v2208_v26  ;;  %v3082_v0 = vmul.f32 %v11187_v51, %v13213_v14 }
 0x2de   : > { %v9018_v16 = vpop.eup %9017  ;;  %v2564_v1 = vmul.f32 0.6931472, %v9016_v32  ;;  %9039 = vlog2.f32 %v2334_v13  ;;  %v3208_v35 = vmax.f32 %v3080_v6, 0.0  ;;  %v2209_v23 = vmul.f32 3.90625e-07, %v2066_v36  ;;  %v3489_v2 = vpop.f32.mrf.mxu0 }
 0x2df   : > { %v9020_v22 = vpop.eup %9019  ;;  %v2710_v45 = vmul.f32 -0.75, %v2562_v10  ;;  %v2566_v60 = vmul.f32 0.6931472, %v9018_v16  ;;  %3651 = vmatmul.mubr.bf16.gmra.mxu0 %v3287_v15  ;;  %9041 = vlog2.f32 %v2335_v47  ;;  %v3210_v9 = vmax.f32 %v3082_v0, 0.0  ;;  %v2078_v15 = vpop.f32.mrf.mxu1  ;;  %v13216_v0 = vld [vmem:[#allocation80_spill] sm:$0xff] }
 0x2e0   : > { %v9022_v46 = vpop.eup %9021  ;;  %v2711_v52 = vmul.f32 -0.75, %v2564_v1  ;;  %v2568_v31 = vmul.f32 0.6931472, %v9020_v22  ;;  %9043 = vlog2.f32 %v2336_v11  ;;  %v2337_v21 = vadd.f32 1.0, %v2209_v23 }
 0x2e1   : > { %v9024_v48 = vpop.eup %9023  ;;  %v2945_v51 = vmul.f32 1.442695, %v2710_v45  ;;  %v2712_v29 = vmul.f32 -0.75, %v2566_v60  ;;  %v2570_v5 = vmul.f32 0.6931472, %v9022_v46  ;;  %v3290_v63 = vpack.c.bf16 %v3210_v9, %v3208_v35  ;;  %v13217_v45 = vld [vmem:[#allocation83_spill] sm:$0xff] }
 0x2e2   : > { %v2947_v19 = vmul.f32 1.442695, %v2711_v52  ;;  %v2713_v36 = vmul.f32 -0.75, %v2568_v31  ;;  %v2572_v8 = vmul.f32 0.6931472, %v9024_v48  ;;  %9045 = vlog2.f32 %v2337_v21  ;;  %v11236_v18 = vpop.f32.mrf.mxu0  ;;  %v2082_v21 = vpop.f32.mrf.mxu1 }
 0x2e3   : > { %v11238_v62 = vpop.eup %9025  ;;  %9047 = vpow2.f32 %v2945_v51  ;;  %v2949_v20 = vmul.f32 1.442695, %v2712_v29  ;;  %v2714_v53 = vmul.f32 -0.75, %v2570_v5  ;;  %3658 = vmatprep.mubr.bf16.mxu0 %v3290_v63  ;;  %v3079_v40 = vmul.f32 %v11173_v17, %v13214_v44 }
 0x2e4   : > { %v11242_v43 = vpop.eup %9027  ;;  %9049 = vpow2.f32 %v2947_v19  ;;  %v2951_v28 = vmul.f32 1.442695, %v2713_v36  ;;  %v2715_v3 = vmul.f32 -0.75, %v2572_v8  ;;  %v3081_v50 = vmul.f32 %v11182_v56, %v13215_v4  ;;  %v3494_v37 = vpop.f32.mrf.mxu0 }
 0x2e5   : > { %v9030_v24 = vpop.eup %9029  ;;  %9051 = vpow2.f32 %v2949_v20  ;;  %v2953_v34 = vmul.f32 1.442695, %v2714_v53  ;;  %v2210_v61 = vmul.f32 3.90625e-07, %v11211_v57  ;;  %v3207_v17 = vmax.f32 %v3079_v40, 0.0  ;;  %v13218_v20 = vld [vmem:[#allocation82_spill] sm:$0xff]  ;;  %v2084_v37 = vpop.f32.mrf.mxu1 }
 0x2e6   : > { %v11247_v26 = vpop.eup %9031  ;;  %v2955_v42 = vmul.f32 1.442695, %v2715_v3  ;;  %v2574_v13 = vmul.f32 0.6931472, %v9030_v24  ;;  %v3209_v47 = vmax.f32 %v3081_v50, 0.0  ;;  %v11249_v41 = vpop.f32.mrf.mxu0  ;;  %9053 = vpow2.f32 %v2951_v28  ;;  %v13219_v50 = vld [vmem:[#allocation81_spill] sm:$0xff] }
 0x2e7   : > { %v11251_v6 = vpop.eup %9033  ;;  %v2338_v32 = vadd.f32 1.0, %v2210_v61  ;;  %v2211_v56 = vmul.f32 3.90625e-07, %v11228_v33  ;;  %v2212_v10 = vmul.f32 3.90625e-07, %v2074_v38  ;;  %9055 = vpow2.f32 %v2953_v34 }
 0x2e8   : > { %v9036_v11 = vpop.eup %9035  ;;  %v2716_v14 = vmul.f32 -0.75, %v2574_v13  ;;  %v3289_v57 = vpack.c.bf16 %v3209_v47, %v3207_v17  ;;  %v3084_v16 = vmul.f32 %v11202_v49, %v13216_v0  ;;  %v3497_v1 = vpop.f32.mrf.mxu0  ;;  %v11261_v33 = vld [vmem:[%s12789_s6] ss:$0 sm:$0xff]  ;;  %v3086_v60 = vmul.f32 %v11215_v25, %v13217_v45 }
 0x2e9   : > { %v11256_v35 = vpop.eup %9037  ;;  %v2576_v23 = vmul.f32 0.6931472, %v9036_v11  ;;  %9057 = vlog2.f32 %v2338_v32  ;;  %v2339_v2 = vadd.f32 1.0, %v2211_v56  ;;  %v2340_v22 = vadd.f32 1.0, %v2212_v10 }
 0x2ea   : > { %9059 = vpow2.f32 %v2955_v42  ;;  %3659 = vmatmul.mubr.bf16.gmra.mxu0 %v3289_v57  ;;  %v2213_v9 = vmul.f32 3.90625e-07, %v2076_v27  ;;  %v11265_v38 = vpop.f32.mrf.mxu0  ;;  %v2957_v46 = vmul.f32 1.442695, %v2716_v14  ;;  %v3212_v31 = vmax.f32 %v3084_v16, 0.0  ;;  %v13220_v57 = vld [vmem:[#allocation85_spill] sm:$0xff] }
 0x2eb   : > { %v9040_v49 = vpop.eup %9039  ;;  %v2717_v52 = vmul.f32 -0.75, %v2576_v23  ;;  %9061 = vlog2.f32 %v2339_v2  ;;  %v3214_v29 = vmax.f32 %v3086_v60, 0.0  ;;  %v3477_v63 = vadd.f32 %v11261_v33, %v11185_v58 }
 0x2ec   : > { %v9042_v48 = vpop.eup %9041  ;;  %v2578_v51 = vmul.f32 0.6931472, %v9040_v49  ;;  %v2341_v5 = vadd.f32 1.0, %v2213_v9  ;;  %v3502_v19 = vpop.f32.mrf.mxu0  ;;  %9063 = vlog2.f32 %v2340_v22  ;;  %v3083_v53 = vmul.f32 %v11197_v30, %v13218_v20 }
 0x2ed   : > { %v9044_v36 = vpop.eup %9043  ;;  %v2959_v8 = vmul.f32 1.442695, %v2717_v52  ;;  %v2580_v25 = vmul.f32 0.6931472, %v9042_v48  ;;  %v3292_v27 = vpack.c.bf16 %v3214_v29, %v3212_v31  ;;  %v3085_v58 = vmul.f32 %v11208_v7, %v13219_v50 }
 0x2ee   : > { %v2718_v44 = vmul.f32 -0.75, %v2578_v51  ;;  %v2582_v40 = vmul.f32 0.6931472, %v9044_v36  ;;  %9065 = vlog2.f32 %v2341_v5  ;;  %v11271_v28 = vpop.f32.mrf.mxu0  ;;  %v3731_v42 = vmax.f32 %v3477_v63, 0.0  ;;  %v13222_v36 = vld [vmem:[#allocation86_spill] sm:$0xff] }
 0x2ef   : > { %v9046_v3 = vpop.eup %9045  ;;  %9067 = vpow2.f32 %v2957_v46  ;;  %v2719_v4 = vmul.f32 -0.75, %v2580_v25  ;;  %3666 = vmatprep.mubr.bf16.mxu0 %v3292_v27  ;;  %v3480_v30 = vadd.f32 %v11261_v33, %v11199_v59  ;;  %v3211_v32 = vmax.f32 %v3083_v53, 0.0  ;;  %v2086_v59 = vpop.f32.mrf.mxu1  ;;  %v13221_v46 = vld [vmem:[#allocation87_spill] sm:$0xff] }
 0x2f0   : > { %v11275_v24 = vpop.eup %9047  ;;  %v2961_v34 = vmul.f32 1.442695, %v2718_v44  ;;  %v2720_v61 = vmul.f32 -0.75, %v2582_v40  ;;  %v3505_v13 = vpop.f32.mrf.mxu0  ;;  %v3213_v56 = vmax.f32 %v3085_v58, 0.0  ;;  %v2214_v10 = vmul.f32 3.90625e-07, %v2078_v15 }
 0x2f1   : > { %v11279_v17 = vpop.eup %9049  ;;  %v2963_v47 = vmul.f32 1.442695, %v2719_v4  ;;  %9069 = vpow2.f32 %v2959_v8  ;;  %v2215_v14 = vmul.f32 3.90625e-07, %v2082_v21  ;;  %v3088_v0 = vmul.f32 %v11225_v12, %v13220_v57  ;;  %v2088_v25 = vpop.f32.mrf.mxu1  ;;  %v13223_v40 = vld [vmem:[#allocation84_spill] sm:$0xff] }
 0x2f2   : > { %v11281_v11 = vpop.eup %9051  ;;  %v2965_v7 = vmul.f32 1.442695, %v2720_v61  ;;  %9071 = vpow2.f32 %v2961_v34  ;;  %v3291_v16 = vpack.c.bf16 %v3213_v56, %v3211_v32  ;;  %v2342_v1 = vadd.f32 1.0, %v2214_v10 }
 0x2f3   : > { %v3732_v23 = vmax.f32 %v3480_v30, 0.0  ;;  %v11285_v2 = vpop.f32.mrf.mxu0  ;;  %v11287_v22 = vpop.eup %9053  ;;  %9073 = vpow2.f32 %v2963_v47  ;;  %v2584_v45 = vmul.f32 0.6931472, %v9046_v3  ;;  %v2216_v15 = vmul.f32 3.90625e-07, %v2084_v37  ;;  %v13224_v47 = vld [vmem:[#allocation89_spill] sm:$0xff] }
 0x2f4   : > { %v11289_v60 = vpop.eup %9055  ;;  %3667 = vmatmul.mubr.bf16.gmra.mxu0 %v3291_v16  ;;  %9075 = vlog2.f32 %v2342_v1  ;;  %v2343_v9 = vadd.f32 1.0, %v2215_v14  ;;  %v3090_v12 = vmul.f32 %v11242_v43, %v13221_v46  ;;  %v3216_v48 = vmax.f32 %v3088_v0, 0.0  ;;  %v13225_v16 = vld [vmem:[#allocation91_spill] sm:$0xff] }
 0x2f5   : > { %v3795_v49 = vpack.c.bf16 %v3732_v23, %v3731_v42  ;;  %v3510_v52 = vpop.f32.mrf.mxu0  ;;  %9077 = vpow2.f32 %v2965_v7  ;;  %v2344_v21 = vadd.f32 1.0, %v2216_v15  ;;  %v2217_v51 = vmul.f32 3.90625e-07, %v2086_v59 }
 0x2f6   : > { %v9058_v31 = vpop.eup %9057  ;;  %v3218_v63 = vmax.f32 %v3090_v12, 0.0  ;;  %v3485_v19 = vadd.f32 %v11261_v33, %v11213_v55  ;;  %v3087_v8 = vmul.f32 %v11221_v39, %v13222_v36  ;;  %v2721_v53 = vmul.f32 -0.75, %v2584_v45  ;;  %v13226_v52 = vld [vmem:[#allocation90_spill] sm:$0xff] }
 0x2f7   : > { %v11293_v29 = vpop.eup %9059  ;;  %v2586_v5 = vmul.f32 0.6931472, %v9058_v31  ;;  %7903 = vmatprep.mubr.bf16.mxu1 %v3795_v49  ;;  %v11299_v20 = vpop.f32.mrf.mxu0  ;;  %9079 = vlog2.f32 %v2344_v21  ;;  %v2345_v44 = vadd.f32 1.0, %v2217_v51  ;;  %v3089_v27 = vmul.f32 %v11238_v62, %v13223_v40  ;;  %v13228_v36 = vld [vmem:[#allocation94_spill] sm:$0xff] }
 0x2f8   : > { %v9062_v43 = vpop.eup %9061  ;;  %9081 = vlog2.f32 %v2343_v9  ;;  %v3294_v4 = vpack.c.bf16 %v3218_v63, %v3216_v48  ;;  %v3215_v50 = vmax.f32 %v3087_v8, 0.0  ;;  %v2218_v39 = vmul.f32 3.90625e-07, %v2088_v25 }
 0x2f9   : > { %v2722_v3 = vmul.f32 -0.75, %v2586_v5  ;;  %v3513_v58 = vpop.f32.mrf.mxu0  ;;  %v9064_v55 = vpop.eup %9063  ;;  %9083 = vlog2.f32 %v2345_v44  ;;  %v3217_v37 = vmax.f32 %v3089_v27, 0.0  ;;  %v3488_v34 = vadd.f32 %v11261_v33, %v11232_v54 }
 0x2fa   : > { %v2590_v30 = vmul.f32 0.6931472, %v9064_v55  ;;  %3674 = vmatprep.mubr.bf16.mxu0 %v3294_v4  ;;  %v3733_v13 = vmax.f32 %v3485_v19, 0.0  ;;  %v3092_v62 = vmul.f32 %v11251_v6, %v13224_v47  ;;  %v2588_v56 = vmul.f32 0.6931472, %v9062_v43  ;;  %v13230_v55 = vld [vmem:[#allocation93_spill] sm:$0xff] }
 0x2fb   : > { %v9066_v61 = vpop.eup %9065  ;;  %v2969_v42 = vmul.f32 1.442695, %v2722_v3  ;;  %v3293_v10 = vpack.c.bf16 %v3217_v37, %v3215_v50  ;;  %v2346_v7 = vadd.f32 1.0, %v2218_v39  ;;  %v3734_v14 = vmax.f32 %v3488_v34, 0.0 }
 0x2fc   : > { %v11307_v32 = vpop.eup %9067  ;;  %v2724_v57 = vmul.f32 -0.75, %v2590_v30  ;;  %v2592_v0 = vmul.f32 0.6931472, %v9066_v61  ;;  %v3094_v54 = vmul.f32 %v11275_v24, %v13225_v16  ;;  %v2967_v6 = vmul.f32 1.442695, %v2721_v53  ;;  %v13227_v24 = vld [vmem:[#allocation88_spill] sm:$0xff] }
 0x2fd   : > { %9085 = vpow2.f32 %v2969_v42  ;;  %v11311_v1 = vpop.f32.mrf.mxu0  ;;  %3675 = vmatmul.mubr.bf16.gmra.mxu0 %v3293_v10  ;;  %v3796_v23 = vpack.c.bf16 %v3734_v14, %v3733_v13  ;;  %v3220_v45 = vmax.f32 %v3092_v62, 0.0  ;;  %v3493_v9 = vadd.f32 %v11261_v33, %v11236_v18  ;;  %v13232_v14 = vld [vmem:[#allocation97_spill] sm:$0xff] }
 0x2fe   : > { %9087 = vlog2.f32 %v2346_v7  ;;  %v11313_v59 = vpop.eup %9069  ;;  %v3222_v15 = vmax.f32 %v3094_v54, 0.0  ;;  %v2723_v12 = vmul.f32 -0.75, %v2588_v56  ;;  %v3091_v31 = vmul.f32 %v11247_v26, %v13226_v52 }
 0x2ff   : > { %v3518_v49 = vpop.f32.mrf.mxu0  ;;  %v9072_v46 = vpop.eup %9071  ;;  %v3093_v21 = vmul.f32 %v11256_v35, %v13227_v24  ;;  %7904 = vmatmul.mubr.bf16.vlgmr.msra.gmra.mxu1 %v3796_v23  ;;  %v3496_v48 = vadd.f32 %v11261_v33, %v11249_v41  ;;  %v2973_v5 = vmul.f32 1.442695, %v2724_v57  ;;  %v2725_v63 = vmul.f32 -0.75, %v2592_v0  ;;  %v13229_v41 = vld [vmem:[#allocation95_spill] sm:$0xff] }
 0x300   : > { %v11323_v51 = vpop.eup %9073  ;;  %v3296_v19 = vpack.c.bf16 %v3222_v15, %v3220_v45  ;;  %v3096_v18 = vmul.f32 %v11281_v11, %v13228_v36  ;;  %v3735_v43 = vmax.f32 %v3493_v9, 0.0  ;;  %v3219_v26 = vmax.f32 %v3091_v31, 0.0 }
 0x301   : > { %v11327_v8 = vpop.f32.mrf.mxu0  ;;  %v9076_v25 = vpop.eup %9075  ;;  %v3221_v53 = vmax.f32 %v3093_v21, 0.0  ;;  %v3736_v44 = vmax.f32 %v3496_v48, 0.0  ;;  %9089 = vpow2.f32 %v2967_v6  ;;  %v3098_v27 = vmul.f32 %v11289_v60, %v13229_v41  ;;  %v13231_v60 = vld [vmem:[#allocation92_spill] sm:$0xff]  ;;  %v13237_v41 = vld [vmem:[#allocation103_spill] sm:$0xff] }
 0x302   : > { %v9078_v35 = vpop.eup %9077  ;;  %v2594_v40 = vmul.f32 0.6931472, %v9076_v25  ;;  %3682 = vmatprep.mubr.bf16.mxu0 %v3296_v19  ;;  %v3501_v3 = vadd.f32 %v11261_v33, %v11265_v38  ;;  %v2971_v50 = vmul.f32 1.442695, %v2723_v12  ;;  %v3097_v37 = vmul.f32 %v11287_v22, %v13230_v55  ;;  %v13234_v19 = vld [vmem:[#allocation98_spill] sm:$0xff] }
 0x303   : > { %v3521_v4 = vpop.f32.mrf.mxu0  ;;  %v3295_v11 = vpack.c.bf16 %v3221_v53, %v3219_v26  ;;  %v3797_v58 = vpack.c.bf16 %v3736_v44, %v3735_v43  ;;  %9091 = vpow2.f32 %v2973_v5  ;;  %v3224_v61 = vmax.f32 %v3096_v18, 0.0  ;;  %v13235_v43 = vld [vmem:[#allocation96_spill] sm:$0xff] }
 0x304   : > { %v9080_v39 = vpop.eup %9079  ;;  %v2726_v34 = vmul.f32 -0.75, %v2594_v40  ;;  %v3226_v42 = vmax.f32 %v3098_v27, 0.0  ;;  %v2975_v13 = vmul.f32 1.442695, %v2725_v63  ;;  %v3095_v62 = vmul.f32 %v11279_v17, %v13231_v60  ;;  %v13233_v17 = vld [vmem:[#allocation99_spill] sm:$0xff] }
 0x305   : > { %v9082_v30 = vpop.eup %9081  ;;  %v2598_v47 = vmul.f32 0.6931472, %v9080_v39  ;;  %3683 = vmatmul.mubr.bf16.gmra.mxu0 %v3295_v11  ;;  %7907 = vmatprep.mubr.bf16.mxu1 %v3797_v58  ;;  %v3504_v38 = vadd.f32 %v11261_v33, %v11271_v28  ;;  %v3737_v22 = vmax.f32 %v3501_v3, 0.0  ;;  %v3100_v57 = vmul.f32 %v11307_v32, %v13232_v14 }
 0x306   : > { %v9084_v56 = vpop.eup %9083  ;;  %v2977_v10 = vmul.f32 1.442695, %v2726_v34  ;;  %v3298_v7 = vpack.c.bf16 %v3226_v42, %v3224_v61  ;;  %v3225_v54 = vmax.f32 %v3097_v37, 0.0  ;;  %v2596_v45 = vmul.f32 0.6931472, %v9082_v30 }
 0x307   : > { %v2728_v0 = vmul.f32 -0.75, %v2598_v47  ;;  %v2600_v16 = vmul.f32 0.6931472, %v9084_v56  ;;  %v3738_v23 = vmax.f32 %v3504_v38, 0.0  ;;  %v3102_v15 = vmul.f32 %v9072_v46, %v13233_v17  ;;  %v13238_v56 = vld [vmem:[#allocation102_spill] sm:$0xff] }
 0x308   : > { %v3524_v6 = vpop.f32.mrf.mxu0  ;;  %9093 = vpow2.f32 %v2977_v10  ;;  %3690 = vmatprep.mubr.bf16.mxu0 %v3298_v7  ;;  %v3223_v49 = vmax.f32 %v3095_v62, 0.0  ;;  %v3228_v24 = vmax.f32 %v3100_v57, 0.0  ;;  %v3509_v21 = vadd.f32 %v11261_v33, %v11285_v2  ;;  %v13236_v2 = vld [vmem:[#allocation101_spill] sm:$0xff] }
 0x309   : > { %9095 = vpow2.f32 %v2971_v50  ;;  %v2981_v28 = vmul.f32 1.442695, %v2728_v0  ;;  %v3798_v12 = vpack.c.bf16 %v3738_v23, %v3737_v22  ;;  %v3230_v32 = vmax.f32 %v3102_v15, 0.0 }
 0x30a   : > { %v9086_v9 = vpop.eup %9085  ;;  %v3526_v52 = vpop.f32.mrf.mxu0  ;;  %9097 = vpow2.f32 %v2975_v13  ;;  %v2729_v48 = vmul.f32 -0.75, %v2600_v16  ;;  %v3297_v63 = vpack.c.bf16 %v3225_v54, %v3223_v49  ;;  %v3101_v36 = vmul.f32 %v11313_v59, %v13234_v19  ;;  %v13240_v54 = vld [vmem:[#allocation100_spill] sm:$0xff] }
 0x30b   : > { %v9088_v31 = vpop.eup %9087  ;;  %7908 = vmatmul.mubr.bf16.gmra.mxu1 %v3798_v12  ;;  %v2727_v18 = vmul.f32 -0.75, %v2596_v45  ;;  %v3300_v25 = vpack.c.bf16 %v3230_v32, %v3228_v24  ;;  %v3099_v26 = vmul.f32 %v11293_v29, %v13235_v43  ;;  %v3512_v53 = vadd.f32 %v11261_v33, %v11299_v20 }
 0x30c   : > { %v2602_v5 = vmul.f32 0.6931472, %v9088_v31  ;;  %v3527_v46 = vpop.f32.mrf.mxu0  ;;  %9099 = vpow2.f32 %v2981_v28  ;;  %v3104_v40 = vmul.f32 %v9078_v35, %v13236_v2  ;;  %v3106_v27 = vmul.f32 %v9086_v9, %v13237_v41  ;;  %v13241_v9 = vld [vmem:[#allocation107_spill] sm:$0xff] }
 0x30d   : > { %3691 = vmatmul.mubr.bf16.gmra.mxu0 %v3297_v63  ;;  %v3739_v59 = vmax.f32 %v3509_v21, 0.0  ;;  %v3740_v4 = vmax.f32 %v3512_v53, 0.0  ;;  %v3517_v50 = vadd.f32 %v11261_v33, %v11311_v1  ;;  %v2983_v58 = vmul.f32 1.442695, %v2729_v48 }
 0x30e   : > { %v2730_v44 = vmul.f32 -0.75, %v2602_v5  ;;  %v3529_v3 = vpop.f32.mrf.mxu0  ;;  %3698 = vmatprep.mubr.bf16.mxu0 %v3300_v25  ;;  %v9090_v11 = vpop.eup %9089  ;;  %v3229_v55 = vmax.f32 %v3101_v36, 0.0  ;;  %v3234_v37 = vmax.f32 %v3106_v27, 0.0  ;;  %v2979_v20 = vmul.f32 1.442695, %v2727_v18  ;;  %v13242_v25 = vld [vmem:[#allocation106_spill] sm:$0xff] }
 0x30f   : > { %v3799_v39 = vpack.c.bf16 %v3740_v4, %v3739_v59  ;;  %v3232_v34 = vmax.f32 %v3104_v40, 0.0  ;;  %v3520_v35 = vadd.f32 %v11261_v33, %v11327_v8  ;;  %v3227_v30 = vmax.f32 %v3099_v26, 0.0  ;;  %v13239_v8 = vld [vmem:[#allocation105_spill] sm:$0xff] }
 0x310   : > { %v2985_v29 = vmul.f32 1.442695, %v2730_v44  ;;  %v9092_v42 = vpop.eup %9091  ;;  %v3741_v47 = vmax.f32 %v3517_v50, 0.0  ;;  %v3525_v1 = vadd.f32 %v11261_v33, %v3524_v6  ;;  %v3105_v10 = vmul.f32 %v9090_v11, %v13238_v56  ;;  %v13243_v44 = vld [vmem:[#allocation104_spill] sm:$0xff]  ;;  %v13244_v40 = vld [vmem:[#allocation109_spill] sm:$0xff]  ;;  %v13245_v50 = vld [vmem:[#allocation111_spill] sm:$0xff] }
 0x311   : > { %v3532_v61 = vpop.f32.mrf.mxu0  ;;  %v3302_v13 = vpack.c.bf16 %v3234_v37, %v3232_v34  ;;  %7911 = vmatprep.mubr.bf16.mxu1 %v3799_v39  ;;  %v3742_v60 = vmax.f32 %v3520_v35, 0.0  ;;  %v3299_v38 = vpack.c.bf16 %v3229_v55, %v3227_v30  ;;  %v3528_v7 = vadd.f32 %v11261_v33, %v3527_v46 }
 0x312   : > { %9101 = vpow2.f32 %v2985_v29  ;;  %v3108_v14 = vmul.f32 %v9092_v42, %v13239_v8  ;;  %v3533_v57 = vadd.f32 %v11261_v33, %v3532_v61  ;;  %v3103_v23 = vmul.f32 %v11323_v51, %v13240_v54 }
 0x313   : > { %v3534_v62 = vpop.f32.mrf.mxu0  ;;  %9103 = vpow2.f32 %v2983_v58  ;;  %v3800_v22 = vpack.c.bf16 %v3742_v60, %v3741_v47  ;;  %v3743_v6 = vmax.f32 %v3525_v1, 0.0  ;;  %v3744_v45 = vmax.f32 %v3528_v7, 0.0  ;;  %v13247_v1 = vld [vmem:[#allocation108_spill] sm:$0xff] }
 0x314   : > { %9105 = vpow2.f32 %v2979_v20  ;;  %v3233_v52 = vmax.f32 %v3105_v10, 0.0  ;;  %v3236_v32 = vmax.f32 %v3108_v14, 0.0  ;;  %v3745_v48 = vmax.f32 %v3533_v57, 0.0 }
 0x315   : > { %v3535_v0 = vpop.f32.mrf.mxu0  ;;  %v9094_v16 = vpop.eup %9093  ;;  %3699 = vmatmul.mubr.bf16.gmra.mxu0 %v3299_v38  ;;  %7912 = vmatmul.mubr.bf16.gmra.mxu1 %v3800_v22  ;;  %v3801_v31 = vpack.c.bf16 %v3744_v45, %v3743_v6  ;;  %v3231_v63 = vmax.f32 %v3103_v23, 0.0 }
 0x316   : > { %v3536_v17 = vadd.f32 %v11261_v33, %v3535_v0  ;;  %v9096_v15 = vpop.eup %9095  ;;  %3706 = vmatprep.mubr.bf16.mxu0 %v3302_v13  ;;  %v3110_v28 = vmul.f32 %v9094_v16, %v13241_v9  ;;  %v13246_v13 = vld [vmem:[#allocation110_spill] sm:$0xff] }
 0x317   : > { %v3537_v49 = vpop.f32.mrf.mxu0  ;;  %v9098_v12 = vpop.eup %9097  ;;  %7915 = vmatprep.mubr.bf16.mxu1 %v3801_v31  ;;  %v3301_v18 = vpack.c.bf16 %v3233_v52, %v3231_v63  ;;  %v3107_v2 = vmul.f32 %v9096_v15, %v13243_v44 }
 0x318   : > { %v3746_v24 = vmax.f32 %v3536_v17, 0.0  ;;  %v3238_v21 = vmax.f32 %v3110_v28, 0.0  ;;  %v3109_v43 = vmul.f32 %v9098_v12, %v13242_v25 }
 0x319   : > { %v3540_v5 = vpop.f32.mrf.mxu0  ;;  %v9100_v51 = vpop.eup %9099  ;;  %v3235_v20 = vmax.f32 %v3107_v2, 0.0 }
 0x31a   : > { %v3304_v19 = vpack.c.bf16 %v3238_v21, %v3236_v32  ;;  %v3802_v36 = vpack.c.bf16 %v3746_v24, %v3745_v48  ;;  %v3541_v26 = vadd.f32 %v11261_v33, %v3540_v5  ;;  %v3112_v41 = vmul.f32 %v9100_v51, %v13244_v40 }
 0x31b   : > { %v3542_v46 = vpop.f32.mrf.mxu0  ;;  %v3237_v4 = vmax.f32 %v3109_v43, 0.0 }
 0x31c   : > { %v3747_v58 = vmax.f32 %v3541_v26, 0.0  ;;  %v3240_v39 = vmax.f32 %v3112_v41, 0.0 }
 0x31d   : > { %v3543_v53 = vpop.f32.mrf.mxu0  ;;  %3707 = vmatmul.mubr.bf16.gmra.mxu0 %v3301_v18  ;;  %7916 = vmatmul.mubr.bf16.gmra.mxu1 %v3802_v36  ;;  %v3303_v42 = vpack.c.bf16 %v3237_v4, %v3235_v20 }
 0x31e   : > { %v3544_v27 = vadd.f32 %v11261_v33, %v3543_v53  ;;  %3714 = vmatprep.mubr.bf16.mxu0 %v3304_v19 }
 0x31f   : > { %v9102_v3 = vpop.eup %9101  ;;  %v3545_v59 = vpop.f32.mrf.mxu0 }
 0x320   : > { %v3114_v11 = vmul.f32 %v9102_v3, %v13245_v50  ;;  %v3748_v29 = vmax.f32 %v3544_v27, 0.0  ;;  %v9104_v55 = vpop.eup %9103  ;;  %v8547_v50 = vld [vmem:[%s13248_s4 + $0x38] sm:$0xff]  }
 0x321   : > { %v9106_v37 = vpop.eup %9105  ;;  %v3113_v47 = vmul.f32 %v9104_v55, %v13246_v13  ;;  %7967 = vmatprep.subr.bf16.mxu1 %v8547_v50 }
 0x322   : > { %v3242_v34 = vmax.f32 %v3114_v11, 0.0  ;;  %v3803_v35 = vpack.c.bf16 %v3748_v29, %v3747_v58  ;;  %v3111_v62 = vmul.f32 %v9106_v37, %v13247_v1  ;;  %7968 = vmatpush3.bf16.msra.mxu1 %v8547_v50  ;;  %v8548_v1 = vld [vmem:[%s13248_s4 + $0x30] sm:$0xff]  }
 0x323   : > { %v3548_v61 = vpop.f32.mrf.mxu0  ;;  %v3241_v10 = vmax.f32 %v3113_v47, 0.0  ;;  %7969 = vmatprep.subr.bf16.mxu1 %v8548_v1 }
 0x324   : > { %v3306_v30 = vpack.c.bf16 %v3242_v34, %v3240_v39  ;;  %7919 = vmatprep.mubr.bf16.mxu1 %v3803_v35  ;;  %v3549_v38 = vadd.f32 %v11261_v33, %v3548_v61  ;;  %v3239_v8 = vmax.f32 %v3111_v62, 0.0 }
 0x325   : > { %v3550_v60 = vpop.f32.mrf.mxu0  ;;  %3715 = vmatmul.mubr.bf16.gmra.mxu0 %v3303_v42 }
 0x326   : > { %3722 = vmatprep.mubr.bf16.mxu0 %v3306_v30  ;;  %v3749_v14 = vmax.f32 %v3549_v38, 0.0  ;;  %v3305_v0 = vpack.c.bf16 %v3241_v10, %v3239_v8  ;;  %7970 = vmatpush3.bf16.msra.mxu1 %v8548_v1  ;;  %v8549_v8 = vld [vmem:[%s13248_s4 + $0x28] sm:$0xff]  }
 0x327   : > { %v3551_v56 = vpop.f32.mrf.mxu0  ;;  %7971 = vmatprep.subr.bf16.mxu1 %v8549_v8 }
 0x328   : > { %v3552_v7 = vadd.f32 %v11261_v33, %v3551_v56 }
 0x329   : > { %v3553_v22 = vpop.f32.mrf.mxu0 }
 0x32a   : > { %v3750_v57 = vmax.f32 %v3552_v7, 0.0  ;;  %7972 = vmatpush3.bf16.msra.mxu1 %v8549_v8 }
 0x32c   : > { %v3804_v16 = vpack.c.bf16 %v3750_v57, %v3749_v14  ;;  %v3556_v54 = vpop.f32.mrf.mxu0 }
 0x32d   : > { %3723 = vmatmul.mubr.bf16.gmra.mxu0 %v3305_v0  ;;  %v3557_v6 = vadd.f32 %v11261_v33, %v3556_v54 }
 0x32e   : > { %v3558_v23 = vpop.f32.mrf.mxu0  ;;  %7920 = vmatmul.mubr.bf16.gmra.mxu1 %v3804_v16 }
 0x32f   : > { %v3751_v9 = vmax.f32 %v3557_v6, 0.0 }
 0x330   : > { %v3559_v45 = vpop.f32.mrf.mxu0 }
 0x331   : > { %v3560_v17 = vadd.f32 %v11261_v33, %v3559_v45  ;;  %v8550_v45 = vld [vmem:[%s13248_s4 + $0x20] sm:$0xff]  }
 0x332   : > { %v3561_v15 = vpop.f32.mrf.mxu0  ;;  %7973 = vmatprep.subr.bf16.mxu1 %v8550_v45 }
 0x333   : > { %v3752_v28 = vmax.f32 %v3560_v17, 0.0  ;;  %7974 = vmatpush3.bf16.msra.mxu1 %v8550_v45 }
 0x335   : > { %v3805_v49 = vpack.c.bf16 %v3752_v28, %v3751_v9  ;;  %v8551_v9 = vld [vmem:[%s13248_s4 + $0x18] sm:$0xff]  }
 0x336   : > { %v3564_v12 = vpop.f32.mrf.mxu0  ;;  %7975 = vmatprep.subr.bf16.mxu1 %v8551_v9 }
 0x337   : > { %7923 = vmatprep.mubr.bf16.mxu1 %v3805_v49  ;;  %v3565_v31 = vadd.f32 %v11261_v33, %v3564_v12  ;;  %7976 = vmatpush3.bf16.msra.mxu1 %v8551_v9 }
 0x338   : > { %v3566_v52 = vpop.f32.mrf.mxu0 }
 0x339   : > { %v3753_v48 = vmax.f32 %v3565_v31, 0.0 }
 0x33a   : > { %v3567_v24 = vpop.f32.mrf.mxu0 }
 0x33b   : > { %v3568_v32 = vadd.f32 %v11261_v33, %v3567_v24 }
 0x33c   : > { %v3569_v21 = vpop.f32.mrf.mxu0 }
 0x33d   : > { %v3754_v5 = vmax.f32 %v3568_v32, 0.0  ;;  %v8552_v32 = vld [vmem:[%s13248_s4 + $0x10] sm:$0xff]  }
 0x33e   : > { %7977 = vmatprep.subr.bf16.mxu1 %v8552_v32 }
 0x33f   : > { %v3806_v63 = vpack.c.bf16 %v3754_v5, %v3753_v48  ;;  %v8553_v5 = vld [vmem:[%s13248_s4 + $0x8] sm:$0xff]   ;;  %7978 = vmatpush3.bf16.msra.mxu1 %v8552_v32 }
 0x340   : > { %v3572_v51 = vpop.f32.mrf.mxu0  ;;  %7979 = vmatprep.subr.bf16.mxu1 %v8553_v5 }
 0x341   : > { %7924 = vmatmul.mubr.bf16.gmra.mxu1 %v3806_v63  ;;  %v3573_v36 = vadd.f32 %v11261_v33, %v3572_v51 }
 0x342   : > { %v3574_v19 = vpop.f32.mrf.mxu0 }
 0x343   : > { %v3755_v43 = vmax.f32 %v3573_v36, 0.0  ;;  %v8554_v19 = vld [vmem:[%s13248_s4] sm:$0xff]   ;;  %7980 = vmatpush3.bf16.msra.mxu1 %v8553_v5  ;;  %s12742_s4 = scalar_lea.hbm %s13410_s0, %s7634_s2 }
 0x344   : > { %v3575_v46 = vpop.f32.mrf.mxu0  ;;  %7981 = vmatprep.subr.bf16.mxu1 %v8554_v19 }
 0x345   : > { %v3576_v18 = vadd.f32 %v11261_v33, %v3575_v46 }
 0x346   : > { %v3577_v25 = vpop.f32.mrf.mxu0 }
 0x347   : > { %v3756_v26 = vmax.f32 %v3576_v18, 0.0  ;;  %7982 = vmatpush3.bf16.msra.mxu1 %v8554_v19 }
 0x349   : > { %v3807_v53 = vpack.c.bf16 %v3756_v26, %v3755_v43  ;;  %v3580_v44 = vpop.f32.mrf.mxu0 }
 0x34a   : > { %v3581_v40 = vadd.f32 %v11261_v33, %v3580_v44 }
 0x34b   : > { %v3582_v2 = vpop.f32.mrf.mxu0  ;;  %7927 = vmatprep.mubr.bf16.mxu1 %v3807_v53 }
 0x34c   : > { %v3757_v59 = vmax.f32 %v3581_v40, 0.0 }
 0x34d   : > { %v3583_v41 = vpop.f32.mrf.mxu0 }
 0x34e   : > { %v3584_v27 = vadd.f32 %v11261_v33, %v3583_v41 }
 0x34f   : > { %v3585_v3 = vpop.f32.mrf.mxu0 }
 0x350   : > { %v3758_v4 = vmax.f32 %v3584_v27, 0.0 }
 0x352   : > { %v3808_v11 = vpack.c.bf16 %v3758_v4, %v3757_v59 }
 0x353   : > { %v3588_v58 = vpop.f32.mrf.mxu0 }
 0x354   : > { %7928 = vmatmul.mubr.bf16.gmra.mxu1 %v3808_v11  ;;  %v3589_v55 = vadd.f32 %v11261_v33, %v3588_v58 }
 0x355   : > { %v3590_v29 = vpop.f32.mrf.mxu0 }
 0x356   : > { %v3759_v34 = vmax.f32 %v3589_v55, 0.0 }
 0x357   : > { %v3591_v37 = vpop.f32.mrf.mxu0 }
 0x358   : > { %v3592_v20 = vadd.f32 %v11261_v33, %v3591_v37 }
 0x359   : > { %v3593_v39 = vpop.f32.mrf.mxu0 }
 0x35a   : > { %v3760_v35 = vmax.f32 %v3592_v20, 0.0 }
 0x35c   : > { %v3809_v61 = vpack.c.bf16 %v3760_v35, %v3759_v34  ;;  %v3596_v42 = vpop.f32.mrf.mxu0 }
 0x35d   : > { %v3597_v13 = vadd.f32 %v11261_v33, %v3596_v42 }
 0x35e   : > { %v3598_v30 = vpop.f32.mrf.mxu0  ;;  %7931 = vmatprep.mubr.bf16.mxu1 %v3809_v61 }
 0x35f   : > { %v3761_v38 = vmax.f32 %v3597_v13, 0.0 }
 0x360   : > { %v3599_v47 = vpop.f32.mrf.mxu0 }
 0x361   : > { %v3600_v60 = vadd.f32 %v11261_v33, %v3599_v47 }
 0x362   : > { %v3601_v62 = vpop.f32.mrf.mxu0 }
 0x363   : > { %v3762_v56 = vmax.f32 %v3600_v60, 0.0 }
 0x365   : > { %v3810_v10 = vpack.c.bf16 %v3762_v56, %v3761_v38 }
 0x367   : > { %v3604_v7 = vpop.f32.mrf.mxu0  ;;  %7932 = vmatmul.mubr.bf16.gmra.mxu1 %v3810_v10 }
 0x368   : > { %v3605_v14 = vadd.f32 %v11261_v33, %v3604_v7 }
 0x369   : > { %v3606_v22 = vpop.f32.mrf.mxu0 }
 0x36a   : > { %v3763_v54 = vmax.f32 %v3605_v14, 0.0 }
 0x36b   : > { %v3607_v57 = vpop.f32.mrf.mxu0 }
 0x36c   : > { %v3608_v0 = vadd.f32 %v11261_v33, %v3607_v57 }
 0x36d   : > { %v3609_v16 = vpop.f32.mrf.mxu0 }
 0x36e   : > { %v3764_v23 = vmax.f32 %v3608_v0, 0.0 }
 0x36f   : > { %v3612_v6 = vpop.f32.mrf.mxu0 }
 0x370   : > { %v3811_v17 = vpack.c.bf16 %v3764_v23, %v3763_v54  ;;  %v3613_v28 = vadd.f32 %v11261_v33, %v3612_v6 }
 0x371   : > { %v3614_v15 = vpop.f32.mrf.mxu0 }
 0x372   : > { %7935 = vmatprep.mubr.bf16.mxu1 %v3811_v17  ;;  %v3765_v31 = vmax.f32 %v3613_v28, 0.0  ;;  %v8555_v28 = vld [vmem:[%s12792_s9 + $0x38] sm:$0xff]  }
 0x373   : > { %v3615_v49 = vpop.f32.mrf.mxu0  ;;  %8047 = vmatprep.subr.bf16.mxu0 %v8555_v28 }
 0x374   : > { %v3616_v12 = vadd.f32 %v11261_v33, %v3615_v49  ;;  %8048 = vmatpush3.bf16.msra.mxu0 %v8555_v28 }
 0x375   : > { %v3617_v52 = vpop.f32.mrf.mxu0 }
 0x376   : > { %v3766_v24 = vmax.f32 %v3616_v12, 0.0 }
 0x378   : > { %v3812_v21 = vpack.c.bf16 %v3766_v24, %v3765_v31 }
 0x379   : > { %v3620_v48 = vpop.f32.mrf.mxu0 }
 0x37a   : > { %7936 = vmatmul.mubr.bf16.gmra.mxu1 %v3812_v21  ;;  %v3621_v51 = vadd.f32 %v11261_v33, %v3620_v48 }
 0x37b   : > { %v3622_v63 = vpop.f32.mrf.mxu0 }
 0x37c   : > { %v3767_v25 = vmax.f32 %v3621_v51, 0.0 }
 0x37d   : > { %v3623_v36 = vpop.f32.mrf.mxu0 }
 0x37e   : > { %v3624_v46 = vadd.f32 %v11261_v33, %v3623_v36 }
 0x37f   : > { %v3625_v18 = vpop.f32.mrf.mxu0 }
 0x380   : > { %v3768_v43 = vmax.f32 %v3624_v46, 0.0 }
 0x382   : > { %v3813_v26 = vpack.c.bf16 %v3768_v43, %v3767_v25 }
 0x383   : > { %v3628_v53 = vpop.f32.mrf.mxu0 }
 0x384   : > { %7939 = vmatprep.mubr.bf16.mxu1 %v3813_v26  ;;  %v3629_v2 = vadd.f32 %v11261_v33, %v3628_v53 }
 0x385   : > { %v3630_v44 = vpop.f32.mrf.mxu0 }
 0x386   : > { %v3769_v3 = vmax.f32 %v3629_v2, 0.0 }
 0x387   : > { %v3631_v40 = vpop.f32.mrf.mxu0 }
 0x388   : > { %v3632_v41 = vadd.f32 %v11261_v33, %v3631_v40 }
 0x389   : > { %v3633_v27 = vpop.f32.mrf.mxu0 }
 0x38a   : > { %v3770_v59 = vmax.f32 %v3632_v41, 0.0 }
 0x38c   : > { %v3814_v4 = vpack.c.bf16 %v3770_v59, %v3769_v3 }
 0x38d   : > { %v3636_v50 = vpop.f32.mrf.mxu0 }
 0x38e   : > { %7940 = vmatmul.mubr.bf16.gmra.mxu1 %v3814_v4  ;;  %v3637_v58 = vadd.f32 %v11261_v33, %v3636_v50 }
 0x38f   : > { %v3638_v11 = vpop.f32.mrf.mxu0 }
 0x390   : > { %v3771_v20 = vmax.f32 %v3637_v58, 0.0 }
 0x391   : > { %v3639_v29 = vpop.f32.mrf.mxu0 }
 0x392   : > { %v3640_v55 = vadd.f32 %v11261_v33, %v3639_v29 }
 0x393   : > { %v3641_v37 = vpop.f32.mrf.mxu0 }
 0x394   : > { %v3772_v39 = vmax.f32 %v3640_v55, 0.0 }
 0x395   : > { %v3644_v34 = vpop.f32.mrf.mxu0 }
 0x396   : > { %v3815_v35 = vpack.c.bf16 %v3772_v39, %v3771_v20  ;;  %v3645_v42 = vadd.f32 %v11261_v33, %v3644_v34 }
 0x397   : > { %v3646_v61 = vpop.f32.mrf.mxu0 }
 0x398   : > { %7943 = vmatprep.mubr.bf16.mxu1 %v3815_v35  ;;  %v3773_v60 = vmax.f32 %v3645_v42, 0.0 }
 0x399   : > { %v3647_v30 = vpop.f32.mrf.mxu0 }
 0x39a   : > { %v3648_v13 = vadd.f32 %v11261_v33, %v3647_v30 }
 0x39b   : > { %v3649_v47 = vpop.f32.mrf.mxu0 }
 0x39c   : > { %v3774_v1 = vmax.f32 %v3648_v13, 0.0 }
 0x39e   : > { %v3816_v62 = vpack.c.bf16 %v3774_v1, %v3773_v60 }
 0x39f   : > { %v3652_v38 = vpop.f32.mrf.mxu0 }
 0x3a0   : > { %7944 = vmatmul.mubr.bf16.gmra.mxu1 %v3816_v62  ;;  %v3653_v10 = vadd.f32 %v11261_v33, %v3652_v38  ;;  %v8556_v38 = vld [vmem:[%s12792_s9 + $0x30] sm:$0xff]  }
 0x3a1   : > { %v3654_v56 = vpop.f32.mrf.mxu0  ;;  %8049 = vmatprep.subr.bf16.mxu0 %v8556_v38 }
 0x3a2   : > { %v3775_v14 = vmax.f32 %v3653_v10, 0.0  ;;  %v9363_v10 = vld [vmem:[%s12789_s6] ss:$0 sm:$0xff]  ;;  %8050 = vmatpush3.bf16.msra.mxu0 %v8556_v38 }
 0x3a3   : > { %v3655_v7 = vpop.f32.mrf.mxu0 }
 0x3a4   : > { %v3656_v22 = vadd.f32 %v11261_v33, %v3655_v7 }
 0x3a5   : > { %v3657_v8 = vpop.f32.mrf.mxu0 }
 0x3a6   : > { %v3776_v57 = vmax.f32 %v3656_v22, 0.0 }
 0x3a8   : > { %v3817_v0 = vpack.c.bf16 %v3776_v57, %v3775_v14 }
 0x3aa   : > { %v3660_v16 = vpop.f32.mrf.mxu0  ;;  %7947 = vmatprep.mubr.bf16.mxu1 %v3817_v0 }
 0x3ab   : > { %v3661_v23 = vadd.f32 %v11261_v33, %v3660_v16 }
 0x3ac   : > { %v3662_v54 = vpop.f32.mrf.mxu0 }
 0x3ad   : > { %v3777_v15 = vmax.f32 %v3661_v23, 0.0 }
 0x3ae   : > { %v3663_v6 = vpop.f32.mrf.mxu0 }
 0x3af   : > { %v3664_v45 = vadd.f32 %v11261_v33, %v3663_v6 }
 0x3b0   : > { %v3665_v17 = vpop.f32.mrf.mxu0 }
 0x3b1   : > { %v3778_v9 = vmax.f32 %v3664_v45, 0.0 }
 0x3b3   : > { %v3818_v49 = vpack.c.bf16 %v3778_v9, %v3777_v15 }
 0x3b4   : > { %v3668_v12 = vpop.f32.mrf.mxu0 }
 0x3b5   : > { %7948 = vmatmul.mubr.bf16.gmra.mxu1 %v3818_v49  ;;  %v3669_v31 = vadd.f32 %v11261_v33, %v3668_v12 }
 0x3b6   : > { %v3670_v52 = vpop.f32.mrf.mxu0 }
 0x3b7   : > { %v3779_v48 = vmax.f32 %v3669_v31, 0.0 }
 0x3b8   : > { %v3671_v24 = vpop.f32.mrf.mxu0 }
 0x3b9   : > { %v3672_v32 = vadd.f32 %v11261_v33, %v3671_v24 }
 0x3ba   : > { %v3673_v21 = vpop.f32.mrf.mxu0 }
 0x3bb   : > { %v3780_v5 = vmax.f32 %v3672_v32, 0.0 }
 0x3bd   : > { %v3819_v63 = vpack.c.bf16 %v3780_v5, %v3779_v48  ;;  %v3676_v51 = vpop.f32.mrf.mxu0 }
 0x3be   : > { %v3677_v46 = vadd.f32 %v11261_v33, %v3676_v51 }
 0x3bf   : > { %v3678_v19 = vpop.f32.mrf.mxu0  ;;  %7951 = vmatprep.mubr.bf16.mxu1 %v3819_v63  ;;  %v11432_v36 = vpop.f32.mrf.mxu1 }
 0x3c0   : > { %v3781_v53 = vmax.f32 %v3677_v46, 0.0 }
 0x3c1   : > { %v3679_v18 = vpop.f32.mrf.mxu0  ;;  %v11436_v26 = vpop.f32.mrf.mxu1 }
 0x3c2   : > { %v3680_v25 = vadd.f32 %v11261_v33, %v3679_v18 }
 0x3c3   : > { %v3681_v43 = vpop.f32.mrf.mxu0  ;;  %v11438_v27 = vpop.f32.mrf.mxu1 }
 0x3c4   : > { %v3782_v44 = vmax.f32 %v3680_v25, 0.0 }
 0x3c5   : > { %v3684_v2 = vpop.f32.mrf.mxu0  ;;  %v3935_v11 = vpop.f32.mrf.mxu1 }
 0x3c6   : > { %v3820_v40 = vpack.c.bf16 %v3782_v44, %v3781_v53  ;;  %v3685_v3 = vadd.f32 %v11261_v33, %v3684_v2  ;;  %v11467_v53 = vld [vmem:[%s12791_s8] ss:$0 sm:$0xff] }
 0x3c7   : > { %v3686_v41 = vpop.f32.mrf.mxu0  ;;  %v11470_v2 = vadd.f32 %v11467_v53, %v3935_v11 }
 0x3c8   : > { %7952 = vmatmul.mubr.bf16.gmra.mxu1 %v3820_v40  ;;  %v3783_v58 = vmax.f32 %v3685_v3, 0.0  ;;  %v11474_v3 = vadd.f32 %v11467_v53, %v11436_v26 }
 0x3c9   : > { %v3687_v59 = vpop.f32.mrf.mxu0 }
 0x3ca   : > { %v3688_v4 = vadd.f32 %v11261_v33, %v3687_v59  ;;  %v4187_v11 = vmul.f32 %v11474_v3, %v11474_v3 }
 0x3cb   : > { %v3689_v50 = vpop.f32.mrf.mxu0  ;;  %v11442_v37 = vpop.f32.mrf.mxu1 }
 0x3cc   : > { %v3784_v29 = vmax.f32 %v3688_v4, 0.0 }
 0x3cd   : > { %v3692_v55 = vpop.f32.mrf.mxu0  ;;  %v11445_v61 = vpop.f32.mrf.mxu1 }
 0x3ce   : > { %v3821_v20 = vpack.c.bf16 %v3784_v29, %v3783_v58  ;;  %v3693_v34 = vadd.f32 %v11261_v33, %v3692_v55  ;;  %v4188_v58 = vmul.f32 %v11470_v2, %v11470_v2 }
 0x3cf   : > { %v3694_v39 = vpop.f32.mrf.mxu0  ;;  %v11448_v1 = vpop.f32.mrf.mxu1 }
 0x3d0   : > { %7955 = vmatprep.mubr.bf16.mxu1 %v3821_v20  ;;  %v3785_v13 = vmax.f32 %v3693_v34, 0.0  ;;  %v11482_v34 = vadd.f32 %v11438_v27, %v11467_v53 }
 0x3d1   : > { %v3695_v35 = vpop.f32.mrf.mxu0  ;;  %v3951_v22 = vpop.f32.mrf.mxu1 }
 0x3d2   : > { %v3696_v42 = vadd.f32 %v11261_v33, %v3695_v35  ;;  %v11485_v26 = vadd.f32 %v11467_v53, %v3951_v22  ;;  %v4190_v27 = vmul.f32 %v11482_v34, %v11482_v34 }
 0x3d3   : > { %v3697_v30 = vpop.f32.mrf.mxu0 }
 0x3d4   : > { %v3786_v47 = vmax.f32 %v3696_v42, 0.0  ;;  %v4251_v42 = vpack.c.bf16 %v4188_v58, %v4187_v11 }
 0x3d5   : > { %v3700_v60 = vpop.f32.mrf.mxu0  ;;  %v11456_v57 = vpop.f32.mrf.mxu1 }
 0x3d6   : > { %v3822_v62 = vpack.c.bf16 %v3786_v47, %v3785_v13  ;;  %v3701_v7 = vadd.f32 %v9363_v10, %v3700_v60  ;;  %v11491_v13 = vadd.f32 %v11432_v36, %v11467_v53  ;;  %v11495_v47 = vadd.f32 %v11467_v53, %v11445_v61 }
 0x3d7   : > { %v3702_v56 = vpop.f32.mrf.mxu0  ;;  %v11458_v45 = vpop.f32.mrf.mxu1  ;;  %v4192_v60 = vmul.f32 %v11485_v26, %v11485_v26 }
 0x3d8   : > { %7956 = vmatmul.mubr.bf16.gmra.mxu1 %v3822_v62  ;;  %v3787_v0 = vmax.f32 %v3701_v7, 0.0  ;;  %v4189_v38 = vmul.f32 %v11491_v13, %v11491_v13  ;;  %v4191_v36 = vmul.f32 %v11495_v47, %v11495_v47  ;;  %v8557_v56 = vld [vmem:[%s12792_s9 + $0x28] sm:$0xff]  }
 0x3d9   : > { %v3703_v33 = vpop.f32.mrf.mxu0  ;;  %v11460_v49 = vpop.f32.mrf.mxu1  ;;  %8051 = vmatprep.subr.bf16.mxu0 %v8557_v56 }
 0x3da   : > { %v3704_v8 = vadd.f32 %v9363_v10, %v3703_v33  ;;  %v4252_v61 = vpack.c.bf16 %v4190_v27, %v4189_v38  ;;  %v4253_v33 = vpack.c.bf16 %v4192_v60, %v4191_v36  ;;  %8052 = vmatpush3.bf16.msra.mxu0 %v8557_v56 }
 0x3db   : > { %v3705_v14 = vpop.f32.mrf.mxu0  ;;  %v3967_v21 = vpop.f32.mrf.mxu1 }
 0x3dc   : > { %v3788_v16 = vmax.f32 %v3704_v8, 0.0  ;;  %v11513_v7 = vadd.f32 %v11467_v53, %v3967_v21  ;;  %v11517_v8 = vadd.f32 %v11442_v37, %v11467_v53  ;;  %v11521_v14 = vadd.f32 %v11467_v53, %v11458_v45 }
 0x3dd   : > { %v3708_v54 = vpop.f32.mrf.mxu0  ;;  %v11462_v63 = vpop.f32.mrf.mxu1  ;;  %v11533_v45 = vadd.f32 %v11460_v49, %v11467_v53 }
 0x3de   : > { %v3823_v23 = vpack.c.bf16 %v3788_v16, %v3787_v0  ;;  %v3709_v17 = vadd.f32 %v9363_v10, %v3708_v54  ;;  %v4196_v0 = vmul.f32 %v11513_v7, %v11513_v7  ;;  %v4193_v54 = vmul.f32 %v11517_v8, %v11517_v8 }
 0x3df   : > { %v3710_v6 = vpop.f32.mrf.mxu0  ;;  %v3980_v43 = vpop.f32.mrf.mxu1  ;;  %v4195_v37 = vmul.f32 %v11521_v14, %v11521_v14 }
 0x3e0   : > { %7959 = vmatprep.mubr.bf16.mxu1 %v3823_v23  ;;  %v3789_v12 = vmax.f32 %v3709_v17, 0.0 }
 0x3e1   : > { %v3711_v15 = vpop.f32.mrf.mxu0  ;;  %v7918_v4 = vpop.f32.mrf.mxu1 }
 0x3e2   : > { %v3712_v9 = vadd.f32 %v9363_v10, %v3711_v15  ;;  %v4255_v15 = vpack.c.bf16 %v4196_v0, %v4195_v37  ;;  %v11554_v21 = vadd.f32 %v7918_v4, %v11467_v53 }
 0x3e3   : > { %v3713_v28 = vpop.f32.mrf.mxu0  ;;  %v3983_v39 = vpop.f32.mrf.mxu1 }
 0x3e4   : > { %v3790_v52 = vmax.f32 %v3712_v9, 0.0  ;;  %v11536_v17 = vadd.f32 %v11467_v53, %v3983_v39  ;;  %v11540_v9 = vadd.f32 %v11456_v57, %v11467_v53  ;;  %v11543_v28 = vadd.f32 %v11467_v53, %v3980_v43 }
 0x3e5   : > { %v3716_v31 = vpop.f32.mrf.mxu0 }
 0x3e6   : > { %v3824_v24 = vpack.c.bf16 %v3790_v52, %v3789_v12  ;;  %v3717_v48 = vadd.f32 %v9363_v10, %v3716_v31  ;;  %v4198_v52 = vmul.f32 %v11533_v45, %v11533_v45  ;;  %v4200_v49 = vmul.f32 %v11536_v17, %v11536_v17 }
 0x3e7   : > { %v3718_v32 = vpop.f32.mrf.mxu0  ;;  %v4197_v31 = vmul.f32 %v11540_v9, %v11540_v9 }
 0x3e8   : > { %7960 = vmatmul.mubr.bf16.gmra.mxu1 %v3824_v24  ;;  %v3791_v46 = vmax.f32 %v3717_v48, 0.0  ;;  %v4199_v24 = vmul.f32 %v11543_v28, %v11543_v28 }
 0x3e9   : > { %v3719_v5 = vpop.f32.mrf.mxu0  ;;  %v4256_v32 = vpack.c.bf16 %v4198_v52, %v4197_v31 }
 0x3ea   : > { %v3720_v51 = vadd.f32 %v9363_v10, %v3719_v5  ;;  %v4257_v5 = vpack.c.bf16 %v4200_v49, %v4199_v24 }
 0x3eb   : > { %v3721_v19 = vpop.f32.mrf.mxu0 }
 0x3ec   : > { %v3792_v18 = vmax.f32 %v3720_v51, 0.0  ;;  %v11561_v51 = vadd.f32 %v11462_v63, %v11467_v53 }
 0x3ed   : > { %v3724_v25 = vpop.f32.mrf.mxu0 }
 0x3ee   : > { %v3825_v44 = vpack.c.bf16 %v3792_v18, %v3791_v46  ;;  %v3725_v41 = vadd.f32 %v9363_v10, %v3724_v25  ;;  %v11487_v30 = vpop.f32.mrf.mxu1  ;;  %v4202_v18 = vmul.f32 %v11554_v21, %v11554_v21 }
 0x3ef   : > { %v3726_v40 = vpop.f32.mrf.mxu0 }
 0x3f0   : > { %7963 = vmatprep.mubr.bf16.mxu1 %v3825_v44  ;;  %v3793_v55 = vmax.f32 %v3725_v41, 0.0  ;;  %v3996_v62 = vpop.f32.mrf.mxu1  ;;  %v4201_v44 = vmul.f32 %v11561_v51, %v11561_v51 }
 0x3f1   : > { %v3727_v59 = vpop.f32.mrf.mxu0  ;;  %v11564_v19 = vadd.f32 %v11467_v53, %v3996_v62 }
 0x3f2   : > { %v3728_v50 = vadd.f32 %v9363_v10, %v3727_v59  ;;  %v11510_v10 = vadd.f32 %v11448_v1, %v11467_v53  ;;  %v7922_v22 = vpop.f32.mrf.mxu1  ;;  %v4258_v59 = vpack.c.bf16 %v4202_v18, %v4201_v44 }
 0x3f3   : > { %v3729_v29 = vpop.f32.mrf.mxu0  ;;  %v4203_v63 = vmul.f32 %v11564_v19, %v11564_v19  ;;  %v11578_v4 = vadd.f32 %v7922_v22, %v11467_v53 }
 0x3f4   : > { %v3794_v20 = vmax.f32 %v3728_v50, 0.0  ;;  %v4194_v1 = vmul.f32 %v11510_v10, %v11510_v10  ;;  %v3999_v16 = vpop.f32.mrf.mxu1 }
 0x3f5   : > { %v11557_v48 = vadd.f32 %v11467_v53, %v3999_v16  ;;  %v4206_v11 = vmul.f32 %v11578_v4, %v11578_v4 }
 0x3f6   : > { %v3826_v35 = vpack.c.bf16 %v3794_v20, %v3793_v55  ;;  %v4254_v6 = vpack.c.bf16 %v4194_v1, %v4193_v54  ;;  %v11585_v55 = vadd.f32 %v11487_v30, %v11467_v53 }
 0x3f7   : > { %v4204_v25 = vmul.f32 %v11557_v48, %v11557_v48 }
 0x3f8   : > { %7964 = vmatmul.mubr.bf16.gmra.mxu1 %v3826_v35 }
 0x3f9   : > { %7983 = vmatprep.mubr.bf16.mxu1 %v4251_v42  ;;  %v4259_v50 = vpack.c.bf16 %v4204_v25, %v4203_v63  ;;  %v4205_v42 = vmul.f32 %v11585_v55, %v11585_v55 }
 0x3fb   : > { %v4260_v30 = vpack.c.bf16 %v4206_v11, %v4205_v42 }
 0x400   : > { %7984 = vmatmul.mubr.bf16.vlgmr.msra.gmra.mxu1 %v4252_v61  ;;  %v8558_v61 = vld [vmem:[%s12792_s9 + $0x20] sm:$0xff]  }
 0x401   : > { %7987 = vmatprep.mubr.bf16.mxu1 %v4253_v33  ;;  %v7925_v23 = vpop.f32.mrf.mxu1  ;;  %8053 = vmatprep.subr.bf16.mxu0 %v8558_v61 }
 0x402   : > { %v11605_v36 = vadd.f32 %v7925_v23, %v11467_v53  ;;  %8054 = vmatpush3.bf16.msra.mxu0 %v8558_v61 }
 0x403   : > { %v4012_v12 = vpop.f32.mrf.mxu1 }
 0x404   : > { %v11581_v58 = vadd.f32 %v11467_v53, %v4012_v12  ;;  %v4209_v1 = vmul.f32 %v11605_v36, %v11605_v36 }
 0x405   : > { %v7926_v57 = vpop.f32.mrf.mxu1 }
 0x406   : > { %v4207_v35 = vmul.f32 %v11581_v58, %v11581_v58  ;;  %v11599_v62 = vadd.f32 %v7926_v57, %v11467_v53 }
 0x407   : > { %v4015_v46 = vpop.f32.mrf.mxu1 }
 0x408   : > { %7988 = vmatmul.mubr.bf16.gmra.mxu1 %v4254_v6  ;;  %v11575_v40 = vadd.f32 %v11467_v53, %v4015_v46  ;;  %v4210_v33 = vmul.f32 %v11599_v62, %v11599_v62 }
 0x409   : > { %7991 = vmatprep.mubr.bf16.mxu1 %v4255_v15 }
 0x40a   : > { %v4208_v20 = vmul.f32 %v11575_v40, %v11575_v40  ;;  %v4262_v16 = vpack.c.bf16 %v4210_v33, %v4209_v1 }
 0x40c   : > { %v4261_v27 = vpack.c.bf16 %v4208_v20, %v4207_v35 }
 0x410   : > { %7992 = vmatmul.mubr.bf16.gmra.mxu1 %v4256_v32 }
 0x411   : > { %7995 = vmatprep.mubr.bf16.mxu1 %v4257_v5 }
 0x414   : > { %v7929_v43 = vpop.f32.mrf.mxu1 }
 0x415   : > { %v11622_v23 = vadd.f32 %v7929_v43, %v11467_v53 }
 0x416   : > { %v4028_v41 = vpop.f32.mrf.mxu1 }
 0x417   : > { %v11602_v38 = vadd.f32 %v11467_v53, %v4028_v41  ;;  %v4213_v49 = vmul.f32 %v11622_v23, %v11622_v23 }
 0x418   : > { %v7930_v29 = vpop.f32.mrf.mxu1  ;;  %7996 = vmatmul.mubr.bf16.gmra.mxu1 %v4258_v59 }
 0x419   : > { %7999 = vmatprep.mubr.bf16.mxu1 %v4259_v50  ;;  %v4211_v22 = vmul.f32 %v11602_v38, %v11602_v38  ;;  %v11619_v54 = vadd.f32 %v7930_v29, %v11467_v53 }
 0x41a   : > { %v4031_v39 = vpop.f32.mrf.mxu1 }
 0x41b   : > { %v11596_v60 = vadd.f32 %v11467_v53, %v4031_v39  ;;  %v4214_v15 = vmul.f32 %v11619_v54, %v11619_v54 }
 0x41d   : > { %v4212_v56 = vmul.f32 %v11596_v60, %v11596_v60  ;;  %v4264_v57 = vpack.c.bf16 %v4214_v15, %v4213_v49 }
 0x41f   : > { %v4263_v0 = vpack.c.bf16 %v4212_v56, %v4211_v22 }
 0x420   : > { %8000 = vmatmul.mubr.bf16.gmra.mxu1 %v4260_v30 }
 0x421   : > { %8003 = vmatprep.mubr.bf16.mxu1 %v4261_v27 }
 0x427   : > { %v7933_v37 = vpop.f32.mrf.mxu1 }
 0x428   : > { %8004 = vmatmul.mubr.bf16.gmra.mxu1 %v4262_v16  ;;  %v11642_v18 = vadd.f32 %v7933_v37, %v11467_v53 }
 0x429   : > { %v4044_v6 = vpop.f32.mrf.mxu1  ;;  %8007 = vmatprep.mubr.bf16.mxu1 %v4263_v0 }
 0x42a   : > { %v11627_v52 = vadd.f32 %v11467_v53, %v4044_v6  ;;  %v4217_v44 = vmul.f32 %v11642_v18, %v11642_v18 }
 0x42b   : > { %v7934_v12 = vpop.f32.mrf.mxu1 }
 0x42c   : > { %v11635_v32 = vadd.f32 %v7934_v12, %v11467_v53  ;;  %v4215_v5 = vmul.f32 %v11627_v52, %v11627_v52 }
 0x42d   : > { %v4047_v31 = vpop.f32.mrf.mxu1 }
 0x42e   : > { %v11632_v24 = vadd.f32 %v11467_v53, %v4047_v31  ;;  %v4218_v43 = vmul.f32 %v11635_v32, %v11635_v32 }
 0x430   : > { %v4216_v46 = vmul.f32 %v11632_v24, %v11632_v24  ;;  %8008 = vmatmul.mubr.bf16.gmra.mxu1 %v4264_v57  ;;  %v4266_v63 = vpack.c.bf16 %v4218_v43, %v4217_v44  ;;  %v8559_v43 = vld [vmem:[%s12792_s9 + $0x18] sm:$0xff]  }
 0x431   : > { %8055 = vmatprep.subr.bf16.mxu0 %v8559_v43 }
 0x432   : > { %v4265_v25 = vpack.c.bf16 %v4216_v46, %v4215_v5  ;;  %8056 = vmatpush3.bf16.msra.mxu0 %v8559_v43 }
 0x434   : > { %8011 = vmatprep.mubr.bf16.mxu1 %v4265_v25 }
 0x438   : > { %8012 = vmatmul.mubr.bf16.gmra.mxu1 %v4266_v63 }
 0x43a   : > { %v7937_v41 = vpop.f32.mrf.mxu1 }
 0x43b   : > { %v11655_v11 = vadd.f32 %v7937_v41, %v11467_v53 }
 0x43c   : > { %v4060_v59 = vpop.f32.mrf.mxu1 }
 0x43d   : > { %v11649_v29 = vadd.f32 %v11467_v53, %v4060_v59  ;;  %v4221_v56 = vmul.f32 %v11655_v11, %v11655_v11 }
 0x43e   : > { %v7938_v50 = vpop.f32.mrf.mxu1 }
 0x43f   : > { %v11652_v20 = vadd.f32 %v7938_v50, %v11467_v53  ;;  %v4219_v27 = vmul.f32 %v11649_v29, %v11649_v29 }
 0x440   : > { %v4063_v39 = vpop.f32.mrf.mxu1 }
 0x441   : > { %v11658_v35 = vadd.f32 %v11467_v53, %v4063_v39  ;;  %v4222_v42 = vmul.f32 %v11652_v20, %v11652_v20 }
 0x443   : > { %v4220_v30 = vmul.f32 %v11658_v35, %v11658_v35  ;;  %v4268_v33 = vpack.c.bf16 %v4222_v42, %v4221_v56 }
 0x445   : > { %v4267_v61 = vpack.c.bf16 %v4220_v30, %v4219_v27 }
 0x447   : > { %8015 = vmatprep.mubr.bf16.mxu1 %v4267_v61 }
 0x448   : > { %8016 = vmatmul.mubr.bf16.gmra.mxu1 %v4268_v33 }
 0x44e   : > { %v7941_v22 = vpop.f32.mrf.mxu1 }
 0x44f   : > { %v11675_v6 = vadd.f32 %v7941_v22, %v11467_v53 }
 0x450   : > { %v4076_v1 = vpop.f32.mrf.mxu1 }
 0x451   : > { %v11669_v16 = vadd.f32 %v11467_v53, %v4076_v1  ;;  %v4225_v5 = vmul.f32 %v11675_v6, %v11675_v6 }
 0x452   : > { %v7942_v0 = vpop.f32.mrf.mxu1 }
 0x453   : > { %v11672_v37 = vadd.f32 %v7942_v0, %v11467_v53  ;;  %v4223_v31 = vmul.f32 %v11669_v16, %v11669_v16  ;;  %v8560_v0 = vld [vmem:[%s12792_s9 + $0x10] sm:$0xff]  }
 0x454   : > { %v4079_v15 = vpop.f32.mrf.mxu1  ;;  %8057 = vmatprep.subr.bf16.mxu0 %v8560_v0 }
 0x455   : > { %v11678_v12 = vadd.f32 %v11467_v53, %v4079_v15  ;;  %v4226_v49 = vmul.f32 %v11672_v37, %v11672_v37  ;;  %8058 = vmatpush3.bf16.msra.mxu0 %v8560_v0  ;;  %v8561_v15 = vld [vmem:[%s12792_s9 + $0x8] sm:$0xff]  }
 0x456   : > { %8059 = vmatprep.subr.bf16.mxu0 %v8561_v15 }
 0x457   : > { %v4224_v57 = vmul.f32 %v11678_v12, %v11678_v12  ;;  %v4270_v25 = vpack.c.bf16 %v4226_v49, %v4225_v5 }
 0x459   : > { %v4269_v46 = vpack.c.bf16 %v4224_v57, %v4223_v31  ;;  %8060 = vmatpush3.bf16.msra.mxu0 %v8561_v15  ;;  %v8562_v31 = vld [vmem:[%s12792_s9] sm:$0xff]  }
 0x45a   : > { %8061 = vmatprep.subr.bf16.mxu0 %v8562_v31 }
 0x45b   : > { %8019 = vmatprep.mubr.bf16.mxu1 %v4269_v46 }
 0x45c   : > { %8020 = vmatmul.mubr.bf16.gmra.mxu1 %v4270_v25 }
 0x45d   : > { %8062 = vmatpush3.bf16.msra.mxu0 %v8562_v31 }
 0x460   : > { %v7945_v44 = vpop.f32.mrf.mxu1 }
 0x461   : > { %v11698_v39 = vadd.f32 %v7945_v44, %v11467_v53 }
 0x462   : > { %v4092_v63 = vpop.f32.mrf.mxu1 }
 0x463   : > { %v11692_v59 = vadd.f32 %v11467_v53, %v4092_v63  ;;  %13251 = vst [vmem:[#allocation15_spill] sm:$0xff] %v11698_v39  ;;  %v4229_v33 = vmul.f32 %v11698_v39, %v11698_v39 }
 0x464   : > { %v7946_v41 = vpop.f32.mrf.mxu1 }
 0x465   : > { %13249 = vst [vmem:[#allocation11_spill] sm:$0xff] %v11692_v59  ;;  %v11695_v50 = vadd.f32 %v7946_v41, %v11467_v53  ;;  %v4227_v56 = vmul.f32 %v11692_v59, %v11692_v59 }
 0x466   : > { %v4095_v42 = vpop.f32.mrf.mxu1 }
 0x467   : > { %13250 = vst [vmem:[#allocation12_spill] sm:$0xff] %v11695_v50  ;;  %v11701_v27 = vadd.f32 %v11467_v53, %v4095_v42  ;;  %v4230_v30 = vmul.f32 %v11695_v50, %v11695_v50 }
 0x469   : > { %13252 = vst [vmem:[#allocation14_spill] sm:$0xff] %v11701_v27  ;;  %v4228_v61 = vmul.f32 %v11701_v27, %v11701_v27  ;;  %v4272_v1 = vpack.c.bf16 %v4230_v30, %v4229_v33 }
 0x46b   : > { %v4271_v22 = vpack.c.bf16 %v4228_v61, %v4227_v56 }
 0x46d   : > { %8023 = vmatprep.mubr.bf16.mxu1 %v4271_v22 }
 0x46e   : > { %8024 = vmatmul.mubr.bf16.gmra.mxu1 %v4272_v1 }
 0x475   : > { %v7949_v49 = vpop.f32.mrf.mxu1 }
 0x476   : > { %v11727_v43 = vadd.f32 %v7949_v49, %v11467_v53 }
 0x477   : > { %v4108_v57 = vpop.f32.mrf.mxu1 }
 0x478   : > { %v11721_v46 = vadd.f32 %v11467_v53, %v4108_v57  ;;  %13255 = vst [vmem:[#allocation19_spill] sm:$0xff] %v11727_v43  ;;  %v4233_v56 = vmul.f32 %v11727_v43, %v11727_v43 }
 0x479   : > { %v7950_v5 = vpop.f32.mrf.mxu1 }
 0x47a   : > { %13253 = vst [vmem:[#allocation13_spill] sm:$0xff] %v11721_v46  ;;  %v11724_v25 = vadd.f32 %v7950_v5, %v11467_v53  ;;  %v4231_v42 = vmul.f32 %v11721_v46, %v11721_v46 }
 0x47b   : > { %v4111_v44 = vpop.f32.mrf.mxu1 }
 0x47c   : > { %13254 = vst [vmem:[#allocation16_spill] sm:$0xff] %v11724_v25  ;;  %v11730_v63 = vadd.f32 %v11467_v53, %v4111_v44  ;;  %v4234_v41 = vmul.f32 %v11724_v25, %v11724_v25 }
 0x47e   : > { %13256 = vst [vmem:[#allocation18_spill] sm:$0xff] %v11730_v63  ;;  %v4232_v30 = vmul.f32 %v11730_v63, %v11730_v63  ;;  %v4274_v33 = vpack.c.bf16 %v4234_v41, %v4233_v56 }
 0x480   : > { %v4273_v61 = vpack.c.bf16 %v4232_v30, %v4231_v42 }
 0x482   : > { %8027 = vmatprep.mubr.bf16.mxu1 %v4273_v61 }
 0x483   : > { %8028 = vmatmul.mubr.bf16.gmra.mxu1 %v4274_v33 }
 0x488   : > { %v7953_v22 = vpop.f32.mrf.mxu1 }
 0x489   : > { %v11747_v31 = vadd.f32 %v7953_v22, %v11467_v53 }
 0x48a   : > { %v4124_v1 = vpop.f32.mrf.mxu1 }
 0x48b   : > { %v11741_v15 = vadd.f32 %v11467_v53, %v4124_v1  ;;  %13259 = vst [vmem:[#allocation23_spill] sm:$0xff] %v11747_v31  ;;  %v4237_v30 = vmul.f32 %v11747_v31, %v11747_v31 }
 0x48c   : > { %v7954_v0 = vpop.f32.mrf.mxu1 }
 0x48d   : > { %13257 = vst [vmem:[#allocation17_spill] sm:$0xff] %v11741_v15  ;;  %v11744_v49 = vadd.f32 %v7954_v0, %v11467_v53  ;;  %v4235_v41 = vmul.f32 %v11741_v15, %v11741_v15 }
 0x48e   : > { %v4127_v57 = vpop.f32.mrf.mxu1 }
 0x48f   : > { %13258 = vst [vmem:[#allocation20_spill] sm:$0xff] %v11744_v49  ;;  %v11750_v5 = vadd.f32 %v11467_v53, %v4127_v57  ;;  %v4238_v44 = vmul.f32 %v11744_v49, %v11744_v49 }
 0x491   : > { %13260 = vst [vmem:[#allocation22_spill] sm:$0xff] %v11750_v5  ;;  %v4236_v42 = vmul.f32 %v11750_v5, %v11750_v5  ;;  %v4276_v61 = vpack.c.bf16 %v4238_v44, %v4237_v30 }
 0x493   : > { %v4275_v56 = vpack.c.bf16 %v4236_v42, %v4235_v41 }
 0x495   : > { %8031 = vmatprep.mubr.bf16.mxu1 %v4275_v56 }
 0x496   : > { %8032 = vmatmul.mubr.bf16.gmra.mxu1 %v4276_v61 }
 0x498   : > { %v7957_v33 = vpop.f32.mrf.mxu1 }
 0x499   : > { %v11767_v49 = vadd.f32 %v7957_v33, %v11467_v53 }
 0x49a   : > { %v4140_v22 = vpop.f32.mrf.mxu1 }
 0x49b   : > { %v11761_v0 = vadd.f32 %v11467_v53, %v4140_v22  ;;  %13263 = vst [vmem:[#allocation27_spill] sm:$0xff] %v11767_v49  ;;  %v4241_v30 = vmul.f32 %v11767_v49, %v11767_v49 }
 0x49c   : > { %v7958_v1 = vpop.f32.mrf.mxu1 }
 0x49d   : > { %13261 = vst [vmem:[#allocation21_spill] sm:$0xff] %v11761_v0  ;;  %v11764_v57 = vadd.f32 %v7958_v1, %v11467_v53  ;;  %v4239_v41 = vmul.f32 %v11761_v0, %v11761_v0 }
 0x49e   : > { %v4143_v5 = vpop.f32.mrf.mxu1 }
 0x49f   : > { %13262 = vst [vmem:[#allocation24_spill] sm:$0xff] %v11764_v57  ;;  %v11770_v15 = vadd.f32 %v11467_v53, %v4143_v5  ;;  %v4242_v44 = vmul.f32 %v11764_v57, %v11764_v57 }
 0x4a1   : > { %13264 = vst [vmem:[#allocation26_spill] sm:$0xff] %v11770_v15  ;;  %v4240_v42 = vmul.f32 %v11770_v15, %v11770_v15  ;;  %v4278_v61 = vpack.c.bf16 %v4242_v44, %v4241_v30 }
 0x4a3   : > { %v4277_v56 = vpack.c.bf16 %v4240_v42, %v4239_v41 }
 0x4a5   : > { %8035 = vmatprep.mubr.bf16.mxu1 %v4277_v56 }
 0x4a6   : > { %8036 = vmatmul.mubr.bf16.gmra.mxu1 %v4278_v61 }
 0x4a8   : > { %v7961_v33 = vpop.f32.mrf.mxu1 }
 0x4a9   : > { %v11787_v0 = vadd.f32 %v7961_v33, %v11467_v53 }
 0x4aa   : > { %v4156_v22 = vpop.f32.mrf.mxu1 }
 0x4ab   : > { %v11781_v1 = vadd.f32 %v11467_v53, %v4156_v22  ;;  %13267 = vst [vmem:[#allocation31_spill] sm:$0xff] %v11787_v0  ;;  %v4245_v30 = vmul.f32 %v11787_v0, %v11787_v0 }
 0x4ac   : > { %v7962_v5 = vpop.f32.mrf.mxu1 }
 0x4ad   : > { %13265 = vst [vmem:[#allocation25_spill] sm:$0xff] %v11781_v1  ;;  %v11784_v57 = vadd.f32 %v7962_v5, %v11467_v53  ;;  %v4243_v41 = vmul.f32 %v11781_v1, %v11781_v1 }
 0x4ae   : > { %v4159_v15 = vpop.f32.mrf.mxu1 }
 0x4af   : > { %13266 = vst [vmem:[#allocation28_spill] sm:$0xff] %v11784_v57  ;;  %v11790_v31 = vadd.f32 %v11467_v53, %v4159_v15  ;;  %v4246_v44 = vmul.f32 %v11784_v57, %v11784_v57 }
 0x4b1   : > { %13268 = vst [vmem:[#allocation30_spill] sm:$0xff] %v11790_v31  ;;  %v4244_v42 = vmul.f32 %v11790_v31, %v11790_v31  ;;  %v4280_v61 = vpack.c.bf16 %v4246_v44, %v4245_v30 }
 0x4b3   : > { %v4279_v56 = vpack.c.bf16 %v4244_v42, %v4243_v41 }
 0x4b5   : > { %8039 = vmatprep.mubr.bf16.mxu1 %v4279_v56 }
 0x4b6   : > { %8040 = vmatmul.mubr.bf16.gmra.mxu1 %v4280_v61 }
 0x4b8   : > { %v7965_v33 = vpop.f32.mrf.mxu1 }
 0x4b9   : > { %v11807_v1 = vadd.f32 %v7965_v33, %v11467_v53 }
 0x4ba   : > { %v4172_v22 = vpop.f32.mrf.mxu1 }
 0x4bb   : > { %v11801_v5 = vadd.f32 %v11467_v53, %v4172_v22  ;;  %13271 = vst [vmem:[#allocation35_spill] sm:$0xff] %v11807_v1  ;;  %v4249_v61 = vmul.f32 %v11807_v1, %v11807_v1 }
 0x4bc   : > { %v7966_v15 = vpop.f32.mrf.mxu1 }
 0x4bd   : > { %13269 = vst [vmem:[#allocation29_spill] sm:$0xff] %v11801_v5  ;;  %v11804_v57 = vadd.f32 %v7966_v15, %v11467_v53  ;;  %v4247_v42 = vmul.f32 %v11801_v5, %v11801_v5 }
 0x4be   : > { %v4175_v31 = vpop.f32.mrf.mxu1 }
 0x4bf   : > { %13270 = vst [vmem:[#allocation32_spill] sm:$0xff] %v11804_v57  ;;  %v11810_v49 = vadd.f32 %v11467_v53, %v4175_v31  ;;  %v4250_v44 = vmul.f32 %v11804_v57, %v11804_v57 }
 0x4c0   : > { %v7985_v41 = vpop.f32.mrf.mxu1 }
 0x4c1   : > { %13272 = vst [vmem:[#allocation34_spill] sm:$0xff] %v11810_v49  ;;  %v4248_v30 = vmul.f32 %v11810_v49, %v11810_v49  ;;  %v4638_v56 = vmul.f32 7.8125e-07, %v7985_v41  ;;  %v4282_v53 = vpack.c.bf16 %v4250_v44, %v4249_v61 }
 0x4c2   : > { %v4381_v33 = vpop.f32.mrf.mxu1 }
 0x4c3   : > { %v4702_v22 = vadd.f32 1.0, %v4638_v56  ;;  %v4636_v15 = vmul.f32 7.8125e-07, %v4381_v33  ;;  %v4281_v0 = vpack.c.bf16 %v4248_v30, %v4247_v42 }
 0x4c4   : > { %v7986_v31 = vpop.f32.mrf.mxu1 }
 0x4c5   : > { %9107 = vlog2.f32 %v4702_v22  ;;  %v4700_v63 = vadd.f32 1.0, %v4636_v15  ;;  %v4639_v57 = vmul.f32 7.8125e-07, %v7986_v31  ;;  %8043 = vmatprep.mubr.bf16.mxu1 %v4281_v0 }
 0x4c6   : > { %v4384_v25 = vpop.f32.mrf.mxu1  ;;  %8044 = vmatmul.mubr.bf16.gmra.mxu1 %v4282_v53 }
 0x4c7   : > { %9109 = vlog2.f32 %v4700_v63  ;;  %v4703_v5 = vadd.f32 1.0, %v4639_v57  ;;  %v4637_v46 = vmul.f32 7.8125e-07, %v4384_v25 }
 0x4c8   : > { %v7989_v49 = vpop.f32.mrf.mxu1 }
 0x4c9   : > { %9111 = vlog2.f32 %v4703_v5  ;;  %v4701_v41 = vadd.f32 1.0, %v4637_v46  ;;  %v4642_v43 = vmul.f32 7.8125e-07, %v7989_v49 }
 0x4ca   : > { %v4397_v1 = vpop.f32.mrf.mxu1 }
 0x4cb   : > { %9113 = vlog2.f32 %v4701_v41  ;;  %v4706_v56 = vadd.f32 1.0, %v4642_v43  ;;  %v4640_v33 = vmul.f32 7.8125e-07, %v4397_v1 }
 0x4cc   : > { %v7990_v42 = vpop.f32.mrf.mxu1 }
 0x4cd   : > { %9115 = vlog2.f32 %v4706_v56  ;;  %v4704_v44 = vadd.f32 1.0, %v4640_v33  ;;  %v4643_v30 = vmul.f32 7.8125e-07, %v7990_v42 }
 0x4ce   : > { %v4400_v61 = vpop.f32.mrf.mxu1 }
 0x4cf   : > { %9117 = vlog2.f32 %v4704_v44  ;;  %v4707_v0 = vadd.f32 1.0, %v4643_v30  ;;  %v4641_v22 = vmul.f32 7.8125e-07, %v4400_v61 }
 0x4d0   : > { %v7993_v15 = vpop.f32.mrf.mxu1 }
 0x4d1   : > { %9119 = vlog2.f32 %v4707_v0  ;;  %v4705_v63 = vadd.f32 1.0, %v4641_v22  ;;  %v4646_v25 = vmul.f32 7.8125e-07, %v7993_v15 }
 0x4d2   : > { %v9108_v57 = vpop.eup %9107  ;;  %v4413_v5 = vpop.f32.mrf.mxu1 }
 0x4d3   : > { %v4769_v46 = vmul.f32 0.6931472, %v9108_v57  ;;  %9121 = vlog2.f32 %v4705_v63  ;;  %v4710_v49 = vadd.f32 1.0, %v4646_v25  ;;  %v4644_v53 = vmul.f32 7.8125e-07, %v4413_v5 }
 0x4d4   : > { %v9110_v43 = vpop.eup %9109  ;;  %v7994_v1 = vpop.f32.mrf.mxu1 }
 0x4d5   : > { %v4894_v31 = vmul.f32 -0.75, %v4769_v46  ;;  %v4765_v41 = vmul.f32 0.6931472, %v9110_v43  ;;  %9123 = vlog2.f32 %v4710_v49  ;;  %v4708_v56 = vadd.f32 1.0, %v4644_v53 }
 0x4d6   : > { %v9112_v33 = vpop.eup %9111  ;;  %v4647_v42 = vmul.f32 7.8125e-07, %v7994_v1  ;;  %v4416_v44 = vpop.f32.mrf.mxu1 }
 0x4d7   : > { %v4960_v30 = vmul.f32 1.442695, %v4894_v31  ;;  %v4892_v61 = vmul.f32 -0.75, %v4765_v41  ;;  %v4771_v0 = vmul.f32 0.6931472, %v9112_v33  ;;  %9125 = vlog2.f32 %v4708_v56 }
 0x4d8   : > { %v9114_v22 = vpop.eup %9113  ;;  %v4711_v15 = vadd.f32 1.0, %v4647_v42  ;;  %v4645_v27 = vmul.f32 7.8125e-07, %v4416_v44  ;;  %v7997_v57 = vpop.f32.mrf.mxu1 }
 0x4d9   : > { %9127 = vpow2.f32 %v4960_v30  ;;  %v4956_v63 = vmul.f32 1.442695, %v4892_v61  ;;  %v4895_v25 = vmul.f32 -0.75, %v4771_v0  ;;  %v4767_v5 = vmul.f32 0.6931472, %v9114_v22 }
 0x4da   : > { %v9116_v50 = vpop.eup %9115  ;;  %9129 = vlog2.f32 %v4711_v15  ;;  %v4709_v46 = vadd.f32 1.0, %v4645_v27  ;;  %v4650_v49 = vmul.f32 7.8125e-07, %v7997_v57  ;;  %v4429_v53 = vpop.f32.mrf.mxu1 }
 0x4db   : > { %9131 = vpow2.f32 %v4956_v63  ;;  %v4962_v43 = vmul.f32 1.442695, %v4895_v25  ;;  %v4893_v1 = vmul.f32 -0.75, %v4767_v5  ;;  %v4777_v31 = vmul.f32 0.6931472, %v9116_v50 }
 0x4dc   : > { %v9118_v41 = vpop.eup %9117  ;;  %9133 = vlog2.f32 %v4709_v46  ;;  %v4714_v56 = vadd.f32 1.0, %v4650_v49  ;;  %v4648_v33 = vmul.f32 7.8125e-07, %v4429_v53  ;;  %v7998_v42 = vpop.f32.mrf.mxu1 }
 0x4dd   : > { %9135 = vpow2.f32 %v4962_v43  ;;  %v4958_v44 = vmul.f32 1.442695, %v4893_v1  ;;  %v4898_v30 = vmul.f32 -0.75, %v4777_v31  ;;  %v4773_v61 = vmul.f32 0.6931472, %v9118_v41 }
 0x4de   : > { %v9120_v0 = vpop.eup %9119  ;;  %9137 = vlog2.f32 %v4714_v56  ;;  %v4712_v22 = vadd.f32 1.0, %v4648_v33  ;;  %v4651_v15 = vmul.f32 7.8125e-07, %v7998_v42  ;;  %v4432_v27 = vpop.f32.mrf.mxu1 }
 0x4df   : > { %9139 = vpow2.f32 %v4958_v44  ;;  %v4968_v57 = vmul.f32 1.442695, %v4898_v30  ;;  %v4896_v63 = vmul.f32 -0.75, %v4773_v61  ;;  %v4779_v25 = vmul.f32 0.6931472, %v9120_v0 }
 0x4e0   : > { %v9122_v5 = vpop.eup %9121  ;;  %9141 = vlog2.f32 %v4712_v22  ;;  %v4715_v50 = vadd.f32 1.0, %v4651_v15  ;;  %v4649_v46 = vmul.f32 7.8125e-07, %v4432_v27  ;;  %v8001_v49 = vpop.f32.mrf.mxu1 }
 0x4e1   : > { %9143 = vpow2.f32 %v4968_v57  ;;  %v4964_v53 = vmul.f32 1.442695, %v4896_v63  ;;  %v4899_v43 = vmul.f32 -0.75, %v4779_v25  ;;  %v4775_v1 = vmul.f32 0.6931472, %v9122_v5 }
 0x4e2   : > { %v9124_v31 = vpop.eup %9123  ;;  %9145 = vlog2.f32 %v4715_v50  ;;  %v4713_v41 = vadd.f32 1.0, %v4649_v46  ;;  %v4654_v56 = vmul.f32 7.8125e-07, %v8001_v49  ;;  %v4445_v33 = vpop.f32.mrf.mxu1 }
 0x4e3   : > { %9147 = vpow2.f32 %v4964_v53  ;;  %v4970_v42 = vmul.f32 1.442695, %v4899_v43  ;;  %v4897_v44 = vmul.f32 -0.75, %v4775_v1  ;;  %v4785_v30 = vmul.f32 0.6931472, %v9124_v31 }
 0x4e4   : > { %v9126_v61 = vpop.eup %9125  ;;  %9149 = vlog2.f32 %v4713_v41  ;;  %v4718_v0 = vadd.f32 1.0, %v4654_v56  ;;  %v4652_v22 = vmul.f32 7.8125e-07, %v4445_v33  ;;  %v8002_v15 = vpop.f32.mrf.mxu1 }
 0x4e5   : > { %9151 = vpow2.f32 %v4970_v42  ;;  %v4966_v27 = vmul.f32 1.442695, %v4897_v44  ;;  %v4902_v57 = vmul.f32 -0.75, %v4785_v30  ;;  %v4781_v63 = vmul.f32 0.6931472, %v9126_v61 }
 0x4e6   : > { %v9128_v25 = vpop.eup %9127  ;;  %9153 = vlog2.f32 %v4718_v0  ;;  %v4716_v5 = vadd.f32 1.0, %v4652_v22  ;;  %v4655_v50 = vmul.f32 7.8125e-07, %v8002_v15  ;;  %v4448_v46 = vpop.f32.mrf.mxu1 }
 0x4e7   : > { %v9130_v49 = vpop.eup %9129  ;;  %9155 = vpow2.f32 %v4966_v27  ;;  %v4976_v53 = vmul.f32 1.442695, %v4902_v57  ;;  %v4900_v43 = vmul.f32 -0.75, %v4781_v63  ;;  %v4653_v1 = vmul.f32 7.8125e-07, %v4448_v46 }
 0x4e8   : > { %v9132_v31 = vpop.eup %9131  ;;  %v4787_v39 = vmul.f32 0.6931472, %v9130_v49  ;;  %9157 = vlog2.f32 %v4716_v5  ;;  %v4719_v41 = vadd.f32 1.0, %v4655_v50  ;;  %v8005_v56 = vpop.f32.mrf.mxu1  ;;  %v11821_v33 = vmul.f32 %v9128_v25, %v11491_v13 }
 0x4e9   : > { %v9134_v42 = vpop.eup %9133  ;;  %9159 = vpow2.f32 %v4976_v53  ;;  %v4972_v44 = vmul.f32 1.442695, %v4900_v43  ;;  %v4717_v30 = vadd.f32 1.0, %v4653_v1  ;;  %v4658_v61 = vmul.f32 7.8125e-07, %v8005_v56 }
 0x4ea   : > { %13273 = vst [vmem:[#allocation33_spill] sm:$0xff] %v11821_v33  ;;  %v9136_v0 = vpop.eup %9135  ;;  %v4903_v22 = vmul.f32 -0.75, %v4787_v39  ;;  %v4783_v15 = vmul.f32 0.6931472, %v9134_v42  ;;  %9161 = vlog2.f32 %v4719_v41  ;;  %v4461_v27 = vpop.f32.mrf.mxu1  ;;  %v11824_v57 = vmul.f32 %v9132_v31, %v11474_v3 }
 0x4eb   : > { %v9138_v63 = vpop.eup %9137  ;;  %9163 = vpow2.f32 %v4972_v44  ;;  %v4722_v5 = vadd.f32 1.0, %v4658_v61  ;;  %v4656_v50 = vmul.f32 7.8125e-07, %v4461_v27  ;;  %v11827_v13 = vmul.f32 %v9136_v0, %v11482_v34 }
 0x4ec   : > { %13274 = vst [vmem:[#allocation36_spill] sm:$0xff] %v11824_v57  ;;  %v9140_v25 = vpop.eup %9139  ;;  %v4978_v46 = vmul.f32 1.442695, %v4903_v22  ;;  %v4901_v49 = vmul.f32 -0.75, %v4783_v15  ;;  %v4793_v53 = vmul.f32 0.6931472, %v9138_v63  ;;  %9165 = vlog2.f32 %v4717_v30  ;;  %v8006_v43 = vpop.f32.mrf.mxu1 }
 0x4ed   : > { %v9142_v39 = vpop.eup %9141  ;;  %9167 = vlog2.f32 %v4722_v5  ;;  %v4720_v1 = vadd.f32 1.0, %v4656_v50  ;;  %v4659_v41 = vmul.f32 7.8125e-07, %v8006_v43  ;;  %v11830_v3 = vmul.f32 %v9140_v25, %v11470_v2 }
 0x4ee   : > { %v11832_v31 = vpop.eup %9143  ;;  %9169 = vpow2.f32 %v4978_v46  ;;  %v4974_v56 = vmul.f32 1.442695, %v4901_v49  ;;  %v4906_v42 = vmul.f32 -0.75, %v4793_v53  ;;  %v4789_v34 = vmul.f32 0.6931472, %v9142_v39  ;;  %v4464_v44 = vpop.f32.mrf.mxu1 }
 0x4ef   : > { %13275 = vst [vmem:[#allocation39_spill] sm:$0xff] %v11830_v3  ;;  %v9146_v61 = vpop.eup %9145  ;;  %9171 = vlog2.f32 %v4720_v1  ;;  %v4723_v0 = vadd.f32 1.0, %v4659_v41  ;;  %v4657_v22 = vmul.f32 7.8125e-07, %v4464_v44  ;;  %v12941_v30 = vmax.f32 %v11824_v57, 0.0 }
 0x4f0   : > { %v9148_v15 = vpop.eup %9147  ;;  %9173 = vpow2.f32 %v4974_v56  ;;  %v4984_v27 = vmul.f32 1.442695, %v4906_v42  ;;  %v4904_v63 = vmul.f32 -0.75, %v4789_v34  ;;  %v4795_v5 = vmul.f32 0.6931472, %v9146_v61  ;;  %v8009_v2 = vpop.f32.mrf.mxu1 }
 0x4f1   : > { %v9150_v50 = vpop.eup %9149  ;;  %9175 = vlog2.f32 %v4723_v0  ;;  %v4721_v25 = vadd.f32 1.0, %v4657_v22  ;;  %v12940_v46 = vmax.f32 %v11830_v3, 0.0  ;;  %v12950_v42 = vmax.f32 %v11827_v13, 0.0 }
 0x4f2   : > { %v11837_v53 = vpop.eup %9151  ;;  %9177 = vpow2.f32 %v4984_v27  ;;  %v4980_v43 = vmul.f32 1.442695, %v4904_v63  ;;  %v4907_v39 = vmul.f32 -0.75, %v4795_v5  ;;  %v4791_v1 = vmul.f32 0.6931472, %v9150_v50  ;;  %v4477_v41 = vpop.f32.mrf.mxu1 }
 0x4f3   : > { %v9154_v44 = vpop.eup %9153  ;;  %9179 = vlog2.f32 %v4721_v25  ;;  %v5212_v56 = vpack.c.bf16 %v12940_v46, %v12941_v30  ;;  %v4662_v34 = vmul.f32 7.8125e-07, %v8009_v2  ;;  %v13276_v5 = vmax.f32 %v11821_v33, 0.0 }
 0x4f4   : > { %v9156_v61 = vpop.eup %9155  ;;  %9181 = vpow2.f32 %v4980_v43  ;;  %v4986_v0 = vmul.f32 1.442695, %v4907_v39  ;;  %v4905_v22 = vmul.f32 -0.75, %v4791_v1  ;;  %v4801_v49 = vmul.f32 0.6931472, %v9154_v44  ;;  %v8010_v27 = vpop.f32.mrf.mxu1 }
 0x4f5   : > { %v9158_v63 = vpop.eup %9157  ;;  %8063 = vmatprep.mubr.bf16.mxu0 %v5212_v56  ;;  %v5213_v50 = vpack.c.bf16 %v12950_v42, %v13276_v5  ;;  %v4726_v25 = vadd.f32 1.0, %v4662_v34  ;;  %v4660_v57 = vmul.f32 7.8125e-07, %v4477_v41  ;;  %v4663_v3 = vmul.f32 7.8125e-07, %v8010_v27 }
 0x4f6   : > { %v9160_v46 = vpop.eup %9159  ;;  %9183 = vpow2.f32 %v4986_v0  ;;  %v4982_v30 = vmul.f32 1.442695, %v4905_v22  ;;  %v4910_v2 = vmul.f32 -0.75, %v4801_v49  ;;  %v4797_v59 = vmul.f32 0.6931472, %v9158_v63  ;;  %v4480_v43 = vpop.f32.mrf.mxu1 }
 0x4f7   : > { %v9162_v39 = vpop.eup %9161  ;;  %8064 = vmatmul.mubr.bf16.vlgmr.msra.gmra.mxu0 %v5213_v50  ;;  %9185 = vlog2.f32 %v4726_v25  ;;  %v4724_v1 = vadd.f32 1.0, %v4660_v57  ;;  %v4727_v44 = vadd.f32 1.0, %v4663_v3  ;;  %v11849_v56 = vmul.f32 %v9148_v15, %v11495_v47 }
 0x4f8   : > { %v9164_v33 = vpop.eup %9163  ;;  %9187 = vpow2.f32 %v4982_v30  ;;  %v4908_v5 = vmul.f32 -0.75, %v4797_v59  ;;  %v4803_v34 = vmul.f32 0.6931472, %v9162_v39  ;;  %v4992_v27 = vmul.f32 1.442695, %v4910_v2  ;;  %v8013_v22 = vpop.f32.mrf.mxu1 }
 0x4f9   : > { %v9166_v41 = vpop.eup %9165  ;;  %9189 = vlog2.f32 %v4724_v1  ;;  %v11852_v0 = vmul.f32 %v9156_v61, %v11485_v26  ;;  %v4661_v49 = vmul.f32 7.8125e-07, %v4480_v43  ;;  %v12947_v3 = vmax.f32 %v11849_v56, 0.0 }
 0x4fa   : > { %v9168_v63 = vpop.eup %9167  ;;  %v4988_v50 = vmul.f32 1.442695, %v4908_v5  ;;  %v4911_v25 = vmul.f32 -0.75, %v4803_v34  ;;  %v4799_v57 = vmul.f32 0.6931472, %v9166_v41  ;;  %9191 = vlog2.f32 %v4727_v44  ;;  %v4493_v44 = vpop.f32.mrf.mxu1 }
 0x4fb   : > { %v9170_v47 = vpop.eup %9169  ;;  %v4809_v15 = vmul.f32 0.6931472, %v9168_v63  ;;  %v12944_v59 = vmax.f32 %v11852_v0, 0.0  ;;  %v4725_v30 = vadd.f32 1.0, %v4661_v49  ;;  %v11858_v26 = vmul.f32 %v11832_v31, %v11517_v8 }
 0x4fc   : > { %v9172_v39 = vpop.eup %9171  ;;  %9193 = vpow2.f32 %v4988_v50  ;;  %v4994_v2 = vmul.f32 1.442695, %v4911_v25  ;;  %v4909_v1 = vmul.f32 -0.75, %v4799_v57  ;;  %v11866_v63 = vmul.f32 %v11837_v53, %v11510_v10 }
 0x4fd   : > { %v9174_v61 = vpop.eup %9173  ;;  %v4914_v43 = vmul.f32 -0.75, %v4809_v15  ;;  %v4805_v5 = vmul.f32 0.6931472, %v9172_v39  ;;  %v5214_v34 = vpack.c.bf16 %v12944_v59, %v12947_v3  ;;  %9195 = vlog2.f32 %v4725_v30 }
 0x4fe   : > { %v9176_v41 = vpop.eup %9175  ;;  %9197 = vpow2.f32 %v4994_v2  ;;  %v4990_v49 = vmul.f32 1.442695, %v4909_v1  ;;  %v12945_v8 = vmax.f32 %v11858_v26, 0.0  ;;  %v11872_v15 = vmul.f32 %v9164_v33, %v11521_v14 }
 0x4ff   : > { %v11869_v31 = vpop.eup %9177  ;;  %v5000_v50 = vmul.f32 1.442695, %v4914_v43  ;;  %v4912_v25 = vmul.f32 -0.75, %v4805_v5  ;;  %v4811_v57 = vmul.f32 0.6931472, %v9176_v41  ;;  %8067 = vmatprep.mubr.bf16.mxu0 %v5214_v34  ;;  %v12946_v39 = vmax.f32 %v11866_v63, 0.0  ;;  %v8014_v41 = vpop.f32.mrf.mxu1 }
 0x500   : > { %v9180_v30 = vpop.eup %9179  ;;  %9199 = vpow2.f32 %v4990_v49  ;;  %v11876_v2 = vmul.f32 %v9174_v61, %v11513_v7  ;;  %v11879_v10 = vmul.f32 %v9160_v46, %v11540_v9  ;;  %v12949_v33 = vmax.f32 %v11872_v15, 0.0 }
 0x501   : > { %v9182_v53 = vpop.eup %9181  ;;  %9201 = vpow2.f32 %v4992_v27  ;;  %v4996_v1 = vmul.f32 1.442695, %v4912_v25  ;;  %v4915_v43 = vmul.f32 -0.75, %v4811_v57  ;;  %v4807_v5 = vmul.f32 0.6931472, %v9180_v30 }
 0x502   : > { %v5215_v14 = vpack.c.bf16 %v12946_v39, %v12945_v8  ;;  %v12948_v34 = vmax.f32 %v11876_v2, 0.0  ;;  %v11888_v7 = vmul.f32 %v9170_v47, %v11533_v45  ;;  %v12951_v61 = vmax.f32 %v11879_v10, 0.0 }
 0x503   : > { %v9184_v9 = vpop.eup %9183  ;;  %9203 = vpow2.f32 %v4996_v1  ;;  %v5002_v46 = vmul.f32 1.442695, %v4915_v43  ;;  %v4913_v27 = vmul.f32 -0.75, %v4807_v5  ;;  %v4666_v30 = vmul.f32 7.8125e-07, %v8013_v22  ;;  %v4496_v43 = vpop.f32.mrf.mxu1 }
 0x504   : > { %v9186_v49 = vpop.eup %9185  ;;  %8068 = vmatmul.mubr.bf16.gmra.mxu0 %v5215_v14  ;;  %v5216_v25 = vpack.c.bf16 %v12948_v34, %v12949_v33  ;;  %v12984_v57 = vmax.f32 %v11888_v7, 0.0  ;;  %v4664_v59 = vmul.f32 7.8125e-07, %v4493_v44  ;;  %9205 = vpow2.f32 %v5000_v50 }
 0x505   : > { %v9188_v8 = vpop.eup %9187  ;;  %v4998_v45 = vmul.f32 1.442695, %v4913_v27  ;;  %v4817_v47 = vmul.f32 0.6931472, %v9186_v49  ;;  %v4667_v1 = vmul.f32 7.8125e-07, %v8014_v41  ;;  %9207 = vpow2.f32 %v5002_v46 }
 0x506   : > { %v9190_v5 = vpop.eup %9189  ;;  %8071 = vmatprep.mubr.bf16.mxu0 %v5216_v25  ;;  %v4730_v39 = vadd.f32 1.0, %v4666_v30  ;;  %v4728_v14 = vadd.f32 1.0, %v4664_v59  ;;  %v11897_v3 = vmul.f32 %v9182_v53, %v11543_v28  ;;  %v5217_v44 = vpack.c.bf16 %v12984_v57, %v12951_v61  ;;  %v13284_v57 = vld [vmem:[#allocation13_spill] sm:$0xff] }
 0x507   : > { %9209 = vpow2.f32 %v4998_v45  ;;  %v4813_v34 = vmul.f32 0.6931472, %v9190_v5  ;;  %v4731_v33 = vadd.f32 1.0, %v4667_v1  ;;  %v9192_v22 = vpop.eup %9191  ;;  %v11904_v50 = vmul.f32 %v9188_v8, %v11536_v17 }
 0x508   : > { %v8017_v42 = vpop.f32.mrf.mxu1  ;;  %9211 = vlog2.f32 %v4730_v39  ;;  %v4665_v41 = vmul.f32 7.8125e-07, %v4496_v43  ;;  %v4918_v59 = vmul.f32 -0.75, %v4817_v47  ;;  %v4819_v28 = vmul.f32 0.6931472, %v9192_v22 }
 0x509   : > { %v9194_v46 = vpop.eup %9193  ;;  %v4916_v27 = vmul.f32 -0.75, %v4813_v34  ;;  %9213 = vlog2.f32 %v4728_v14  ;;  %v12979_v25 = vmax.f32 %v11897_v3, 0.0  ;;  %v12964_v30 = vmax.f32 %v11904_v50, 0.0 }
 0x50a   : > { %v4509_v53 = vpop.f32.mrf.mxu1  ;;  %v9196_v49 = vpop.eup %9195  ;;  %9215 = vlog2.f32 %v4731_v33  ;;  %v4729_v45 = vadd.f32 1.0, %v4665_v41  ;;  %v4919_v39 = vmul.f32 -0.75, %v4819_v28  ;;  %v11910_v17 = vmul.f32 %v11869_v31, %v11561_v51 }
 0x50b   : > { %v9198_v1 = vpop.eup %9197  ;;  %v5004_v5 = vmul.f32 1.442695, %v4916_v27  ;;  %v4815_v61 = vmul.f32 0.6931472, %v9196_v49  ;;  %v5218_v33 = vpack.c.bf16 %v12964_v30, %v12979_v25  ;;  %v11917_v34 = vmul.f32 %v9184_v9, %v11554_v21 }
 0x50c   : > { %v8018_v8 = vpop.f32.mrf.mxu1  ;;  %8072 = vmatmul.mubr.bf16.gmra.mxu0 %v5217_v44  ;;  %9217 = vlog2.f32 %v4729_v45  ;;  %v5010_v43 = vmul.f32 1.442695, %v4919_v39  ;;  %v11920_v22 = vmul.f32 %v9194_v46, %v11564_v19  ;;  %v5008_v31 = vmul.f32 1.442695, %v4918_v59 }
 0x50d   : > { %v9200_v47 = vpop.eup %9199  ;;  %9219 = vpow2.f32 %v5004_v5  ;;  %v4917_v14 = vmul.f32 -0.75, %v4815_v61  ;;  %8075 = vmatprep.mubr.bf16.mxu0 %v5218_v33  ;;  %v12978_v44 = vmax.f32 %v11917_v34, 0.0  ;;  %v12977_v28 = vmax.f32 %v11910_v17, 0.0 }
 0x50e   : > { %v9202_v51 = vpop.eup %9201  ;;  %v11924_v41 = vmul.f32 %v9200_v47, %v11557_v48  ;;  %v4670_v21 = vmul.f32 7.8125e-07, %v8017_v42  ;;  %v4512_v9 = vpop.f32.mrf.mxu1  ;;  %9221 = vpow2.f32 %v5010_v43  ;;  %v12963_v61 = vmax.f32 %v11920_v22, 0.0 }
 0x50f   : > { %v5006_v27 = vmul.f32 1.442695, %v4917_v14  ;;  %v11930_v46 = vmul.f32 %v9198_v1, %v11578_v4  ;;  %v4668_v45 = vmul.f32 7.8125e-07, %v4509_v53  ;;  %v4671_v5 = vmul.f32 7.8125e-07, %v8018_v8 }
 0x510   : > { %v9204_v49 = vpop.eup %9203  ;;  %v12952_v19 = vmax.f32 %v11924_v41, 0.0  ;;  %v4734_v59 = vadd.f32 1.0, %v4670_v21  ;;  %v5219_v42 = vpack.c.bf16 %v12978_v44, %v12977_v28  ;;  %v4669_v4 = vmul.f32 7.8125e-07, %v4512_v9 }
 0x511   : > { %9223 = vpow2.f32 %v5006_v27  ;;  %v9206_v48 = vpop.eup %9205  ;;  %v11941_v33 = vmul.f32 %v9204_v49, %v11581_v58  ;;  %v4732_v47 = vadd.f32 1.0, %v4668_v45  ;;  %v4735_v53 = vadd.f32 1.0, %v4671_v5 }
 0x512   : > { %v5220_v39 = vpack.c.bf16 %v12952_v19, %v12963_v61  ;;  %v9208_v1 = vpop.eup %9207  ;;  %9225 = vlog2.f32 %v4734_v59  ;;  %v11944_v43 = vmul.f32 %v9202_v51, %v11585_v55  ;;  %v4733_v14 = vadd.f32 1.0, %v4669_v4 }
 0x513   : > { %9227 = vpow2.f32 %v5008_v31  ;;  %v12956_v9 = vmax.f32 %v11930_v46, 0.0  ;;  %v12954_v59 = vmax.f32 %v11941_v33, 0.0  ;;  %v11953_v55 = vmul.f32 %v9208_v1, %v11599_v62 }
 0x514   : > { %v9210_v8 = vpop.eup %9209  ;;  %8076 = vmatmul.mubr.bf16.gmra.mxu0 %v5219_v42  ;;  %9229 = vlog2.f32 %v4732_v47 }
 0x515   : > { %v9212_v27 = vpop.eup %9211  ;;  %8079 = vmatprep.mubr.bf16.mxu0 %v5220_v39  ;;  %v11947_v21 = vmul.f32 %v9210_v8, %v11575_v40  ;;  %9231 = vlog2.f32 %v4735_v53  ;;  %v12955_v40 = vmax.f32 %v11944_v43, 0.0  ;;  %v11961_v53 = vmul.f32 %v9206_v48, %v11605_v36 }
 0x516   : > { %v9214_v58 = vpop.eup %9213  ;;  %v4825_v49 = vmul.f32 0.6931472, %v9212_v27  ;;  %9233 = vlog2.f32 %v4733_v14 }
 0x517   : > { %v9216_v45 = vpop.eup %9215  ;;  %v4821_v31 = vmul.f32 0.6931472, %v9214_v58  ;;  %v12953_v5 = vmax.f32 %v11947_v21, 0.0  ;;  %v5221_v62 = vpack.c.bf16 %v12956_v9, %v12955_v40  ;;  %v12957_v48 = vmax.f32 %v11961_v53, 0.0 }
 0x518   : > { %v4922_v51 = vmul.f32 -0.75, %v4825_v49  ;;  %v4827_v42 = vmul.f32 0.6931472, %v9216_v45  ;;  %v12962_v49 = vmax.f32 %v11953_v55, 0.0 }
 0x519   : > { %v9218_v39 = vpop.eup %9217  ;;  %v4920_v4 = vmul.f32 -0.75, %v4821_v31  ;;  %v5222_v47 = vpack.c.bf16 %v12953_v5, %v12954_v59 }
 0x51a   : > { %v9220_v8 = vpop.eup %9219  ;;  %v5016_v27 = vmul.f32 1.442695, %v4922_v51  ;;  %v4923_v14 = vmul.f32 -0.75, %v4827_v42  ;;  %v4823_v58 = vmul.f32 0.6931472, %v9218_v39 }
 0x51b   : > { %v5012_v1 = vmul.f32 1.442695, %v4920_v4  ;;  %v9222_v36 = vpop.eup %9221  ;;  %v11970_v42 = vmul.f32 %v9220_v8, %v11602_v38 }
 0x51c   : > { %v8021_v45 = vpop.f32.mrf.mxu1  ;;  %9235 = vpow2.f32 %v5016_v27  ;;  %v5018_v31 = vmul.f32 1.442695, %v4923_v14  ;;  %v4921_v19 = vmul.f32 -0.75, %v4823_v58  ;;  %8080 = vmatmul.mubr.bf16.gmra.mxu0 %v5221_v62 }
 0x51d   : > { %v4674_v5 = vmul.f32 7.8125e-07, %v8021_v45  ;;  %9237 = vpow2.f32 %v5012_v1  ;;  %8083 = vmatprep.mubr.bf16.mxu0 %v5222_v47  ;;  %v5223_v47 = vpack.c.bf16 %v12962_v49, %v12957_v48 }
 0x51e   : > { %v4525_v51 = vpop.f32.mrf.mxu1  ;;  %v9224_v39 = vpop.eup %9223  ;;  %9239 = vpow2.f32 %v5018_v31  ;;  %v5014_v4 = vmul.f32 1.442695, %v4921_v19  ;;  %v12961_v19 = vmax.f32 %v11970_v42, 0.0 }
 0x51f   : > { %v4738_v59 = vadd.f32 1.0, %v4674_v5  ;;  %v4672_v40 = vmul.f32 7.8125e-07, %v4525_v51  ;;  %v11973_v27 = vmul.f32 %v9224_v39, %v11596_v60  ;;  %v9226_v58 = vpop.eup %9225  ;;  %v11982_v51 = vmul.f32 %v9222_v36, %v11619_v54 }
 0x520   : > { %v8022_v14 = vpop.f32.mrf.mxu1  ;;  %9241 = vpow2.f32 %v5014_v4  ;;  %v9228_v38 = vpop.eup %9227  ;;  %v4833_v8 = vmul.f32 0.6931472, %v9226_v58 }
 0x521   : > { %v4736_v62 = vadd.f32 1.0, %v4672_v40  ;;  %v4675_v1 = vmul.f32 7.8125e-07, %v8022_v14  ;;  %9243 = vlog2.f32 %v4738_v59  ;;  %v12958_v5 = vmax.f32 %v11973_v27, 0.0  ;;  %v9230_v60 = vpop.eup %9229 }
 0x522   : > { %v4528_v45 = vpop.f32.mrf.mxu1  ;;  %v9232_v4 = vpop.eup %9231  ;;  %v4926_v9 = vmul.f32 -0.75, %v4833_v8  ;;  %v4829_v48 = vmul.f32 0.6931472, %v9230_v60  ;;  %v11989_v58 = vmul.f32 %v9228_v38, %v11622_v23  ;;  %v12960_v8 = vmax.f32 %v11982_v51, 0.0  ;;  %v8563_v60 = vld [vmem:[%s12794_s11 + $0x38] sm:$0xff]  }
 0x523   : > { %9245 = vlog2.f32 %v4736_v62  ;;  %v4739_v31 = vadd.f32 1.0, %v4675_v1  ;;  %v4673_v39 = vmul.f32 7.8125e-07, %v4528_v45  ;;  %v5224_v59 = vpack.c.bf16 %v12958_v5, %v12961_v19  ;;  %v9234_v40 = vpop.eup %9233  ;;  %8127 = vmatprep.subr.bf16.mxu1 %v8563_v60 }
 0x524   : > { %v4835_v14 = vmul.f32 0.6931472, %v9232_v4  ;;  %8084 = vmatmul.mubr.bf16.gmra.mxu0 %v5223_v47  ;;  %v5024_v1 = vmul.f32 1.442695, %v4926_v9  ;;  %v4924_v54 = vmul.f32 -0.75, %v4829_v48  ;;  %v8564_v47 = vld [vmem:[%s12794_s11 + $0x30] sm:$0xff]   ;;  %8128 = vmatpush3.bf16.msra.mxu1 %v8563_v60 }
 0x525   : > { %9247 = vlog2.f32 %v4739_v31  ;;  %v4737_v62 = vadd.f32 1.0, %v4673_v39  ;;  %v4831_v36 = vmul.f32 0.6931472, %v9234_v40  ;;  %8087 = vmatprep.mubr.bf16.mxu0 %v5224_v59  ;;  %v12959_v9 = vmax.f32 %v11989_v58, 0.0  ;;  %8129 = vmatprep.subr.bf16.mxu1 %v8564_v47 }
 0x526   : > { %v4927_v45 = vmul.f32 -0.75, %v4835_v14  ;;  %v5020_v31 = vmul.f32 1.442695, %v4924_v54  ;;  %v8565_v14 = vld [vmem:[%s12794_s11 + $0x28] sm:$0xff]  }
 0x527   : > { %9249 = vlog2.f32 %v4737_v62  ;;  %v4925_v23 = vmul.f32 -0.75, %v4831_v36  ;;  %v5225_v59 = vpack.c.bf16 %v12960_v8, %v12959_v9 }
 0x528   : > { %9251 = vpow2.f32 %v5024_v1  ;;  %v5026_v38 = vmul.f32 1.442695, %v4927_v45  ;;  %8130 = vmatpush3.bf16.msra.mxu1 %v8564_v47 }
 0x529   : > { %v9236_v48 = vpop.eup %9235  ;;  %9253 = vpow2.f32 %v5020_v31  ;;  %v5022_v39 = vmul.f32 1.442695, %v4925_v23  ;;  %8131 = vmatprep.subr.bf16.mxu1 %v8565_v14 }
 0x52a   : > { %v9238_v4 = vpop.eup %9237  ;;  %9255 = vpow2.f32 %v5026_v38  ;;  %v12013_v45 = vmul.f32 %v9236_v48, %v11642_v18 }
 0x52b   : > { %v9240_v40 = vpop.eup %9239  ;;  %9257 = vpow2.f32 %v5022_v39  ;;  %v12010_v36 = vmul.f32 %v9238_v4, %v11627_v52 }
 0x52c   : > { %8088 = vmatmul.mubr.bf16.gmra.mxu0 %v5225_v59  ;;  %v12007_v62 = vmul.f32 %v9240_v40, %v11635_v32  ;;  %v8566_v32 = vld [vmem:[%s12794_s11 + $0x20] sm:$0xff]   ;;  %v12967_v5 = vmax.f32 %v12013_v45, 0.0  ;;  %8132 = vmatpush3.bf16.msra.mxu1 %v8565_v14 }
 0x52d   : > { %v9242_v1 = vpop.eup %9241  ;;  %8133 = vmatprep.subr.bf16.mxu1 %v8566_v32 }
 0x52e   : > { %v8025_v54 = vpop.f32.mrf.mxu1  ;;  %v9244_v60 = vpop.eup %9243  ;;  %v12016_v23 = vmul.f32 %v9242_v1, %v11632_v24  ;;  %v12976_v52 = vmax.f32 %v12007_v62, 0.0  ;;  %v12966_v24 = vmax.f32 %v12010_v36, 0.0 }
 0x52f   : > { %v4678_v31 = vmul.f32 7.8125e-07, %v8025_v54  ;;  %v4841_v39 = vmul.f32 0.6931472, %v9244_v60 }
 0x530   : > { %v9246_v38 = vpop.eup %9245  ;;  %v4541_v59 = vpop.f32.mrf.mxu1  ;;  %v12965_v47 = vmax.f32 %v12016_v23, 0.0  ;;  %v5227_v14 = vpack.c.bf16 %v12976_v52, %v12967_v5  ;;  %8134 = vmatpush3.bf16.msra.mxu1 %v8566_v32 }
 0x531   : > { %v4837_v4 = vmul.f32 0.6931472, %v9246_v38  ;;  %v4742_v40 = vadd.f32 1.0, %v4678_v31  ;;  %v4676_v18 = vmul.f32 7.8125e-07, %v4541_v59  ;;  %v4930_v54 = vmul.f32 -0.75, %v4841_v39 }
 0x532   : > { %v9248_v48 = vpop.eup %9247  ;;  %v8026_v1 = vpop.f32.mrf.mxu1  ;;  %v8567_v31 = vld [vmem:[%s12794_s11 + $0x18] sm:$0xff]   ;;  %v5226_v39 = vpack.c.bf16 %v12965_v47, %v12966_v24 }
 0x533   : > { %v4928_v9 = vmul.f32 -0.75, %v4837_v4  ;;  %v4843_v8 = vmul.f32 0.6931472, %v9248_v48  ;;  %9259 = vlog2.f32 %v4742_v40  ;;  %v4740_v60 = vadd.f32 1.0, %v4676_v18  ;;  %8135 = vmatprep.subr.bf16.mxu1 %v8567_v31 }
 0x534   : > { %v9250_v38 = vpop.eup %9249  ;;  %v5032_v59 = vmul.f32 1.442695, %v4930_v54  ;;  %v4679_v19 = vmul.f32 7.8125e-07, %v8026_v1  ;;  %v4544_v4 = vpop.f32.mrf.mxu1  ;;  %8091 = vmatprep.mubr.bf16.mxu0 %v5226_v39  ;;  %8136 = vmatpush3.bf16.msra.mxu1 %v8567_v31 }
 0x535   : > { %v5028_v40 = vmul.f32 1.442695, %v4928_v9  ;;  %v4931_v18 = vmul.f32 -0.75, %v4843_v8  ;;  %v4839_v48 = vmul.f32 0.6931472, %v9250_v38  ;;  %9261 = vlog2.f32 %v4740_v60  ;;  %v9252_v49 = vpop.eup %9251  ;;  %8092 = vmatmul.mubr.bf16.gmra.mxu0 %v5227_v14 }
 0x536   : > { %9263 = vpow2.f32 %v5032_v59  ;;  %v4743_v54 = vadd.f32 1.0, %v4679_v19  ;;  %v4677_v61 = vmul.f32 7.8125e-07, %v4544_v4  ;;  %v9254_v30 = vpop.eup %9253  ;;  %v12040_v38 = vmul.f32 %v9252_v49, %v11655_v11  ;;  %v8568_v11 = vld [vmem:[%s12794_s11 + $0x10] sm:$0xff]  }
 0x537   : > { %9265 = vpow2.f32 %v5028_v40  ;;  %v5034_v47 = vmul.f32 1.442695, %v4931_v18  ;;  %v4929_v1 = vmul.f32 -0.75, %v4839_v48  ;;  %v9256_v24 = vpop.eup %9255  ;;  %v12037_v9 = vmul.f32 %v9254_v30, %v11649_v29  ;;  %8137 = vmatprep.subr.bf16.mxu1 %v8568_v11 }
 0x538   : > { %9267 = vlog2.f32 %v4743_v54  ;;  %v4741_v5 = vadd.f32 1.0, %v4677_v61  ;;  %v9258_v8 = vpop.eup %9257  ;;  %v12043_v19 = vmul.f32 %v9256_v24, %v11652_v20  ;;  %8138 = vmatpush3.bf16.msra.mxu1 %v8568_v11  ;;  %v8569_v24 = vld [vmem:[%s12794_s11 + $0x8] sm:$0xff]  }
 0x539   : > { %9269 = vpow2.f32 %v5034_v47  ;;  %v5030_v60 = vmul.f32 1.442695, %v4929_v1  ;;  %v12046_v32 = vmul.f32 %v9258_v8, %v11658_v35  ;;  %v12975_v29 = vmax.f32 %v12037_v9, 0.0  ;;  %8139 = vmatprep.subr.bf16.mxu1 %v8569_v24 }
 0x53a   : > { %9271 = vlog2.f32 %v4741_v5  ;;  %v12970_v61 = vmax.f32 %v12043_v19, 0.0  ;;  %v12969_v47 = vmax.f32 %v12040_v38, 0.0 }
 0x53b   : > { %9273 = vpow2.f32 %v5030_v60  ;;  %v12968_v30 = vmax.f32 %v12046_v32, 0.0 }
 0x53c   : > { %v5229_v35 = vpack.c.bf16 %v12970_v61, %v12969_v47  ;;  %8140 = vmatpush3.bf16.msra.mxu1 %v8569_v24 }
 0x53d   : > { %v5228_v20 = vpack.c.bf16 %v12968_v30, %v12975_v29  ;;  %v13278_v29 = vld [vmem:[#allocation15_spill] sm:$0xff] }
 0x53f   : > { %8095 = vmatprep.mubr.bf16.mxu0 %v5228_v20 }
 0x540   : > { %v9260_v49 = vpop.eup %9259  ;;  %8096 = vmatmul.mubr.bf16.gmra.mxu0 %v5229_v35 }
 0x541   : > { %v4849_v5 = vmul.f32 0.6931472, %v9260_v49 }
 0x542   : > { %v9262_v31 = vpop.eup %9261 }
 0x543   : > { %v9264_v59 = vpop.eup %9263  ;;  %v4934_v39 = vmul.f32 -0.75, %v4849_v5  ;;  %v4845_v14 = vmul.f32 0.6931472, %v9262_v31  ;;  %v8029_v4 = vpop.f32.mrf.mxu1 }
 0x544   : > { %v9266_v40 = vpop.eup %9265  ;;  %v4682_v18 = vmul.f32 7.8125e-07, %v8029_v4  ;;  %v12067_v35 = vmul.f32 %v9264_v59, %v11675_v6 }
 0x545   : > { %v9268_v48 = vpop.eup %9267  ;;  %v4932_v54 = vmul.f32 -0.75, %v4845_v14  ;;  %v4557_v1 = vpop.f32.mrf.mxu1  ;;  %v5040_v30 = vmul.f32 1.442695, %v4934_v39  ;;  %v12070_v31 = vmul.f32 %v9266_v40, %v11669_v16 }
 0x546   : > { %v9270_v8 = vpop.eup %9269  ;;  %v4851_v60 = vmul.f32 0.6931472, %v9268_v48  ;;  %v4746_v11 = vadd.f32 1.0, %v4682_v18  ;;  %v4680_v20 = vmul.f32 7.8125e-07, %v4557_v1 }
 0x547   : > { %v9272_v49 = vpop.eup %9271  ;;  %v5036_v47 = vmul.f32 1.442695, %v4932_v54  ;;  %v8030_v5 = vpop.f32.mrf.mxu1  ;;  %v12073_v4 = vmul.f32 %v9270_v8, %v11672_v37  ;;  %v8570_v37 = vld [vmem:[%s12794_s11] sm:$0xff]   ;;  %v12974_v8 = vmax.f32 %v12070_v31, 0.0 }
 0x548   : > { %v9274_v24 = vpop.eup %9273  ;;  %v4935_v14 = vmul.f32 -0.75, %v4851_v60  ;;  %v4847_v61 = vmul.f32 0.6931472, %v9272_v49  ;;  %9275 = vlog2.f32 %v4746_v11  ;;  %v4744_v48 = vadd.f32 1.0, %v4680_v20  ;;  %8141 = vmatprep.subr.bf16.mxu1 %v8570_v37 }
 0x549   : > { %9277 = vpow2.f32 %v5036_v47  ;;  %v4683_v18 = vmul.f32 7.8125e-07, %v8030_v5  ;;  %v4560_v1 = vpop.f32.mrf.mxu1  ;;  %v12076_v6 = vmul.f32 %v9274_v24, %v11678_v12  ;;  %v12973_v59 = vmax.f32 %v12073_v4, 0.0  ;;  %8142 = vmatpush3.bf16.msra.mxu1 %v8570_v37 }
 0x54a   : > { %v5042_v39 = vmul.f32 1.442695, %v4935_v14  ;;  %v4933_v54 = vmul.f32 -0.75, %v4847_v61  ;;  %9279 = vlog2.f32 %v4744_v48  ;;  %v4681_v16 = vmul.f32 7.8125e-07, %v4560_v1  ;;  %v13277_v48 = vld [vmem:[#allocation11_spill] sm:$0xff] }
 0x54b   : > { %9281 = vpow2.f32 %v5040_v30  ;;  %v4747_v40 = vadd.f32 1.0, %v4683_v18  ;;  %v12971_v47 = vmax.f32 %v12076_v6, 0.0  ;;  %v12972_v11 = vmax.f32 %v12067_v35, 0.0 }
 0x54c   : > { %9283 = vpow2.f32 %v5042_v39  ;;  %v5038_v60 = vmul.f32 1.442695, %v4933_v54  ;;  %v4745_v12 = vadd.f32 1.0, %v4681_v16 }
 0x54d   : > { %9285 = vlog2.f32 %v4747_v40  ;;  %v5230_v61 = vpack.c.bf16 %v12971_v47, %v12974_v8  ;;  %v5231_v30 = vpack.c.bf16 %v12973_v59, %v12972_v11 }
 0x54e   : > { %9287 = vpow2.f32 %v5038_v60 }
 0x54f   : > { %9289 = vlog2.f32 %v4745_v12  ;;  %8099 = vmatprep.mubr.bf16.mxu0 %v5230_v61 }
 0x550   : > { %8100 = vmatmul.mubr.bf16.gmra.mxu0 %v5231_v30 }
 0x555   : > { %v9276_v20 = vpop.eup %9275 }
 0x556   : > { %v9278_v49 = vpop.eup %9277  ;;  %v4857_v5 = vmul.f32 0.6931472, %v9276_v20  ;;  %v8033_v14 = vpop.f32.mrf.mxu1 }
 0x557   : > { %v9280_v24 = vpop.eup %9279  ;;  %v12094_v18 = vmul.f32 %v9278_v49, %v13277_v48  ;;  %v4686_v16 = vmul.f32 7.8125e-07, %v8033_v14  ;;  %v13279_v49 = vld [vmem:[#allocation12_spill] sm:$0xff] }
 0x558   : > { %v9282_v1 = vpop.eup %9281  ;;  %v4938_v39 = vmul.f32 -0.75, %v4857_v5  ;;  %v4853_v54 = vmul.f32 0.6931472, %v9280_v24  ;;  %v4573_v40 = vpop.f32.mrf.mxu1 }
 0x559   : > { %v9284_v37 = vpop.eup %9283  ;;  %v4750_v12 = vadd.f32 1.0, %v4686_v16  ;;  %v4684_v61 = vmul.f32 7.8125e-07, %v4573_v40  ;;  %v12983_v20 = vmax.f32 %v12094_v18, 0.0  ;;  %v12098_v52 = vmul.f32 %v9282_v1, %v13278_v29  ;;  %v13280_v40 = vld [vmem:[#allocation14_spill] sm:$0xff] }
 0x55a   : > { %v9286_v60 = vpop.eup %9285  ;;  %v5048_v47 = vmul.f32 1.442695, %v4938_v39  ;;  %v4936_v11 = vmul.f32 -0.75, %v4853_v54  ;;  %v8034_v8 = vpop.f32.mrf.mxu1  ;;  %v12101_v48 = vmul.f32 %v9284_v37, %v13279_v49 }
 0x55b   : > { %v9288_v30 = vpop.eup %9287  ;;  %v4859_v59 = vmul.f32 0.6931472, %v9286_v60  ;;  %v4748_v14 = vadd.f32 1.0, %v4684_v61  ;;  %v4687_v28 = vmul.f32 7.8125e-07, %v8034_v8 }
 0x55c   : > { %v9290_v5 = vpop.eup %9289  ;;  %9291 = vpow2.f32 %v5048_v47  ;;  %v5044_v24 = vmul.f32 1.442695, %v4936_v11  ;;  %v4576_v16 = vpop.f32.mrf.mxu1  ;;  %v12104_v60 = vmul.f32 %v9288_v30, %v13280_v40  ;;  %v12982_v29 = vmax.f32 %v12101_v48, 0.0 }
 0x55d   : > { %v4939_v39 = vmul.f32 -0.75, %v4859_v59  ;;  %v4855_v54 = vmul.f32 0.6931472, %v9290_v5  ;;  %9293 = vlog2.f32 %v4750_v12  ;;  %v4751_v44 = vadd.f32 1.0, %v4687_v28 }
 0x55e   : > { %13281 = vst [vmem:[#allocation38_spill] sm:$0xff] %v12104_v60  ;;  %9295 = vpow2.f32 %v5044_v24  ;;  %v4685_v25 = vmul.f32 7.8125e-07, %v4576_v16  ;;  %v12980_v47 = vmax.f32 %v12104_v60, 0.0  ;;  %v12981_v59 = vmax.f32 %v12098_v52, 0.0 }
 0x55f   : > { %v5050_v1 = vmul.f32 1.442695, %v4939_v39  ;;  %v4937_v37 = vmul.f32 -0.75, %v4855_v54  ;;  %9297 = vlog2.f32 %v4748_v14 }
 0x560   : > { %9299 = vlog2.f32 %v4751_v44  ;;  %v4749_v11 = vadd.f32 1.0, %v4685_v25  ;;  %v5232_v12 = vpack.c.bf16 %v12980_v47, %v12983_v20  ;;  %v5233_v28 = vpack.c.bf16 %v12982_v29, %v12981_v59 }
 0x561   : > { %9301 = vpow2.f32 %v5050_v1  ;;  %v5046_v8 = vmul.f32 1.442695, %v4937_v37 }
 0x562   : > { %9303 = vlog2.f32 %v4749_v11  ;;  %8103 = vmatprep.mubr.bf16.mxu0 %v5232_v12  ;;  %v13282_v12 = vld [vmem:[#allocation19_spill] sm:$0xff] }
 0x563   : > { %9305 = vpow2.f32 %v5046_v8  ;;  %8104 = vmatmul.mubr.bf16.gmra.mxu0 %v5233_v28 }
 0x566   : > { %v8037_v44 = vpop.f32.mrf.mxu1 }
 0x567   : > { %v4690_v25 = vmul.f32 7.8125e-07, %v8037_v44 }
 0x568   : > { %v4589_v30 = vpop.f32.mrf.mxu1 }
 0x569   : > { %v9292_v61 = vpop.eup %9291  ;;  %v4754_v5 = vadd.f32 1.0, %v4690_v25  ;;  %v4688_v24 = vmul.f32 7.8125e-07, %v4589_v30 }
 0x56a   : > { %v9294_v49 = vpop.eup %9293  ;;  %v8038_v54 = vpop.f32.mrf.mxu1  ;;  %v12118_v28 = vmul.f32 %v9292_v61, %v13282_v12 }
 0x56b   : > { %v9296_v14 = vpop.eup %9295  ;;  %v4865_v39 = vmul.f32 0.6931472, %v9294_v49  ;;  %9307 = vlog2.f32 %v4754_v5  ;;  %v4752_v40 = vadd.f32 1.0, %v4688_v24  ;;  %v4691_v1 = vmul.f32 7.8125e-07, %v8038_v54  ;;  %v13286_v5 = vld [vmem:[#allocation16_spill] sm:$0xff] }
 0x56c   : > { %v9298_v16 = vpop.eup %9297  ;;  %v4592_v8 = vpop.f32.mrf.mxu1  ;;  %13283 = vst [vmem:[#allocation37_spill] sm:$0xff] %v12118_v28  ;;  %v12121_v60 = vmul.f32 %v9296_v14, %v13284_v57 }
 0x56d   : > { %v9300_v37 = vpop.eup %9299  ;;  %v4942_v11 = vmul.f32 -0.75, %v4865_v39  ;;  %v4861_v47 = vmul.f32 0.6931472, %v9298_v16  ;;  %9309 = vlog2.f32 %v4752_v40  ;;  %v4755_v29 = vadd.f32 1.0, %v4691_v1 }
 0x56e   : > { %v9302_v44 = vpop.eup %9301  ;;  %v4867_v59 = vmul.f32 0.6931472, %v9300_v37  ;;  %v4689_v25 = vmul.f32 7.8125e-07, %v4592_v8  ;;  %13285 = vst [vmem:[#allocation40_spill] sm:$0xff] %v12121_v60  ;;  %v13288_v37 = vld [vmem:[#allocation18_spill] sm:$0xff] }
 0x56f   : > { %v9304_v30 = vpop.eup %9303  ;;  %v5056_v20 = vmul.f32 1.442695, %v4942_v11  ;;  %v4940_v49 = vmul.f32 -0.75, %v4861_v47  ;;  %v12124_v24 = vmul.f32 %v9302_v44, %v13286_v5  ;;  %9311 = vlog2.f32 %v4755_v29 }
 0x570   : > { %v9306_v39 = vpop.eup %9305  ;;  %v4943_v54 = vmul.f32 -0.75, %v4867_v59  ;;  %v4863_v16 = vmul.f32 0.6931472, %v9304_v30  ;;  %v4753_v61 = vadd.f32 1.0, %v4689_v25  ;;  %v12987_v57 = vmax.f32 %v12121_v60, 0.0 }
 0x571   : > { %13287 = vst [vmem:[#allocation43_spill] sm:$0xff] %v12124_v24  ;;  %9313 = vpow2.f32 %v5056_v20  ;;  %v5052_v12 = vmul.f32 1.442695, %v4940_v49  ;;  %v12127_v40 = vmul.f32 %v9306_v39, %v13288_v37  ;;  %v12989_v47 = vmax.f32 %v12124_v24, 0.0 }
 0x572   : > { %v5058_v1 = vmul.f32 1.442695, %v4943_v54  ;;  %v4941_v8 = vmul.f32 -0.75, %v4863_v16  ;;  %9315 = vlog2.f32 %v4753_v61  ;;  %v12988_v29 = vmax.f32 %v12118_v28, 0.0 }
 0x573   : > { %13289 = vst [vmem:[#allocation42_spill] sm:$0xff] %v12127_v40  ;;  %9317 = vpow2.f32 %v5052_v12  ;;  %v12986_v14 = vmax.f32 %v12127_v40, 0.0 }
 0x574   : > { %9319 = vpow2.f32 %v5058_v1  ;;  %v5054_v59 = vmul.f32 1.442695, %v4941_v8  ;;  %v5235_v11 = vpack.c.bf16 %v12989_v47, %v12988_v29 }
 0x575   : > { %v5234_v20 = vpack.c.bf16 %v12986_v14, %v12987_v57 }
 0x576   : > { %9321 = vpow2.f32 %v5054_v59  ;;  %v8041_v44 = vpop.f32.mrf.mxu1 }
 0x577   : > { %8107 = vmatprep.mubr.bf16.mxu0 %v5234_v20  ;;  %v4694_v25 = vmul.f32 7.8125e-07, %v8041_v44 }
 0x578   : > { %8108 = vmatmul.mubr.bf16.gmra.mxu0 %v5235_v11  ;;  %v9308_v30 = vpop.eup %9307  ;;  %v4605_v49 = vpop.f32.mrf.mxu1 }
 0x579   : > { %v4873_v5 = vmul.f32 0.6931472, %v9308_v30  ;;  %v4758_v39 = vadd.f32 1.0, %v4694_v25  ;;  %v4692_v54 = vmul.f32 7.8125e-07, %v4605_v49 }
 0x57a   : > { %v9310_v16 = vpop.eup %9309  ;;  %v8042_v61 = vpop.f32.mrf.mxu1 }
 0x57b   : > { %v4946_v12 = vmul.f32 -0.75, %v4873_v5  ;;  %v4869_v37 = vmul.f32 0.6931472, %v9310_v16  ;;  %9323 = vlog2.f32 %v4758_v39  ;;  %v4756_v1 = vadd.f32 1.0, %v4692_v54  ;;  %v13290_v54 = vld [vmem:[#allocation17_spill] sm:$0xff] }
 0x57c   : > { %v9312_v8 = vpop.eup %9311  ;;  %v4695_v59 = vmul.f32 7.8125e-07, %v8042_v61  ;;  %v4608_v14 = vpop.f32.mrf.mxu1 }
 0x57d   : > { %v5064_v29 = vmul.f32 1.442695, %v4946_v12  ;;  %v4944_v47 = vmul.f32 -0.75, %v4869_v37  ;;  %v4875_v20 = vmul.f32 0.6931472, %v9312_v8  ;;  %9325 = vlog2.f32 %v4756_v1  ;;  %v13292_v37 = vld [vmem:[#allocation20_spill] sm:$0xff] }
 0x57e   : > { %v9314_v57 = vpop.eup %9313  ;;  %v4759_v44 = vadd.f32 1.0, %v4695_v59  ;;  %v4693_v40 = vmul.f32 7.8125e-07, %v4608_v14  ;;  %v13294_v14 = vld [vmem:[#allocation23_spill] sm:$0xff] }
 0x57f   : > { %v9316_v11 = vpop.eup %9315  ;;  %9327 = vpow2.f32 %v5064_v29  ;;  %v5060_v25 = vmul.f32 1.442695, %v4944_v47  ;;  %v4947_v49 = vmul.f32 -0.75, %v4875_v20  ;;  %v12148_v59 = vmul.f32 %v9314_v57, %v13294_v14  ;;  %v13296_v29 = vld [vmem:[#allocation22_spill] sm:$0xff] }
 0x580   : > { %v9318_v30 = vpop.eup %9317  ;;  %v4871_v28 = vmul.f32 0.6931472, %v9316_v11  ;;  %9329 = vlog2.f32 %v4759_v44  ;;  %v4757_v39 = vadd.f32 1.0, %v4693_v40 }
 0x581   : > { %v9320_v5 = vpop.eup %9319  ;;  %v12142_v16 = vmul.f32 %v9318_v30, %v13290_v54  ;;  %9331 = vpow2.f32 %v5060_v25  ;;  %v5066_v61 = vmul.f32 1.442695, %v4947_v49  ;;  %13295 = vst [vmem:[#allocation47_spill] sm:$0xff] %v12148_v59  ;;  %v12998_v30 = vmax.f32 %v12148_v59, 0.0 }
 0x582   : > { %v4945_v12 = vmul.f32 -0.75, %v4871_v28  ;;  %v12145_v8 = vmul.f32 %v9320_v5, %v13292_v37  ;;  %9333 = vlog2.f32 %v4757_v39 }
 0x583   : > { %13291 = vst [vmem:[#allocation41_spill] sm:$0xff] %v12142_v16  ;;  %v9322_v1 = vpop.eup %9321  ;;  %9335 = vpow2.f32 %v5066_v61  ;;  %v12993_v11 = vmax.f32 %v12142_v16, 0.0 }
 0x584   : > { %13293 = vst [vmem:[#allocation44_spill] sm:$0xff] %v12145_v8  ;;  %v5062_v47 = vmul.f32 1.442695, %v4945_v12  ;;  %v12151_v20 = vmul.f32 %v9322_v1, %v13296_v29  ;;  %v12999_v40 = vmax.f32 %v12145_v8, 0.0 }
 0x586   : > { %13297 = vst [vmem:[#allocation46_spill] sm:$0xff] %v12151_v20  ;;  %9337 = vpow2.f32 %v5062_v47  ;;  %v12992_v28 = vmax.f32 %v12151_v20, 0.0  ;;  %v8045_v44 = vpop.f32.mrf.mxu1  ;;  %v5237_v39 = vpack.c.bf16 %v12999_v40, %v12998_v30 }
 0x587   : > { %v4698_v25 = vmul.f32 7.8125e-07, %v8045_v44 }
 0x588   : > { %v5236_v57 = vpack.c.bf16 %v12992_v28, %v12993_v11  ;;  %v9324_v49 = vpop.eup %9323  ;;  %v4621_v5 = vpop.f32.mrf.mxu1 }
 0x589   : > { %v4881_v54 = vmul.f32 0.6931472, %v9324_v49  ;;  %v4762_v61 = vadd.f32 1.0, %v4698_v25  ;;  %v4696_v12 = vmul.f32 7.8125e-07, %v4621_v5 }
 0x58a   : > { %8111 = vmatprep.mubr.bf16.mxu0 %v5236_v57  ;;  %v9326_v37 = vpop.eup %9325  ;;  %v8046_v1 = vpop.f32.mrf.mxu1 }
 0x58b   : > { %8112 = vmatmul.mubr.bf16.gmra.mxu0 %v5237_v39  ;;  %v4950_v14 = vmul.f32 -0.75, %v4881_v54  ;;  %v4877_v47 = vmul.f32 0.6931472, %v9326_v37  ;;  %9339 = vlog2.f32 %v4762_v61  ;;  %v4760_v29 = vadd.f32 1.0, %v4696_v12  ;;  %v13298_v61 = vld [vmem:[#allocation21_spill] sm:$0xff]  ;;  %v13300_v37 = vld [vmem:[#allocation24_spill] sm:$0xff] }
 0x58c   : > { %v9328_v44 = vpop.eup %9327  ;;  %v4699_v28 = vmul.f32 7.8125e-07, %v8046_v1  ;;  %v4624_v11 = vpop.f32.mrf.mxu1 }
 0x58d   : > { %v9330_v20 = vpop.eup %9329  ;;  %v4948_v16 = vmul.f32 -0.75, %v4877_v47  ;;  %9341 = vlog2.f32 %v4760_v29  ;;  %v4697_v59 = vmul.f32 7.8125e-07, %v4624_v11  ;;  %v5072_v5 = vmul.f32 1.442695, %v4950_v14 }
 0x58e   : > { %v9332_v8 = vpop.eup %9331  ;;  %v4883_v30 = vmul.f32 0.6931472, %v9330_v20  ;;  %v4763_v49 = vadd.f32 1.0, %v4699_v28  ;;  %v13302_v20 = vld [vmem:[#allocation27_spill] sm:$0xff] }
 0x58f   : > { %v9334_v25 = vpop.eup %9333  ;;  %v5068_v57 = vmul.f32 1.442695, %v4948_v16  ;;  %v4761_v40 = vadd.f32 1.0, %v4697_v59  ;;  %v12166_v12 = vmul.f32 %v9332_v8, %v13298_v61  ;;  %v12172_v28 = vmul.f32 %v9328_v44, %v13302_v20  ;;  %v13304_v16 = vld [vmem:[#allocation26_spill] sm:$0xff] }
 0x590   : > { %v9336_v24 = vpop.eup %9335  ;;  %v4951_v39 = vmul.f32 -0.75, %v4883_v30  ;;  %v4879_v54 = vmul.f32 0.6931472, %v9334_v25  ;;  %9343 = vlog2.f32 %v4763_v49 }
 0x591   : > { %9345 = vpow2.f32 %v5068_v57  ;;  %13299 = vst [vmem:[#allocation45_spill] sm:$0xff] %v12166_v12  ;;  %v12169_v1 = vmul.f32 %v9336_v24, %v13300_v37  ;;  %13303 = vst [vmem:[#allocation51_spill] sm:$0xff] %v12172_v28  ;;  %v13002_v8 = vmax.f32 %v12166_v12, 0.0  ;;  %v13012_v49 = vmax.f32 %v12172_v28, 0.0  ;;  %v13306_v28 = vld [vmem:[#allocation25_spill] sm:$0xff] }
 0x592   : > { %v5074_v11 = vmul.f32 1.442695, %v4951_v39  ;;  %v4949_v29 = vmul.f32 -0.75, %v4879_v54  ;;  %9347 = vlog2.f32 %v4761_v40 }
 0x593   : > { %13301 = vst [vmem:[#allocation48_spill] sm:$0xff] %v12169_v1  ;;  %v9338_v47 = vpop.eup %9337  ;;  %9349 = vpow2.f32 %v5072_v5  ;;  %v13013_v14 = vmax.f32 %v12169_v1, 0.0 }
 0x594   : > { %v12175_v59 = vmul.f32 %v9338_v47, %v13304_v16  ;;  %9351 = vpow2.f32 %v5074_v11  ;;  %v5070_v30 = vmul.f32 1.442695, %v4949_v29 }
 0x595   : > { %v5239_v25 = vpack.c.bf16 %v13013_v14, %v13012_v49 }
 0x596   : > { %13305 = vst [vmem:[#allocation50_spill] sm:$0xff] %v12175_v59  ;;  %v13001_v24 = vmax.f32 %v12175_v59, 0.0  ;;  %9353 = vpow2.f32 %v5070_v30 }
 0x598   : > { %v5238_v40 = vpack.c.bf16 %v13001_v24, %v13002_v8  ;;  %v9340_v44 = vpop.eup %9339 }
 0x599   : > { %v4889_v5 = vmul.f32 0.6931472, %v9340_v44 }
 0x59a   : > { %8115 = vmatprep.mubr.bf16.mxu0 %v5238_v40  ;;  %v9342_v57 = vpop.eup %9341 }
 0x59b   : > { %8116 = vmatmul.mubr.bf16.gmra.mxu0 %v5239_v25  ;;  %v4954_v39 = vmul.f32 -0.75, %v4889_v5  ;;  %v4885_v54 = vmul.f32 0.6931472, %v9342_v57  ;;  %v13308_v25 = vld [vmem:[#allocation28_spill] sm:$0xff] }
 0x59d   : > { %v9344_v61 = vpop.eup %9343  ;;  %v4952_v37 = vmul.f32 -0.75, %v4885_v54  ;;  %v5080_v20 = vmul.f32 1.442695, %v4954_v39  ;;  %v13310_v54 = vld [vmem:[#allocation31_spill] sm:$0xff] }
 0x59e   : > { %v9346_v47 = vpop.eup %9345  ;;  %v4891_v11 = vmul.f32 0.6931472, %v9344_v61 }
 0x59f   : > { %v9348_v29 = vpop.eup %9347  ;;  %v5076_v16 = vmul.f32 1.442695, %v4952_v37  ;;  %v12190_v1 = vmul.f32 %v9346_v47, %v13306_v28  ;;  %v13312_v37 = vld [vmem:[#allocation30_spill] sm:$0xff] }
 0x5a0   : > { %v9350_v30 = vpop.eup %9349  ;;  %v4955_v24 = vmul.f32 -0.75, %v4891_v11  ;;  %v4887_v8 = vmul.f32 0.6931472, %v9348_v29 }
 0x5a1   : > { %v9352_v59 = vpop.eup %9351  ;;  %13307 = vst [vmem:[#allocation49_spill] sm:$0xff] %v12190_v1  ;;  %9355 = vpow2.f32 %v5076_v16  ;;  %v12196_v61 = vmul.f32 %v9350_v30, %v13310_v54  ;;  %v13007_v28 = vmax.f32 %v12190_v1, 0.0 }
 0x5a2   : > { %v5082_v40 = vmul.f32 1.442695, %v4955_v24  ;;  %v4953_v44 = vmul.f32 -0.75, %v4887_v8  ;;  %v12193_v5 = vmul.f32 %v9352_v59, %v13308_v25  ;;  %9357 = vpow2.f32 %v5080_v20  ;;  %v13316_v25 = vld [vmem:[#allocation32_spill] sm:$0xff] }
 0x5a3   : > { %v9354_v57 = vpop.eup %9353  ;;  %13311 = vst [vmem:[#allocation55_spill] sm:$0xff] %v12196_v61  ;;  %v13008_v59 = vmax.f32 %v12196_v61, 0.0 }
 0x5a4   : > { %13309 = vst [vmem:[#allocation52_spill] sm:$0xff] %v12193_v5  ;;  %9359 = vpow2.f32 %v5082_v40  ;;  %v5078_v39 = vmul.f32 1.442695, %v4953_v44  ;;  %v12199_v11 = vmul.f32 %v9354_v57, %v13312_v37  ;;  %v13009_v29 = vmax.f32 %v12193_v5, 0.0  ;;  %v13314_v40 = vld [vmem:[#allocation29_spill] sm:$0xff] }
 0x5a6   : > { %13313 = vst [vmem:[#allocation54_spill] sm:$0xff] %v12199_v11  ;;  %9361 = vpow2.f32 %v5078_v39  ;;  %v13006_v8 = vmax.f32 %v12199_v11, 0.0  ;;  %v5241_v47 = vpack.c.bf16 %v13009_v29, %v13008_v59  ;;  %v13318_v39 = vld [vmem:[#allocation35_spill] sm:$0xff] }
 0x5a8   : > { %v5240_v24 = vpack.c.bf16 %v13006_v8, %v13007_v28  ;;  %v13320_v8 = vld [vmem:[#allocation34_spill] sm:$0xff] }
 0x5aa   : > { %8119 = vmatprep.mubr.bf16.mxu0 %v5240_v24 }
 0x5ab   : > { %8120 = vmatmul.mubr.bf16.gmra.mxu0 %v5241_v47 }
 0x5ae   : > { %v9356_v20 = vpop.eup %9355 }
 0x5af   : > { %v9358_v16 = vpop.eup %9357  ;;  %v12214_v44 = vmul.f32 %v9356_v20, %v13314_v40 }
 0x5b0   : > { %v12220_v37 = vmul.f32 %v9358_v16, %v13318_v39  ;;  %v12240_v16 = vld [vmem:[%s12793_s10] ss:$0 sm:$0xff] }
 0x5b1   : > { %v9360_v30 = vpop.eup %9359  ;;  %13315 = vst [vmem:[#allocation53_spill] sm:$0xff] %v12214_v44  ;;  %v13011_v24 = vmax.f32 %v12214_v44, 0.0 }
 0x5b2   : > { %v12217_v57 = vmul.f32 %v9360_v30, %v13316_v25  ;;  %13319 = vst [vmem:[#allocation59_spill] sm:$0xff] %v12220_v37  ;;  %v13015_v20 = vmax.f32 %v12220_v37, 0.0 }
 0x5b3   : > { %v9362_v54 = vpop.eup %9361 }
 0x5b4   : > { %13317 = vst [vmem:[#allocation56_spill] sm:$0xff] %v12217_v57  ;;  %v12223_v28 = vmul.f32 %v9362_v54, %v13320_v8  ;;  %v13016_v59 = vmax.f32 %v12217_v57, 0.0 }
 0x5b6   : > { %13321 = vst [vmem:[#allocation58_spill] sm:$0xff] %v12223_v28  ;;  %v13010_v47 = vmax.f32 %v12223_v28, 0.0  ;;  %v5243_v8 = vpack.c.bf16 %v13016_v59, %v13015_v20 }
 0x5b7   : > { %v8065_v29 = vpop.f32.mrf.mxu0 }
 0x5b8   : > { %v5242_v30 = vpack.c.bf16 %v13010_v47, %v13011_v24  ;;  %v5358_v47 = vadd.f32 %v8065_v29, %v12240_v16 }
 0x5b9   : > { %v5349_v40 = vpop.f32.mrf.mxu0 }
 0x5ba   : > { %8123 = vmatprep.mubr.bf16.mxu0 %v5242_v30  ;;  %v5350_v54 = vadd.f32 %v12240_v16, %v5349_v40  ;;  %v5606_v59 = vmax.f32 %v5358_v47, 0.0 }
 0x5bb   : > { %v8066_v25 = vpop.f32.mrf.mxu0  ;;  %8124 = vmatmul.mubr.bf16.gmra.mxu0 %v5243_v8 }
 0x5bc   : > { %v5361_v39 = vadd.f32 %v8066_v25, %v12240_v16  ;;  %v5604_v28 = vmax.f32 %v5350_v54, 0.0 }
 0x5bd   : > { %v5352_v24 = vpop.f32.mrf.mxu0 }
 0x5be   : > { %v5353_v49 = vadd.f32 %v12240_v16, %v5352_v24  ;;  %v5607_v14 = vmax.f32 %v5361_v39, 0.0 }
 0x5c0   : > { %v5605_v20 = vmax.f32 %v5353_v49, 0.0  ;;  %v5669_v57 = vpack.c.bf16 %v5607_v14, %v5606_v59 }
 0x5c2   : > { %v5668_v37 = vpack.c.bf16 %v5605_v20, %v5604_v28 }
 0x5c4   : > { %v8069_v44 = vpop.f32.mrf.mxu0  ;;  %8143 = vmatprep.mubr.bf16.mxu1 %v5668_v37 }
 0x5c5   : > { %8144 = vmatmul.mubr.bf16.vlgmr.msra.gmra.mxu1 %v5669_v57  ;;  %v5374_v29 = vadd.f32 %v8069_v44, %v12240_v16 }
 0x5c6   : > { %v5365_v30 = vpop.f32.mrf.mxu0 }
 0x5c7   : > { %v5366_v40 = vadd.f32 %v12240_v16, %v5365_v30  ;;  %v5610_v28 = vmax.f32 %v5374_v29, 0.0 }
 0x5c8   : > { %v8070_v8 = vpop.f32.mrf.mxu0 }
 0x5c9   : > { %v5377_v25 = vadd.f32 %v8070_v8, %v12240_v16  ;;  %v5608_v49 = vmax.f32 %v5366_v40, 0.0 }
 0x5ca   : > { %v5368_v11 = vpop.f32.mrf.mxu0 }
 0x5cb   : > { %v5369_v24 = vadd.f32 %v12240_v16, %v5368_v11  ;;  %v5611_v39 = vmax.f32 %v5377_v25, 0.0 }
 0x5cc   : > { %v8073_v54 = vpop.f32.mrf.mxu0 }
 0x5cd   : > { %v5609_v47 = vmax.f32 %v5369_v24, 0.0  ;;  %v5671_v37 = vpack.c.bf16 %v5611_v39, %v5610_v28  ;;  %v5390_v8 = vadd.f32 %v8073_v54, %v12240_v16 }
 0x5ce   : > { %v5381_v14 = vpop.f32.mrf.mxu0 }
 0x5cf   : > { %v5670_v59 = vpack.c.bf16 %v5609_v47, %v5608_v49  ;;  %v5382_v20 = vadd.f32 %v12240_v16, %v5381_v14  ;;  %v5614_v29 = vmax.f32 %v5390_v8, 0.0 }
 0x5d0   : > { %v8074_v57 = vpop.f32.mrf.mxu0 }
 0x5d1   : > { %v5393_v30 = vadd.f32 %v8074_v57, %v12240_v16  ;;  %8147 = vmatprep.mubr.bf16.mxu1 %v5670_v59  ;;  %v5612_v40 = vmax.f32 %v5382_v20, 0.0 }
 0x5d2   : > { %v5384_v44 = vpop.f32.mrf.mxu0  ;;  %8148 = vmatmul.mubr.bf16.gmra.mxu1 %v5671_v37 }
 0x5d3   : > { %v5385_v11 = vadd.f32 %v12240_v16, %v5384_v44  ;;  %v5615_v25 = vmax.f32 %v5393_v30, 0.0 }
 0x5d4   : > { %v8077_v61 = vpop.f32.mrf.mxu0 }
 0x5d5   : > { %v5613_v24 = vmax.f32 %v5385_v11, 0.0  ;;  %v5673_v39 = vpack.c.bf16 %v5615_v25, %v5614_v29  ;;  %v5406_v54 = vadd.f32 %v8077_v61, %v12240_v16 }
 0x5d6   : > { %v5397_v5 = vpop.f32.mrf.mxu0 }
 0x5d7   : > { %v5672_v49 = vpack.c.bf16 %v5613_v24, %v5612_v40  ;;  %v5398_v28 = vadd.f32 %v12240_v16, %v5397_v5  ;;  %v5618_v8 = vmax.f32 %v5406_v54, 0.0 }
 0x5d8   : > { %v8078_v47 = vpop.f32.mrf.mxu0 }
 0x5d9   : > { %v5409_v14 = vadd.f32 %v8078_v47, %v12240_v16  ;;  %8151 = vmatprep.mubr.bf16.mxu1 %v5672_v49  ;;  %v5616_v20 = vmax.f32 %v5398_v28, 0.0  ;;  %v8571_v47 = vld [vmem:[%s12796_s13 + $0x38] sm:$0xff]  }
 0x5da   : > { %v5400_v59 = vpop.f32.mrf.mxu0  ;;  %8152 = vmatmul.mubr.bf16.gmra.mxu1 %v5673_v39  ;;  %8207 = vmatprep.subr.bf16.mxu0 %v8571_v47 }
 0x5db   : > { %v5401_v37 = vadd.f32 %v12240_v16, %v5400_v59  ;;  %v5619_v57 = vmax.f32 %v5409_v14, 0.0  ;;  %8208 = vmatpush3.bf16.msra.mxu0 %v8571_v47 }
 0x5dc   : > { %v8081_v30 = vpop.f32.mrf.mxu0 }
 0x5dd   : > { %v5617_v44 = vmax.f32 %v5401_v37, 0.0  ;;  %v5675_v25 = vpack.c.bf16 %v5619_v57, %v5618_v8  ;;  %v5422_v61 = vadd.f32 %v8081_v30, %v12240_v16 }
 0x5de   : > { %v5413_v11 = vpop.f32.mrf.mxu0 }
 0x5df   : > { %v5674_v40 = vpack.c.bf16 %v5617_v44, %v5616_v20  ;;  %v5414_v5 = vadd.f32 %v12240_v16, %v5413_v11  ;;  %v5622_v37 = vmax.f32 %v5422_v61, 0.0 }
 0x5e0   : > { %v8082_v24 = vpop.f32.mrf.mxu0 }
 0x5e1   : > { %v5425_v29 = vadd.f32 %v8082_v24, %v12240_v16  ;;  %8155 = vmatprep.mubr.bf16.mxu1 %v5674_v40  ;;  %v5620_v54 = vmax.f32 %v5414_v5, 0.0 }
 0x5e2   : > { %v5416_v49 = vpop.f32.mrf.mxu0  ;;  %8156 = vmatmul.mubr.bf16.gmra.mxu1 %v5675_v25 }
 0x5e3   : > { %v5417_v39 = vadd.f32 %v12240_v16, %v5416_v49  ;;  %v5623_v28 = vmax.f32 %v5425_v29, 0.0 }
 0x5e4   : > { %v8085_v14 = vpop.f32.mrf.mxu0 }
 0x5e5   : > { %v5621_v59 = vmax.f32 %v5417_v39, 0.0  ;;  %v5677_v44 = vpack.c.bf16 %v5623_v28, %v5622_v37  ;;  %v5438_v40 = vadd.f32 %v8085_v14, %v12240_v16 }
 0x5e6   : > { %v5429_v57 = vpop.f32.mrf.mxu0 }
 0x5e7   : > { %v5676_v20 = vpack.c.bf16 %v5621_v59, %v5620_v54  ;;  %v5430_v30 = vadd.f32 %v12240_v16, %v5429_v57  ;;  %v5626_v39 = vmax.f32 %v5438_v40, 0.0 }
 0x5e8   : > { %v8086_v8 = vpop.f32.mrf.mxu0 }
 0x5e9   : > { %v5441_v11 = vadd.f32 %v8086_v8, %v12240_v16  ;;  %8159 = vmatprep.mubr.bf16.mxu1 %v5676_v20  ;;  %v5624_v49 = vmax.f32 %v5430_v30, 0.0  ;;  %v8572_v30 = vld [vmem:[%s12796_s13 + $0x30] sm:$0xff]  }
 0x5ea   : > { %v5432_v25 = vpop.f32.mrf.mxu0  ;;  %8160 = vmatmul.mubr.bf16.gmra.mxu1 %v5677_v44  ;;  %8209 = vmatprep.subr.bf16.mxu0 %v8572_v30 }
 0x5eb   : > { %v5433_v24 = vadd.f32 %v12240_v16, %v5432_v25  ;;  %v5627_v5 = vmax.f32 %v5441_v11, 0.0  ;;  %8210 = vmatpush3.bf16.msra.mxu0 %v8572_v30 }
 0x5ec   : > { %v8089_v29 = vpop.f32.mrf.mxu0 }
 0x5ed   : > { %v5625_v61 = vmax.f32 %v5433_v24, 0.0  ;;  %v5679_v28 = vpack.c.bf16 %v5627_v5, %v5626_v39  ;;  %v5454_v14 = vadd.f32 %v8089_v29, %v12240_v16 }
 0x5ee   : > { %v5445_v47 = vpop.f32.mrf.mxu0 }
 0x5ef   : > { %v5678_v54 = vpack.c.bf16 %v5625_v61, %v5624_v49  ;;  %v5446_v37 = vadd.f32 %v12240_v16, %v5445_v47  ;;  %v5630_v25 = vmax.f32 %v5454_v14, 0.0 }
 0x5f0   : > { %v8090_v59 = vpop.f32.mrf.mxu0 }
 0x5f1   : > { %8163 = vmatprep.mubr.bf16.mxu1 %v5678_v54  ;;  %v5457_v57 = vadd.f32 %v8090_v59, %v12240_v16  ;;  %v5628_v11 = vmax.f32 %v5446_v37, 0.0 }
 0x5f2   : > { %8164 = vmatmul.mubr.bf16.gmra.mxu1 %v5679_v28  ;;  %v5448_v20 = vpop.f32.mrf.mxu0 }
 0x5f3   : > { %v5449_v44 = vadd.f32 %v12240_v16, %v5448_v20  ;;  %v5631_v8 = vmax.f32 %v5457_v57, 0.0  ;;  %v8573_v57 = vld [vmem:[%s12796_s13 + $0x28] sm:$0xff]  }
 0x5f4   : > { %8211 = vmatprep.subr.bf16.mxu0 %v8573_v57 }
 0x5f5   : > { %v5629_v40 = vmax.f32 %v5449_v44, 0.0  ;;  %v8093_v24 = vpop.f32.mrf.mxu0  ;;  %v5681_v49 = vpack.c.bf16 %v5631_v8, %v5630_v25  ;;  %8212 = vmatpush3.bf16.msra.mxu0 %v8573_v57 }
 0x5f6   : > { %v5470_v54 = vadd.f32 %v8093_v24, %v12240_v16  ;;  %v8574_v24 = vld [vmem:[%s12796_s13 + $0x20] sm:$0xff]  }
 0x5f7   : > { %v5680_v5 = vpack.c.bf16 %v5629_v40, %v5628_v11  ;;  %v5461_v61 = vpop.f32.mrf.mxu0  ;;  %8213 = vmatprep.subr.bf16.mxu0 %v8574_v24 }
 0x5f8   : > { %v5462_v39 = vadd.f32 %v12240_v16, %v5461_v61  ;;  %v5634_v44 = vmax.f32 %v5470_v54, 0.0 }
 0x5f9   : > { %8167 = vmatprep.mubr.bf16.mxu1 %v5680_v5  ;;  %v8094_v29 = vpop.f32.mrf.mxu0  ;;  %8214 = vmatpush3.bf16.msra.mxu0 %v8574_v24 }
 0x5fa   : > { %8168 = vmatmul.mubr.bf16.gmra.mxu1 %v5681_v49  ;;  %v5473_v47 = vadd.f32 %v8094_v29, %v12240_v16  ;;  %v5632_v14 = vmax.f32 %v5462_v39, 0.0 }
 0x5fb   : > { %v5464_v28 = vpop.f32.mrf.mxu0 }
 0x5fc   : > { %v5465_v59 = vadd.f32 %v12240_v16, %v5464_v28  ;;  %v5635_v37 = vmax.f32 %v5473_v47, 0.0 }
 0x5fe   : > { %v5633_v20 = vmax.f32 %v5465_v59, 0.0  ;;  %v5683_v11 = vpack.c.bf16 %v5635_v37, %v5634_v44  ;;  %v8575_v37 = vld [vmem:[%s12796_s13 + $0x18] sm:$0xff]   ;;  %v8576_v44 = vld [vmem:[%s12796_s13 + $0x10] sm:$0xff]  }
 0x5ff   : > { %8215 = vmatprep.subr.bf16.mxu0 %v8575_v37 }
 0x600   : > { %v8097_v8 = vpop.f32.mrf.mxu0  ;;  %v5682_v30 = vpack.c.bf16 %v5633_v20, %v5632_v14  ;;  %8216 = vmatpush3.bf16.msra.mxu0 %v8575_v37 }
 0x601   : > { %v5486_v61 = vadd.f32 %v8097_v8, %v12240_v16  ;;  %8217 = vmatprep.subr.bf16.mxu0 %v8576_v44 }
 0x602   : > { %v5477_v40 = vpop.f32.mrf.mxu0  ;;  %8171 = vmatprep.mubr.bf16.mxu1 %v5682_v30 }
 0x603   : > { %8172 = vmatmul.mubr.bf16.gmra.mxu1 %v5683_v11  ;;  %v5478_v5 = vadd.f32 %v12240_v16, %v5477_v40  ;;  %v5638_v59 = vmax.f32 %v5486_v61, 0.0 }
 0x604   : > { %v8098_v25 = vpop.f32.mrf.mxu0  ;;  %8218 = vmatpush3.bf16.msra.mxu0 %v8576_v44 }
 0x605   : > { %v5489_v49 = vadd.f32 %v8098_v25, %v12240_v16  ;;  %v5636_v54 = vmax.f32 %v5478_v5, 0.0  ;;  %v8577_v5 = vld [vmem:[%s12796_s13 + $0x8] sm:$0xff]  }
 0x606   : > { %v5480_v29 = vpop.f32.mrf.mxu0  ;;  %8219 = vmatprep.subr.bf16.mxu0 %v8577_v5 }
 0x607   : > { %v5481_v39 = vadd.f32 %v12240_v16, %v5480_v29  ;;  %v5639_v47 = vmax.f32 %v5489_v49, 0.0 }
 0x608   : > { %8220 = vmatpush3.bf16.msra.mxu0 %v8577_v5 }
 0x609   : > { %v5637_v28 = vmax.f32 %v5481_v39, 0.0  ;;  %v5685_v14 = vpack.c.bf16 %v5639_v47, %v5638_v59 }
 0x60b   : > { %v5684_v57 = vpack.c.bf16 %v5637_v28, %v5636_v54  ;;  %v8578_v54 = vld [vmem:[%s12796_s13] sm:$0xff]  }
 0x60c   : > { %8221 = vmatprep.subr.bf16.mxu0 %v8578_v54 }
 0x60d   : > { %8175 = vmatprep.mubr.bf16.mxu1 %v5684_v57  ;;  %8222 = vmatpush3.bf16.msra.mxu0 %v8578_v54 }
 0x60e   : > { %8176 = vmatmul.mubr.bf16.gmra.mxu1 %v5685_v14 }
 0x610   : > { %v8101_v20 = vpop.f32.mrf.mxu0 }
 0x611   : > { %v5502_v25 = vadd.f32 %v8101_v20, %v12240_v16 }
 0x612   : > { %v5493_v8 = vpop.f32.mrf.mxu0 }
 0x613   : > { %v5494_v11 = vadd.f32 %v12240_v16, %v5493_v8  ;;  %v5642_v47 = vmax.f32 %v5502_v25, 0.0 }
 0x614   : > { %v8102_v30 = vpop.f32.mrf.mxu0 }
 0x615   : > { %v5505_v40 = vadd.f32 %v8102_v30, %v12240_v16  ;;  %v5640_v29 = vmax.f32 %v5494_v11, 0.0 }
 0x616   : > { %v5496_v24 = vpop.f32.mrf.mxu0 }
 0x617   : > { %v5497_v49 = vadd.f32 %v12240_v16, %v5496_v24  ;;  %v5643_v61 = vmax.f32 %v5505_v40, 0.0 }
 0x619   : > { %v5641_v39 = vmax.f32 %v5497_v49, 0.0  ;;  %v5687_v59 = vpack.c.bf16 %v5643_v61, %v5642_v47 }
 0x61b   : > { %v5686_v28 = vpack.c.bf16 %v5641_v39, %v5640_v29 }
 0x61d   : > { %8179 = vmatprep.mubr.bf16.mxu1 %v5686_v28 }
 0x61e   : > { %8180 = vmatmul.mubr.bf16.gmra.mxu1 %v5687_v59 }
 0x623   : > { %v8105_v37 = vpop.f32.mrf.mxu0 }
 0x624   : > { %v5518_v8 = vadd.f32 %v8105_v37, %v12240_v16 }
 0x625   : > { %v5509_v57 = vpop.f32.mrf.mxu0 }
 0x626   : > { %v5510_v20 = vadd.f32 %v12240_v16, %v5509_v57  ;;  %v5646_v5 = vmax.f32 %v5518_v8, 0.0 }
 0x627   : > { %v8106_v14 = vpop.f32.mrf.mxu0 }
 0x628   : > { %v5521_v44 = vadd.f32 %v8106_v14, %v12240_v16  ;;  %v5644_v25 = vmax.f32 %v5510_v20, 0.0 }
 0x629   : > { %v5512_v30 = vpop.f32.mrf.mxu0 }
 0x62a   : > { %v5513_v11 = vadd.f32 %v12240_v16, %v5512_v30  ;;  %v5647_v40 = vmax.f32 %v5521_v44, 0.0 }
 0x62c   : > { %v5645_v24 = vmax.f32 %v5513_v11, 0.0  ;;  %v5689_v61 = vpack.c.bf16 %v5647_v40, %v5646_v5 }
 0x62e   : > { %v5688_v49 = vpack.c.bf16 %v5645_v24, %v5644_v25 }
 0x630   : > { %8183 = vmatprep.mubr.bf16.mxu1 %v5688_v49 }
 0x631   : > { %8184 = vmatmul.mubr.bf16.gmra.mxu1 %v5689_v61 }
 0x638   : > { %v8109_v29 = vpop.f32.mrf.mxu0 }
 0x639   : > { %v5534_v59 = vadd.f32 %v8109_v29, %v12240_v16 }
 0x63a   : > { %v5525_v39 = vpop.f32.mrf.mxu0 }
 0x63b   : > { %v5526_v54 = vadd.f32 %v12240_v16, %v5525_v39  ;;  %v5650_v8 = vmax.f32 %v5534_v59, 0.0 }
 0x63c   : > { %v8110_v47 = vpop.f32.mrf.mxu0 }
 0x63d   : > { %v5537_v28 = vadd.f32 %v8110_v47, %v12240_v16  ;;  %v5648_v20 = vmax.f32 %v5526_v54, 0.0 }
 0x63e   : > { %v5528_v37 = vpop.f32.mrf.mxu0 }
 0x63f   : > { %v5529_v57 = vadd.f32 %v12240_v16, %v5528_v37  ;;  %v5651_v14 = vmax.f32 %v5537_v28, 0.0 }
 0x641   : > { %v5649_v44 = vmax.f32 %v5529_v57, 0.0  ;;  %v5691_v11 = vpack.c.bf16 %v5651_v14, %v5650_v8 }
 0x643   : > { %v5690_v30 = vpack.c.bf16 %v5649_v44, %v5648_v20 }
 0x645   : > { %8187 = vmatprep.mubr.bf16.mxu1 %v5690_v30 }
 0x646   : > { %8188 = vmatmul.mubr.bf16.gmra.mxu1 %v5691_v11 }
 0x64b   : > { %v8113_v40 = vpop.f32.mrf.mxu0 }
 0x64c   : > { %v5550_v61 = vadd.f32 %v8113_v40, %v12240_v16 }
 0x64d   : > { %v5541_v25 = vpop.f32.mrf.mxu0 }
 0x64e   : > { %v5542_v5 = vadd.f32 %v12240_v16, %v5541_v25  ;;  %v5654_v59 = vmax.f32 %v5550_v61, 0.0 }
 0x64f   : > { %v8114_v24 = vpop.f32.mrf.mxu0 }
 0x650   : > { %v5553_v49 = vadd.f32 %v8114_v24, %v12240_v16  ;;  %v5652_v54 = vmax.f32 %v5542_v5, 0.0 }
 0x651   : > { %v5544_v29 = vpop.f32.mrf.mxu0 }
 0x652   : > { %v5545_v39 = vadd.f32 %v12240_v16, %v5544_v29  ;;  %v5655_v47 = vmax.f32 %v5553_v49, 0.0 }
 0x654   : > { %v5653_v28 = vmax.f32 %v5545_v39, 0.0  ;;  %v5693_v57 = vpack.c.bf16 %v5655_v47, %v5654_v59 }
 0x656   : > { %v5692_v37 = vpack.c.bf16 %v5653_v28, %v5652_v54 }
 0x658   : > { %8191 = vmatprep.mubr.bf16.mxu1 %v5692_v37 }
 0x659   : > { %8192 = vmatmul.mubr.bf16.gmra.mxu1 %v5693_v57 }
 0x65b   : > { %v8117_v14 = vpop.f32.mrf.mxu0 }
 0x65c   : > { %v5566_v11 = vadd.f32 %v8117_v14, %v12240_v16 }
 0x65d   : > { %v5557_v20 = vpop.f32.mrf.mxu0 }
 0x65e   : > { %v5558_v8 = vadd.f32 %v12240_v16, %v5557_v20  ;;  %v5658_v61 = vmax.f32 %v5566_v11, 0.0 }
 0x65f   : > { %v8118_v44 = vpop.f32.mrf.mxu0 }
 0x660   : > { %v5569_v30 = vadd.f32 %v8118_v44, %v12240_v16  ;;  %v5656_v5 = vmax.f32 %v5558_v8, 0.0 }
 0x661   : > { %v5560_v40 = vpop.f32.mrf.mxu0 }
 0x662   : > { %v5561_v25 = vadd.f32 %v12240_v16, %v5560_v40  ;;  %v5659_v24 = vmax.f32 %v5569_v30, 0.0 }
 0x664   : > { %v5657_v49 = vmax.f32 %v5561_v25, 0.0  ;;  %v5695_v39 = vpack.c.bf16 %v5659_v24, %v5658_v61 }
 0x666   : > { %v5694_v29 = vpack.c.bf16 %v5657_v49, %v5656_v5 }
 0x668   : > { %8195 = vmatprep.mubr.bf16.mxu1 %v5694_v29 }
 0x669   : > { %8196 = vmatmul.mubr.bf16.gmra.mxu1 %v5695_v39 }
 0x66b   : > { %v8121_v47 = vpop.f32.mrf.mxu0 }
 0x66c   : > { %v5582_v57 = vadd.f32 %v8121_v47, %v12240_v16 }
 0x66d   : > { %v5573_v54 = vpop.f32.mrf.mxu0 }
 0x66e   : > { %v5574_v59 = vadd.f32 %v12240_v16, %v5573_v54  ;;  %v5662_v11 = vmax.f32 %v5582_v57, 0.0 }
 0x66f   : > { %v8122_v28 = vpop.f32.mrf.mxu0 }
 0x670   : > { %v5585_v37 = vadd.f32 %v8122_v28, %v12240_v16  ;;  %v5660_v8 = vmax.f32 %v5574_v59, 0.0 }
 0x671   : > { %v5576_v14 = vpop.f32.mrf.mxu0 }
 0x672   : > { %v5577_v20 = vadd.f32 %v12240_v16, %v5576_v14  ;;  %v5663_v44 = vmax.f32 %v5585_v37, 0.0 }
 0x674   : > { %v5661_v30 = vmax.f32 %v5577_v20, 0.0  ;;  %v5697_v25 = vpack.c.bf16 %v5663_v44, %v5662_v11  ;;  %v12333_v44 = vld [vmem:[%s12795_s12] ss:$0 sm:$0xff] }
 0x676   : > { %v5696_v40 = vpack.c.bf16 %v5661_v30, %v5660_v8 }
 0x678   : > { %8199 = vmatprep.mubr.bf16.mxu1 %v5696_v40 }
 0x679   : > { %8200 = vmatmul.mubr.bf16.gmra.mxu1 %v5697_v25 }
 0x67b   : > { %v8125_v24 = vpop.f32.mrf.mxu0 }
 0x67c   : > { %v5598_v39 = vadd.f32 %v8125_v24, %v12240_v16 }
 0x67d   : > { %v5589_v5 = vpop.f32.mrf.mxu0 }
 0x67e   : > { %v5590_v61 = vadd.f32 %v12240_v16, %v5589_v5  ;;  %v5666_v57 = vmax.f32 %v5598_v39, 0.0  ;;  %v13322_v5 = vld [vmem:[#allocation36_spill] sm:$0xff] }
 0x67f   : > { %v8126_v49 = vpop.f32.mrf.mxu0 }
 0x680   : > { %v5601_v29 = vadd.f32 %v8126_v49, %v12240_v16  ;;  %v5664_v59 = vmax.f32 %v5590_v61, 0.0  ;;  %v13323_v49 = vmax.f32 %v13322_v5, 0.0 }
 0x681   : > { %v5592_v47 = vpop.f32.mrf.mxu0 }
 0x682   : > { %v5593_v54 = vadd.f32 %v12240_v16, %v5592_v47  ;;  %v5667_v28 = vmax.f32 %v5601_v29, 0.0  ;;  %v13324_v29 = vmax.f32 %v11827_v13, 0.0 }
 0x684   : > { %v5665_v37 = vmax.f32 %v5593_v54, 0.0  ;;  %v5699_v8 = vpack.c.bf16 %v5667_v28, %v5666_v57  ;;  %v13325_v54 = vld [vmem:[#allocation33_spill] sm:$0xff] }
 0x685   : > { %v8145_v14 = vpop.f32.mrf.mxu1  ;;  %v13326_v28 = vmax.f32 %v13325_v54, 0.0 }
 0x686   : > { %v5698_v20 = vpack.c.bf16 %v5665_v37, %v5664_v59  ;;  %v5814_v40 = vadd.f32 %v8145_v14, %v12333_v44  ;;  %v13327_v37 = vld [vmem:[#allocation39_spill] sm:$0xff] }
 0x687   : > { %v5805_v30 = vpop.f32.mrf.mxu1  ;;  %v13328_v57 = vmax.f32 %v13327_v37, 0.0 }
 0x688   : > { %v5806_v11 = vadd.f32 %v12333_v44, %v5805_v30  ;;  %8203 = vmatprep.mubr.bf16.mxu1 %v5698_v20  ;;  %v6062_v59 = vadd.f32 %v5814_v40, %v13326_v28 }
 0x689   : > { %v8146_v25 = vpop.f32.mrf.mxu1  ;;  %8204 = vmatmul.mubr.bf16.gmra.mxu1 %v5699_v8 }
 0x68a   : > { %v5817_v16 = vadd.f32 %v8146_v25, %v12333_v44  ;;  %v6060_v61 = vadd.f32 %v5806_v11, %v13323_v49  ;;  %v6126_v1 = vmax.f32 %v6062_v59, 0.0  ;;  %v13329_v49 = vmax.f32 %v11849_v56, 0.0 }
 0x68b   : > { %v5808_v24 = vpop.f32.mrf.mxu1 }
 0x68c   : > { %v6063_v39 = vadd.f32 %v5817_v16, %v13324_v29  ;;  %v5809_v47 = vadd.f32 %v12333_v44, %v5808_v24  ;;  %v6124_v30 = vmax.f32 %v6060_v61, 0.0  ;;  %v13330_v61 = vmax.f32 %v11866_v63, 0.0 }
 0x68e   : > { %v6061_v20 = vadd.f32 %v5809_v47, %v13328_v57  ;;  %v6127_v14 = vmax.f32 %v6063_v39, 0.0 }
 0x690   : > { %v6125_v8 = vmax.f32 %v6061_v20, 0.0  ;;  %v6189_v60 = vpack.c.bf16 %v6127_v14, %v6126_v1  ;;  %v13331_v1 = vmax.f32 %v11858_v26, 0.0 }
 0x692   : > { %v8149_v25 = vpop.f32.mrf.mxu1  ;;  %v6188_v12 = vpack.c.bf16 %v6125_v8, %v6124_v30 }
 0x693   : > { %v5830_v11 = vadd.f32 %v8149_v25, %v12333_v44 }
 0x694   : > { %v5821_v5 = vpop.f32.mrf.mxu1  ;;  %8223 = vmatprep.mubr.bf16.mxu0 %v6188_v12 }
 0x695   : > { %v5822_v13 = vadd.f32 %v12333_v44, %v5821_v5  ;;  %8224 = vmatmul.mubr.bf16.vlgmr.msra.gmra.mxu0 %v6189_v60  ;;  %v6066_v12 = vadd.f32 %v5830_v11, %v13331_v1  ;;  %v13332_v60 = vmax.f32 %v11852_v0, 0.0  ;;  %v13334_v0 = vmax.f32 %v11888_v7, 0.0 }
 0x696   : > { %v8150_v16 = vpop.f32.mrf.mxu1 }
 0x697   : > { %v5833_v40 = vadd.f32 %v8150_v16, %v12333_v44  ;;  %v6064_v29 = vadd.f32 %v5822_v13, %v13329_v49  ;;  %v6130_v56 = vmax.f32 %v6066_v12, 0.0  ;;  %v13333_v13 = vmax.f32 %v11872_v15, 0.0 }
 0x698   : > { %v5824_v24 = vpop.f32.mrf.mxu1 }
 0x699   : > { %v6067_v39 = vadd.f32 %v5833_v40, %v13330_v61  ;;  %v5825_v47 = vadd.f32 %v12333_v44, %v5824_v24  ;;  %v6128_v57 = vmax.f32 %v6064_v29, 0.0  ;;  %v13335_v24 = vmax.f32 %v11879_v10, 0.0 }
 0x69a   : > { %v8153_v54 = vpop.f32.mrf.mxu1  ;;  %v13336_v61 = vmax.f32 %v11876_v2, 0.0  ;;  %v13338_v2 = vmax.f32 %v11917_v34, 0.0 }
 0x69b   : > { %v6065_v28 = vadd.f32 %v5825_v47, %v13332_v60  ;;  %v6131_v59 = vmax.f32 %v6067_v39, 0.0  ;;  %v5846_v30 = vadd.f32 %v8153_v54, %v12333_v44 }
 0x69c   : > { %v5837_v37 = vpop.f32.mrf.mxu1 }
 0x69d   : > { %v6129_v20 = vmax.f32 %v6065_v28, 0.0  ;;  %v5838_v14 = vadd.f32 %v12333_v44, %v5837_v37  ;;  %v6191_v5 = vpack.c.bf16 %v6131_v59, %v6130_v56  ;;  %v6070_v49 = vadd.f32 %v5846_v30, %v13335_v24 }
 0x69e   : > { %v8154_v63 = vpop.f32.mrf.mxu1 }
 0x69f   : > { %v5849_v8 = vadd.f32 %v8154_v63, %v12333_v44  ;;  %v6190_v25 = vpack.c.bf16 %v6129_v20, %v6128_v57  ;;  %v6068_v11 = vadd.f32 %v5838_v14, %v13333_v13  ;;  %v6134_v60 = vmax.f32 %v6070_v49, 0.0 }
 0x6a0   : > { %v5840_v26 = vpop.f32.mrf.mxu1  ;;  %v13337_v20 = vmax.f32 %v11897_v3, 0.0  ;;  %v13339_v63 = vmax.f32 %v11910_v17, 0.0 }
 0x6a1   : > { %v6071_v16 = vadd.f32 %v5849_v8, %v13334_v0  ;;  %v5841_v40 = vadd.f32 %v12333_v44, %v5840_v26  ;;  %8227 = vmatprep.mubr.bf16.mxu0 %v6190_v25  ;;  %v6132_v12 = vmax.f32 %v6068_v11, 0.0 }
 0x6a2   : > { %v8157_v29 = vpop.f32.mrf.mxu1  ;;  %8228 = vmatmul.mubr.bf16.gmra.mxu0 %v6191_v5  ;;  %v13340_v5 = vmax.f32 %v11904_v50, 0.0  ;;  %v13342_v50 = vmax.f32 %v11930_v46, 0.0 }
 0x6a3   : > { %v6069_v39 = vadd.f32 %v5841_v40, %v13336_v61  ;;  %v6135_v47 = vmax.f32 %v6071_v16, 0.0  ;;  %v5862_v7 = vadd.f32 %v8157_v29, %v12333_v44 }
 0x6a4   : > { %v5853_v1 = vpop.f32.mrf.mxu1 }
 0x6a5   : > { %v6133_v54 = vmax.f32 %v6069_v39, 0.0  ;;  %v5854_v15 = vadd.f32 %v12333_v44, %v5853_v1  ;;  %v6193_v10 = vpack.c.bf16 %v6135_v47, %v6134_v60  ;;  %v6074_v8 = vadd.f32 %v5862_v7, %v13339_v63 }
 0x6a6   : > { %v8158_v28 = vpop.f32.mrf.mxu1  ;;  %v13341_v39 = vmax.f32 %v11920_v22, 0.0  ;;  %v13344_v7 = vmax.f32 %v11924_v41, 0.0  ;;  %v13345_v63 = vmax.f32 %v11941_v33, 0.0 }
 0x6a7   : > { %v5865_v59 = vadd.f32 %v8158_v28, %v12333_v44  ;;  %v6192_v37 = vpack.c.bf16 %v6133_v54, %v6132_v12  ;;  %v6072_v14 = vadd.f32 %v5854_v15, %v13337_v20  ;;  %v6138_v40 = vmax.f32 %v6074_v8, 0.0 }
 0x6a8   : > { %v5856_v57 = vpop.f32.mrf.mxu1  ;;  %v13343_v54 = vmax.f32 %v11944_v43, 0.0 }
 0x6a9   : > { %v6075_v56 = vadd.f32 %v5865_v59, %v13338_v2  ;;  %v5857_v30 = vadd.f32 %v12333_v44, %v5856_v57  ;;  %8231 = vmatprep.mubr.bf16.mxu0 %v6192_v37  ;;  %v6136_v0 = vmax.f32 %v6072_v14, 0.0  ;;  %v8579_v59 = vld [vmem:[%s12798_s15 + $0x38] sm:$0xff]  }
 0x6aa   : > { %v8161_v25 = vpop.f32.mrf.mxu1  ;;  %8232 = vmatmul.mubr.bf16.gmra.mxu0 %v6193_v10  ;;  %8287 = vmatprep.subr.bf16.mxu1 %v8579_v59 }
 0x6ab   : > { %v6073_v26 = vadd.f32 %v5857_v30, %v13340_v5  ;;  %v6139_v13 = vmax.f32 %v6075_v56, 0.0  ;;  %v5878_v34 = vadd.f32 %v8161_v25, %v12333_v44  ;;  %8288 = vmatpush3.bf16.msra.mxu1 %v8579_v59  ;;  %v13346_v25 = vmax.f32 %v11953_v55, 0.0 }
 0x6ac   : > { %v5869_v11 = vpop.f32.mrf.mxu1 }
 0x6ad   : > { %v6137_v16 = vmax.f32 %v6073_v26, 0.0  ;;  %v5870_v3 = vadd.f32 %v12333_v44, %v5869_v11  ;;  %v6195_v17 = vpack.c.bf16 %v6139_v13, %v6138_v40  ;;  %v6078_v15 = vadd.f32 %v5878_v34, %v13343_v54 }
 0x6ae   : > { %v8162_v24 = vpop.f32.mrf.mxu1  ;;  %v13347_v13 = vmax.f32 %v11961_v53, 0.0 }
 0x6af   : > { %v5881_v49 = vadd.f32 %v8162_v24, %v12333_v44  ;;  %v6194_v29 = vpack.c.bf16 %v6137_v16, %v6136_v0  ;;  %v6076_v47 = vadd.f32 %v5870_v3, %v13341_v39  ;;  %v6142_v20 = vmax.f32 %v6078_v15, 0.0 }
 0x6b0   : > { %v5872_v61 = vpop.f32.mrf.mxu1  ;;  %v13348_v16 = vmax.f32 %v11947_v21, 0.0  ;;  %v13351_v15 = vmax.f32 %v11989_v58, 0.0 }
 0x6b1   : > { %v6079_v1 = vadd.f32 %v5881_v49, %v13342_v50  ;;  %v5873_v12 = vadd.f32 %v12333_v44, %v5872_v61  ;;  %8235 = vmatprep.mubr.bf16.mxu0 %v6194_v29  ;;  %v6140_v10 = vmax.f32 %v6076_v47, 0.0  ;;  %v13349_v50 = vmax.f32 %v11970_v42, 0.0 }
 0x6b2   : > { %v8165_v60 = vpop.f32.mrf.mxu1  ;;  %8236 = vmatmul.mubr.bf16.gmra.mxu0 %v6195_v17 }
 0x6b3   : > { %v6077_v28 = vadd.f32 %v5873_v12, %v13344_v7  ;;  %v6143_v22 = vmax.f32 %v6079_v1, 0.0  ;;  %v5894_v43 = vadd.f32 %v8165_v60, %v12333_v44  ;;  %v13350_v1 = vmax.f32 %v11982_v51, 0.0 }
 0x6b4   : > { %v5885_v37 = vpop.f32.mrf.mxu1  ;;  %v13352_v7 = vmax.f32 %v11973_v27, 0.0 }
 0x6b5   : > { %v6141_v46 = vmax.f32 %v6077_v28, 0.0  ;;  %v5886_v57 = vadd.f32 %v12333_v44, %v5885_v37  ;;  %v6197_v56 = vpack.c.bf16 %v6143_v22, %v6142_v20  ;;  %v6082_v11 = vadd.f32 %v5894_v43, %v13347_v13  ;;  %v8580_v37 = vld [vmem:[%s12798_s15 + $0x30] sm:$0xff]  }
 0x6b6   : > { %v8166_v14 = vpop.f32.mrf.mxu1  ;;  %8289 = vmatprep.subr.bf16.mxu1 %v8580_v37 }
 0x6b7   : > { %v5897_v2 = vadd.f32 %v8166_v14, %v12333_v44  ;;  %v6196_v41 = vpack.c.bf16 %v6141_v46, %v6140_v10  ;;  %v6080_v8 = vadd.f32 %v5886_v57, %v13345_v63  ;;  %v6146_v29 = vmax.f32 %v6082_v11, 0.0  ;;  %8290 = vmatpush3.bf16.msra.mxu1 %v8580_v37  ;;  %v8585_v37 = vld [vmem:[%s12798_s15 + $0x8] sm:$0xff]  }
 0x6b8   : > { %v5888_v30 = vpop.f32.mrf.mxu1 }
 0x6b9   : > { %v6083_v5 = vadd.f32 %v5897_v2, %v13346_v25  ;;  %v5889_v26 = vadd.f32 %v12333_v44, %v5888_v30  ;;  %8239 = vmatprep.mubr.bf16.mxu0 %v6196_v41  ;;  %v6144_v24 = vmax.f32 %v6080_v8, 0.0  ;;  %v13353_v41 = vmax.f32 %v12010_v36, 0.0 }
 0x6ba   : > { %8240 = vmatmul.mubr.bf16.gmra.mxu0 %v6197_v56  ;;  %v8169_v0 = vpop.f32.mrf.mxu1  ;;  %v13354_v30 = vmax.f32 %v12007_v62, 0.0  ;;  %v13355_v25 = vmax.f32 %v12013_v45, 0.0 }
 0x6bb   : > { %v6081_v3 = vadd.f32 %v5889_v26, %v13348_v16  ;;  %v6147_v40 = vmax.f32 %v6083_v5, 0.0  ;;  %v5910_v55 = vadd.f32 %v8169_v0, %v12333_v44  ;;  %v13356_v26 = vmax.f32 %v12016_v23, 0.0  ;;  %v8581_v16 = vld [vmem:[%s12798_s15 + $0x28] sm:$0xff]  }
 0x6bc   : > { %v5901_v34 = vpop.f32.mrf.mxu1  ;;  %8291 = vmatprep.subr.bf16.mxu1 %v8581_v16 }
 0x6bd   : > { %v6145_v49 = vmax.f32 %v6081_v3, 0.0  ;;  %v5902_v33 = vadd.f32 %v12333_v44, %v5901_v34  ;;  %v6199_v53 = vpack.c.bf16 %v6147_v40, %v6146_v29  ;;  %v6086_v60 = vadd.f32 %v5910_v55, %v13351_v15  ;;  %8292 = vmatpush3.bf16.msra.mxu1 %v8581_v16  ;;  %v8582_v55 = vld [vmem:[%s12798_s15 + $0x20] sm:$0xff]  }
 0x6be   : > { %v8170_v17 = vpop.f32.mrf.mxu1  ;;  %8293 = vmatprep.subr.bf16.mxu1 %v8582_v55 }
 0x6bf   : > { %v6198_v61 = vpack.c.bf16 %v6145_v49, %v6144_v24  ;;  %v5913_v39 = vadd.f32 %v8170_v17, %v12333_v44  ;;  %v6084_v21 = vadd.f32 %v5902_v33, %v13349_v50  ;;  %v6150_v46 = vmax.f32 %v6086_v60, 0.0  ;;  %v8583_v17 = vld [vmem:[%s12798_s15 + $0x18] sm:$0xff]  }
 0x6c0   : > { %v5904_v47 = vpop.f32.mrf.mxu1 }
 0x6c1   : > { %8243 = vmatprep.mubr.bf16.mxu0 %v6198_v61  ;;  %v6087_v12 = vadd.f32 %v5913_v39, %v13350_v1  ;;  %v5905_v54 = vadd.f32 %v12333_v44, %v5904_v47  ;;  %v6148_v42 = vmax.f32 %v6084_v21, 0.0  ;;  %v13357_v61 = vmax.f32 %v12037_v9, 0.0  ;;  %8294 = vmatpush3.bf16.msra.mxu1 %v8582_v55  ;;  %v8584_v9 = vld [vmem:[%s12798_s15 + $0x10] sm:$0xff]  }
 0x6c2   : > { %8244 = vmatmul.mubr.bf16.gmra.mxu0 %v6199_v53  ;;  %v13358_v53 = vmax.f32 %v12043_v19, 0.0  ;;  %v13359_v21 = vmax.f32 %v12040_v38, 0.0  ;;  %8295 = vmatprep.subr.bf16.mxu1 %v8583_v17 }
 0x6c3   : > { %v6085_v28 = vadd.f32 %v5905_v54, %v13352_v7  ;;  %v6151_v59 = vmax.f32 %v6087_v12, 0.0  ;;  %v8173_v22 = vpop.f32.mrf.mxu1  ;;  %v13360_v12 = vmax.f32 %v12046_v32, 0.0 }
 0x6c4   : > { %v5926_v43 = vadd.f32 %v8173_v22, %v12333_v44 }
 0x6c5   : > { %v6149_v10 = vmax.f32 %v6085_v28, 0.0  ;;  %v5917_v51 = vpop.f32.mrf.mxu1  ;;  %v6201_v58 = vpack.c.bf16 %v6151_v59, %v6150_v46  ;;  %8296 = vmatpush3.bf16.msra.mxu1 %v8583_v17 }
 0x6c6   : > { %v5918_v20 = vadd.f32 %v12333_v44, %v5917_v51  ;;  %v6090_v5 = vadd.f32 %v5926_v43, %v13355_v25  ;;  %8297 = vmatprep.subr.bf16.mxu1 %v8584_v9 }
 0x6c7   : > { %v6200_v57 = vpack.c.bf16 %v6149_v10, %v6148_v42  ;;  %v8174_v27 = vpop.f32.mrf.mxu1 }
 0x6c8   : > { %v5929_v14 = vadd.f32 %v8174_v27, %v12333_v44  ;;  %v6088_v56 = vadd.f32 %v5918_v20, %v13353_v41  ;;  %v6154_v40 = vmax.f32 %v6090_v5, 0.0  ;;  %v13364_v41 = vmax.f32 %v12076_v6, 0.0 }
 0x6c9   : > { %8247 = vmatprep.mubr.bf16.mxu0 %v6200_v57  ;;  %v5920_v2 = vpop.f32.mrf.mxu1  ;;  %8298 = vmatpush3.bf16.msra.mxu1 %v8584_v9  ;;  %v13361_v57 = vmax.f32 %v12070_v31, 0.0 }
 0x6ca   : > { %8248 = vmatmul.mubr.bf16.gmra.mxu0 %v6201_v58  ;;  %v6091_v63 = vadd.f32 %v5929_v14, %v13354_v30  ;;  %v5921_v8 = vadd.f32 %v12333_v44, %v5920_v2  ;;  %v6152_v3 = vmax.f32 %v6088_v56, 0.0  ;;  %8299 = vmatprep.subr.bf16.mxu1 %v8585_v37  ;;  %v13362_v58 = vmax.f32 %v12073_v4, 0.0 }
 0x6cb   : > { %v13363_v14 = vmax.f32 %v12067_v35, 0.0 }
 0x6cc   : > { %v6089_v13 = vadd.f32 %v5921_v8, %v13356_v26  ;;  %v6155_v11 = vmax.f32 %v6091_v63, 0.0  ;;  %v8586_v63 = vld [vmem:[%s12798_s15] sm:$0xff]  }
 0x6cd   : > { %8300 = vmatpush3.bf16.msra.mxu1 %v8585_v37 }
 0x6ce   : > { %v8177_v0 = vpop.f32.mrf.mxu1  ;;  %v6153_v36 = vmax.f32 %v6089_v13, 0.0  ;;  %v6203_v45 = vpack.c.bf16 %v6155_v11, %v6154_v40  ;;  %8301 = vmatprep.subr.bf16.mxu1 %v8586_v63  ;;  %v13366_v40 = vmax.f32 %v12101_v48, 0.0 }
 0x6cf   : > { %v5942_v49 = vadd.f32 %v8177_v0, %v12333_v44 }
 0x6d0   : > { %v5933_v34 = vpop.f32.mrf.mxu1  ;;  %v6202_v62 = vpack.c.bf16 %v6153_v36, %v6152_v3  ;;  %v13365_v3 = vmax.f32 %v12094_v18, 0.0 }
 0x6d1   : > { %v5934_v24 = vadd.f32 %v12333_v44, %v5933_v34  ;;  %v6094_v1 = vadd.f32 %v5942_v49, %v13359_v21  ;;  %8302 = vmatpush3.bf16.msra.mxu1 %v8586_v63  ;;  %v13368_v49 = vld [vmem:[#allocation38_spill] sm:$0xff] }
 0x6d2   : > { %v8178_v23 = vpop.f32.mrf.mxu1  ;;  %8251 = vmatprep.mubr.bf16.mxu0 %v6202_v62 }
 0x6d3   : > { %v5945_v33 = vadd.f32 %v8178_v23, %v12333_v44  ;;  %8252 = vmatmul.mubr.bf16.gmra.mxu0 %v6203_v45  ;;  %v6092_v39 = vadd.f32 %v5934_v24, %v13357_v61  ;;  %v6158_v28 = vmax.f32 %v6094_v1, 0.0  ;;  %v13367_v24 = vmax.f32 %v12098_v52, 0.0 }
 0x6d4   : > { %v5936_v29 = vpop.f32.mrf.mxu1  ;;  %v13369_v23 = vmax.f32 %v13368_v49, 0.0 }
 0x6d5   : > { %v6095_v47 = vadd.f32 %v5945_v33, %v13358_v53  ;;  %v5937_v50 = vadd.f32 %v12333_v44, %v5936_v29  ;;  %v6156_v60 = vmax.f32 %v6092_v39, 0.0 }
 0x6d7   : > { %v6093_v54 = vadd.f32 %v5937_v50, %v13360_v12  ;;  %v6159_v15 = vmax.f32 %v6095_v47, 0.0  ;;  %v13370_v12 = vld [vmem:[#allocation40_spill] sm:$0xff] }
 0x6d9   : > { %v6157_v7 = vmax.f32 %v6093_v54, 0.0  ;;  %v6205_v59 = vpack.c.bf16 %v6159_v15, %v6158_v28  ;;  %v13371_v54 = vmax.f32 %v13370_v12, 0.0 }
 0x6db   : > { %v6204_v19 = vpack.c.bf16 %v6157_v7, %v6156_v60  ;;  %v13372_v60 = vld [vmem:[#allocation43_spill] sm:$0xff] }
 0x6dc   : > { %v13373_v7 = vmax.f32 %v13372_v60, 0.0 }
 0x6dd   : > { %8255 = vmatprep.mubr.bf16.mxu0 %v6204_v19  ;;  %v13374_v19 = vld [vmem:[#allocation37_spill] sm:$0xff] }
 0x6de   : > { %v8181_v38 = vpop.f32.mrf.mxu1  ;;  %8256 = vmatmul.mubr.bf16.gmra.mxu0 %v6205_v59  ;;  %v13375_v59 = vmax.f32 %v13374_v19, 0.0 }
 0x6df   : > { %v5958_v42 = vadd.f32 %v8181_v38, %v12333_v44 }
 0x6e0   : > { %v5949_v22 = vpop.f32.mrf.mxu1 }
 0x6e1   : > { %v5950_v32 = vadd.f32 %v12333_v44, %v5949_v22  ;;  %v6098_v2 = vadd.f32 %v5958_v42, %v13363_v14  ;;  %v13376_v22 = vld [vmem:[#allocation42_spill] sm:$0xff] }
 0x6e2   : > { %v8182_v10 = vpop.f32.mrf.mxu1 }
 0x6e3   : > { %v5961_v46 = vadd.f32 %v8182_v10, %v12333_v44  ;;  %v6096_v20 = vadd.f32 %v5950_v32, %v13361_v57  ;;  %v6162_v31 = vmax.f32 %v6098_v2, 0.0  ;;  %v13377_v32 = vmax.f32 %v13376_v22, 0.0 }
 0x6e4   : > { %v5952_v51 = vpop.f32.mrf.mxu1 }
 0x6e5   : > { %v6099_v43 = vadd.f32 %v5961_v46, %v13362_v58  ;;  %v5953_v27 = vadd.f32 %v12333_v44, %v5952_v51  ;;  %v6160_v8 = vmax.f32 %v6096_v20, 0.0 }
 0x6e7   : > { %v6097_v56 = vadd.f32 %v5953_v27, %v13364_v41  ;;  %v6163_v30 = vmax.f32 %v6099_v43, 0.0 }
 0x6e9   : > { %v6161_v25 = vmax.f32 %v6097_v56, 0.0  ;;  %v6207_v4 = vpack.c.bf16 %v6163_v30, %v6162_v31  ;;  %v13378_v30 = vld [vmem:[#allocation41_spill] sm:$0xff] }
 0x6ea   : > { %v13379_v63 = vmax.f32 %v13378_v30, 0.0 }
 0x6eb   : > { %v6206_v5 = vpack.c.bf16 %v6161_v25, %v6160_v8  ;;  %v13380_v25 = vld [vmem:[#allocation44_spill] sm:$0xff] }
 0x6ec   : > { %v13381_v31 = vmax.f32 %v13380_v25, 0.0 }
 0x6ed   : > { %8259 = vmatprep.mubr.bf16.mxu0 %v6206_v5 }
 0x6ee   : > { %8260 = vmatmul.mubr.bf16.gmra.mxu0 %v6207_v4 }
 0x6f1   : > { %v8185_v26 = vpop.f32.mrf.mxu1 }
 0x6f2   : > { %v5974_v6 = vadd.f32 %v8185_v26, %v12333_v44  ;;  %v13382_v26 = vld [vmem:[#allocation47_spill] sm:$0xff] }
 0x6f3   : > { %v5965_v35 = vpop.f32.mrf.mxu1 }
 0x6f4   : > { %v5966_v13 = vadd.f32 %v12333_v44, %v5965_v35  ;;  %v6102_v45 = vadd.f32 %v5974_v6, %v13367_v24  ;;  %v13383_v35 = vmax.f32 %v13382_v26, 0.0  ;;  %v13384_v6 = vld [vmem:[#allocation46_spill] sm:$0xff] }
 0x6f5   : > { %v8186_v11 = vpop.f32.mrf.mxu1 }
 0x6f6   : > { %v5977_v0 = vadd.f32 %v8186_v11, %v12333_v44  ;;  %v6100_v36 = vadd.f32 %v5966_v13, %v13365_v3  ;;  %v6166_v61 = vmax.f32 %v6102_v45, 0.0  ;;  %v13385_v11 = vmax.f32 %v13384_v6, 0.0 }
 0x6f7   : > { %v5968_v16 = vpop.f32.mrf.mxu1 }
 0x6f8   : > { %v6103_v34 = vadd.f32 %v5977_v0, %v13366_v40  ;;  %v5969_v62 = vadd.f32 %v12333_v44, %v5968_v16  ;;  %v6164_v55 = vmax.f32 %v6100_v36, 0.0 }
 0x6fa   : > { %v6101_v33 = vadd.f32 %v5969_v62, %v13369_v23  ;;  %v6167_v29 = vmax.f32 %v6103_v34, 0.0 }
 0x6fc   : > { %v6165_v17 = vmax.f32 %v6101_v33, 0.0  ;;  %v6209_v53 = vpack.c.bf16 %v6167_v29, %v6166_v61 }
 0x6fe   : > { %v6208_v39 = vpack.c.bf16 %v6165_v17, %v6164_v55  ;;  %v13386_v17 = vld [vmem:[#allocation45_spill] sm:$0xff] }
 0x6ff   : > { %v13387_v61 = vmax.f32 %v13386_v17, 0.0 }
 0x700   : > { %8263 = vmatprep.mubr.bf16.mxu0 %v6208_v39 }
 0x701   : > { %8264 = vmatmul.mubr.bf16.gmra.mxu0 %v6209_v53  ;;  %v13388_v53 = vld [vmem:[#allocation48_spill] sm:$0xff] }
 0x706   : > { %v8189_v18 = vpop.f32.mrf.mxu1 }
 0x707   : > { %v5990_v50 = vadd.f32 %v8189_v18, %v12333_v44  ;;  %v13389_v18 = vmax.f32 %v13388_v53, 0.0 }
 0x708   : > { %v5981_v47 = vpop.f32.mrf.mxu1 }
 0x709   : > { %v5982_v48 = vadd.f32 %v12333_v44, %v5981_v47  ;;  %v6106_v38 = vadd.f32 %v5990_v50, %v13375_v59  ;;  %v13390_v50 = vld [vmem:[#allocation51_spill] sm:$0xff] }
 0x70a   : > { %v8190_v21 = vpop.f32.mrf.mxu1 }
 0x70b   : > { %v5993_v52 = vadd.f32 %v8190_v21, %v12333_v44  ;;  %v6104_v15 = vadd.f32 %v5982_v48, %v13371_v54  ;;  %v6170_v51 = vmax.f32 %v6106_v38, 0.0  ;;  %v13391_v21 = vmax.f32 %v13390_v50, 0.0 }
 0x70c   : > { %v5984_v1 = vpop.f32.mrf.mxu1 }
 0x70d   : > { %v6107_v28 = vadd.f32 %v5993_v52, %v13373_v7  ;;  %v5985_v9 = vadd.f32 %v12333_v44, %v5984_v1  ;;  %v6168_v10 = vmax.f32 %v6104_v15, 0.0  ;;  %v13392_v1 = vld [vmem:[#allocation50_spill] sm:$0xff] }
 0x70e   : > { %v13393_v12 = vmax.f32 %v13392_v1, 0.0  ;;  %v12554_v1 = vld [vmem:[%s12797_s14] ss:$0 sm:$0xff] }
 0x70f   : > { %v6105_v37 = vadd.f32 %v5985_v9, %v13377_v32  ;;  %v6171_v42 = vmax.f32 %v6107_v28, 0.0 }
 0x711   : > { %v6169_v46 = vmax.f32 %v6105_v37, 0.0  ;;  %v6211_v20 = vpack.c.bf16 %v6171_v42, %v6170_v51 }
 0x713   : > { %v6210_v57 = vpack.c.bf16 %v6169_v46, %v6168_v10  ;;  %v13394_v46 = vld [vmem:[#allocation49_spill] sm:$0xff] }
 0x714   : > { %v13395_v51 = vmax.f32 %v13394_v46, 0.0 }
 0x715   : > { %8267 = vmatprep.mubr.bf16.mxu0 %v6210_v57 }
 0x716   : > { %8268 = vmatmul.mubr.bf16.gmra.mxu0 %v6211_v20  ;;  %v13396_v20 = vld [vmem:[#allocation52_spill] sm:$0xff] }
 0x719   : > { %v8193_v58 = vpop.f32.mrf.mxu1 }
 0x71a   : > { %v6006_v14 = vadd.f32 %v8193_v58, %v12333_v44  ;;  %v13397_v58 = vmax.f32 %v13396_v20, 0.0 }
 0x71b   : > { %v5997_v43 = vpop.f32.mrf.mxu1 }
 0x71c   : > { %v5998_v27 = vadd.f32 %v12333_v44, %v5997_v43  ;;  %v6110_v13 = vadd.f32 %v6006_v14, %v13383_v35  ;;  %v13398_v14 = vld [vmem:[#allocation55_spill] sm:$0xff] }
 0x71d   : > { %v8194_v2 = vpop.f32.mrf.mxu1 }
 0x71e   : > { %v6009_v41 = vadd.f32 %v8194_v2, %v12333_v44  ;;  %v6108_v8 = vadd.f32 %v5998_v27, %v13379_v63  ;;  %v6174_v40 = vmax.f32 %v6110_v13, 0.0  ;;  %v13399_v2 = vmax.f32 %v13398_v14, 0.0 }
 0x71f   : > { %v6000_v56 = vpop.f32.mrf.mxu1 }
 0x720   : > { %v6111_v5 = vadd.f32 %v6009_v41, %v13381_v31  ;;  %v6001_v4 = vadd.f32 %v12333_v44, %v6000_v56  ;;  %v6172_v3 = vmax.f32 %v6108_v8, 0.0  ;;  %v13400_v56 = vld [vmem:[#allocation54_spill] sm:$0xff] }
 0x721   : > { %v13401_v30 = vmax.f32 %v13400_v56, 0.0 }
 0x722   : > { %v6109_v0 = vadd.f32 %v6001_v4, %v13385_v11  ;;  %v6175_v16 = vmax.f32 %v6111_v5, 0.0 }
 0x724   : > { %v6173_v36 = vmax.f32 %v6109_v0, 0.0  ;;  %v6213_v62 = vpack.c.bf16 %v6175_v16, %v6174_v40 }
 0x726   : > { %v6212_v34 = vpack.c.bf16 %v6173_v36, %v6172_v3  ;;  %v13402_v36 = vld [vmem:[#allocation53_spill] sm:$0xff] }
 0x727   : > { %v13403_v40 = vmax.f32 %v13402_v36, 0.0 }
 0x728   : > { %8271 = vmatprep.mubr.bf16.mxu0 %v6212_v34 }
 0x729   : > { %v8197_v24 = vpop.f32.mrf.mxu1  ;;  %8272 = vmatmul.mubr.bf16.gmra.mxu0 %v6213_v62  ;;  %v13404_v62 = vld [vmem:[#allocation56_spill] sm:$0xff] }
 0x72a   : > { %v6022_v23 = vadd.f32 %v8197_v24, %v12333_v44  ;;  %v13405_v24 = vmax.f32 %v13404_v62, 0.0 }
 0x72b   : > { %v6013_v45 = vpop.f32.mrf.mxu1 }
 0x72c   : > { %v6014_v49 = vadd.f32 %v12333_v44, %v6013_v45  ;;  %v6114_v52 = vadd.f32 %v6022_v23, %v13391_v21  ;;  %v13406_v23 = vld [vmem:[#allocation59_spill] sm:$0xff] }
 0x72d   : > { %v8198_v33 = vpop.f32.mrf.mxu1 }
 0x72e   : > { %v6025_v29 = vadd.f32 %v8198_v33, %v12333_v44  ;;  %v6112_v39 = vadd.f32 %v6014_v49, %v13387_v61  ;;  %v6178_v28 = vmax.f32 %v6114_v52, 0.0  ;;  %v13407_v33 = vmax.f32 %v13406_v23, 0.0 }
 0x72f   : > { %v6016_v55 = vpop.f32.mrf.mxu1 }
 0x730   : > { %v6115_v47 = vadd.f32 %v6025_v29, %v13389_v18  ;;  %v6017_v48 = vadd.f32 %v12333_v44, %v6016_v55  ;;  %v6176_v60 = vmax.f32 %v6112_v39, 0.0  ;;  %v13408_v55 = vld [vmem:[#allocation58_spill] sm:$0xff] }
 0x731   : > { %v13409_v17 = vmax.f32 %v13408_v55, 0.0 }
 0x732   : > { %v6113_v54 = vadd.f32 %v6017_v48, %v13393_v12  ;;  %v6179_v15 = vmax.f32 %v6115_v47, 0.0 }
 0x734   : > { %v6177_v7 = vmax.f32 %v6113_v54, 0.0  ;;  %v6215_v19 = vpack.c.bf16 %v6179_v15, %v6178_v28 }
 0x736   : > { %v6214_v9 = vpack.c.bf16 %v6177_v7, %v6176_v60 }
 0x738   : > { %8275 = vmatprep.mubr.bf16.mxu0 %v6214_v9 }
 0x739   : > { %8276 = vmatmul.mubr.bf16.gmra.mxu0 %v6215_v19  ;;  %v8201_v59 = vpop.f32.mrf.mxu1 }
 0x73a   : > { %v6038_v32 = vadd.f32 %v8201_v59, %v12333_v44 }
 0x73b   : > { %v6029_v38 = vpop.f32.mrf.mxu1 }
 0x73c   : > { %v6030_v22 = vadd.f32 %v12333_v44, %v6029_v38  ;;  %v6118_v41 = vadd.f32 %v6038_v32, %v13399_v2 }
 0x73d   : > { %v8202_v37 = vpop.f32.mrf.mxu1 }
 0x73e   : > { %v6041_v42 = vadd.f32 %v8202_v37, %v12333_v44  ;;  %v6116_v57 = vadd.f32 %v6030_v22, %v13395_v51  ;;  %v6182_v5 = vmax.f32 %v6118_v41, 0.0 }
 0x73f   : > { %v6032_v10 = vpop.f32.mrf.mxu1 }
 0x740   : > { %v6119_v43 = vadd.f32 %v6041_v42, %v13397_v58  ;;  %v6033_v27 = vadd.f32 %v12333_v44, %v6032_v10  ;;  %v6180_v25 = vmax.f32 %v6116_v57, 0.0 }
 0x742   : > { %v6117_v63 = vadd.f32 %v6033_v27, %v13401_v30  ;;  %v6183_v8 = vmax.f32 %v6119_v43, 0.0 }
 0x744   : > { %v6181_v31 = vmax.f32 %v6117_v63, 0.0  ;;  %v6217_v26 = vpack.c.bf16 %v6183_v8, %v6182_v5 }
 0x746   : > { %v6216_v4 = vpack.c.bf16 %v6181_v31, %v6180_v25 }
 0x748   : > { %8279 = vmatprep.mubr.bf16.mxu0 %v6216_v4 }
 0x749   : > { %v8205_v35 = vpop.f32.mrf.mxu1  ;;  %8280 = vmatmul.mubr.bf16.gmra.mxu0 %v6217_v26 }
 0x74a   : > { %v6054_v11 = vadd.f32 %v8205_v35, %v12333_v44 }
 0x74b   : > { %v6045_v13 = vpop.f32.mrf.mxu1 }
 0x74c   : > { %v6046_v6 = vadd.f32 %v12333_v44, %v6045_v13  ;;  %v6122_v29 = vadd.f32 %v6054_v11, %v13407_v33 }
 0x74d   : > { %v8206_v0 = vpop.f32.mrf.mxu1 }
 0x74e   : > { %v6057_v16 = vadd.f32 %v8206_v0, %v12333_v44  ;;  %v6120_v34 = vadd.f32 %v6046_v6, %v13403_v40  ;;  %v6186_v47 = vmax.f32 %v6122_v29, 0.0 }
 0x74f   : > { %v6048_v3 = vpop.f32.mrf.mxu1 }
 0x750   : > { %v6123_v45 = vadd.f32 %v6057_v16, %v13405_v24  ;;  %v6049_v49 = vadd.f32 %v12333_v44, %v6048_v3  ;;  %v6184_v53 = vmax.f32 %v6120_v34, 0.0 }
 0x752   : > { %v6121_v61 = vadd.f32 %v6049_v49, %v13409_v17  ;;  %v6187_v39 = vmax.f32 %v6123_v45, 0.0 }
 0x754   : > { %v6185_v18 = vmax.f32 %v6121_v61, 0.0  ;;  %v6219_v21 = vpack.c.bf16 %v6187_v39, %v6186_v47 }
 0x755   : > { %v8225_v48 = vpop.f32.mrf.mxu0 }
 0x756   : > { %v6218_v50 = vpack.c.bf16 %v6185_v18, %v6184_v53  ;;  %v6334_v15 = vadd.f32 %v8225_v48, %v12554_v1 }
 0x757   : > { %v6325_v52 = vpop.f32.mrf.mxu0 }
 0x758   : > { %8283 = vmatprep.mubr.bf16.mxu0 %v6218_v50  ;;  %v6326_v12 = vadd.f32 %v12554_v1, %v6325_v52  ;;  %v6582_v59 = vmax.f32 %v6334_v15, 0.0 }
 0x759   : > { %v8226_v44 = vpop.f32.mrf.mxu0  ;;  %8284 = vmatmul.mubr.bf16.gmra.mxu0 %v6219_v21 }
 0x75a   : > { %v6337_v54 = vadd.f32 %v8226_v44, %v12554_v1  ;;  %v6580_v9 = vmax.f32 %v6326_v12, 0.0 }
 0x75b   : > { %v6328_v60 = vpop.f32.mrf.mxu0 }
 0x75c   : > { %v6329_v7 = vadd.f32 %v12554_v1, %v6328_v60  ;;  %v6583_v28 = vmax.f32 %v6337_v54, 0.0 }
 0x75e   : > { %v6581_v19 = vmax.f32 %v6329_v7, 0.0  ;;  %v6645_v22 = vpack.c.bf16 %v6583_v28, %v6582_v59 }
 0x760   : > { %v6644_v38 = vpack.c.bf16 %v6581_v19, %v6580_v9 }
 0x762   : > { %v8229_v32 = vpop.f32.mrf.mxu0  ;;  %8303 = vmatprep.mubr.bf16.mxu1 %v6644_v38 }
 0x763   : > { %8304 = vmatmul.mubr.bf16.vlgmr.msra.gmra.mxu1 %v6645_v22  ;;  %v6350_v51 = vadd.f32 %v8229_v32, %v12554_v1 }
 0x764   : > { %v6341_v37 = vpop.f32.mrf.mxu0 }
 0x765   : > { %v6342_v10 = vadd.f32 %v12554_v1, %v6341_v37  ;;  %v6586_v2 = vmax.f32 %v6350_v51, 0.0 }
 0x766   : > { %v8230_v42 = vpop.f32.mrf.mxu0 }
 0x767   : > { %v6353_v46 = vadd.f32 %v8230_v42, %v12554_v1  ;;  %v6584_v27 = vmax.f32 %v6342_v10, 0.0 }
 0x768   : > { %v6344_v57 = vpop.f32.mrf.mxu0 }
 0x769   : > { %v6345_v20 = vadd.f32 %v12554_v1, %v6344_v57  ;;  %v6587_v58 = vmax.f32 %v6353_v46, 0.0 }
 0x76a   : > { %v8233_v43 = vpop.f32.mrf.mxu0 }
 0x76b   : > { %v6585_v14 = vmax.f32 %v6345_v20, 0.0  ;;  %v6647_v30 = vpack.c.bf16 %v6587_v58, %v6586_v2  ;;  %v6366_v31 = vadd.f32 %v8233_v43, %v12554_v1 }
 0x76c   : > { %v6357_v41 = vpop.f32.mrf.mxu0 }
 0x76d   : > { %v6646_v56 = vpack.c.bf16 %v6585_v14, %v6584_v27  ;;  %v6358_v8 = vadd.f32 %v12554_v1, %v6357_v41  ;;  %v6590_v11 = vmax.f32 %v6366_v31, 0.0 }
 0x76e   : > { %v8234_v63 = vpop.f32.mrf.mxu0 }
 0x76f   : > { %v6369_v25 = vadd.f32 %v8234_v63, %v12554_v1  ;;  %8307 = vmatprep.mubr.bf16.mxu1 %v6646_v56  ;;  %v6588_v13 = vmax.f32 %v6358_v8, 0.0 }
 0x770   : > { %v6360_v5 = vpop.f32.mrf.mxu0  ;;  %8308 = vmatmul.mubr.bf16.gmra.mxu1 %v6647_v30 }
 0x771   : > { %v6361_v4 = vadd.f32 %v12554_v1, %v6360_v5  ;;  %v6591_v26 = vmax.f32 %v6369_v25, 0.0 }
 0x772   : > { %v8237_v35 = vpop.f32.mrf.mxu0 }
 0x773   : > { %v6589_v6 = vmax.f32 %v6361_v4, 0.0  ;;  %v6649_v3 = vpack.c.bf16 %v6591_v26, %v6590_v11  ;;  %v6382_v62 = vadd.f32 %v8237_v35, %v12554_v1 }
 0x774   : > { %v6373_v0 = vpop.f32.mrf.mxu0 }
 0x775   : > { %v6648_v16 = vpack.c.bf16 %v6589_v6, %v6588_v13  ;;  %v6374_v40 = vadd.f32 %v12554_v1, %v6373_v0  ;;  %v6594_v55 = vmax.f32 %v6382_v62, 0.0 }
 0x776   : > { %v8238_v36 = vpop.f32.mrf.mxu0 }
 0x777   : > { %v6385_v34 = vadd.f32 %v8238_v36, %v12554_v1  ;;  %8311 = vmatprep.mubr.bf16.mxu1 %v6648_v16  ;;  %v6592_v33 = vmax.f32 %v6374_v40, 0.0 }
 0x778   : > { %v6376_v24 = vpop.f32.mrf.mxu0  ;;  %8312 = vmatmul.mubr.bf16.gmra.mxu1 %v6649_v3 }
 0x779   : > { %v6377_v45 = vadd.f32 %v12554_v1, %v6376_v24  ;;  %v6595_v49 = vmax.f32 %v6385_v34, 0.0 }
 0x77a   : > { %v8241_v23 = vpop.f32.mrf.mxu0 }
 0x77b   : > { %v6593_v29 = vmax.f32 %v6377_v45, 0.0  ;;  %v6651_v39 = vpack.c.bf16 %v6595_v49, %v6594_v55  ;;  %v6398_v48 = vadd.f32 %v8241_v23, %v12554_v1 }
 0x77c   : > { %v6389_v17 = vpop.f32.mrf.mxu0 }
 0x77d   : > { %v6650_v61 = vpack.c.bf16 %v6593_v29, %v6592_v33  ;;  %v6390_v18 = vadd.f32 %v12554_v1, %v6389_v17  ;;  %v6598_v15 = vmax.f32 %v6398_v48, 0.0 }
 0x77e   : > { %v8242_v53 = vpop.f32.mrf.mxu0 }
 0x77f   : > { %v6401_v47 = vadd.f32 %v8242_v53, %v12554_v1  ;;  %8315 = vmatprep.mubr.bf16.mxu1 %v6650_v61  ;;  %v6596_v12 = vmax.f32 %v6390_v18, 0.0 }
 0x780   : > { %v6392_v50 = vpop.f32.mrf.mxu0  ;;  %8316 = vmatmul.mubr.bf16.gmra.mxu1 %v6651_v39 }
 0x781   : > { %v6393_v21 = vadd.f32 %v12554_v1, %v6392_v50  ;;  %v6599_v52 = vmax.f32 %v6401_v47, 0.0 }
 0x782   : > { %v8245_v44 = vpop.f32.mrf.mxu0 }
 0x783   : > { %v6597_v54 = vmax.f32 %v6393_v21, 0.0  ;;  %v6653_v28 = vpack.c.bf16 %v6599_v52, %v6598_v15  ;;  %v6414_v38 = vadd.f32 %v8245_v44, %v12554_v1 }
 0x784   : > { %v6405_v60 = vpop.f32.mrf.mxu0 }
 0x785   : > { %v6652_v7 = vpack.c.bf16 %v6597_v54, %v6596_v12  ;;  %v6406_v19 = vadd.f32 %v12554_v1, %v6405_v60  ;;  %v6602_v51 = vmax.f32 %v6414_v38, 0.0 }
 0x786   : > { %v8246_v9 = vpop.f32.mrf.mxu0 }
 0x787   : > { %v6417_v59 = vadd.f32 %v8246_v9, %v12554_v1  ;;  %8319 = vmatprep.mubr.bf16.mxu1 %v6652_v7  ;;  %v6600_v10 = vmax.f32 %v6406_v19, 0.0 }
 0x788   : > { %v6408_v22 = vpop.f32.mrf.mxu0  ;;  %8320 = vmatmul.mubr.bf16.gmra.mxu1 %v6653_v28 }
 0x789   : > { %v6409_v32 = vadd.f32 %v12554_v1, %v6408_v22  ;;  %v6603_v37 = vmax.f32 %v6417_v59, 0.0 }
 0x78a   : > { %v8249_v42 = vpop.f32.mrf.mxu0 }
 0x78b   : > { %v6601_v46 = vmax.f32 %v6409_v32, 0.0  ;;  %v6655_v58 = vpack.c.bf16 %v6603_v37, %v6602_v51  ;;  %v6430_v2 = vadd.f32 %v8249_v42, %v12554_v1 }
 0x78c   : > { %v6421_v57 = vpop.f32.mrf.mxu0 }
 0x78d   : > { %v6654_v20 = vpack.c.bf16 %v6601_v46, %v6600_v10  ;;  %v6422_v27 = vadd.f32 %v12554_v1, %v6421_v57  ;;  %v6606_v25 = vmax.f32 %v6430_v2, 0.0 }
 0x78e   : > { %v8250_v43 = vpop.f32.mrf.mxu0 }
 0x78f   : > { %8323 = vmatprep.mubr.bf16.mxu1 %v6654_v20  ;;  %v6433_v14 = vadd.f32 %v8250_v43, %v12554_v1  ;;  %v6604_v63 = vmax.f32 %v6422_v27, 0.0 }
 0x790   : > { %8324 = vmatmul.mubr.bf16.gmra.mxu1 %v6655_v58  ;;  %v6424_v41 = vpop.f32.mrf.mxu0 }
 0x791   : > { %v6425_v56 = vadd.f32 %v12554_v1, %v6424_v41  ;;  %v6607_v30 = vmax.f32 %v6433_v14, 0.0 }
 0x793   : > { %v6605_v8 = vmax.f32 %v6425_v56, 0.0  ;;  %v8253_v31 = vpop.f32.mrf.mxu0  ;;  %v6657_v4 = vpack.c.bf16 %v6607_v30, %v6606_v25 }
 0x794   : > { %v6446_v11 = vadd.f32 %v8253_v31, %v12554_v1 }
 0x795   : > { %v6656_v5 = vpack.c.bf16 %v6605_v8, %v6604_v63  ;;  %v6437_v26 = vpop.f32.mrf.mxu0 }
 0x796   : > { %v6438_v13 = vadd.f32 %v12554_v1, %v6437_v26  ;;  %v6610_v34 = vmax.f32 %v6446_v11, 0.0 }
 0x797   : > { %8327 = vmatprep.mubr.bf16.mxu1 %v6656_v5  ;;  %v8254_v35 = vpop.f32.mrf.mxu0 }
 0x798   : > { %8328 = vmatmul.mubr.bf16.gmra.mxu1 %v6657_v4  ;;  %v6449_v6 = vadd.f32 %v8254_v35, %v12554_v1  ;;  %v6608_v36 = vmax.f32 %v6438_v13, 0.0 }
 0x799   : > { %v6440_v0 = vpop.f32.mrf.mxu0 }
 0x79a   : > { %v6441_v16 = vadd.f32 %v12554_v1, %v6440_v0  ;;  %v6611_v3 = vmax.f32 %v6449_v6, 0.0 }
 0x79c   : > { %v6609_v40 = vmax.f32 %v6441_v16, 0.0  ;;  %v6659_v45 = vpack.c.bf16 %v6611_v3, %v6610_v34 }
 0x79e   : > { %v8257_v62 = vpop.f32.mrf.mxu0  ;;  %v6658_v24 = vpack.c.bf16 %v6609_v40, %v6608_v36 }
 0x79f   : > { %v6462_v55 = vadd.f32 %v8257_v62, %v12554_v1 }
 0x7a0   : > { %v6453_v49 = vpop.f32.mrf.mxu0  ;;  %8331 = vmatprep.mubr.bf16.mxu1 %v6658_v24 }
 0x7a1   : > { %8332 = vmatmul.mubr.bf16.gmra.mxu1 %v6659_v45  ;;  %v6454_v33 = vadd.f32 %v12554_v1, %v6453_v49  ;;  %v6614_v47 = vmax.f32 %v6462_v55, 0.0 }
 0x7a2   : > { %v8258_v23 = vpop.f32.mrf.mxu0 }
 0x7a3   : > { %v6465_v29 = vadd.f32 %v8258_v23, %v12554_v1  ;;  %v6612_v53 = vmax.f32 %v6454_v33, 0.0 }
 0x7a4   : > { %v6456_v17 = vpop.f32.mrf.mxu0 }
 0x7a5   : > { %v6457_v61 = vadd.f32 %v12554_v1, %v6456_v17  ;;  %v6615_v39 = vmax.f32 %v6465_v29, 0.0 }
 0x7a7   : > { %v6613_v18 = vmax.f32 %v6457_v61, 0.0  ;;  %v6661_v50 = vpack.c.bf16 %v6615_v39, %v6614_v47 }
 0x7a9   : > { %v6660_v48 = vpack.c.bf16 %v6613_v18, %v6612_v53 }
 0x7ab   : > { %8335 = vmatprep.mubr.bf16.mxu1 %v6660_v48 }
 0x7ac   : > { %8336 = vmatmul.mubr.bf16.gmra.mxu1 %v6661_v50 }
 0x7ae   : > { %v8261_v21 = vpop.f32.mrf.mxu0 }
 0x7af   : > { %v6478_v15 = vadd.f32 %v8261_v21, %v12554_v1 }
 0x7b0   : > { %v6469_v52 = vpop.f32.mrf.mxu0 }
 0x7b1   : > { %v6470_v12 = vadd.f32 %v12554_v1, %v6469_v52  ;;  %v6618_v59 = vmax.f32 %v6478_v15, 0.0 }
 0x7b2   : > { %v8262_v44 = vpop.f32.mrf.mxu0 }
 0x7b3   : > { %v6481_v54 = vadd.f32 %v8262_v44, %v12554_v1  ;;  %v6616_v9 = vmax.f32 %v6470_v12, 0.0 }
 0x7b4   : > { %v6472_v60 = vpop.f32.mrf.mxu0 }
 0x7b5   : > { %v6473_v7 = vadd.f32 %v12554_v1, %v6472_v60  ;;  %v6619_v28 = vmax.f32 %v6481_v54, 0.0 }
 0x7b7   : > { %v6617_v19 = vmax.f32 %v6473_v7, 0.0  ;;  %v6663_v22 = vpack.c.bf16 %v6619_v28, %v6618_v59  ;;  %v9427_v7 = vmov 0.0  }
 0x7b8   : > { %8367 = vmatprep.subr.bf16.mxu0 %v9427_v7  ;;  %8383 = vmatprep.mubr.msk.bf16.mxu0 %vm9428_vm5, %v9427_v7 }
 0x7b9   : > { %v6662_v38 = vpack.c.bf16 %v6617_v19, %v6616_v9 }
 0x7bb   : > { %8339 = vmatprep.mubr.bf16.mxu1 %v6662_v38 }
 0x7bc   : > { %8340 = vmatmul.mubr.bf16.gmra.mxu1 %v6663_v22 }
 0x7c1   : > { %v8265_v32 = vpop.f32.mrf.mxu0 }
 0x7c2   : > { %v6494_v51 = vadd.f32 %v8265_v32, %v12554_v1 }
 0x7c3   : > { %v6485_v37 = vpop.f32.mrf.mxu0 }
 0x7c4   : > { %v6486_v10 = vadd.f32 %v12554_v1, %v6485_v37  ;;  %v6622_v14 = vmax.f32 %v6494_v51, 0.0 }
 0x7c5   : > { %v8266_v42 = vpop.f32.mrf.mxu0 }
 0x7c6   : > { %v6497_v46 = vadd.f32 %v8266_v42, %v12554_v1  ;;  %v6620_v43 = vmax.f32 %v6486_v10, 0.0 }
 0x7c7   : > { %v6488_v57 = vpop.f32.mrf.mxu0 }
 0x7c8   : > { %v6489_v20 = vadd.f32 %v12554_v1, %v6488_v57  ;;  %v6623_v58 = vmax.f32 %v6497_v46, 0.0 }
 0x7ca   : > { %v6621_v27 = vmax.f32 %v6489_v20, 0.0  ;;  %v6665_v41 = vpack.c.bf16 %v6623_v58, %v6622_v14 }
 0x7cc   : > { %v6664_v2 = vpack.c.bf16 %v6621_v27, %v6620_v43 }
 0x7ce   : > { %8343 = vmatprep.mubr.bf16.mxu1 %v6664_v2 }
 0x7cf   : > { %8344 = vmatmul.mubr.bf16.gmra.mxu1 %v6665_v41  ;;  %v8587_v41 = vld [vmem:[%s12800_s17 + $0x38] sm:$0xff]  }
 0x7d0   : > { %8368 = vmatpush3.bf16.msra.mxu0 %v8587_v41 }
 0x7d1   : > { %8369 = vmatprep.subr.bf16.mxu0 %v9427_v7 }
 0x7d6   : > { %v8269_v56 = vpop.f32.mrf.mxu0 }
 0x7d7   : > { %v6510_v31 = vadd.f32 %v8269_v56, %v12554_v1 }
 0x7d8   : > { %v6501_v30 = vpop.f32.mrf.mxu0 }
 0x7d9   : > { %v6502_v8 = vadd.f32 %v12554_v1, %v6501_v30  ;;  %v6626_v6 = vmax.f32 %v6510_v31, 0.0 }
 0x7da   : > { %v8270_v63 = vpop.f32.mrf.mxu0 }
 0x7db   : > { %v6513_v25 = vadd.f32 %v8270_v63, %v12554_v1  ;;  %v6624_v35 = vmax.f32 %v6502_v8, 0.0  ;;  %v8588_v8 = vld [vmem:[%s12800_s17 + $0x30] sm:$0xff]  }
 0x7dc   : > { %v6504_v5 = vpop.f32.mrf.mxu0  ;;  %8370 = vmatpush3.bf16.msra.mxu0 %v8588_v8 }
 0x7dd   : > { %v6505_v4 = vadd.f32 %v12554_v1, %v6504_v5  ;;  %v6627_v26 = vmax.f32 %v6513_v25, 0.0  ;;  %8371 = vmatprep.subr.bf16.mxu0 %v9427_v7 }
 0x7df   : > { %v6625_v13 = vmax.f32 %v6505_v4, 0.0  ;;  %v6667_v0 = vpack.c.bf16 %v6627_v26, %v6626_v6 }
 0x7e1   : > { %v6666_v11 = vpack.c.bf16 %v6625_v13, %v6624_v35 }
 0x7e3   : > { %8347 = vmatprep.mubr.bf16.mxu1 %v6666_v11 }
 0x7e4   : > { %8348 = vmatmul.mubr.bf16.gmra.mxu1 %v6667_v0 }
 0x7e9   : > { %v8273_v16 = vpop.f32.mrf.mxu0 }
 0x7ea   : > { %v6526_v62 = vadd.f32 %v8273_v16, %v12554_v1 }
 0x7eb   : > { %v6517_v3 = vpop.f32.mrf.mxu0 }
 0x7ec   : > { %v6518_v40 = vadd.f32 %v12554_v1, %v6517_v3  ;;  %v6630_v29 = vmax.f32 %v6526_v62, 0.0 }
 0x7ed   : > { %v8274_v36 = vpop.f32.mrf.mxu0 }
 0x7ee   : > { %v6529_v34 = vadd.f32 %v8274_v36, %v12554_v1  ;;  %v6628_v23 = vmax.f32 %v6518_v40, 0.0 }
 0x7ef   : > { %v6520_v24 = vpop.f32.mrf.mxu0 }
 0x7f0   : > { %v6521_v45 = vadd.f32 %v12554_v1, %v6520_v24  ;;  %v6631_v49 = vmax.f32 %v6529_v34, 0.0 }
 0x7f2   : > { %v6629_v33 = vmax.f32 %v6521_v45, 0.0  ;;  %v6669_v17 = vpack.c.bf16 %v6631_v49, %v6630_v29 }
 0x7f4   : > { %v6668_v55 = vpack.c.bf16 %v6629_v33, %v6628_v23 }
 0x7f6   : > { %8351 = vmatprep.mubr.bf16.mxu1 %v6668_v55 }
 0x7f7   : > { %8352 = vmatmul.mubr.bf16.gmra.mxu1 %v6669_v17 }
 0x7f9   : > { %v8277_v61 = vpop.f32.mrf.mxu0 }
 0x7fa   : > { %v6542_v48 = vadd.f32 %v8277_v61, %v12554_v1 }
 0x7fb   : > { %v6533_v39 = vpop.f32.mrf.mxu0 }
 0x7fc   : > { %v6534_v18 = vadd.f32 %v12554_v1, %v6533_v39  ;;  %v6634_v54 = vmax.f32 %v6542_v48, 0.0 }
 0x7fd   : > { %v8278_v53 = vpop.f32.mrf.mxu0 }
 0x7fe   : > { %v6545_v47 = vadd.f32 %v8278_v53, %v12554_v1  ;;  %v6632_v44 = vmax.f32 %v6534_v18, 0.0 }
 0x7ff   : > { %v6536_v50 = vpop.f32.mrf.mxu0 }
 0x800   : > { %v6537_v21 = vadd.f32 %v12554_v1, %v6536_v50  ;;  %v6635_v52 = vmax.f32 %v6545_v47, 0.0 }
 0x802   : > { %v6633_v12 = vmax.f32 %v6537_v21, 0.0  ;;  %v6671_v60 = vpack.c.bf16 %v6635_v52, %v6634_v54 }
 0x804   : > { %v6670_v15 = vpack.c.bf16 %v6633_v12, %v6632_v44 }
 0x806   : > { %8355 = vmatprep.mubr.bf16.mxu1 %v6670_v15 }
 0x807   : > { %8356 = vmatmul.mubr.bf16.gmra.mxu1 %v6671_v60 }
 0x809   : > { %v8281_v28 = vpop.f32.mrf.mxu0 }
 0x80a   : > { %v6558_v22 = vadd.f32 %v8281_v28, %v12554_v1 }
 0x80b   : > { %v6549_v9 = vpop.f32.mrf.mxu0 }
 0x80c   : > { %v6550_v59 = vadd.f32 %v12554_v1, %v6549_v9  ;;  %v6638_v51 = vmax.f32 %v6558_v22, 0.0 }
 0x80d   : > { %v8282_v19 = vpop.f32.mrf.mxu0 }
 0x80e   : > { %v6561_v38 = vadd.f32 %v8282_v19, %v12554_v1  ;;  %v6636_v10 = vmax.f32 %v6550_v59, 0.0 }
 0x80f   : > { %v6552_v32 = vpop.f32.mrf.mxu0 }
 0x810   : > { %v6553_v37 = vadd.f32 %v12554_v1, %v6552_v32  ;;  %v6639_v42 = vmax.f32 %v6561_v38, 0.0 }
 0x812   : > { %v6637_v46 = vmax.f32 %v6553_v37, 0.0  ;;  %v6673_v20 = vpack.c.bf16 %v6639_v42, %v6638_v51 }
 0x814   : > { %v6672_v57 = vpack.c.bf16 %v6637_v46, %v6636_v10 }
 0x816   : > { %8359 = vmatprep.mubr.bf16.mxu1 %v6672_v57 }
 0x817   : > { %8360 = vmatmul.mubr.bf16.gmra.mxu1 %v6673_v20 }
 0x819   : > { %v8285_v58 = vpop.f32.mrf.mxu0 }
 0x81a   : > { %v6574_v56 = vadd.f32 %v8285_v58, %v12554_v1 }
 0x81b   : > { %v6565_v43 = vpop.f32.mrf.mxu0 }
 0x81c   : > { %v6566_v14 = vadd.f32 %v12554_v1, %v6565_v43  ;;  %v6642_v4 = vmax.f32 %v6574_v56, 0.0  ;;  %v8589_v56 = vld [vmem:[%s12800_s17 + $0x28] sm:$0xff]  }
 0x81d   : > { %v8286_v27 = vpop.f32.mrf.mxu0  ;;  %8372 = vmatpush3.bf16.msra.mxu0 %v8589_v56 }
 0x81e   : > { %v6577_v2 = vadd.f32 %v8286_v27, %v12554_v1  ;;  %v6640_v31 = vmax.f32 %v6566_v14, 0.0  ;;  %8373 = vmatprep.subr.bf16.mxu0 %v9427_v7 }
 0x81f   : > { %v6568_v30 = vpop.f32.mrf.mxu0 }
 0x820   : > { %v6569_v63 = vadd.f32 %v12554_v1, %v6568_v30  ;;  %v6643_v25 = vmax.f32 %v6577_v2, 0.0  ;;  %v12632_v1 = vld [vmem:[%s12799_s16] ss:$0 sm:$0xff] }
 0x822   : > { %v6641_v5 = vmax.f32 %v6569_v63, 0.0  ;;  %v6675_v13 = vpack.c.bf16 %v6643_v25, %v6642_v4  ;;  %v8590_v4 = vld [vmem:[%s12800_s17 + $0x20] sm:$0xff]  }
 0x823   : > { %v8305_v26 = vpop.f32.mrf.mxu1  ;;  %8374 = vmatpush3.bf16.msra.mxu0 %v8590_v4 }
 0x824   : > { %v6674_v35 = vpack.c.bf16 %v6641_v5, %v6640_v31  ;;  %v6790_v3 = vadd.f32 %v8305_v26, %v12632_v1  ;;  %8375 = vmatprep.subr.bf16.mxu0 %v9427_v7 }
 0x825   : > { %v6781_v6 = vpop.f32.mrf.mxu1 }
 0x826   : > { %8363 = vmatprep.mubr.bf16.mxu1 %v6674_v35  ;;  %v6782_v0 = vadd.f32 %v12632_v1, %v6781_v6  ;;  %v7038_v24 = vmax.f32 %v6790_v3, 0.0 }
 0x827   : > { %v8306_v11 = vpop.f32.mrf.mxu1  ;;  %8364 = vmatmul.mubr.bf16.gmra.mxu1 %v6675_v13 }
 0x828   : > { %v7036_v40 = vmax.f32 %v6782_v0, 0.0  ;;  %v6793_v34 = vadd.f32 %v8306_v11, %v12632_v1 }
 0x829   : > { %v6784_v16 = vpop.f32.mrf.mxu1 }
 0x82a   : > { %v6785_v36 = vadd.f32 %v12632_v1, %v6784_v16  ;;  %v7039_v49 = vmax.f32 %v6793_v34, 0.0 }
 0x82c   : > { %v7037_v62 = vmax.f32 %v6785_v36, 0.0 }
 0x82e   : > { %v7100_v45 = vadd.f32 %v7037_v62, %v7036_v40 }
 0x830   : > { %v7101_v23 = vadd.f32 %v7100_v45, %v7038_v24  ;;  %v8309_v33 = vpop.f32.mrf.mxu1 }
 0x831   : > { %v6806_v18 = vadd.f32 %v8309_v33, %v12632_v1 }
 0x832   : > { %v6797_v29 = vpop.f32.mrf.mxu1  ;;  %v7102_v55 = vadd.f32 %v7101_v23, %v7039_v49 }
 0x833   : > { %v6798_v17 = vadd.f32 %v12632_v1, %v6797_v29  ;;  %v7042_v12 = vmax.f32 %v6806_v18, 0.0 }
 0x834   : > { %v8310_v61 = vpop.f32.mrf.mxu1 }
 0x835   : > { %v7040_v39 = vmax.f32 %v6798_v17, 0.0  ;;  %v6809_v21 = vadd.f32 %v8310_v61, %v12632_v1 }
 0x836   : > { %v6800_v53 = vpop.f32.mrf.mxu1 }
 0x837   : > { %v7103_v47 = vadd.f32 %v7102_v55, %v7040_v39  ;;  %v6801_v48 = vadd.f32 %v12632_v1, %v6800_v53  ;;  %v7043_v60 = vmax.f32 %v6809_v21, 0.0 }
 0x838   : > { %v8313_v50 = vpop.f32.mrf.mxu1 }
 0x839   : > { %v7041_v52 = vmax.f32 %v6801_v48, 0.0  ;;  %v6822_v38 = vadd.f32 %v8313_v50, %v12632_v1 }
 0x83a   : > { %v6813_v44 = vpop.f32.mrf.mxu1 }
 0x83b   : > { %v7104_v54 = vadd.f32 %v7103_v47, %v7041_v52  ;;  %v6814_v9 = vadd.f32 %v12632_v1, %v6813_v44  ;;  %v7046_v57 = vmax.f32 %v6822_v38, 0.0 }
 0x83c   : > { %v8314_v15 = vpop.f32.mrf.mxu1 }
 0x83d   : > { %v7105_v28 = vadd.f32 %v7104_v54, %v7042_v12  ;;  %v7044_v42 = vmax.f32 %v6814_v9, 0.0  ;;  %v6825_v10 = vadd.f32 %v8314_v15, %v12632_v1 }
 0x83e   : > { %v6816_v19 = vpop.f32.mrf.mxu1 }
 0x83f   : > { %v7106_v59 = vadd.f32 %v7105_v28, %v7043_v60  ;;  %v6817_v22 = vadd.f32 %v12632_v1, %v6816_v19  ;;  %v7047_v14 = vmax.f32 %v6825_v10, 0.0 }
 0x840   : > { %v8317_v32 = vpop.f32.mrf.mxu1 }
 0x841   : > { %v7107_v37 = vrot.slane %v7106_v59, 4  ;;  %v7045_v46 = vmax.f32 %v6817_v22, 0.0  ;;  %v6838_v30 = vadd.f32 %v8317_v32, %v12632_v1 }
 0x842   : > { %v6829_v51 = vpop.f32.mrf.mxu1 }
 0x843   : > { %v7113_v20 = vadd.f32 %v7045_v46, %v7044_v42  ;;  %v6830_v58 = vadd.f32 %v12632_v1, %v6829_v51  ;;  %v7108_v43 = vadd.f32 %v7107_v37, %v7106_v59  ;;  %v7050_v11 = vmax.f32 %v6838_v30, 0.0 }
 0x844   : > { %v8318_v27 = vpop.f32.mrf.mxu1 }
 0x845   : > { %v7114_v2 = vadd.f32 %v7113_v20, %v7046_v57  ;;  %v7048_v63 = vmax.f32 %v6830_v58, 0.0  ;;  %v7109_v31 = vrot.slane %v7108_v43, 2  ;;  %v6841_v35 = vadd.f32 %v8318_v27, %v12632_v1 }
 0x846   : > { %v6832_v41 = vpop.f32.mrf.mxu1 }
 0x847   : > { %v7115_v8 = vadd.f32 %v7114_v2, %v7047_v14  ;;  %v6833_v25 = vadd.f32 %v12632_v1, %v6832_v41  ;;  %v7110_v16 = vadd.f32 %v7109_v31, %v7108_v43  ;;  %v7051_v36 = vmax.f32 %v6841_v35, 0.0 }
 0x848   : > { %v8321_v5 = vpop.f32.mrf.mxu1 }
 0x849   : > { %v7116_v26 = vadd.f32 %v7115_v8, %v7048_v63  ;;  %v7049_v13 = vmax.f32 %v6833_v25, 0.0  ;;  %v6854_v45 = vadd.f32 %v8321_v5, %v12632_v1  ;;  %v7111_v23 = vrot.slane %v7110_v16, 1 }
 0x84a   : > { %v6845_v6 = vpop.f32.mrf.mxu1 }
 0x84b   : > { %v7117_v0 = vadd.f32 %v7116_v26, %v7049_v13  ;;  %v6846_v34 = vadd.f32 %v12632_v1, %v6845_v6  ;;  %v7054_v18 = vmax.f32 %v6854_v45, 0.0  ;;  %v7112_v50 = vadd.f32 %v7111_v23, %v7110_v16 }
 0x84c   : > { %v8322_v3 = vpop.f32.mrf.mxu1 }
 0x84d   : > { %v7118_v40 = vadd.f32 %v7117_v0, %v7050_v11  ;;  %v7052_v55 = vmax.f32 %v6846_v34, 0.0  ;;  %v6857_v17 = vadd.f32 %v8322_v3, %v12632_v1  ;;  %v7205_v59 = vmul.f32 0.015625, %v7112_v50 }
 0x84e   : > { %v6848_v62 = vpop.f32.mrf.mxu1 }
 0x84f   : > { %v7119_v24 = vadd.f32 %v7118_v40, %v7051_v36  ;;  %v6849_v49 = vadd.f32 %v12632_v1, %v6848_v62  ;;  %v7055_v44 = vmax.f32 %v6857_v17, 0.0  ;;  %v7213_v20 = vpack.c.bf16 %v7205_v59, %v7205_v59 }
 0x850   : > { %v8325_v33 = vpop.f32.mrf.mxu1 }
 0x851   : > { %v7120_v29 = vrot.slane %v7119_v24, 4  ;;  %v7053_v61 = vmax.f32 %v6849_v49, 0.0  ;;  %v6870_v54 = vadd.f32 %v8325_v33, %v12632_v1  ;;  %v7252_v25 = vunpack.c.l.b16 %v7213_v20 }
 0x852   : > { %v6861_v39 = vpop.f32.mrf.mxu1 }
 0x853   : > { %v7121_v53 = vadd.f32 %v7120_v29, %v7119_v24  ;;  %v7126_v47 = vadd.f32 %v7053_v61, %v7052_v55  ;;  %v6862_v48 = vadd.f32 %v12632_v1, %v6861_v39  ;;  %v7058_v51 = vmax.f32 %v6870_v54, 0.0  ;;  %v8591_v61 = vld [vmem:[%s12800_s17 + $0x18] sm:$0xff]  }
 0x854   : > { %v8326_v21 = vpop.f32.mrf.mxu1  ;;  %8376 = vmatpush3.bf16.msra.mxu0 %v8591_v61 }
 0x855   : > { %v7122_v52 = vrot.slane %v7121_v53, 2  ;;  %v7127_v12 = vadd.f32 %v7126_v47, %v7054_v18  ;;  %v7056_v28 = vmax.f32 %v6862_v48, 0.0  ;;  %v6873_v37 = vadd.f32 %v8326_v21, %v12632_v1  ;;  %v8592_v48 = vld [vmem:[%s12800_s17 + $0x10] sm:$0xff]   ;;  %8377 = vmatprep.subr.bf16.mxu0 %v9427_v7 }
 0x856   : > { %v6864_v15 = vpop.f32.mrf.mxu1 }
 0x857   : > { %v7123_v60 = vadd.f32 %v7122_v52, %v7121_v53  ;;  %v7128_v9 = vadd.f32 %v7127_v12, %v7055_v44  ;;  %v6865_v19 = vadd.f32 %v12632_v1, %v6864_v15  ;;  %v7059_v14 = vmax.f32 %v6873_v37, 0.0 }
 0x858   : > { %v8329_v38 = vpop.f32.mrf.mxu1  ;;  %8378 = vmatpush3.bf16.msra.mxu0 %v8592_v48 }
 0x859   : > { %v7124_v22 = vrot.slane %v7123_v60, 1  ;;  %v7129_v32 = vadd.f32 %v7128_v9, %v7056_v28  ;;  %v7057_v42 = vmax.f32 %v6865_v19, 0.0  ;;  %v6886_v63 = vadd.f32 %v8329_v38, %v12632_v1  ;;  %8379 = vmatprep.subr.bf16.mxu0 %v9427_v7 }
 0x85a   : > { %v6877_v10 = vpop.f32.mrf.mxu1 }
 0x85b   : > { %v7125_v46 = vadd.f32 %v7124_v22, %v7123_v60  ;;  %v7130_v57 = vadd.f32 %v7129_v32, %v7057_v42  ;;  %v6878_v58 = vadd.f32 %v12632_v1, %v6877_v10  ;;  %v7062_v0 = vmax.f32 %v6886_v63, 0.0 }
 0x85c   : > { %v8330_v43 = vpop.f32.mrf.mxu1 }
 0x85d   : > { %v7206_v27 = vmul.f32 0.015625, %v7125_v46  ;;  %v7131_v2 = vadd.f32 %v7130_v57, %v7058_v51  ;;  %v7060_v31 = vmax.f32 %v6878_v58, 0.0  ;;  %v6889_v26 = vadd.f32 %v8330_v43, %v12632_v1  ;;  %v8593_v58 = vld [vmem:[%s12800_s17 + $0x8] sm:$0xff]  }
 0x85e   : > { %v6880_v41 = vpop.f32.mrf.mxu1  ;;  %8380 = vmatpush3.bf16.msra.mxu0 %v8593_v58 }
 0x85f   : > { %v7214_v56 = vpack.c.bf16 %v7206_v27, %v7206_v27  ;;  %v7132_v30 = vadd.f32 %v7131_v2, %v7059_v14  ;;  %v6881_v8 = vadd.f32 %v12632_v1, %v6880_v41  ;;  %v7063_v40 = vmax.f32 %v6889_v26, 0.0  ;;  %v8594_v27 = vld [vmem:[%s12800_s17] sm:$0xff]   ;;  %8381 = vmatprep.subr.bf16.mxu0 %v9427_v7 }
 0x861   : > { %v7253_v5 = vunpack.c.l.b16 %v7214_v56  ;;  %v7133_v4 = vrot.slane %v7132_v30, 4  ;;  %v7061_v35 = vmax.f32 %v6881_v8, 0.0  ;;  %v8333_v13 = vpop.f32.mrf.mxu1 }
 0x862   : > { %v6902_v55 = vadd.f32 %v8333_v13, %v12632_v1  ;;  %8382 = vmatpush3.bf16.msra.mxu0 %v8594_v27 }
 0x863   : > { %v7261_v6 = vsel %vm7260_vm2, %v7253_v5, %v7252_v25  ;;  %v7134_v11 = vadd.f32 %v7133_v4, %v7132_v30  ;;  %v7139_v16 = vadd.f32 %v7061_v35, %v7060_v31  ;;  %v6893_v3 = vpop.f32.mrf.mxu1 }
 0x864   : > { %v6894_v62 = vadd.f32 %v12632_v1, %v6893_v3  ;;  %v7066_v21 = vmax.f32 %v6902_v55, 0.0 }
 0x865   : > { %v7135_v36 = vrot.slane %v7134_v11, 2  ;;  %v7140_v34 = vadd.f32 %v7139_v16, %v7062_v0  ;;  %v8334_v24 = vpop.f32.mrf.mxu1 }
 0x866   : > { %v7064_v49 = vmax.f32 %v6894_v62, 0.0  ;;  %v6905_v18 = vadd.f32 %v8334_v24, %v12632_v1 }
 0x867   : > { %v7136_v45 = vadd.f32 %v7135_v36, %v7134_v11  ;;  %v7141_v23 = vadd.f32 %v7140_v34, %v7063_v40  ;;  %v6896_v33 = vpop.f32.mrf.mxu1 }
 0x868   : > { %v6897_v17 = vadd.f32 %v12632_v1, %v6896_v33  ;;  %v7067_v12 = vmax.f32 %v6905_v18, 0.0 }
 0x869   : > { %v7137_v29 = vrot.slane %v7136_v45, 1  ;;  %v7142_v53 = vadd.f32 %v7141_v23, %v7064_v49 }
 0x86a   : > { %v7065_v47 = vmax.f32 %v6897_v17, 0.0 }
 0x86b   : > { %v7138_v39 = vadd.f32 %v7137_v29, %v7136_v45 }
 0x86c   : > { %v7143_v52 = vadd.f32 %v7142_v53, %v7065_v47  ;;  %v8337_v37 = vpop.f32.mrf.mxu1 }
 0x86d   : > { %v7207_v50 = vmul.f32 0.015625, %v7138_v39  ;;  %v6918_v24 = vadd.f32 %v8337_v37, %v12632_v1 }
 0x86e   : > { %v7144_v54 = vadd.f32 %v7143_v52, %v7066_v21  ;;  %v6909_v46 = vpop.f32.mrf.mxu1 }
 0x86f   : > { %v7215_v44 = vpack.c.bf16 %v7207_v50, %v7207_v50  ;;  %v6910_v0 = vadd.f32 %v12632_v1, %v6909_v46  ;;  %v7070_v18 = vmax.f32 %v6918_v24, 0.0 }
 0x870   : > { %v7145_v60 = vadd.f32 %v7144_v54, %v7067_v12  ;;  %v8338_v20 = vpop.f32.mrf.mxu1 }
 0x871   : > { %v7254_v15 = vunpack.c.l.b16 %v7215_v44  ;;  %v7068_v45 = vmax.f32 %v6910_v0, 0.0  ;;  %v6921_v48 = vadd.f32 %v8338_v20, %v12632_v1 }
 0x872   : > { %v7146_v9 = vrot.slane %v7145_v60, 4  ;;  %v6912_v43 = vpop.f32.mrf.mxu1 }
 0x873   : > { %v7263_v28 = vsel %vm7262_vm3, %v7254_v15, %v7261_v6  ;;  %v6913_v7 = vadd.f32 %v12632_v1, %v6912_v43 }
 0x874   : > { %v7147_v19 = vadd.f32 %v7146_v9, %v7145_v60 }
 0x875   : > { %v7069_v36 = vmax.f32 %v6913_v7, 0.0 }
 0x876   : > { %v7148_v59 = vrot.slane %v7147_v19, 2 }
 0x877   : > { %v7152_v29 = vadd.f32 %v7069_v36, %v7068_v45 }
 0x878   : > { %v7149_v38 = vadd.f32 %v7148_v59, %v7147_v19 }
 0x879   : > { %v7153_v52 = vadd.f32 %v7152_v29, %v7070_v18 }
 0x87a   : > { %v7150_v22 = vrot.slane %v7149_v38, 1 }
 0x87c   : > { %v7151_v32 = vadd.f32 %v7150_v22, %v7149_v38  ;;  %v12692_v14 = vpop.f32.mrf.mxu1  ;;  %v7071_v22 = vmax.f32 %v6921_v48, 0.0 }
 0x87e   : > { %v7208_v42 = vmul.f32 0.015625, %v7151_v32  ;;  %v6925_v2 = vpop.f32.mrf.mxu1 }
 0x87f   : > { %v6926_v50 = vadd.f32 %v12632_v1, %v6925_v2 }
 0x880   : > { %v7216_v10 = vpack.c.bf16 %v7208_v42, %v7208_v42  ;;  %v12694_v41 = vpop.f32.mrf.mxu1 }
 0x881   : > { %v7072_v32 = vmax.f32 %v6926_v50, 0.0  ;;  %v6937_v0 = vadd.f32 %v12694_v41, %v12632_v1 }
 0x882   : > { %v7255_v51 = vunpack.c.l.b16 %v7216_v10  ;;  %v6928_v56 = vpop.f32.mrf.mxu1 }
 0x883   : > { %v6929_v60 = vadd.f32 %v12632_v1, %v6928_v56  ;;  %v6934_v56 = vadd.f32 %v12692_v14, %v12632_v1 }
 0x884   : > { %v12682_v57 = vsel %vm7264_vm4, %v7255_v51, %v7263_v28  ;;  %v7154_v51 = vadd.f32 %v7153_v52, %v7071_v22 }
 0x885   : > { %v7073_v20 = vmax.f32 %v6929_v60, 0.0 }
 0x88f   : > { %v8345_v30 = vpop.f32.mrf.mxu1 }
 0x890   : > { %v6950_v55 = vadd.f32 %v8345_v30, %v12632_v1  ;;  %v7155_v30 = vadd.f32 %v7154_v51, %v7072_v32 }
 0x891   : > { %v6941_v63 = vpop.f32.mrf.mxu1 }
 0x892   : > { %v6942_v40 = vadd.f32 %v12632_v1, %v6941_v63  ;;  %v7078_v44 = vmax.f32 %v6950_v55, 0.0 }
 0x893   : > { %v8346_v8 = vpop.f32.mrf.mxu1 }
 0x894   : > { %v7076_v17 = vmax.f32 %v6942_v40, 0.0  ;;  %v6953_v12 = vadd.f32 %v8346_v8, %v12632_v1 }
 0x895   : > { %v6944_v25 = vpop.f32.mrf.mxu1 }
 0x896   : > { %v6945_v16 = vadd.f32 %v12632_v1, %v6944_v25  ;;  %v7079_v10 = vmax.f32 %v6953_v12, 0.0 }
 0x898   : > { %v7077_v49 = vmax.f32 %v6945_v16, 0.0 }
 0x89a   : > { %v7165_v47 = vadd.f32 %v7077_v49, %v7076_v17 }
 0x89c   : > { %v7166_v59 = vadd.f32 %v7165_v47, %v7078_v44 }
 0x89e   : > { %v7167_v27 = vadd.f32 %v7166_v59, %v7079_v10 }
 0x8a4   : > { %v8349_v31 = vpop.f32.mrf.mxu1 }
 0x8a5   : > { %v6966_v25 = vadd.f32 %v8349_v31, %v12632_v1 }
 0x8a6   : > { %v6957_v5 = vpop.f32.mrf.mxu1 }
 0x8a7   : > { %v6958_v54 = vadd.f32 %v12632_v1, %v6957_v5  ;;  %v7082_v36 = vmax.f32 %v6966_v25, 0.0 }
 0x8a8   : > { %v12696_v4 = vpop.f32.mrf.mxu1 }
 0x8a9   : > { %v7080_v46 = vmax.f32 %v6958_v54, 0.0  ;;  %v6969_v14 = vadd.f32 %v12696_v4, %v12632_v1 }
 0x8aa   : > { %v6960_v26 = vpop.f32.mrf.mxu1 }
 0x8ab   : > { %v6961_v38 = vadd.f32 %v12632_v1, %v6960_v26  ;;  %v7168_v5 = vadd.f32 %v7167_v27, %v7080_v46  ;;  %v7156_v26 = vadd.f32 %v7155_v30, %v7073_v20 }
 0x8ad   : > { %v7081_v2 = vmax.f32 %v6961_v38, 0.0 }
 0x8af   : > { %v7169_v7 = vadd.f32 %v7168_v5, %v7081_v2 }
 0x8b1   : > { %v7170_v45 = vadd.f32 %v7169_v7, %v7082_v36 }
 0x8b7   : > { %v8353_v35 = vpop.f32.mrf.mxu1 }
 0x8b8   : > { %v6982_v39 = vadd.f32 %v8353_v35, %v12632_v1 }
 0x8b9   : > { %v6973_v13 = vpop.f32.mrf.mxu1 }
 0x8ba   : > { %v6974_v62 = vadd.f32 %v12632_v1, %v6973_v13  ;;  %v7086_v28 = vmax.f32 %v6982_v39, 0.0 }
 0x8bb   : > { %v8354_v6 = vpop.f32.mrf.mxu1 }
 0x8bc   : > { %v7084_v53 = vmax.f32 %v6974_v62, 0.0  ;;  %v6985_v9 = vadd.f32 %v8354_v6, %v12632_v1 }
 0x8bd   : > { %v6976_v11 = vpop.f32.mrf.mxu1 }
 0x8be   : > { %v6977_v3 = vadd.f32 %v12632_v1, %v6976_v11  ;;  %v7087_v58 = vmax.f32 %v6985_v9, 0.0  ;;  %v7074_v11 = vmax.f32 %v6934_v56, 0.0 }
 0x8c0   : > { %v7085_v33 = vmax.f32 %v6977_v3, 0.0  ;;  %v7157_v40 = vadd.f32 %v7156_v26, %v7074_v11 }
 0x8c2   : > { %v7178_v21 = vadd.f32 %v7085_v33, %v7084_v53  ;;  %v7083_v33 = vmax.f32 %v6969_v14, 0.0 }
 0x8c4   : > { %v7179_v37 = vadd.f32 %v7178_v21, %v7086_v28  ;;  %v7171_v17 = vadd.f32 %v7170_v45, %v7083_v33 }
 0x8c6   : > { %v7180_v63 = vadd.f32 %v7179_v37, %v7087_v58  ;;  %v7172_v47 = vrot.slane %v7171_v17, 4 }
 0x8c7   : > { %v8357_v34 = vpop.f32.mrf.mxu1 }
 0x8c8   : > { %v6998_v35 = vadd.f32 %v8357_v34, %v12632_v1  ;;  %v7075_v34 = vmax.f32 %v6937_v0, 0.0  ;;  %v7173_v12 = vadd.f32 %v7172_v47, %v7171_v17 }
 0x8c9   : > { %v6989_v23 = vpop.f32.mrf.mxu1 }
 0x8ca   : > { %v6990_v19 = vadd.f32 %v12632_v1, %v6989_v23  ;;  %v7090_v62 = vmax.f32 %v6998_v35, 0.0  ;;  %v7158_v55 = vadd.f32 %v7157_v40, %v7075_v34  ;;  %v7174_v22 = vrot.slane %v7173_v12, 2 }
 0x8cb   : > { %v8358_v61 = vpop.f32.mrf.mxu1 }
 0x8cc   : > { %v7088_v43 = vmax.f32 %v6990_v19, 0.0  ;;  %v7001_v31 = vadd.f32 %v8358_v61, %v12632_v1  ;;  %v7159_v4 = vrot.slane %v7158_v55, 4 }
 0x8cd   : > { %v6992_v15 = vpop.f32.mrf.mxu1 }
 0x8ce   : > { %v6993_v42 = vadd.f32 %v12632_v1, %v6992_v15  ;;  %v7181_v13 = vadd.f32 %v7180_v63, %v7088_v43  ;;  %v7091_v41 = vmax.f32 %v7001_v31, 0.0  ;;  %v7160_v52 = vadd.f32 %v7159_v4, %v7158_v55 }
 0x8cf   : > { %v7175_v43 = vadd.f32 %v7174_v22, %v7173_v12 }
 0x8d0   : > { %v7089_v8 = vmax.f32 %v6993_v42, 0.0  ;;  %v7161_v59 = vrot.slane %v7160_v52, 2 }
 0x8d1   : > { %v7176_v5 = vrot.slane %v7175_v43, 1 }
 0x8d2   : > { %v7182_v16 = vadd.f32 %v7181_v13, %v7089_v8  ;;  %v7162_v58 = vadd.f32 %v7161_v59, %v7160_v52 }
 0x8d3   : > { %v7177_v11 = vadd.f32 %v7176_v5, %v7175_v43 }
 0x8d4   : > { %v7183_v49 = vadd.f32 %v7182_v16, %v7090_v62  ;;  %v7163_v25 = vrot.slane %v7162_v58, 1 }
 0x8d5   : > { %v7210_v14 = vmul.f32 0.015625, %v7177_v11 }
 0x8d6   : > { %v7184_v53 = vadd.f32 %v7183_v49, %v7091_v41  ;;  %v7164_v7 = vadd.f32 %v7163_v25, %v7162_v58 }
 0x8d7   : > { %v8361_v6 = vpop.f32.mrf.mxu1 }
 0x8d8   : > { %v7014_v48 = vadd.f32 %v8361_v6, %v12632_v1  ;;  %v7185_v50 = vrot.slane %v7184_v53, 4  ;;  %v7209_v36 = vmul.f32 0.015625, %v7164_v7 }
 0x8d9   : > { %v7005_v3 = vpop.f32.mrf.mxu1 }
 0x8da   : > { %v7006_v39 = vadd.f32 %v12632_v1, %v7005_v3  ;;  %v7094_v54 = vmax.f32 %v7014_v48, 0.0  ;;  %v7186_v60 = vadd.f32 %v7185_v50, %v7184_v53  ;;  %v7217_v31 = vpack.c.bf16 %v7209_v36, %v7209_v36  ;;  %v7624_v48 = vld [vmem:[%s12801_s18] ss:$0 sm:$0xff] }
 0x8db   : > { %v8362_v24 = vpop.f32.mrf.mxu1 }
 0x8dc   : > { %v7092_v61 = vmax.f32 %v7006_v39, 0.0  ;;  %v7017_v15 = vadd.f32 %v8362_v24, %v12632_v1  ;;  %v7187_v42 = vrot.slane %v7186_v60, 2  ;;  %v7218_v24 = vpack.c.bf16 %v7210_v14, %v7210_v14 }
 0x8dd   : > { %v7008_v23 = vpop.f32.mrf.mxu1 }
 0x8de   : > { %v7009_v29 = vadd.f32 %v12632_v1, %v7008_v23  ;;  %v7095_v32 = vmax.f32 %v7017_v15, 0.0  ;;  %v7188_v30 = vadd.f32 %v7187_v42, %v7186_v60  ;;  %v7256_v23 = vunpack.c.l.b16 %v7217_v31 }
 0x8df   : > { %v7257_v33 = vunpack.c.l.b16 %v7218_v24 }
 0x8e0   : > { %v7093_v18 = vmax.f32 %v7009_v29, 0.0  ;;  %v7189_v13 = vrot.slane %v7188_v30, 1  ;;  %v7267_v17 = vsel %vm7266_vm6, %v7256_v23, %v12682_v57 }
 0x8e1   : > { %v7269_v39 = vsel %vm7268_vm7, %v7257_v33, %v7267_v17 }
 0x8e2   : > { %v7191_v21 = vadd.f32 %v7093_v18, %v7092_v61  ;;  %v7190_v16 = vadd.f32 %v7189_v13, %v7188_v30 }
 0x8e4   : > { %v7192_v9 = vadd.f32 %v7191_v21, %v7094_v54  ;;  %v7211_v62 = vmul.f32 0.015625, %v7190_v16 }
 0x8e6   : > { %v7193_v51 = vadd.f32 %v7192_v9, %v7095_v32  ;;  %v7219_v34 = vpack.c.bf16 %v7211_v62, %v7211_v62 }
 0x8e7   : > { %v8365_v44 = vpop.f32.mrf.mxu1 }
 0x8e8   : > { %v7030_v46 = vadd.f32 %v8365_v44, %v12632_v1  ;;  %v7258_v55 = vunpack.c.l.b16 %v7219_v34 }
 0x8e9   : > { %v7021_v28 = vpop.f32.mrf.mxu1 }
 0x8ea   : > { %v7022_v19 = vadd.f32 %v12632_v1, %v7021_v28  ;;  %v7098_v63 = vmax.f32 %v7030_v46, 0.0  ;;  %v7271_v18 = vsel %vm7270_vm8, %v7258_v55, %v7269_v39 }
 0x8eb   : > { %v8366_v38 = vpop.f32.mrf.mxu1 }
 0x8ec   : > { %v7096_v37 = vmax.f32 %v7022_v19, 0.0  ;;  %v7033_v2 = vadd.f32 %v8366_v38, %v12632_v1 }
 0x8ed   : > { %v7024_v10 = vpop.f32.mrf.mxu1 }
 0x8ee   : > { %v7025_v20 = vadd.f32 %v12632_v1, %v7024_v10  ;;  %v7194_v27 = vadd.f32 %v7193_v51, %v7096_v37  ;;  %v7099_v26 = vmax.f32 %v7033_v2, 0.0 }
 0x8f0   : > { %v7097_v56 = vmax.f32 %v7025_v20, 0.0 }
 0x8f2   : > { %v7195_v8 = vadd.f32 %v7194_v27, %v7097_v56 }
 0x8f4   : > { %v7196_v35 = vadd.f32 %v7195_v8, %v7098_v63 }
 0x8f6   : > { %v7197_v6 = vadd.f32 %v7196_v35, %v7099_v26 }
 0x8f8   : > { %v7198_v0 = vrot.slane %v7197_v6, 4 }
 0x8fa   : > { %v7199_v3 = vadd.f32 %v7198_v0, %v7197_v6 }
 0x8fc   : > { %v7200_v40 = vrot.slane %v7199_v3, 2 }
 0x8fe   : > { %v7201_v1 = vadd.f32 %v7200_v40, %v7199_v3 }
 0x900   : > { %v7202_v45 = vrot.slane %v7201_v1, 1 }
 0x902   : > { %v7203_v49 = vadd.f32 %v7202_v45, %v7201_v1 }
 0x904   : > { %v7212_v29 = vmul.f32 0.015625, %v7203_v49 }
 0x906   : > { %v7220_v41 = vpack.c.bf16 %v7212_v29, %v7212_v29 }
 0x908   : > { %v7259_v53 = vunpack.c.l.b16 %v7220_v41 }
 0x90a   : > { %v7273_v4 = vsel %vm7272_vm9, %v7259_v53, %v7271_v18 }
 0x90b   : > { %v7274_v47 = vpack.c.b16 %v7273_v4, %v7273_v4 }
 0x90d   : > { %8384 = vmatmul.mubr.bf16.vlgmr.msra.gmra.mxu0 %v7274_v47 }
 0x9cd   : > { %v7358_v61 = vpop.f32.mrf.mxu0 }
 0x9ce   : > { %v7359_v57 = vadd.f32 %v7624_v48, %v7358_v61 }
 0x9cf   : > { %v8385_v50 = vpop.f32.mrf.mxu0 }
 0x9d0   : > { %7365 = vst.msk [vmem:[%s598_s26] sm:$0xff] %vm7364_vm10, %v7359_v57 }
 0x9d1   : > { %v7361_v21 = vpop.f32.mrf.mxu0 }
 0x9d2   : > { %9377 = shalt.err (!%p9374_p3)
}
 0x9d3   : > { %s9378_s2 = scalar_lea.hbm %s12742_s4, 128  ;;  %s9382_s28 = scalar_lea.hbm %s13411_s23, 256 }
 0x9d4   : > { %p9379_p4 = scmp.ne.s32.totalorder %s12742_s4, %s9378_s2  ;;  %p9383_p9 = scmp.lt.s32.totalorder %s12742_s4, %s13411_s23 }
 0x9d5   : > { %p9384_p10 = scmp.lt.s32.totalorder %s9382_s28, %s9378_s2 }
 0x9d6   : > { %p9380_p7 = pnand %p9379_p4, %p9568_p5 }
 0x9d7   : > { %p9385_p11 = por %p9384_p10, %p9383_p9 }
 0x9d8   : > { %p9381_p8 = pneg %p9380_p7 }
 0x9da   : > { %p9386_p12 = pnand %p9385_p11, %p9381_p8 }
 0x9dc   : > { %9389 = shalt.err (!%p9386_p12)
}
 0x9dd   : > { %8387 = dma.vmem_to_hbm [thread:$0]  (%p9568_p5), %s12744_s19, 128, %s12742_s4, %s7367_s20   ;;  %v8386_v52 = vpop.f32.mrf.mxu0 }
 0x9de PF: > { %s13412_s1 = sld [smem:[#allocation7_spill]] }
 0x9df   : > { %s13413_s22 = sld [smem:[#allocation5_spill]] }
 0x9e4   : > { %p8393_p13 = scmp.ge.s32.totalorder %s13412_s1, 2 }
 0x9e5   : > { %s7392_s25 = sand.u32 1, %s13413_s22  }
 0x9e6   : > { %p8390_p0 = pnand %p8393_p13, %p9572_p6  ;;  %s7393_s26 = scalar_lea.sflag [#allocation3], %s7392_s25 }
 0x9e8   : > { %p8391_p1 = pneg %p8390_p0 }
 0x9ea   : > { %9407 = dma.done.wait (%p8391_p1), %s7393_s26, 128  }
 0x9eb   : > { %9409 = vsyncadd (%p8391_p1), %s7393_s26, 4294967168  ;;  %s13415_s21 = sld [smem:[#allocation8_spill]]  ;;  %s13418_s0 = smov %s9416_s30 }
 0x9ec   : > { %s13416_s2 = sld [smem:[#allocation6_spill]] }
 0x9ed   : > { %s13417_s20 = sld [smem:[#allocation9_spill]] }
 0x9f1   : > { %p29_p2 = scmp.ge.s32.totalorder %s13415_s21, 4  }
 0x9f2   : > { %s13419_s30 = smov %s13416_s2 }
 0x9f3   :  { %31 = sbr.rel (!%p29_p2) target bundleno = 10 (0xa), region = 131 }
 0x9f8   :  { %7398 = vsyncpa [#allocation3], 1 }
 0x9f9   :  { %7400 = vsyncpa [#allocation3 + $0x1], 1 }

</bundles_post_ra>
